<compile_context>
chip_gen: v7x
topology: tpu7x:2x2x1
jax: 0.10.0
libtpu: 0.0.40
codegen_flags: <defaults>
</compile_context>

<pallas_src>
import functools

import jax
import jax.numpy as jnp
from jax.experimental import pallas as pl
from jax.experimental.pallas import tpu as pltpu

BN_EPS = 1e-5


def _round_up(x, m):
    return (x + m - 1) // m * m


@functools.lru_cache(maxsize=1)
def _vmem_limit_bytes():
    cap = 64 * 1024 * 1024  # conservative fallback (v7x physical VMEM)
    try:
        cap = int(pltpu.get_tpu_info().vmem_capacity_bytes)
    except Exception:
        pass
    return int(min(cap * 3 // 4, 96 * 1024 * 1024))


def _full_spec(shape):
    nd = len(shape)
    return pl.BlockSpec(shape, lambda *_: (0,) * nd)


# ----------------------------------------------------------------------------
# Tiled GEMM kernel: out = relu?( A @ B + bias [+ residual] )
# ----------------------------------------------------------------------------
def _gemm_kernel(a_ref, b_ref, bias_ref, *rest, relu, has_residual):
    if has_residual:
        r_ref, o_ref, acc_ref = rest
    else:
        o_ref, acc_ref = rest

    @pl.when(pl.program_id(2) == 0)
    def _init():
        acc_ref[...] = jnp.zeros_like(acc_ref)

    acc_ref[...] += jnp.dot(a_ref[...], b_ref[...],
                            preferred_element_type=jnp.float32)

    @pl.when(pl.program_id(2) == pl.num_programs(2) - 1)
    def _finalize():
        out = acc_ref[...] + bias_ref[...]
        if has_residual:
            out = out + r_ref[...].astype(jnp.float32)
        if relu:
            out = jnp.maximum(out, 0.0)
        o_ref[...] = out.astype(o_ref.dtype)


def matmul_bias_act(a, b, bias, *, relu, residual=None):
    """Tiled bf16 GEMM with f32 accumulation; bias/residual/ReLU fused."""
    m, k = a.shape
    n = b.shape[1]
    tm = 128 if m >= 128 else _round_up(m, 8)
    tn = 128
    kp = _round_up(k, 128)
    tk = 256 if kp % 256 == 0 else 128
    mp = _round_up(m, tm)
    np_ = _round_up(n, tn)

    a_p = jnp.pad(a.astype(jnp.bfloat16), ((0, mp - m), (0, kp - k)))
    b_p = jnp.pad(b.astype(jnp.bfloat16), ((0, kp - k), (0, np_ - n)))
    bias_p = jnp.pad(bias.astype(jnp.float32), (0, np_ - n)).reshape(1, np_)

    args = [a_p, b_p, bias_p]
    in_specs = [
        pl.BlockSpec((tm, tk), lambda i, j, kk: (i, kk)),
        pl.BlockSpec((tk, tn), lambda i, j, kk: (kk, j)),
        pl.BlockSpec((1, tn), lambda i, j, kk: (0, j)),
    ]
    has_residual = residual is not None
    if has_residual:
        r_p = jnp.pad(residual.astype(jnp.bfloat16),
                      ((0, mp - m), (0, np_ - n)))
        args.append(r_p)
        in_specs.append(pl.BlockSpec((tm, tn), lambda i, j, kk: (i, j)))

    kernel = functools.partial(_gemm_kernel, relu=relu,
                               has_residual=has_residual)
    out = pl.pallas_call(
        kernel,
        out_shape=jax.ShapeDtypeStruct((mp, np_), jnp.bfloat16),
        grid=(mp // tm, np_ // tn, kp // tk),
        in_specs=in_specs,
        out_specs=pl.BlockSpec((tm, tn), lambda i, j, kk: (i, j)),
        scratch_shapes=[pltpu.VMEM((tm, tn), jnp.float32)],
        compiler_params=pltpu.CompilerParams(
            dimension_semantics=("parallel", "parallel", "arbitrary"),
            vmem_limit_bytes=_vmem_limit_bytes(),
        ),
    )(*args)
    if mp != m or np_ != n:
        out = out[:m, :n]
    return out


# ----------------------------------------------------------------------------
# Fused stride-1 3x3 conv + folded BN (+ residual) (+ ReLU) kernel.
# Reads the padded NHWC activation directly (no im2col HBM round-trip).
# ----------------------------------------------------------------------------
def _conv3x3_s1_kernel(x_ref, w_ref, bias_ref, *rest, relu, has_residual):
    if has_residual:
        r_ref, o_ref = rest
    else:
        (o_ref,) = rest
    _, oh, ow, oc = o_ref.shape
    c = x_ref.shape[3]

    x = x_ref[0]                                    # (H+2, W+2, C) bf16
    acc = jnp.zeros((oh * ow, oc), jnp.float32) + bias_ref[...]
    for ky in range(3):
        for kx in range(3):
            patch = jax.lax.slice(x, (ky, kx, 0), (ky + oh, kx + ow, c))
            acc = acc + jnp.dot(patch.reshape(oh * ow, c),
                                w_ref[3 * ky + kx],
                                preferred_element_type=jnp.float32)
    if has_residual:
        acc = acc + r_ref[...].reshape(oh * ow, oc).astype(jnp.float32)
    if relu:
        acc = jnp.maximum(acc, 0.0)
    o_ref[...] = acc.reshape(1, oh, ow, oc).astype(o_ref.dtype)


def _conv3x3_s1_fused(x, p, *, relu, residual=None):
    n, h, w, c = x.shape
    oc = p["w"].shape[0]
    scale = p["gamma"] * jax.lax.rsqrt(p["var"] + BN_EPS)
    w9 = (jnp.transpose(p["w"], (2, 3, 1, 0)).reshape(9, c, oc)
          * scale[None, None, :]).astype(jnp.bfloat16)
    bias = (p["beta"] + (p["b"] - p["mean"]) * scale)
    bias = bias.astype(jnp.float32).reshape(1, oc)
    xp = jnp.pad(x.astype(jnp.bfloat16), ((0, 0), (1, 1), (1, 1), (0, 0)))

    args = [xp, w9, bias]
    in_specs = [
        pl.BlockSpec((1, h + 2, w + 2, c), lambda b: (b, 0, 0, 0)),
        pl.BlockSpec((9, c, oc), lambda b: (0, 0, 0)),
        pl.BlockSpec((1, oc), lambda b: (0, 0)),
    ]
    has_residual = residual is not None
    if has_residual:
        args.append(residual.astype(jnp.bfloat16))
        in_specs.append(pl.BlockSpec((1, h, w, oc), lambda b: (b, 0, 0, 0)))

    kernel = functools.partial(_conv3x3_s1_kernel, relu=relu,
                               has_residual=has_residual)
    return pl.pallas_call(
        kernel,
        out_shape=jax.ShapeDtypeStruct((n, h, w, oc), jnp.bfloat16),
        grid=(n,),
        in_specs=in_specs,
        out_specs=pl.BlockSpec((1, h, w, oc), lambda b: (b, 0, 0, 0)),
        compiler_params=pltpu.CompilerParams(
            dimension_semantics=("parallel",),
            vmem_limit_bytes=_vmem_limit_bytes(),
        ),
    )(*args)


# ----------------------------------------------------------------------------
# im2col glue (only for stem / strided / tiny late-stage convs) + wrappers
# ----------------------------------------------------------------------------
def _im2col(x, kh, kw, stride, pad):
    n, h, w, c = x.shape
    xp = jnp.pad(x, ((0, 0), (pad, pad), (pad, pad), (0, 0)))
    oh = (h + 2 * pad - kh) // stride + 1
    ow = (w + 2 * pad - kw) // stride + 1
    cols = []
    for ky in range(kh):
        for kx in range(kw):
            v = jax.lax.slice(
                xp, (0, ky, kx, 0),
                (n, ky + (oh - 1) * stride + 1, kx + (ow - 1) * stride + 1, c),
                (1, stride, stride, 1))
            cols.append(v)
    patches = jnp.concatenate(cols, axis=-1)
    return patches.reshape(n * oh * ow, kh * kw * c), oh, ow


def conv_bn(x, p, *, stride, pad, relu, residual=None):
    """Conv + folded BN [+ residual] [+ ReLU]; picks fused or GEMM path."""
    n, h, w, c = x.shape
    k = p["w"].shape[2]
    oc = p["w"].shape[0]
    if k == 3 and stride == 1 and pad == 1 and h % 8 == 0 and w % 8 == 0:
        return _conv3x3_s1_fused(x, p, relu=relu, residual=residual)
    # Fallback: im2col + tiled GEMM (stem / strided / tiny 4x4 & 2x2 maps).
    a, oh, ow = _im2col(x.astype(jnp.bfloat16), k, k, stride, pad)
    scale = p["gamma"] * jax.lax.rsqrt(p["var"] + BN_EPS)
    w_mat = (jnp.transpose(p["w"], (2, 3, 1, 0)).reshape(k * k * c, oc)
             * scale[None, :])
    bias = p["beta"] + (p["b"] - p["mean"]) * scale
    res = None if residual is None else residual.reshape(n * oh * ow, oc)
    out = matmul_bias_act(a, w_mat, bias, relu=relu, residual=res)
    return out.reshape(n, oh, ow, oc)


def conv1x1_plain(x, w, b, *, stride):
    """1x1 conv with bias (the use_1x1conv shortcut), no BN / ReLU."""
    n = x.shape[0]
    oc, cin = w.shape[0], w.shape[1]
    xs = x[:, ::stride, ::stride, :]
    oh, ow = xs.shape[1], xs.shape[2]
    a = xs.reshape(n * oh * ow, cin)
    w_mat = jnp.transpose(w, (2, 3, 1, 0)).reshape(cin, oc)
    out = matmul_bias_act(a, w_mat, b, relu=False)
    return out.reshape(n, oh, ow, oc)


def maxpool_3x3_s2_p1(x):
    # Per review: plain-JAX maximum tree over the 9 strided taps (pure VPU,
    # XLA fuses it) instead of a 9x HBM-materialized stack + Pallas call.
    n, h, w, c = x.shape
    neg = float(jnp.finfo(x.dtype).min)
    xp = jnp.pad(x, ((0, 0), (1, 1), (1, 1), (0, 0)), constant_values=neg)
    oh = (h + 2 - 3) // 2 + 1
    ow = (w + 2 - 3) // 2 + 1
    out = None
    for ky in range(3):
        for kx in range(3):
            v = jax.lax.slice(
                xp, (0, ky, kx, 0),
                (n, ky + (oh - 1) * 2 + 1, kx + (ow - 1) * 2 + 1, c),
                (1, 2, 2, 1))
            out = v if out is None else jnp.maximum(out, v)
    return out


# ----------------------------------------------------------------------------
# Fused head: AdaptiveAvgPool2d((1,1)) + flatten + Linear(512 -> 10)
# ----------------------------------------------------------------------------
def _head_kernel(x_ref, w_ref, bias_ref, o_ref):
    inv_hw = 1.0 / x_ref.shape[1]
    feat = jnp.sum(x_ref[...].astype(jnp.float32), axis=1) * inv_hw   # (N, C)
    o_ref[...] = (jnp.dot(feat.astype(jnp.bfloat16), w_ref[...],
                          preferred_element_type=jnp.float32)
                  + bias_ref[...])


def head_avgpool_fc(x, fc_w, fc_b):
    n, h, w, c = x.shape
    ncls = fc_w.shape[0]
    npad = _round_up(ncls, 128)                 # lane-padded output (10 -> 128)
    x3 = x.reshape(n, h * w, c).astype(jnp.bfloat16)
    w_p = jnp.pad(fc_w.T.astype(jnp.bfloat16), ((0, 0), (0, npad - ncls)))
    b_p = jnp.pad(fc_b.astype(jnp.float32), (0, npad - ncls)).reshape(1, npad)
    out = pl.pallas_call(
        _head_kernel,
        out_shape=jax.ShapeDtypeStruct((n, npad), jnp.float32),
        grid=(1,),
        in_specs=[_full_spec(x3.shape), _full_spec(w_p.shape),
                  _full_spec(b_p.shape)],
        out_specs=_full_spec((n, npad)),
    )(x3, w_p, b_p)
    return out[:, :ncls]


# ----------------------------------------------------------------------------
# Parameter construction (deterministic, synthetic)
# ----------------------------------------------------------------------------
def _conv_bn_params(key, cin, cout, k):
    k1, k2, k3, k4, k5, k6 = jax.random.split(key, 6)
    fan_in = cin * k * k
    return dict(
        w=jax.random.normal(k1, (cout, cin, k, k), jnp.float32)
        * jnp.sqrt(2.0 / fan_in),
        b=0.01 * jax.random.normal(k2, (cout,), jnp.float32),
        gamma=1.0 + 0.1 * jax.random.normal(k3, (cout,), jnp.float32),
        beta=0.1 * jax.random.normal(k4, (cout,), jnp.float32),
        mean=0.1 * jax.random.normal(k5, (cout,), jnp.float32),
        var=1.0 + 0.1 * jax.random.uniform(k6, (cout,), jnp.float32),
    )


def init_params(key):
    keys = iter(jax.random.split(key, 64))

    def res_params(cin, cout, use_1x1):
        p = {
            "conv1": _conv_bn_params(next(keys), cin, cout, 3),
            "conv2": _conv_bn_params(next(keys), cout, cout, 3),
        }
        if use_1x1:
            kw, kb = jax.random.split(next(keys))
            p["conv3_w"] = jax.random.normal(
                kw, (cout, cin, 1, 1), jnp.float32) * jnp.sqrt(2.0 / cin)
            p["conv3_b"] = 0.01 * jax.random.normal(kb, (cout,), jnp.float32)
        return p

    params = {
        "b1": _conv_bn_params(next(keys), 1, 64, 7),
        "b2": [res_params(64, 64, False), res_params(64, 64, False)],
        "b3": [res_params(64, 128, True), res_params(128, 128, False)],
        "b4": [res_params(128, 256, True), res_params(256, 256, False)],
        "b5": [res_params(256, 512, True), res_params(512, 512, False)],
    }
    kw, kb = jax.random.split(next(keys))
    params["fc_w"] = jax.random.normal(kw, (10, 512), jnp.float32) * jnp.sqrt(1.0 / 512)
    params["fc_b"] = 0.01 * jax.random.normal(kb, (10,), jnp.float32)
    return params


# ----------------------------------------------------------------------------
# Forward pass (MyResNet)
# ----------------------------------------------------------------------------
def _residual_block(x, p, stride):
    y = conv_bn(x, p["conv1"], stride=stride, pad=1, relu=True)
    if "conv3_w" in p:
        shortcut = conv1x1_plain(x, p["conv3_w"], p["conv3_b"], stride=stride)
    else:
        shortcut = x
    # conv2 + folded BN, + shortcut, then ReLU — fused in one kernel.
    return conv_bn(y, p["conv2"], stride=1, pad=1, relu=True, residual=shortcut)


@jax.jit
def my_resnet_forward(x_nchw, params):
    # PyTorch NCHW input -> NHWC (channels on the lane axis), bf16 activations.
    x = jnp.transpose(x_nchw, (0, 2, 3, 1)).astype(jnp.bfloat16)

    # b1: Conv7x7 s2 p3 + BN + ReLU (tiled GEMM) + MaxPool3x3 s2 p1.
    x = conv_bn(x, params["b1"], stride=2, pad=3, relu=True)
    x = maxpool_3x3_s2_p1(x)

    # b2..b5 residual stages.
    x = _residual_block(x, params["b2"][0], 1)
    x = _residual_block(x, params["b2"][1], 1)
    x = _residual_block(x, params["b3"][0], 2)
    x = _residual_block(x, params["b3"][1], 1)
    x = _residual_block(x, params["b4"][0], 2)
    x = _residual_block(x, params["b4"][1], 1)
    x = _residual_block(x, params["b5"][0], 2)
    x = _residual_block(x, params["b5"][1], 1)

    # AdaptiveAvgPool2d((1,1)) + flatten + Linear(512 -> 10), fused.
    return head_avgpool_fc(x, params["fc_w"], params["fc_b"])


if __name__ == "__main__":
    key = jax.random.PRNGKey(0)
    k_param, k_input = jax.random.split(key)

    params = init_params(k_param)
    # Small input consistent with the module: NCHW, 1 input channel.
    x = jax.random.normal(k_input, (2, 1, 64, 64), jnp.float32)

    logits = my_resnet_forward(x, params)
    logits = jax.block_until_ready(logits)
    assert logits.shape == (2, 10)
    assert bool(jnp.all(jnp.isfinite(logits)))
    print("KERNEL_OK")
</pallas_src>

<mosaic_0001>
module attributes {stable_mosaic.version = 11 : i64} {
  func.func @_gemm_kernel(%arg0: i32, %arg1: i32, %arg2: i32, %arg3: memref<128x128xbf16, #tpu.memory_space<vmem>>, %arg4: memref<128x128xbf16, #tpu.memory_space<vmem>>, %arg5: memref<1x128xf32, #tpu.memory_space<vmem>>, %arg6: memref<128x128xbf16, #tpu.memory_space<vmem>>, %arg7: memref<128x128xf32, #tpu.memory_space<vmem>>) attributes {dimension_semantics = [#tpu.dimension_semantics<parallel>, #tpu.dimension_semantics<parallel>, #tpu.dimension_semantics<arbitrary>], iteration_bounds = array<i64: 16, 1, 1>, scalar_prefetch = 0 : i64, scratch_operands = 1 : i64, tpu.core_type = #tpu.core_type<tc>, window_params = [{transform_indices = @transform_0, window_bounds = array<i64: 128, 128>}, {transform_indices = @transform_1, window_bounds = array<i64: 128, 128>}, {transform_indices = @transform_2, window_bounds = array<i64: 1, 128>}, {transform_indices = @transform_3, window_bounds = array<i64: 128, 128>}]} {
    %c0_i32 = arith.constant 0 : i32
    %0 = arith.cmpi eq, %arg2, %c0_i32 : i32
    %1 = arith.extui %0 : i1 to i32
    %c0_i32_0 = arith.constant 0 : i32
    %2 = arith.cmpi ne, %1, %c0_i32_0 : i32
    scf.if %2 {
      %cst_10 = arith.constant 0.000000e+00 : f32
      %12 = vector.broadcast %cst_10 : f32 to vector<128x128xf32>
      %c0_11 = arith.constant 0 : index
      %c0_12 = arith.constant 0 : index
      %13 = vector.load %arg7[%c0_11, %c0_12] : memref<128x128xf32, #tpu.memory_space<vmem>>, vector<128x128xf32>
      tpu.vector_store %arg7[%c0_11, %c0_12], %12 {strides = array<i32>} : memref<128x128xf32, #tpu.memory_space<vmem>>, vector<128x128xf32>,
    } else {
    }
    %c0 = arith.constant 0 : index
    %c0_1 = arith.constant 0 : index
    %3 = vector.load %arg7[%c0, %c0_1] : memref<128x128xf32, #tpu.memory_space<vmem>>, vector<128x128xf32>
    %c0_2 = arith.constant 0 : index
    %c0_3 = arith.constant 0 : index
    %4 = vector.load %arg3[%c0_2, %c0_3] : memref<128x128xbf16, #tpu.memory_space<vmem>>, vector<128x128xbf16>
    %c0_4 = arith.constant 0 : index
    %c0_5 = arith.constant 0 : index
    %5 = vector.load %arg4[%c0_4, %c0_5] : memref<128x128xbf16, #tpu.memory_space<vmem>>, vector<128x128xbf16>
    %cst = arith.constant dense<0.000000e+00> : vector<128x128xf32>
    %6 = tpu.matmul %4, %5, %cst {dimension_numbers = #tpu.dot_dimension_numbers<[1], [0], [0], [1], [0, 0, 1, 1], [], []>} : vector<128x128xbf16>, vector<128x128xbf16>, vector<128x128xf32> -> vector<128x128xf32>
    %7 = arith.addf %3, %6 : vector<128x128xf32>
    %c0_6 = arith.constant 0 : index
    %c0_7 = arith.constant 0 : index
    %8 = vector.load %arg7[%c0_6, %c0_7] : memref<128x128xf32, #tpu.memory_space<vmem>>, vector<128x128xf32>
    tpu.vector_store %arg7[%c0_6, %c0_7], %7 {strides = array<i32>} : memref<128x128xf32, #tpu.memory_space<vmem>>, vector<128x128xf32>,
    %c0_i32_8 = arith.constant 0 : i32
    %9 = arith.cmpi eq, %arg2, %c0_i32_8 : i32
    %10 = arith.extui %9 : i1 to i32
    %c0_i32_9 = arith.constant 0 : i32
    %11 = arith.cmpi ne, %10, %c0_i32_9 : i32
    scf.if %11 {
      %c0_10 = arith.constant 0 : index
      %c0_11 = arith.constant 0 : index
      %12 = vector.load %arg7[%c0_10, %c0_11] : memref<128x128xf32, #tpu.memory_space<vmem>>, vector<128x128xf32>
      %c0_12 = arith.constant 0 : index
      %c0_13 = arith.constant 0 : index
      %13 = vector.load %arg5[%c0_12, %c0_13] : memref<1x128xf32, #tpu.memory_space<vmem>>, vector<1x128xf32>
      %14 = vector.broadcast %13 : vector<1x128xf32> to vector<128x128xf32>
      %15 = arith.addf %12, %14 : vector<128x128xf32>
      %cst_14 = arith.constant 0.000000e+00 : f32
      %16 = vector.broadcast %cst_14 : f32 to vector<128x128xf32>
      %17 = arith.maximumf %15, %16 : vector<128x128xf32>
      %18 = arith.truncf %17 : vector<128x128xf32> to vector<128x128xbf16>
      %c0_15 = arith.constant 0 : index
      %c0_16 = arith.constant 0 : index
      %19 = vector.load %arg6[%c0_15, %c0_16] : memref<128x128xbf16, #tpu.memory_space<vmem>>, vector<128x128xbf16>
      tpu.vector_store %arg6[%c0_15, %c0_16], %18 {strides = array<i32>} : memref<128x128xbf16, #tpu.memory_space<vmem>>, vector<128x128xbf16>,
    } else {
    }
    return
  }
  func.func @transform_0(%arg0: i32, %arg1: i32, %arg2: i32) -> (i32, i32) {
    %c0_i32 = arith.constant 0 : i32
    return %arg0, %arg2 : i32, i32
  }
  func.func @transform_1(%arg0: i32, %arg1: i32, %arg2: i32) -> (i32, i32) {
    %c0_i32 = arith.constant 0 : i32
    return %arg2, %arg1 : i32, i32
  }
  func.func @transform_2(%arg0: i32, %arg1: i32, %arg2: i32) -> (i32, i32) {
    %c0_i32 = arith.constant 0 : i32
    %c0_i32_0 = arith.constant 0 : i32
    return %c0_i32, %arg1 : i32, i32
  }
  func.func @transform_3(%arg0: i32, %arg1: i32, %arg2: i32) -> (i32, i32) {
    %c0_i32 = arith.constant 0 : i32
    return %arg0, %arg1 : i32, i32
  }
}

module attributes {stable_mosaic.version = 11 : i64} {
  func.func @_conv3x3_s1_kernel(%arg0: i32, %arg1: memref<1x18x18x64xbf16, #tpu.memory_space<vmem>>, %arg2: memref<9x64x64xbf16, #tpu.memory_space<vmem>>, %arg3: memref<1x64xf32, #tpu.memory_space<vmem>>, %arg4: memref<1x16x16x64xbf16, #tpu.memory_space<vmem>>, %arg5: memref<1x16x16x64xbf16, #tpu.memory_space<vmem>>) attributes {dimension_semantics = [#tpu.dimension_semantics<parallel>], iteration_bounds = array<i64: 2>, scalar_prefetch = 0 : i64, scratch_operands = 0 : i64, tpu.core_type = #tpu.core_type<tc>, window_params = [{transform_indices = @transform_0, window_bounds = array<i64: 1, 18, 18, 64>}, {pipeline_mode = #tpu.pipeline_mode<synchronous>, transform_indices = @transform_1, window_bounds = array<i64: 9, 64, 64>}, {pipeline_mode = #tpu.pipeline_mode<synchronous>, transform_indices = @transform_2, window_bounds = array<i64: 1, 64>}, {transform_indices = @transform_3, window_bounds = array<i64: 1, 16, 16, 64>}, {transform_indices = @transform_4, window_bounds = array<i64: 1, 16, 16, 64>}]} {
    %c0 = arith.constant 0 : index
    %c0_0 = arith.constant 0 : index
    %c0_1 = arith.constant 0 : index
    %c0_2 = arith.constant 0 : index
    %0 = vector.load %arg1[%c0, %c0_0, %c0_1, %c0_2] : memref<1x18x18x64xbf16, #tpu.memory_space<vmem>>, vector<1x18x18x64xbf16>
    %1 = vector.shape_cast %0 : vector<1x18x18x64xbf16> to vector<18x18x64xbf16>
    %cst = arith.constant 0.000000e+00 : f32
    %2 = vector.broadcast %cst : f32 to vector<256x64xf32>
    %c0_3 = arith.constant 0 : index
    %c0_4 = arith.constant 0 : index
    %3 = vector.load %arg3[%c0_3, %c0_4] : memref<1x64xf32, #tpu.memory_space<vmem>>, vector<1x64xf32>
    %4 = vector.broadcast %3 : vector<1x64xf32> to vector<256x64xf32>
    %5 = arith.addf %2, %4 : vector<256x64xf32>
    %6 = vector.extract_strided_slice %1 {offsets = [0, 0, 0], sizes = [16, 16, 64], strides = [1, 1, 1]} : vector<18x18x64xbf16> to vector<16x16x64xbf16>
    %7 = vector.shape_cast %6 : vector<16x16x64xbf16> to vector<256x64xbf16>
    %c0_5 = arith.constant 0 : index
    %c0_6 = arith.constant 0 : index
    %c0_7 = arith.constant 0 : index
    %8 = vector.load %arg2[%c0_5, %c0_6, %c0_7] : memref<9x64x64xbf16, #tpu.memory_space<vmem>>, vector<1x64x64xbf16>
    %9 = vector.shape_cast %8 : vector<1x64x64xbf16> to vector<64x64xbf16>
    %cst_8 = arith.constant dense<0.000000e+00> : vector<256x64xf32>
    %10 = tpu.matmul %7, %9, %cst_8 {dimension_numbers = #tpu.dot_dimension_numbers<[1], [0], [0], [1], [0, 0, 1, 1], [], []>} : vector<256x64xbf16>, vector<64x64xbf16>, vector<256x64xf32> -> vector<256x64xf32>
    %11 = arith.addf %5, %10 : vector<256x64xf32>
    %12 = vector.extract_strided_slice %1 {offsets = [0, 1, 0], sizes = [16, 16, 64], strides = [1, 1, 1]} : vector<18x18x64xbf16> to vector<16x16x64xbf16>
    %13 = vector.shape_cast %12 : vector<16x16x64xbf16> to vector<256x64xbf16>
    %c1 = arith.constant 1 : index
    %c0_9 = arith.constant 0 : index
    %c0_10 = arith.constant 0 : index
    %14 = vector.load %arg2[%c1, %c0_9, %c0_10] : memref<9x64x64xbf16, #tpu.memory_space<vmem>>, vector<1x64x64xbf16>
    %15 = vector.shape_cast %14 : vector<1x64x64xbf16> to vector<64x64xbf16>
    %cst_11 = arith.constant dense<0.000000e+00> : vector<256x64xf32>
    %16 = tpu.matmul %13, %15, %cst_11 {dimension_numbers = #tpu.dot_dimension_numbers<[1], [0], [0], [1], [0, 0, 1, 1], [], []>} : vector<256x64xbf16>, vector<64x64xbf16>, vector<256x64xf32> -> vector<256x64xf32>
    %17 = arith.addf %11, %16 : vector<256x64xf32>
    %18 = vector.extract_strided_slice %1 {offsets = [0, 2, 0], sizes = [16, 16, 64], strides = [1, 1, 1]} : vector<18x18x64xbf16> to vector<16x16x64xbf16>
    %19 = vector.shape_cast %18 : vector<16x16x64xbf16> to vector<256x64xbf16>
    %c2 = arith.constant 2 : index
    %c0_12 = arith.constant 0 : index
    %c0_13 = arith.constant 0 : index
    %20 = vector.load %arg2[%c2, %c0_12, %c0_13] : memref<9x64x64xbf16, #tpu.memory_space<vmem>>, vector<1x64x64xbf16>
    %21 = vector.shape_cast %20 : vector<1x64x64xbf16> to vector<64x64xbf16>
    %cst_14 = arith.constant dense<0.000000e+00> : vector<256x64xf32>
    %22 = tpu.matmul %19, %21, %cst_14 {dimension_numbers = #tpu.dot_dimension_numbers<[1], [0], [0], [1], [0, 0, 1, 1], [], []>} : vector<256x64xbf16>, vector<64x64xbf16>, vector<256x64xf32> -> vector<256x64xf32>
    %23 = arith.addf %17, %22 : vector<256x64xf32>
    %24 = vector.extract_strided_slice %1 {offsets = [1, 0, 0], sizes = [16, 16, 64], strides = [1, 1, 1]} : vector<18x18x64xbf16> to vector<16x16x64xbf16>
    %25 = vector.shape_cast %24 : vector<16x16x64xbf16> to vector<256x64xbf16>
    %c3 = arith.constant 3 : index
    %c0_15 = arith.constant 0 : index
    %c0_16 = arith.constant 0 : index
    %26 = vector.load %arg2[%c3, %c0_15, %c0_16] : memref<9x64x64xbf16, #tpu.memory_space<vmem>>, vector<1x64x64xbf16>
    %27 = vector.shape_cast %26 : vector<1x64x64xbf16> to vector<64x64xbf16>
    %cst_17 = arith.constant dense<0.000000e+00> : vector<256x64xf32>
    %28 = tpu.matmul %25, %27, %cst_17 {dimension_numbers = #tpu.dot_dimension_numbers<[1], [0], [0], [1], [0, 0, 1, 1], [], []>} : vector<256x64xbf16>, vector<64x64xbf16>, vector<256x64xf32> -> vector<256x64xf32>
    %29 = arith.addf %23, %28 : vector<256x64xf32>
    %30 = vector.extract_strided_slice %1 {offsets = [1, 1, 0], sizes = [16, 16, 64], strides = [1, 1, 1]} : vector<18x18x64xbf16> to vector<16x16x64xbf16>
    %31 = vector.shape_cast %30 : vector<16x16x64xbf16> to vector<256x64xbf16>
    %c4 = arith.constant 4 : index
    %c0_18 = arith.constant 0 : index
    %c0_19 = arith.constant 0 : index
    %32 = vector.load %arg2[%c4, %c0_18, %c0_19] : memref<9x64x64xbf16, #tpu.memory_space<vmem>>, vector<1x64x64xbf16>
    %33 = vector.shape_cast %32 : vector<1x64x64xbf16> to vector<64x64xbf16>
    %cst_20 = arith.constant dense<0.000000e+00> : vector<256x64xf32>
    %34 = tpu.matmul %31, %33, %cst_20 {dimension_numbers = #tpu.dot_dimension_numbers<[1], [0], [0], [1], [0, 0, 1, 1], [], []>} : vector<256x64xbf16>, vector<64x64xbf16>, vector<256x64xf32> -> vector<256x64xf32>
    %35 = arith.addf %29, %34 : vector<256x64xf32>
    %36 = vector.extract_strided_slice %1 {offsets = [1, 2, 0], sizes = [16, 16, 64], strides = [1, 1, 1]} : vector<18x18x64xbf16> to vector<16x16x64xbf16>
    %37 = vector.shape_cast %36 : vector<16x16x64xbf16> to vector<256x64xbf16>
    %c5 = arith.constant 5 : index
    %c0_21 = arith.constant 0 : index
    %c0_22 = arith.constant 0 : index
    %38 = vector.load %arg2[%c5, %c0_21, %c0_22] : memref<9x64x64xbf16, #tpu.memory_space<vmem>>, vector<1x64x64xbf16>
    %39 = vector.shape_cast %38 : vector<1x64x64xbf16> to vector<64x64xbf16>
    %cst_23 = arith.constant dense<0.000000e+00> : vector<256x64xf32>
    %40 = tpu.matmul %37, %39, %cst_23 {dimension_numbers = #tpu.dot_dimension_numbers<[1], [0], [0], [1], [0, 0, 1, 1], [], []>} : vector<256x64xbf16>, vector<64x64xbf16>, vector<256x64xf32> -> vector<256x64xf32>
    %41 = arith.addf %35, %40 : vector<256x64xf32>
    %42 = vector.extract_strided_slice %1 {offsets = [2, 0, 0], sizes = [16, 16, 64], strides = [1, 1, 1]} : vector<18x18x64xbf16> to vector<16x16x64xbf16>
    %43 = vector.shape_cast %42 : vector<16x16x64xbf16> to vector<256x64xbf16>
    %c6 = arith.constant 6 : index
    %c0_24 = arith.constant 0 : index
    %c0_25 = arith.constant 0 : index
    %44 = vector.load %arg2[%c6, %c0_24, %c0_25] : memref<9x64x64xbf16, #tpu.memory_space<vmem>>, vector<1x64x64xbf16>
    %45 = vector.shape_cast %44 : vector<1x64x64xbf16> to vector<64x64xbf16>
    %cst_26 = arith.constant dense<0.000000e+00> : vector<256x64xf32>
    %46 = tpu.matmul %43, %45, %cst_26 {dimension_numbers = #tpu.dot_dimension_numbers<[1], [0], [0], [1], [0, 0, 1, 1], [], []>} : vector<256x64xbf16>, vector<64x64xbf16>, vector<256x64xf32> -> vector<256x64xf32>
    %47 = arith.addf %41, %46 : vector<256x64xf32>
    %48 = vector.extract_strided_slice %1 {offsets = [2, 1, 0], sizes = [16, 16, 64], strides = [1, 1, 1]} : vector<18x18x64xbf16> to vector<16x16x64xbf16>
    %49 = vector.shape_cast %48 : vector<16x16x64xbf16> to vector<256x64xbf16>
    %c7 = arith.constant 7 : index
    %c0_27 = arith.constant 0 : index
    %c0_28 = arith.constant 0 : index
    %50 = vector.load %arg2[%c7, %c0_27, %c0_28] : memref<9x64x64xbf16, #tpu.memory_space<vmem>>, vector<1x64x64xbf16>
    %51 = vector.shape_cast %50 : vector<1x64x64xbf16> to vector<64x64xbf16>
    %cst_29 = arith.constant dense<0.000000e+00> : vector<256x64xf32>
    %52 = tpu.matmul %49, %51, %cst_29 {dimension_numbers = #tpu.dot_dimension_numbers<[1], [0], [0], [1], [0, 0, 1, 1], [], []>} : vector<256x64xbf16>, vector<64x64xbf16>, vector<256x64xf32> -> vector<256x64xf32>
    %53 = arith.addf %47, %52 : vector<256x64xf32>
    %54 = vector.extract_strided_slice %1 {offsets = [2, 2, 0], sizes = [16, 16, 64], strides = [1, 1, 1]} : vector<18x18x64xbf16> to vector<16x16x64xbf16>
    %55 = vector.shape_cast %54 : vector<16x16x64xbf16> to vector<256x64xbf16>
    %c8 = arith.constant 8 : index
    %c0_30 = arith.constant 0 : index
    %c0_31 = arith.constant 0 : index
    %56 = vector.load %arg2[%c8, %c0_30, %c0_31] : memref<9x64x64xbf16, #tpu.memory_space<vmem>>, vector<1x64x64xbf16>
    %57 = vector.shape_cast %56 : vector<1x64x64xbf16> to vector<64x64xbf16>
    %cst_32 = arith.constant dense<0.000000e+00> : vector<256x64xf32>
    %58 = tpu.matmul %55, %57, %cst_32 {dimension_numbers = #tpu.dot_dimension_numbers<[1], [0], [0], [1], [0, 0, 1, 1], [], []>} : vector<256x64xbf16>, vector<64x64xbf16>, vector<256x64xf32> -> vector<256x64xf32>
    %59 = arith.addf %53, %58 : vector<256x64xf32>
    %c0_33 = arith.constant 0 : index
    %c0_34 = arith.constant 0 : index
    %c0_35 = arith.constant 0 : index
    %c0_36 = arith.constant 0 : index
    %60 = vector.load %arg4[%c0_33, %c0_34, %c0_35, %c0_36] : memref<1x16x16x64xbf16, #tpu.memory_space<vmem>>, vector<1x16x16x64xbf16>
    %61 = vector.shape_cast %60 : vector<1x16x16x64xbf16> to vector<256x64xbf16>
    %62 = arith.extf %61 : vector<256x64xbf16> to vector<256x64xf32>
    %63 = arith.addf %59, %62 : vector<256x64xf32>
    %cst_37 = arith.constant 0.000000e+00 : f32
    %64 = vector.broadcast %cst_37 : f32 to vector<256x64xf32>
    %65 = arith.maximumf %63, %64 : vector<256x64xf32>
    %66 = vector.shape_cast %65 : vector<256x64xf32> to vector<1x16x16x64xf32>
    %67 = arith.truncf %66 : vector<1x16x16x64xf32> to vector<1x16x16x64xbf16>
    %c0_38 = arith.constant 0 : index
    %c0_39 = arith.constant 0 : index
    %c0_40 = arith.constant 0 : index
    %c0_41 = arith.constant 0 : index
    %68 = vector.load %arg5[%c0_38, %c0_39, %c0_40, %c0_41] : memref<1x16x16x64xbf16, #tpu.memory_space<vmem>>, vector<1x16x16x64xbf16>
    tpu.vector_store %arg5[%c0_38, %c0_39, %c0_40, %c0_41], %67 {strides = array<i32>} : memref<1x16x16x64xbf16, #tpu.memory_space<vmem>>, vector<1x16x16x64xbf16>,
    return
  }
  func.func @transform_0(%arg0: i32) -> (i32, i32, i32, i32) {
    %c0_i32 = arith.constant 0 : i32
    %c0_i32_0 = arith.constant 0 : i32
    %c0_i32_1 = arith.constant 0 : i32
    %c0_i32_2 = arith.constant 0 : i32
    return %arg0, %c0_i32, %c0_i32_0, %c0_i32_1 : i32, i32, i32, i32
  }
  func.func @transform_1(%arg0: i32) -> (i32, i32, i32) {
    %c0_i32 = arith.constant 0 : i32
    %c0_i32_0 = arith.constant 0 : i32
    %c0_i32_1 = arith.constant 0 : i32
    %c0_i32_2 = arith.constant 0 : i32
    return %c0_i32, %c0_i32_0, %c0_i32_1 : i32, i32, i32
  }
  func.func @transform_2(%arg0: i32) -> (i32, i32) {
    %c0_i32 = arith.constant 0 : i32
    %c0_i32_0 = arith.constant 0 : i32
    %c0_i32_1 = arith.constant 0 : i32
    return %c0_i32, %c0_i32_0 : i32, i32
  }
  func.func @transform_3(%arg0: i32) -> (i32, i32, i32, i32) {
    %c0_i32 = arith.constant 0 : i32
    %c0_i32_0 = arith.constant 0 : i32
    %c0_i32_1 = arith.constant 0 : i32
    %c0_i32_2 = arith.constant 0 : i32
    return %arg0, %c0_i32, %c0_i32_0, %c0_i32_1 : i32, i32, i32, i32
  }
  func.func @transform_4(%arg0: i32) -> (i32, i32, i32, i32) {
    %c0_i32 = arith.constant 0 : i32
    %c0_i32_0 = arith.constant 0 : i32
    %c0_i32_1 = arith.constant 0 : i32
    %c0_i32_2 = arith.constant 0 : i32
    return %arg0, %c0_i32, %c0_i32_0, %c0_i32_1 : i32, i32, i32, i32
  }
}

module attributes {stable_mosaic.version = 11 : i64} {
  func.func @_conv3x3_s1_kernel(%arg0: i32, %arg1: memref<1x18x18x64xbf16, #tpu.memory_space<vmem>>, %arg2: memref<9x64x64xbf16, #tpu.memory_space<vmem>>, %arg3: memref<1x64xf32, #tpu.memory_space<vmem>>, %arg4: memref<1x16x16x64xbf16, #tpu.memory_space<vmem>>) attributes {dimension_semantics = [#tpu.dimension_semantics<parallel>], iteration_bounds = array<i64: 2>, scalar_prefetch = 0 : i64, scratch_operands = 0 : i64, tpu.core_type = #tpu.core_type<tc>, window_params = [{transform_indices = @transform_0, window_bounds = array<i64: 1, 18, 18, 64>}, {pipeline_mode = #tpu.pipeline_mode<synchronous>, transform_indices = @transform_1, window_bounds = array<i64: 9, 64, 64>}, {pipeline_mode = #tpu.pipeline_mode<synchronous>, transform_indices = @transform_2, window_bounds = array<i64: 1, 64>}, {transform_indices = @transform_3, window_bounds = array<i64: 1, 16, 16, 64>}]} {
    %c0 = arith.constant 0 : index
    %c0_0 = arith.constant 0 : index
    %c0_1 = arith.constant 0 : index
    %c0_2 = arith.constant 0 : index
    %0 = vector.load %arg1[%c0, %c0_0, %c0_1, %c0_2] : memref<1x18x18x64xbf16, #tpu.memory_space<vmem>>, vector<1x18x18x64xbf16>
    %1 = vector.shape_cast %0 : vector<1x18x18x64xbf16> to vector<18x18x64xbf16>
    %cst = arith.constant 0.000000e+00 : f32
    %2 = vector.broadcast %cst : f32 to vector<256x64xf32>
    %c0_3 = arith.constant 0 : index
    %c0_4 = arith.constant 0 : index
    %3 = vector.load %arg3[%c0_3, %c0_4] : memref<1x64xf32, #tpu.memory_space<vmem>>, vector<1x64xf32>
    %4 = vector.broadcast %3 : vector<1x64xf32> to vector<256x64xf32>
    %5 = arith.addf %2, %4 : vector<256x64xf32>
    %6 = vector.extract_strided_slice %1 {offsets = [0, 0, 0], sizes = [16, 16, 64], strides = [1, 1, 1]} : vector<18x18x64xbf16> to vector<16x16x64xbf16>
    %7 = vector.shape_cast %6 : vector<16x16x64xbf16> to vector<256x64xbf16>
    %c0_5 = arith.constant 0 : index
    %c0_6 = arith.constant 0 : index
    %c0_7 = arith.constant 0 : index
    %8 = vector.load %arg2[%c0_5, %c0_6, %c0_7] : memref<9x64x64xbf16, #tpu.memory_space<vmem>>, vector<1x64x64xbf16>
    %9 = vector.shape_cast %8 : vector<1x64x64xbf16> to vector<64x64xbf16>
    %cst_8 = arith.constant dense<0.000000e+00> : vector<256x64xf32>
    %10 = tpu.matmul %7, %9, %cst_8 {dimension_numbers = #tpu.dot_dimension_numbers<[1], [0], [0], [1], [0, 0, 1, 1], [], []>} : vector<256x64xbf16>, vector<64x64xbf16>, vector<256x64xf32> -> vector<256x64xf32>
    %11 = arith.addf %5, %10 : vector<256x64xf32>
    %12 = vector.extract_strided_slice %1 {offsets = [0, 1, 0], sizes = [16, 16, 64], strides = [1, 1, 1]} : vector<18x18x64xbf16> to vector<16x16x64xbf16>
    %13 = vector.shape_cast %12 : vector<16x16x64xbf16> to vector<256x64xbf16>
    %c1 = arith.constant 1 : index
    %c0_9 = arith.constant 0 : index
    %c0_10 = arith.constant 0 : index
    %14 = vector.load %arg2[%c1, %c0_9, %c0_10] : memref<9x64x64xbf16, #tpu.memory_space<vmem>>, vector<1x64x64xbf16>
    %15 = vector.shape_cast %14 : vector<1x64x64xbf16> to vector<64x64xbf16>
    %cst_11 = arith.constant dense<0.000000e+00> : vector<256x64xf32>
    %16 = tpu.matmul %13, %15, %cst_11 {dimension_numbers = #tpu.dot_dimension_numbers<[1], [0], [0], [1], [0, 0, 1, 1], [], []>} : vector<256x64xbf16>, vector<64x64xbf16>, vector<256x64xf32> -> vector<256x64xf32>
    %17 = arith.addf %11, %16 : vector<256x64xf32>
    %18 = vector.extract_strided_slice %1 {offsets = [0, 2, 0], sizes = [16, 16, 64], strides = [1, 1, 1]} : vector<18x18x64xbf16> to vector<16x16x64xbf16>
    %19 = vector.shape_cast %18 : vector<16x16x64xbf16> to vector<256x64xbf16>
    %c2 = arith.constant 2 : index
    %c0_12 = arith.constant 0 : index
    %c0_13 = arith.constant 0 : index
    %20 = vector.load %arg2[%c2, %c0_12, %c0_13] : memref<9x64x64xbf16, #tpu.memory_space<vmem>>, vector<1x64x64xbf16>
    %21 = vector.shape_cast %20 : vector<1x64x64xbf16> to vector<64x64xbf16>
    %cst_14 = arith.constant dense<0.000000e+00> : vector<256x64xf32>
    %22 = tpu.matmul %19, %21, %cst_14 {dimension_numbers = #tpu.dot_dimension_numbers<[1], [0], [0], [1], [0, 0, 1, 1], [], []>} : vector<256x64xbf16>, vector<64x64xbf16>, vector<256x64xf32> -> vector<256x64xf32>
    %23 = arith.addf %17, %22 : vector<256x64xf32>
    %24 = vector.extract_strided_slice %1 {offsets = [1, 0, 0], sizes = [16, 16, 64], strides = [1, 1, 1]} : vector<18x18x64xbf16> to vector<16x16x64xbf16>
    %25 = vector.shape_cast %24 : vector<16x16x64xbf16> to vector<256x64xbf16>
    %c3 = arith.constant 3 : index
    %c0_15 = arith.constant 0 : index
    %c0_16 = arith.constant 0 : index
    %26 = vector.load %arg2[%c3, %c0_15, %c0_16] : memref<9x64x64xbf16, #tpu.memory_space<vmem>>, vector<1x64x64xbf16>
    %27 = vector.shape_cast %26 : vector<1x64x64xbf16> to vector<64x64xbf16>
    %cst_17 = arith.constant dense<0.000000e+00> : vector<256x64xf32>
    %28 = tpu.matmul %25, %27, %cst_17 {dimension_numbers = #tpu.dot_dimension_numbers<[1], [0], [0], [1], [0, 0, 1, 1], [], []>} : vector<256x64xbf16>, vector<64x64xbf16>, vector<256x64xf32> -> vector<256x64xf32>
    %29 = arith.addf %23, %28 : vector<256x64xf32>
    %30 = vector.extract_strided_slice %1 {offsets = [1, 1, 0], sizes = [16, 16, 64], strides = [1, 1, 1]} : vector<18x18x64xbf16> to vector<16x16x64xbf16>
    %31 = vector.shape_cast %30 : vector<16x16x64xbf16> to vector<256x64xbf16>
    %c4 = arith.constant 4 : index
    %c0_18 = arith.constant 0 : index
    %c0_19 = arith.constant 0 : index
    %32 = vector.load %arg2[%c4, %c0_18, %c0_19] : memref<9x64x64xbf16, #tpu.memory_space<vmem>>, vector<1x64x64xbf16>
    %33 = vector.shape_cast %32 : vector<1x64x64xbf16> to vector<64x64xbf16>
    %cst_20 = arith.constant dense<0.000000e+00> : vector<256x64xf32>
    %34 = tpu.matmul %31, %33, %cst_20 {dimension_numbers = #tpu.dot_dimension_numbers<[1], [0], [0], [1], [0, 0, 1, 1], [], []>} : vector<256x64xbf16>, vector<64x64xbf16>, vector<256x64xf32> -> vector<256x64xf32>
    %35 = arith.addf %29, %34 : vector<256x64xf32>
    %36 = vector.extract_strided_slice %1 {offsets = [1, 2, 0], sizes = [16, 16, 64], strides = [1, 1, 1]} : vector<18x18x64xbf16> to vector<16x16x64xbf16>
    %37 = vector.shape_cast %36 : vector<16x16x64xbf16> to vector<256x64xbf16>
    %c5 = arith.constant 5 : index
    %c0_21 = arith.constant 0 : index
    %c0_22 = arith.constant 0 : index
    %38 = vector.load %arg2[%c5, %c0_21, %c0_22] : memref<9x64x64xbf16, #tpu.memory_space<vmem>>, vector<1x64x64xbf16>
    %39 = vector.shape_cast %38 : vector<1x64x64xbf16> to vector<64x64xbf16>
    %cst_23 = arith.constant dense<0.000000e+00> : vector<256x64xf32>
    %40 = tpu.matmul %37, %39, %cst_23 {dimension_numbers = #tpu.dot_dimension_numbers<[1], [0], [0], [1], [0, 0, 1, 1], [], []>} : vector<256x64xbf16>, vector<64x64xbf16>, vector<256x64xf32> -> vector<256x64xf32>
    %41 = arith.addf %35, %40 : vector<256x64xf32>
    %42 = vector.extract_strided_slice %1 {offsets = [2, 0, 0], sizes = [16, 16, 64], strides = [1, 1, 1]} : vector<18x18x64xbf16> to vector<16x16x64xbf16>
    %43 = vector.shape_cast %42 : vector<16x16x64xbf16> to vector<256x64xbf16>
    %c6 = arith.constant 6 : index
    %c0_24 = arith.constant 0 : index
    %c0_25 = arith.constant 0 : index
    %44 = vector.load %arg2[%c6, %c0_24, %c0_25] : memref<9x64x64xbf16, #tpu.memory_space<vmem>>, vector<1x64x64xbf16>
    %45 = vector.shape_cast %44 : vector<1x64x64xbf16> to vector<64x64xbf16>
    %cst_26 = arith.constant dense<0.000000e+00> : vector<256x64xf32>
    %46 = tpu.matmul %43, %45, %cst_26 {dimension_numbers = #tpu.dot_dimension_numbers<[1], [0], [0], [1], [0, 0, 1, 1], [], []>} : vector<256x64xbf16>, vector<64x64xbf16>, vector<256x64xf32> -> vector<256x64xf32>
    %47 = arith.addf %41, %46 : vector<256x64xf32>
    %48 = vector.extract_strided_slice %1 {offsets = [2, 1, 0], sizes = [16, 16, 64], strides = [1, 1, 1]} : vector<18x18x64xbf16> to vector<16x16x64xbf16>
    %49 = vector.shape_cast %48 : vector<16x16x64xbf16> to vector<256x64xbf16>
    %c7 = arith.constant 7 : index
    %c0_27 = arith.constant 0 : index
    %c0_28 = arith.constant 0 : index
    %50 = vector.load %arg2[%c7, %c0_27, %c0_28] : memref<9x64x64xbf16, #tpu.memory_space<vmem>>, vector<1x64x64xbf16>
    %51 = vector.shape_cast %50 : vector<1x64x64xbf16> to vector<64x64xbf16>
    %cst_29 = arith.constant dense<0.000000e+00> : vector<256x64xf32>
    %52 = tpu.matmul %49, %51, %cst_29 {dimension_numbers = #tpu.dot_dimension_numbers<[1], [0], [0], [1], [0, 0, 1, 1], [], []>} : vector<256x64xbf16>, vector<64x64xbf16>, vector<256x64xf32> -> vector<256x64xf32>
    %53 = arith.addf %47, %52 : vector<256x64xf32>
    %54 = vector.extract_strided_slice %1 {offsets = [2, 2, 0], sizes = [16, 16, 64], strides = [1, 1, 1]} : vector<18x18x64xbf16> to vector<16x16x64xbf16>
    %55 = vector.shape_cast %54 : vector<16x16x64xbf16> to vector<256x64xbf16>
    %c8 = arith.constant 8 : index
    %c0_30 = arith.constant 0 : index
    %c0_31 = arith.constant 0 : index
    %56 = vector.load %arg2[%c8, %c0_30, %c0_31] : memref<9x64x64xbf16, #tpu.memory_space<vmem>>, vector<1x64x64xbf16>
    %57 = vector.shape_cast %56 : vector<1x64x64xbf16> to vector<64x64xbf16>
    %cst_32 = arith.constant dense<0.000000e+00> : vector<256x64xf32>
    %58 = tpu.matmul %55, %57, %cst_32 {dimension_numbers = #tpu.dot_dimension_numbers<[1], [0], [0], [1], [0, 0, 1, 1], [], []>} : vector<256x64xbf16>, vector<64x64xbf16>, vector<256x64xf32> -> vector<256x64xf32>
    %59 = arith.addf %53, %58 : vector<256x64xf32>
    %cst_33 = arith.constant 0.000000e+00 : f32
    %60 = vector.broadcast %cst_33 : f32 to vector<256x64xf32>
    %61 = arith.maximumf %59, %60 : vector<256x64xf32>
    %62 = vector.shape_cast %61 : vector<256x64xf32> to vector<1x16x16x64xf32>
    %63 = arith.truncf %62 : vector<1x16x16x64xf32> to vector<1x16x16x64xbf16>
    %c0_34 = arith.constant 0 : index
    %c0_35 = arith.constant 0 : index
    %c0_36 = arith.constant 0 : index
    %c0_37 = arith.constant 0 : index
    %64 = vector.load %arg4[%c0_34, %c0_35, %c0_36, %c0_37] : memref<1x16x16x64xbf16, #tpu.memory_space<vmem>>, vector<1x16x16x64xbf16>
    tpu.vector_store %arg4[%c0_34, %c0_35, %c0_36, %c0_37], %63 {strides = array<i32>} : memref<1x16x16x64xbf16, #tpu.memory_space<vmem>>, vector<1x16x16x64xbf16>,
    return
  }
  func.func @transform_0(%arg0: i32) -> (i32, i32, i32, i32) {
    %c0_i32 = arith.constant 0 : i32
    %c0_i32_0 = arith.constant 0 : i32
    %c0_i32_1 = arith.constant 0 : i32
    %c0_i32_2 = arith.constant 0 : i32
    return %arg0, %c0_i32, %c0_i32_0, %c0_i32_1 : i32, i32, i32, i32
  }
  func.func @transform_1(%arg0: i32) -> (i32, i32, i32) {
    %c0_i32 = arith.constant 0 : i32
    %c0_i32_0 = arith.constant 0 : i32
    %c0_i32_1 = arith.constant 0 : i32
    %c0_i32_2 = arith.constant 0 : i32
    return %c0_i32, %c0_i32_0, %c0_i32_1 : i32, i32, i32
  }
  func.func @transform_2(%arg0: i32) -> (i32, i32) {
    %c0_i32 = arith.constant 0 : i32
    %c0_i32_0 = arith.constant 0 : i32
    %c0_i32_1 = arith.constant 0 : i32
    return %c0_i32, %c0_i32_0 : i32, i32
  }
  func.func @transform_3(%arg0: i32) -> (i32, i32, i32, i32) {
    %c0_i32 = arith.constant 0 : i32
    %c0_i32_0 = arith.constant 0 : i32
    %c0_i32_1 = arith.constant 0 : i32
    %c0_i32_2 = arith.constant 0 : i32
    return %arg0, %c0_i32, %c0_i32_0, %c0_i32_1 : i32, i32, i32, i32
  }
}

module attributes {stable_mosaic.version = 11 : i64} {
  func.func @_gemm_kernel(%arg0: i32, %arg1: i32, %arg2: i32, %arg3: memref<128x128xbf16, #tpu.memory_space<vmem>>, %arg4: memref<128x128xbf16, #tpu.memory_space<vmem>>, %arg5: memref<1x128xf32, #tpu.memory_space<vmem>>, %arg6: memref<128x128xbf16, #tpu.memory_space<vmem>>, %arg7: memref<128x128xf32, #tpu.memory_space<vmem>>) attributes {dimension_semantics = [#tpu.dimension_semantics<parallel>, #tpu.dimension_semantics<parallel>, #tpu.dimension_semantics<arbitrary>], iteration_bounds = array<i64: 1, 1, 5>, scalar_prefetch = 0 : i64, scratch_operands = 1 : i64, tpu.core_type = #tpu.core_type<tc>, window_params = [{transform_indices = @transform_0, window_bounds = array<i64: 128, 128>}, {transform_indices = @transform_1, window_bounds = array<i64: 128, 128>}, {transform_indices = @transform_2, window_bounds = array<i64: 1, 128>}, {transform_indices = @transform_3, window_bounds = array<i64: 128, 128>}]} {
    %c0_i32 = arith.constant 0 : i32
    %0 = arith.cmpi eq, %arg2, %c0_i32 : i32
    %1 = arith.extui %0 : i1 to i32
    %c0_i32_0 = arith.constant 0 : i32
    %2 = arith.cmpi ne, %1, %c0_i32_0 : i32
    scf.if %2 {
      %cst_9 = arith.constant 0.000000e+00 : f32
      %12 = vector.broadcast %cst_9 : f32 to vector<128x128xf32>
      %c0_10 = arith.constant 0 : index
      %c0_11 = arith.constant 0 : index
      %13 = vector.load %arg7[%c0_10, %c0_11] : memref<128x128xf32, #tpu.memory_space<vmem>>, vector<128x128xf32>
      tpu.vector_store %arg7[%c0_10, %c0_11], %12 {strides = array<i32>} : memref<128x128xf32, #tpu.memory_space<vmem>>, vector<128x128xf32>,
    } else {
    }
    %c0 = arith.constant 0 : index
    %c0_1 = arith.constant 0 : index
    %3 = vector.load %arg7[%c0, %c0_1] : memref<128x128xf32, #tpu.memory_space<vmem>>, vector<128x128xf32>
    %c0_2 = arith.constant 0 : index
    %c0_3 = arith.constant 0 : index
    %4 = vector.load %arg3[%c0_2, %c0_3] : memref<128x128xbf16, #tpu.memory_space<vmem>>, vector<128x128xbf16>
    %c0_4 = arith.constant 0 : index
    %c0_5 = arith.constant 0 : index
    %5 = vector.load %arg4[%c0_4, %c0_5] : memref<128x128xbf16, #tpu.memory_space<vmem>>, vector<128x128xbf16>
    %cst = arith.constant dense<0.000000e+00> : vector<128x128xf32>
    %6 = tpu.matmul %4, %5, %cst {dimension_numbers = #tpu.dot_dimension_numbers<[1], [0], [0], [1], [0, 0, 1, 1], [], []>} : vector<128x128xbf16>, vector<128x128xbf16>, vector<128x128xf32> -> vector<128x128xf32>
    %7 = arith.addf %3, %6 : vector<128x128xf32>
    %c0_6 = arith.constant 0 : index
    %c0_7 = arith.constant 0 : index
    %8 = vector.load %arg7[%c0_6, %c0_7] : memref<128x128xf32, #tpu.memory_space<vmem>>, vector<128x128xf32>
    tpu.vector_store %arg7[%c0_6, %c0_7], %7 {strides = array<i32>} : memref<128x128xf32, #tpu.memory_space<vmem>>, vector<128x128xf32>,
    %c4_i32 = arith.constant 4 : i32
    %9 = arith.cmpi eq, %arg2, %c4_i32 : i32
    %10 = arith.extui %9 : i1 to i32
    %c0_i32_8 = arith.constant 0 : i32
    %11 = arith.cmpi ne, %10, %c0_i32_8 : i32
    scf.if %11 {
      %c0_9 = arith.constant 0 : index
      %c0_10 = arith.constant 0 : index
      %12 = vector.load %arg7[%c0_9, %c0_10] : memref<128x128xf32, #tpu.memory_space<vmem>>, vector<128x128xf32>
      %c0_11 = arith.constant 0 : index
      %c0_12 = arith.constant 0 : index
      %13 = vector.load %arg5[%c0_11, %c0_12] : memref<1x128xf32, #tpu.memory_space<vmem>>, vector<1x128xf32>
      %14 = vector.broadcast %13 : vector<1x128xf32> to vector<128x128xf32>
      %15 = arith.addf %12, %14 : vector<128x128xf32>
      %cst_13 = arith.constant 0.000000e+00 : f32
      %16 = vector.broadcast %cst_13 : f32 to vector<128x128xf32>
      %17 = arith.maximumf %15, %16 : vector<128x128xf32>
      %18 = arith.truncf %17 : vector<128x128xf32> to vector<128x128xbf16>
      %c0_14 = arith.constant 0 : index
      %c0_15 = arith.constant 0 : index
      %19 = vector.load %arg6[%c0_14, %c0_15] : memref<128x128xbf16, #tpu.memory_space<vmem>>, vector<128x128xbf16>
      tpu.vector_store %arg6[%c0_14, %c0_15], %18 {strides = array<i32>} : memref<128x128xbf16, #tpu.memory_space<vmem>>, vector<128x128xbf16>,
    } else {
    }
    return
  }
  func.func @transform_0(%arg0: i32, %arg1: i32, %arg2: i32) -> (i32, i32) {
    %c0_i32 = arith.constant 0 : i32
    return %arg0, %arg2 : i32, i32
  }
  func.func @transform_1(%arg0: i32, %arg1: i32, %arg2: i32) -> (i32, i32) {
    %c0_i32 = arith.constant 0 : i32
    return %arg2, %arg1 : i32, i32
  }
  func.func @transform_2(%arg0: i32, %arg1: i32, %arg2: i32) -> (i32, i32) {
    %c0_i32 = arith.constant 0 : i32
    %c0_i32_0 = arith.constant 0 : i32
    return %c0_i32, %arg1 : i32, i32
  }
  func.func @transform_3(%arg0: i32, %arg1: i32, %arg2: i32) -> (i32, i32) {
    %c0_i32 = arith.constant 0 : i32
    return %arg0, %arg1 : i32, i32
  }
}

module attributes {stable_mosaic.version = 11 : i64} {
  func.func @_gemm_kernel(%arg0: i32, %arg1: i32, %arg2: i32, %arg3: memref<128x128xbf16, #tpu.memory_space<vmem>>, %arg4: memref<128x128xbf16, #tpu.memory_space<vmem>>, %arg5: memref<1x128xf32, #tpu.memory_space<vmem>>, %arg6: memref<128x128xbf16, #tpu.memory_space<vmem>>, %arg7: memref<128x128xf32, #tpu.memory_space<vmem>>) attributes {dimension_semantics = [#tpu.dimension_semantics<parallel>, #tpu.dimension_semantics<parallel>, #tpu.dimension_semantics<arbitrary>], iteration_bounds = array<i64: 1, 1, 1>, scalar_prefetch = 0 : i64, scratch_operands = 1 : i64, tpu.core_type = #tpu.core_type<tc>, window_params = [{transform_indices = @transform_0, window_bounds = array<i64: 128, 128>}, {transform_indices = @transform_1, window_bounds = array<i64: 128, 128>}, {transform_indices = @transform_2, window_bounds = array<i64: 1, 128>}, {transform_indices = @transform_3, window_bounds = array<i64: 128, 128>}]} {
    %c0_i32 = arith.constant 0 : i32
    %0 = arith.cmpi eq, %arg2, %c0_i32 : i32
    %1 = arith.extui %0 : i1 to i32
    %c0_i32_0 = arith.constant 0 : i32
    %2 = arith.cmpi ne, %1, %c0_i32_0 : i32
    scf.if %2 {
      %cst_10 = arith.constant 0.000000e+00 : f32
      %12 = vector.broadcast %cst_10 : f32 to vector<128x128xf32>
      %c0_11 = arith.constant 0 : index
      %c0_12 = arith.constant 0 : index
      %13 = vector.load %arg7[%c0_11, %c0_12] : memref<128x128xf32, #tpu.memory_space<vmem>>, vector<128x128xf32>
      tpu.vector_store %arg7[%c0_11, %c0_12], %12 {strides = array<i32>} : memref<128x128xf32, #tpu.memory_space<vmem>>, vector<128x128xf32>,
    } else {
    }
    %c0 = arith.constant 0 : index
    %c0_1 = arith.constant 0 : index
    %3 = vector.load %arg7[%c0, %c0_1] : memref<128x128xf32, #tpu.memory_space<vmem>>, vector<128x128xf32>
    %c0_2 = arith.constant 0 : index
    %c0_3 = arith.constant 0 : index
    %4 = vector.load %arg3[%c0_2, %c0_3] : memref<128x128xbf16, #tpu.memory_space<vmem>>, vector<128x128xbf16>
    %c0_4 = arith.constant 0 : index
    %c0_5 = arith.constant 0 : index
    %5 = vector.load %arg4[%c0_4, %c0_5] : memref<128x128xbf16, #tpu.memory_space<vmem>>, vector<128x128xbf16>
    %cst = arith.constant dense<0.000000e+00> : vector<128x128xf32>
    %6 = tpu.matmul %4, %5, %cst {dimension_numbers = #tpu.dot_dimension_numbers<[1], [0], [0], [1], [0, 0, 1, 1], [], []>} : vector<128x128xbf16>, vector<128x128xbf16>, vector<128x128xf32> -> vector<128x128xf32>
    %7 = arith.addf %3, %6 : vector<128x128xf32>
    %c0_6 = arith.constant 0 : index
    %c0_7 = arith.constant 0 : index
    %8 = vector.load %arg7[%c0_6, %c0_7] : memref<128x128xf32, #tpu.memory_space<vmem>>, vector<128x128xf32>
    tpu.vector_store %arg7[%c0_6, %c0_7], %7 {strides = array<i32>} : memref<128x128xf32, #tpu.memory_space<vmem>>, vector<128x128xf32>,
    %c0_i32_8 = arith.constant 0 : i32
    %9 = arith.cmpi eq, %arg2, %c0_i32_8 : i32
    %10 = arith.extui %9 : i1 to i32
    %c0_i32_9 = arith.constant 0 : i32
    %11 = arith.cmpi ne, %10, %c0_i32_9 : i32
    scf.if %11 {
      %c0_10 = arith.constant 0 : index
      %c0_11 = arith.constant 0 : index
      %12 = vector.load %arg7[%c0_10, %c0_11] : memref<128x128xf32, #tpu.memory_space<vmem>>, vector<128x128xf32>
      %c0_12 = arith.constant 0 : index
      %c0_13 = arith.constant 0 : index
      %13 = vector.load %arg5[%c0_12, %c0_13] : memref<1x128xf32, #tpu.memory_space<vmem>>, vector<1x128xf32>
      %14 = vector.broadcast %13 : vector<1x128xf32> to vector<128x128xf32>
      %15 = arith.addf %12, %14 : vector<128x128xf32>
      %16 = arith.truncf %15 : vector<128x128xf32> to vector<128x128xbf16>
      %c0_14 = arith.constant 0 : index
      %c0_15 = arith.constant 0 : index
      %17 = vector.load %arg6[%c0_14, %c0_15] : memref<128x128xbf16, #tpu.memory_space<vmem>>, vector<128x128xbf16>
      tpu.vector_store %arg6[%c0_14, %c0_15], %16 {strides = array<i32>} : memref<128x128xbf16, #tpu.memory_space<vmem>>, vector<128x128xbf16>,
    } else {
    }
    return
  }
  func.func @transform_0(%arg0: i32, %arg1: i32, %arg2: i32) -> (i32, i32) {
    %c0_i32 = arith.constant 0 : i32
    return %arg0, %arg2 : i32, i32
  }
  func.func @transform_1(%arg0: i32, %arg1: i32, %arg2: i32) -> (i32, i32) {
    %c0_i32 = arith.constant 0 : i32
    return %arg2, %arg1 : i32, i32
  }
  func.func @transform_2(%arg0: i32, %arg1: i32, %arg2: i32) -> (i32, i32) {
    %c0_i32 = arith.constant 0 : i32
    %c0_i32_0 = arith.constant 0 : i32
    return %c0_i32, %arg1 : i32, i32
  }
  func.func @transform_3(%arg0: i32, %arg1: i32, %arg2: i32) -> (i32, i32) {
    %c0_i32 = arith.constant 0 : i32
    return %arg0, %arg1 : i32, i32
  }
}

module attributes {stable_mosaic.version = 11 : i64} {
  func.func @_conv3x3_s1_kernel(%arg0: i32, %arg1: memref<1x10x10x128xbf16, #tpu.memory_space<vmem>>, %arg2: memref<9x128x128xbf16, #tpu.memory_space<vmem>>, %arg3: memref<1x128xf32, #tpu.memory_space<vmem>>, %arg4: memref<1x8x8x128xbf16, #tpu.memory_space<vmem>>, %arg5: memref<1x8x8x128xbf16, #tpu.memory_space<vmem>>) attributes {dimension_semantics = [#tpu.dimension_semantics<parallel>], iteration_bounds = array<i64: 2>, scalar_prefetch = 0 : i64, scratch_operands = 0 : i64, tpu.core_type = #tpu.core_type<tc>, window_params = [{transform_indices = @transform_0, window_bounds = array<i64: 1, 10, 10, 128>}, {pipeline_mode = #tpu.pipeline_mode<synchronous>, transform_indices = @transform_1, window_bounds = array<i64: 9, 128, 128>}, {pipeline_mode = #tpu.pipeline_mode<synchronous>, transform_indices = @transform_2, window_bounds = array<i64: 1, 128>}, {transform_indices = @transform_3, window_bounds = array<i64: 1, 8, 8, 128>}, {transform_indices = @transform_4, window_bounds = array<i64: 1, 8, 8, 128>}]} {
    %c0 = arith.constant 0 : index
    %c0_0 = arith.constant 0 : index
    %c0_1 = arith.constant 0 : index
    %c0_2 = arith.constant 0 : index
    %0 = vector.load %arg1[%c0, %c0_0, %c0_1, %c0_2] : memref<1x10x10x128xbf16, #tpu.memory_space<vmem>>, vector<1x10x10x128xbf16>
    %1 = vector.shape_cast %0 : vector<1x10x10x128xbf16> to vector<10x10x128xbf16>
    %cst = arith.constant 0.000000e+00 : f32
    %2 = vector.broadcast %cst : f32 to vector<64x128xf32>
    %c0_3 = arith.constant 0 : index
    %c0_4 = arith.constant 0 : index
    %3 = vector.load %arg3[%c0_3, %c0_4] : memref<1x128xf32, #tpu.memory_space<vmem>>, vector<1x128xf32>
    %4 = vector.broadcast %3 : vector<1x128xf32> to vector<64x128xf32>
    %5 = arith.addf %2, %4 : vector<64x128xf32>
    %6 = vector.extract_strided_slice %1 {offsets = [0, 0, 0], sizes = [8, 8, 128], strides = [1, 1, 1]} : vector<10x10x128xbf16> to vector<8x8x128xbf16>
    %7 = vector.shape_cast %6 : vector<8x8x128xbf16> to vector<64x128xbf16>
    %c0_5 = arith.constant 0 : index
    %c0_6 = arith.constant 0 : index
    %c0_7 = arith.constant 0 : index
    %8 = vector.load %arg2[%c0_5, %c0_6, %c0_7] : memref<9x128x128xbf16, #tpu.memory_space<vmem>>, vector<1x128x128xbf16>
    %9 = vector.shape_cast %8 : vector<1x128x128xbf16> to vector<128x128xbf16>
    %cst_8 = arith.constant dense<0.000000e+00> : vector<64x128xf32>
    %10 = tpu.matmul %7, %9, %cst_8 {dimension_numbers = #tpu.dot_dimension_numbers<[1], [0], [0], [1], [0, 0, 1, 1], [], []>} : vector<64x128xbf16>, vector<128x128xbf16>, vector<64x128xf32> -> vector<64x128xf32>
    %11 = arith.addf %5, %10 : vector<64x128xf32>
    %12 = vector.extract_strided_slice %1 {offsets = [0, 1, 0], sizes = [8, 8, 128], strides = [1, 1, 1]} : vector<10x10x128xbf16> to vector<8x8x128xbf16>
    %13 = vector.shape_cast %12 : vector<8x8x128xbf16> to vector<64x128xbf16>
    %c1 = arith.constant 1 : index
    %c0_9 = arith.constant 0 : index
    %c0_10 = arith.constant 0 : index
    %14 = vector.load %arg2[%c1, %c0_9, %c0_10] : memref<9x128x128xbf16, #tpu.memory_space<vmem>>, vector<1x128x128xbf16>
    %15 = vector.shape_cast %14 : vector<1x128x128xbf16> to vector<128x128xbf16>
    %cst_11 = arith.constant dense<0.000000e+00> : vector<64x128xf32>
    %16 = tpu.matmul %13, %15, %cst_11 {dimension_numbers = #tpu.dot_dimension_numbers<[1], [0], [0], [1], [0, 0, 1, 1], [], []>} : vector<64x128xbf16>, vector<128x128xbf16>, vector<64x128xf32> -> vector<64x128xf32>
    %17 = arith.addf %11, %16 : vector<64x128xf32>
    %18 = vector.extract_strided_slice %1 {offsets = [0, 2, 0], sizes = [8, 8, 128], strides = [1, 1, 1]} : vector<10x10x128xbf16> to vector<8x8x128xbf16>
    %19 = vector.shape_cast %18 : vector<8x8x128xbf16> to vector<64x128xbf16>
    %c2 = arith.constant 2 : index
    %c0_12 = arith.constant 0 : index
    %c0_13 = arith.constant 0 : index
    %20 = vector.load %arg2[%c2, %c0_12, %c0_13] : memref<9x128x128xbf16, #tpu.memory_space<vmem>>, vector<1x128x128xbf16>
    %21 = vector.shape_cast %20 : vector<1x128x128xbf16> to vector<128x128xbf16>
    %cst_14 = arith.constant dense<0.000000e+00> : vector<64x128xf32>
    %22 = tpu.matmul %19, %21, %cst_14 {dimension_numbers = #tpu.dot_dimension_numbers<[1], [0], [0], [1], [0, 0, 1, 1], [], []>} : vector<64x128xbf16>, vector<128x128xbf16>, vector<64x128xf32> -> vector<64x128xf32>
    %23 = arith.addf %17, %22 : vector<64x128xf32>
    %24 = vector.extract_strided_slice %1 {offsets = [1, 0, 0], sizes = [8, 8, 128], strides = [1, 1, 1]} : vector<10x10x128xbf16> to vector<8x8x128xbf16>
    %25 = vector.shape_cast %24 : vector<8x8x128xbf16> to vector<64x128xbf16>
    %c3 = arith.constant 3 : index
    %c0_15 = arith.constant 0 : index
    %c0_16 = arith.constant 0 : index
    %26 = vector.load %arg2[%c3, %c0_15, %c0_16] : memref<9x128x128xbf16, #tpu.memory_space<vmem>>, vector<1x128x128xbf16>
    %27 = vector.shape_cast %26 : vector<1x128x128xbf16> to vector<128x128xbf16>
    %cst_17 = arith.constant dense<0.000000e+00> : vector<64x128xf32>
    %28 = tpu.matmul %25, %27, %cst_17 {dimension_numbers = #tpu.dot_dimension_numbers<[1], [0], [0], [1], [0, 0, 1, 1], [], []>} : vector<64x128xbf16>, vector<128x128xbf16>, vector<64x128xf32> -> vector<64x128xf32>
    %29 = arith.addf %23, %28 : vector<64x128xf32>
    %30 = vector.extract_strided_slice %1 {offsets = [1, 1, 0], sizes = [8, 8, 128], strides = [1, 1, 1]} : vector<10x10x128xbf16> to vector<8x8x128xbf16>
    %31 = vector.shape_cast %30 : vector<8x8x128xbf16> to vector<64x128xbf16>
    %c4 = arith.constant 4 : index
    %c0_18 = arith.constant 0 : index
    %c0_19 = arith.constant 0 : index
    %32 = vector.load %arg2[%c4, %c0_18, %c0_19] : memref<9x128x128xbf16, #tpu.memory_space<vmem>>, vector<1x128x128xbf16>
    %33 = vector.shape_cast %32 : vector<1x128x128xbf16> to vector<128x128xbf16>
    %cst_20 = arith.constant dense<0.000000e+00> : vector<64x128xf32>
    %34 = tpu.matmul %31, %33, %cst_20 {dimension_numbers = #tpu.dot_dimension_numbers<[1], [0], [0], [1], [0, 0, 1, 1], [], []>} : vector<64x128xbf16>, vector<128x128xbf16>, vector<64x128xf32> -> vector<64x128xf32>
    %35 = arith.addf %29, %34 : vector<64x128xf32>
    %36 = vector.extract_strided_slice %1 {offsets = [1, 2, 0], sizes = [8, 8, 128], strides = [1, 1, 1]} : vector<10x10x128xbf16> to vector<8x8x128xbf16>
    %37 = vector.shape_cast %36 : vector<8x8x128xbf16> to vector<64x128xbf16>
    %c5 = arith.constant 5 : index
    %c0_21 = arith.constant 0 : index
    %c0_22 = arith.constant 0 : index
    %38 = vector.load %arg2[%c5, %c0_21, %c0_22] : memref<9x128x128xbf16, #tpu.memory_space<vmem>>, vector<1x128x128xbf16>
    %39 = vector.shape_cast %38 : vector<1x128x128xbf16> to vector<128x128xbf16>
    %cst_23 = arith.constant dense<0.000000e+00> : vector<64x128xf32>
    %40 = tpu.matmul %37, %39, %cst_23 {dimension_numbers = #tpu.dot_dimension_numbers<[1], [0], [0], [1], [0, 0, 1, 1], [], []>} : vector<64x128xbf16>, vector<128x128xbf16>, vector<64x128xf32> -> vector<64x128xf32>
    %41 = arith.addf %35, %40 : vector<64x128xf32>
    %42 = vector.extract_strided_slice %1 {offsets = [2, 0, 0], sizes = [8, 8, 128], strides = [1, 1, 1]} : vector<10x10x128xbf16> to vector<8x8x128xbf16>
    %43 = vector.shape_cast %42 : vector<8x8x128xbf16> to vector<64x128xbf16>
    %c6 = arith.constant 6 : index
    %c0_24 = arith.constant 0 : index
    %c0_25 = arith.constant 0 : index
    %44 = vector.load %arg2[%c6, %c0_24, %c0_25] : memref<9x128x128xbf16, #tpu.memory_space<vmem>>, vector<1x128x128xbf16>
    %45 = vector.shape_cast %44 : vector<1x128x128xbf16> to vector<128x128xbf16>
    %cst_26 = arith.constant dense<0.000000e+00> : vector<64x128xf32>
    %46 = tpu.matmul %43, %45, %cst_26 {dimension_numbers = #tpu.dot_dimension_numbers<[1], [0], [0], [1], [0, 0, 1, 1], [], []>} : vector<64x128xbf16>, vector<128x128xbf16>, vector<64x128xf32> -> vector<64x128xf32>
    %47 = arith.addf %41, %46 : vector<64x128xf32>
    %48 = vector.extract_strided_slice %1 {offsets = [2, 1, 0], sizes = [8, 8, 128], strides = [1, 1, 1]} : vector<10x10x128xbf16> to vector<8x8x128xbf16>
    %49 = vector.shape_cast %48 : vector<8x8x128xbf16> to vector<64x128xbf16>
    %c7 = arith.constant 7 : index
    %c0_27 = arith.constant 0 : index
    %c0_28 = arith.constant 0 : index
    %50 = vector.load %arg2[%c7, %c0_27, %c0_28] : memref<9x128x128xbf16, #tpu.memory_space<vmem>>, vector<1x128x128xbf16>
    %51 = vector.shape_cast %50 : vector<1x128x128xbf16> to vector<128x128xbf16>
    %cst_29 = arith.constant dense<0.000000e+00> : vector<64x128xf32>
    %52 = tpu.matmul %49, %51, %cst_29 {dimension_numbers = #tpu.dot_dimension_numbers<[1], [0], [0], [1], [0, 0, 1, 1], [], []>} : vector<64x128xbf16>, vector<128x128xbf16>, vector<64x128xf32> -> vector<64x128xf32>
    %53 = arith.addf %47, %52 : vector<64x128xf32>
    %54 = vector.extract_strided_slice %1 {offsets = [2, 2, 0], sizes = [8, 8, 128], strides = [1, 1, 1]} : vector<10x10x128xbf16> to vector<8x8x128xbf16>
    %55 = vector.shape_cast %54 : vector<8x8x128xbf16> to vector<64x128xbf16>
    %c8 = arith.constant 8 : index
    %c0_30 = arith.constant 0 : index
    %c0_31 = arith.constant 0 : index
    %56 = vector.load %arg2[%c8, %c0_30, %c0_31] : memref<9x128x128xbf16, #tpu.memory_space<vmem>>, vector<1x128x128xbf16>
    %57 = vector.shape_cast %56 : vector<1x128x128xbf16> to vector<128x128xbf16>
    %cst_32 = arith.constant dense<0.000000e+00> : vector<64x128xf32>
    %58 = tpu.matmul %55, %57, %cst_32 {dimension_numbers = #tpu.dot_dimension_numbers<[1], [0], [0], [1], [0, 0, 1, 1], [], []>} : vector<64x128xbf16>, vector<128x128xbf16>, vector<64x128xf32> -> vector<64x128xf32>
    %59 = arith.addf %53, %58 : vector<64x128xf32>
    %c0_33 = arith.constant 0 : index
    %c0_34 = arith.constant 0 : index
    %c0_35 = arith.constant 0 : index
    %c0_36 = arith.constant 0 : index
    %60 = vector.load %arg4[%c0_33, %c0_34, %c0_35, %c0_36] : memref<1x8x8x128xbf16, #tpu.memory_space<vmem>>, vector<1x8x8x128xbf16>
    %61 = vector.shape_cast %60 : vector<1x8x8x128xbf16> to vector<64x128xbf16>
    %62 = arith.extf %61 : vector<64x128xbf16> to vector<64x128xf32>
    %63 = arith.addf %59, %62 : vector<64x128xf32>
    %cst_37 = arith.constant 0.000000e+00 : f32
    %64 = vector.broadcast %cst_37 : f32 to vector<64x128xf32>
    %65 = arith.maximumf %63, %64 : vector<64x128xf32>
    %66 = vector.shape_cast %65 : vector<64x128xf32> to vector<1x8x8x128xf32>
    %67 = arith.truncf %66 : vector<1x8x8x128xf32> to vector<1x8x8x128xbf16>
    %c0_38 = arith.constant 0 : index
    %c0_39 = arith.constant 0 : index
    %c0_40 = arith.constant 0 : index
    %c0_41 = arith.constant 0 : index
    %68 = vector.load %arg5[%c0_38, %c0_39, %c0_40, %c0_41] : memref<1x8x8x128xbf16, #tpu.memory_space<vmem>>, vector<1x8x8x128xbf16>
    tpu.vector_store %arg5[%c0_38, %c0_39, %c0_40, %c0_41], %67 {strides = array<i32>} : memref<1x8x8x128xbf16, #tpu.memory_space<vmem>>, vector<1x8x8x128xbf16>,
    return
  }
  func.func @transform_0(%arg0: i32) -> (i32, i32, i32, i32) {
    %c0_i32 = arith.constant 0 : i32
    %c0_i32_0 = arith.constant 0 : i32
    %c0_i32_1 = arith.constant 0 : i32
    %c0_i32_2 = arith.constant 0 : i32
    return %arg0, %c0_i32, %c0_i32_0, %c0_i32_1 : i32, i32, i32, i32
  }
  func.func @transform_1(%arg0: i32) -> (i32, i32, i32) {
    %c0_i32 = arith.constant 0 : i32
    %c0_i32_0 = arith.constant 0 : i32
    %c0_i32_1 = arith.constant 0 : i32
    %c0_i32_2 = arith.constant 0 : i32
    return %c0_i32, %c0_i32_0, %c0_i32_1 : i32, i32, i32
  }
  func.func @transform_2(%arg0: i32) -> (i32, i32) {
    %c0_i32 = arith.constant 0 : i32
    %c0_i32_0 = arith.constant 0 : i32
    %c0_i32_1 = arith.constant 0 : i32
    return %c0_i32, %c0_i32_0 : i32, i32
  }
  func.func @transform_3(%arg0: i32) -> (i32, i32, i32, i32) {
    %c0_i32 = arith.constant 0 : i32
    %c0_i32_0 = arith.constant 0 : i32
    %c0_i32_1 = arith.constant 0 : i32
    %c0_i32_2 = arith.constant 0 : i32
    return %arg0, %c0_i32, %c0_i32_0, %c0_i32_1 : i32, i32, i32, i32
  }
  func.func @transform_4(%arg0: i32) -> (i32, i32, i32, i32) {
    %c0_i32 = arith.constant 0 : i32
    %c0_i32_0 = arith.constant 0 : i32
    %c0_i32_1 = arith.constant 0 : i32
    %c0_i32_2 = arith.constant 0 : i32
    return %arg0, %c0_i32, %c0_i32_0, %c0_i32_1 : i32, i32, i32, i32
  }
}

module attributes {stable_mosaic.version = 11 : i64} {
  func.func @_conv3x3_s1_kernel(%arg0: i32, %arg1: memref<1x10x10x128xbf16, #tpu.memory_space<vmem>>, %arg2: memref<9x128x128xbf16, #tpu.memory_space<vmem>>, %arg3: memref<1x128xf32, #tpu.memory_space<vmem>>, %arg4: memref<1x8x8x128xbf16, #tpu.memory_space<vmem>>) attributes {dimension_semantics = [#tpu.dimension_semantics<parallel>], iteration_bounds = array<i64: 2>, scalar_prefetch = 0 : i64, scratch_operands = 0 : i64, tpu.core_type = #tpu.core_type<tc>, window_params = [{transform_indices = @transform_0, window_bounds = array<i64: 1, 10, 10, 128>}, {pipeline_mode = #tpu.pipeline_mode<synchronous>, transform_indices = @transform_1, window_bounds = array<i64: 9, 128, 128>}, {pipeline_mode = #tpu.pipeline_mode<synchronous>, transform_indices = @transform_2, window_bounds = array<i64: 1, 128>}, {transform_indices = @transform_3, window_bounds = array<i64: 1, 8, 8, 128>}]} {
    %c0 = arith.constant 0 : index
    %c0_0 = arith.constant 0 : index
    %c0_1 = arith.constant 0 : index
    %c0_2 = arith.constant 0 : index
    %0 = vector.load %arg1[%c0, %c0_0, %c0_1, %c0_2] : memref<1x10x10x128xbf16, #tpu.memory_space<vmem>>, vector<1x10x10x128xbf16>
    %1 = vector.shape_cast %0 : vector<1x10x10x128xbf16> to vector<10x10x128xbf16>
    %cst = arith.constant 0.000000e+00 : f32
    %2 = vector.broadcast %cst : f32 to vector<64x128xf32>
    %c0_3 = arith.constant 0 : index
    %c0_4 = arith.constant 0 : index
    %3 = vector.load %arg3[%c0_3, %c0_4] : memref<1x128xf32, #tpu.memory_space<vmem>>, vector<1x128xf32>
    %4 = vector.broadcast %3 : vector<1x128xf32> to vector<64x128xf32>
    %5 = arith.addf %2, %4 : vector<64x128xf32>
    %6 = vector.extract_strided_slice %1 {offsets = [0, 0, 0], sizes = [8, 8, 128], strides = [1, 1, 1]} : vector<10x10x128xbf16> to vector<8x8x128xbf16>
    %7 = vector.shape_cast %6 : vector<8x8x128xbf16> to vector<64x128xbf16>
    %c0_5 = arith.constant 0 : index
    %c0_6 = arith.constant 0 : index
    %c0_7 = arith.constant 0 : index
    %8 = vector.load %arg2[%c0_5, %c0_6, %c0_7] : memref<9x128x128xbf16, #tpu.memory_space<vmem>>, vector<1x128x128xbf16>
    %9 = vector.shape_cast %8 : vector<1x128x128xbf16> to vector<128x128xbf16>
    %cst_8 = arith.constant dense<0.000000e+00> : vector<64x128xf32>
    %10 = tpu.matmul %7, %9, %cst_8 {dimension_numbers = #tpu.dot_dimension_numbers<[1], [0], [0], [1], [0, 0, 1, 1], [], []>} : vector<64x128xbf16>, vector<128x128xbf16>, vector<64x128xf32> -> vector<64x128xf32>
    %11 = arith.addf %5, %10 : vector<64x128xf32>
    %12 = vector.extract_strided_slice %1 {offsets = [0, 1, 0], sizes = [8, 8, 128], strides = [1, 1, 1]} : vector<10x10x128xbf16> to vector<8x8x128xbf16>
    %13 = vector.shape_cast %12 : vector<8x8x128xbf16> to vector<64x128xbf16>
    %c1 = arith.constant 1 : index
    %c0_9 = arith.constant 0 : index
    %c0_10 = arith.constant 0 : index
    %14 = vector.load %arg2[%c1, %c0_9, %c0_10] : memref<9x128x128xbf16, #tpu.memory_space<vmem>>, vector<1x128x128xbf16>
    %15 = vector.shape_cast %14 : vector<1x128x128xbf16> to vector<128x128xbf16>
    %cst_11 = arith.constant dense<0.000000e+00> : vector<64x128xf32>
    %16 = tpu.matmul %13, %15, %cst_11 {dimension_numbers = #tpu.dot_dimension_numbers<[1], [0], [0], [1], [0, 0, 1, 1], [], []>} : vector<64x128xbf16>, vector<128x128xbf16>, vector<64x128xf32> -> vector<64x128xf32>
    %17 = arith.addf %11, %16 : vector<64x128xf32>
    %18 = vector.extract_strided_slice %1 {offsets = [0, 2, 0], sizes = [8, 8, 128], strides = [1, 1, 1]} : vector<10x10x128xbf16> to vector<8x8x128xbf16>
    %19 = vector.shape_cast %18 : vector<8x8x128xbf16> to vector<64x128xbf16>
    %c2 = arith.constant 2 : index
    %c0_12 = arith.constant 0 : index
    %c0_13 = arith.constant 0 : index
    %20 = vector.load %arg2[%c2, %c0_12, %c0_13] : memref<9x128x128xbf16, #tpu.memory_space<vmem>>, vector<1x128x128xbf16>
    %21 = vector.shape_cast %20 : vector<1x128x128xbf16> to vector<128x128xbf16>
    %cst_14 = arith.constant dense<0.000000e+00> : vector<64x128xf32>
    %22 = tpu.matmul %19, %21, %cst_14 {dimension_numbers = #tpu.dot_dimension_numbers<[1], [0], [0], [1], [0, 0, 1, 1], [], []>} : vector<64x128xbf16>, vector<128x128xbf16>, vector<64x128xf32> -> vector<64x128xf32>
    %23 = arith.addf %17, %22 : vector<64x128xf32>
    %24 = vector.extract_strided_slice %1 {offsets = [1, 0, 0], sizes = [8, 8, 128], strides = [1, 1, 1]} : vector<10x10x128xbf16> to vector<8x8x128xbf16>
    %25 = vector.shape_cast %24 : vector<8x8x128xbf16> to vector<64x128xbf16>
    %c3 = arith.constant 3 : index
    %c0_15 = arith.constant 0 : index
    %c0_16 = arith.constant 0 : index
    %26 = vector.load %arg2[%c3, %c0_15, %c0_16] : memref<9x128x128xbf16, #tpu.memory_space<vmem>>, vector<1x128x128xbf16>
    %27 = vector.shape_cast %26 : vector<1x128x128xbf16> to vector<128x128xbf16>
    %cst_17 = arith.constant dense<0.000000e+00> : vector<64x128xf32>
    %28 = tpu.matmul %25, %27, %cst_17 {dimension_numbers = #tpu.dot_dimension_numbers<[1], [0], [0], [1], [0, 0, 1, 1], [], []>} : vector<64x128xbf16>, vector<128x128xbf16>, vector<64x128xf32> -> vector<64x128xf32>
    %29 = arith.addf %23, %28 : vector<64x128xf32>
    %30 = vector.extract_strided_slice %1 {offsets = [1, 1, 0], sizes = [8, 8, 128], strides = [1, 1, 1]} : vector<10x10x128xbf16> to vector<8x8x128xbf16>
    %31 = vector.shape_cast %30 : vector<8x8x128xbf16> to vector<64x128xbf16>
    %c4 = arith.constant 4 : index
    %c0_18 = arith.constant 0 : index
    %c0_19 = arith.constant 0 : index
    %32 = vector.load %arg2[%c4, %c0_18, %c0_19] : memref<9x128x128xbf16, #tpu.memory_space<vmem>>, vector<1x128x128xbf16>
    %33 = vector.shape_cast %32 : vector<1x128x128xbf16> to vector<128x128xbf16>
    %cst_20 = arith.constant dense<0.000000e+00> : vector<64x128xf32>
    %34 = tpu.matmul %31, %33, %cst_20 {dimension_numbers = #tpu.dot_dimension_numbers<[1], [0], [0], [1], [0, 0, 1, 1], [], []>} : vector<64x128xbf16>, vector<128x128xbf16>, vector<64x128xf32> -> vector<64x128xf32>
    %35 = arith.addf %29, %34 : vector<64x128xf32>
    %36 = vector.extract_strided_slice %1 {offsets = [1, 2, 0], sizes = [8, 8, 128], strides = [1, 1, 1]} : vector<10x10x128xbf16> to vector<8x8x128xbf16>
    %37 = vector.shape_cast %36 : vector<8x8x128xbf16> to vector<64x128xbf16>
    %c5 = arith.constant 5 : index
    %c0_21 = arith.constant 0 : index
    %c0_22 = arith.constant 0 : index
    %38 = vector.load %arg2[%c5, %c0_21, %c0_22] : memref<9x128x128xbf16, #tpu.memory_space<vmem>>, vector<1x128x128xbf16>
    %39 = vector.shape_cast %38 : vector<1x128x128xbf16> to vector<128x128xbf16>
    %cst_23 = arith.constant dense<0.000000e+00> : vector<64x128xf32>
    %40 = tpu.matmul %37, %39, %cst_23 {dimension_numbers = #tpu.dot_dimension_numbers<[1], [0], [0], [1], [0, 0, 1, 1], [], []>} : vector<64x128xbf16>, vector<128x128xbf16>, vector<64x128xf32> -> vector<64x128xf32>
    %41 = arith.addf %35, %40 : vector<64x128xf32>
    %42 = vector.extract_strided_slice %1 {offsets = [2, 0, 0], sizes = [8, 8, 128], strides = [1, 1, 1]} : vector<10x10x128xbf16> to vector<8x8x128xbf16>
    %43 = vector.shape_cast %42 : vector<8x8x128xbf16> to vector<64x128xbf16>
    %c6 = arith.constant 6 : index
    %c0_24 = arith.constant 0 : index
    %c0_25 = arith.constant 0 : index
    %44 = vector.load %arg2[%c6, %c0_24, %c0_25] : memref<9x128x128xbf16, #tpu.memory_space<vmem>>, vector<1x128x128xbf16>
    %45 = vector.shape_cast %44 : vector<1x128x128xbf16> to vector<128x128xbf16>
    %cst_26 = arith.constant dense<0.000000e+00> : vector<64x128xf32>
    %46 = tpu.matmul %43, %45, %cst_26 {dimension_numbers = #tpu.dot_dimension_numbers<[1], [0], [0], [1], [0, 0, 1, 1], [], []>} : vector<64x128xbf16>, vector<128x128xbf16>, vector<64x128xf32> -> vector<64x128xf32>
    %47 = arith.addf %41, %46 : vector<64x128xf32>
    %48 = vector.extract_strided_slice %1 {offsets = [2, 1, 0], sizes = [8, 8, 128], strides = [1, 1, 1]} : vector<10x10x128xbf16> to vector<8x8x128xbf16>
    %49 = vector.shape_cast %48 : vector<8x8x128xbf16> to vector<64x128xbf16>
    %c7 = arith.constant 7 : index
    %c0_27 = arith.constant 0 : index
    %c0_28 = arith.constant 0 : index
    %50 = vector.load %arg2[%c7, %c0_27, %c0_28] : memref<9x128x128xbf16, #tpu.memory_space<vmem>>, vector<1x128x128xbf16>
    %51 = vector.shape_cast %50 : vector<1x128x128xbf16> to vector<128x128xbf16>
    %cst_29 = arith.constant dense<0.000000e+00> : vector<64x128xf32>
    %52 = tpu.matmul %49, %51, %cst_29 {dimension_numbers = #tpu.dot_dimension_numbers<[1], [0], [0], [1], [0, 0, 1, 1], [], []>} : vector<64x128xbf16>, vector<128x128xbf16>, vector<64x128xf32> -> vector<64x128xf32>
    %53 = arith.addf %47, %52 : vector<64x128xf32>
    %54 = vector.extract_strided_slice %1 {offsets = [2, 2, 0], sizes = [8, 8, 128], strides = [1, 1, 1]} : vector<10x10x128xbf16> to vector<8x8x128xbf16>
    %55 = vector.shape_cast %54 : vector<8x8x128xbf16> to vector<64x128xbf16>
    %c8 = arith.constant 8 : index
    %c0_30 = arith.constant 0 : index
    %c0_31 = arith.constant 0 : index
    %56 = vector.load %arg2[%c8, %c0_30, %c0_31] : memref<9x128x128xbf16, #tpu.memory_space<vmem>>, vector<1x128x128xbf16>
    %57 = vector.shape_cast %56 : vector<1x128x128xbf16> to vector<128x128xbf16>
    %cst_32 = arith.constant dense<0.000000e+00> : vector<64x128xf32>
    %58 = tpu.matmul %55, %57, %cst_32 {dimension_numbers = #tpu.dot_dimension_numbers<[1], [0], [0], [1], [0, 0, 1, 1], [], []>} : vector<64x128xbf16>, vector<128x128xbf16>, vector<64x128xf32> -> vector<64x128xf32>
    %59 = arith.addf %53, %58 : vector<64x128xf32>
    %cst_33 = arith.constant 0.000000e+00 : f32
    %60 = vector.broadcast %cst_33 : f32 to vector<64x128xf32>
    %61 = arith.maximumf %59, %60 : vector<64x128xf32>
    %62 = vector.shape_cast %61 : vector<64x128xf32> to vector<1x8x8x128xf32>
    %63 = arith.truncf %62 : vector<1x8x8x128xf32> to vector<1x8x8x128xbf16>
    %c0_34 = arith.constant 0 : index
    %c0_35 = arith.constant 0 : index
    %c0_36 = arith.constant 0 : index
    %c0_37 = arith.constant 0 : index
    %64 = vector.load %arg4[%c0_34, %c0_35, %c0_36, %c0_37] : memref<1x8x8x128xbf16, #tpu.memory_space<vmem>>, vector<1x8x8x128xbf16>
    tpu.vector_store %arg4[%c0_34, %c0_35, %c0_36, %c0_37], %63 {strides = array<i32>} : memref<1x8x8x128xbf16, #tpu.memory_space<vmem>>, vector<1x8x8x128xbf16>,
    return
  }
  func.func @transform_0(%arg0: i32) -> (i32, i32, i32, i32) {
    %c0_i32 = arith.constant 0 : i32
    %c0_i32_0 = arith.constant 0 : i32
    %c0_i32_1 = arith.constant 0 : i32
    %c0_i32_2 = arith.constant 0 : i32
    return %arg0, %c0_i32, %c0_i32_0, %c0_i32_1 : i32, i32, i32, i32
  }
  func.func @transform_1(%arg0: i32) -> (i32, i32, i32) {
    %c0_i32 = arith.constant 0 : i32
    %c0_i32_0 = arith.constant 0 : i32
    %c0_i32_1 = arith.constant 0 : i32
    %c0_i32_2 = arith.constant 0 : i32
    return %c0_i32, %c0_i32_0, %c0_i32_1 : i32, i32, i32
  }
  func.func @transform_2(%arg0: i32) -> (i32, i32) {
    %c0_i32 = arith.constant 0 : i32
    %c0_i32_0 = arith.constant 0 : i32
    %c0_i32_1 = arith.constant 0 : i32
    return %c0_i32, %c0_i32_0 : i32, i32
  }
  func.func @transform_3(%arg0: i32) -> (i32, i32, i32, i32) {
    %c0_i32 = arith.constant 0 : i32
    %c0_i32_0 = arith.constant 0 : i32
    %c0_i32_1 = arith.constant 0 : i32
    %c0_i32_2 = arith.constant 0 : i32
    return %arg0, %c0_i32, %c0_i32_0, %c0_i32_1 : i32, i32, i32, i32
  }
}

module attributes {stable_mosaic.version = 11 : i64} {
  func.func @_gemm_kernel(%arg0: i32, %arg1: i32, %arg2: i32, %arg3: memref<32x128xbf16, #tpu.memory_space<vmem>>, %arg4: memref<128x128xbf16, #tpu.memory_space<vmem>>, %arg5: memref<1x128xf32, #tpu.memory_space<vmem>>, %arg6: memref<32x128xbf16, #tpu.memory_space<vmem>>, %arg7: memref<32x128xf32, #tpu.memory_space<vmem>>) attributes {dimension_semantics = [#tpu.dimension_semantics<parallel>, #tpu.dimension_semantics<parallel>, #tpu.dimension_semantics<arbitrary>], iteration_bounds = array<i64: 1, 2, 9>, scalar_prefetch = 0 : i64, scratch_operands = 1 : i64, tpu.core_type = #tpu.core_type<tc>, window_params = [{transform_indices = @transform_0, window_bounds = array<i64: 32, 128>}, {transform_indices = @transform_1, window_bounds = array<i64: 128, 128>}, {transform_indices = @transform_2, window_bounds = array<i64: 1, 128>}, {transform_indices = @transform_3, window_bounds = array<i64: 32, 128>}]} {
    %c0_i32 = arith.constant 0 : i32
    %0 = arith.cmpi eq, %arg2, %c0_i32 : i32
    %1 = arith.extui %0 : i1 to i32
    %c0_i32_0 = arith.constant 0 : i32
    %2 = arith.cmpi ne, %1, %c0_i32_0 : i32
    scf.if %2 {
      %cst_9 = arith.constant 0.000000e+00 : f32
      %12 = vector.broadcast %cst_9 : f32 to vector<32x128xf32>
      %c0_10 = arith.constant 0 : index
      %c0_11 = arith.constant 0 : index
      %13 = vector.load %arg7[%c0_10, %c0_11] : memref<32x128xf32, #tpu.memory_space<vmem>>, vector<32x128xf32>
      tpu.vector_store %arg7[%c0_10, %c0_11], %12 {strides = array<i32>} : memref<32x128xf32, #tpu.memory_space<vmem>>, vector<32x128xf32>,
    } else {
    }
    %c0 = arith.constant 0 : index
    %c0_1 = arith.constant 0 : index
    %3 = vector.load %arg7[%c0, %c0_1] : memref<32x128xf32, #tpu.memory_space<vmem>>, vector<32x128xf32>
    %c0_2 = arith.constant 0 : index
    %c0_3 = arith.constant 0 : index
    %4 = vector.load %arg3[%c0_2, %c0_3] : memref<32x128xbf16, #tpu.memory_space<vmem>>, vector<32x128xbf16>
    %c0_4 = arith.constant 0 : index
    %c0_5 = arith.constant 0 : index
    %5 = vector.load %arg4[%c0_4, %c0_5] : memref<128x128xbf16, #tpu.memory_space<vmem>>, vector<128x128xbf16>
    %cst = arith.constant dense<0.000000e+00> : vector<32x128xf32>
    %6 = tpu.matmul %4, %5, %cst {dimension_numbers = #tpu.dot_dimension_numbers<[1], [0], [0], [1], [0, 0, 1, 1], [], []>} : vector<32x128xbf16>, vector<128x128xbf16>, vector<32x128xf32> -> vector<32x128xf32>
    %7 = arith.addf %3, %6 : vector<32x128xf32>
    %c0_6 = arith.constant 0 : index
    %c0_7 = arith.constant 0 : index
    %8 = vector.load %arg7[%c0_6, %c0_7] : memref<32x128xf32, #tpu.memory_space<vmem>>, vector<32x128xf32>
    tpu.vector_store %arg7[%c0_6, %c0_7], %7 {strides = array<i32>} : memref<32x128xf32, #tpu.memory_space<vmem>>, vector<32x128xf32>,
    %c8_i32 = arith.constant 8 : i32
    %9 = arith.cmpi eq, %arg2, %c8_i32 : i32
    %10 = arith.extui %9 : i1 to i32
    %c0_i32_8 = arith.constant 0 : i32
    %11 = arith.cmpi ne, %10, %c0_i32_8 : i32
    scf.if %11 {
      %c0_9 = arith.constant 0 : index
      %c0_10 = arith.constant 0 : index
      %12 = vector.load %arg7[%c0_9, %c0_10] : memref<32x128xf32, #tpu.memory_space<vmem>>, vector<32x128xf32>
      %c0_11 = arith.constant 0 : index
      %c0_12 = arith.constant 0 : index
      %13 = vector.load %arg5[%c0_11, %c0_12] : memref<1x128xf32, #tpu.memory_space<vmem>>, vector<1x128xf32>
      %14 = vector.broadcast %13 : vector<1x128xf32> to vector<32x128xf32>
      %15 = arith.addf %12, %14 : vector<32x128xf32>
      %cst_13 = arith.constant 0.000000e+00 : f32
      %16 = vector.broadcast %cst_13 : f32 to vector<32x128xf32>
      %17 = arith.maximumf %15, %16 : vector<32x128xf32>
      %18 = arith.truncf %17 : vector<32x128xf32> to vector<32x128xbf16>
      %c0_14 = arith.constant 0 : index
      %c0_15 = arith.constant 0 : index
      %19 = vector.load %arg6[%c0_14, %c0_15] : memref<32x128xbf16, #tpu.memory_space<vmem>>, vector<32x128xbf16>
      tpu.vector_store %arg6[%c0_14, %c0_15], %18 {strides = array<i32>} : memref<32x128xbf16, #tpu.memory_space<vmem>>, vector<32x128xbf16>,
    } else {
    }
    return
  }
  func.func @transform_0(%arg0: i32, %arg1: i32, %arg2: i32) -> (i32, i32) {
    %c0_i32 = arith.constant 0 : i32
    return %arg0, %arg2 : i32, i32
  }
  func.func @transform_1(%arg0: i32, %arg1: i32, %arg2: i32) -> (i32, i32) {
    %c0_i32 = arith.constant 0 : i32
    return %arg2, %arg1 : i32, i32
  }
  func.func @transform_2(%arg0: i32, %arg1: i32, %arg2: i32) -> (i32, i32) {
    %c0_i32 = arith.constant 0 : i32
    %c0_i32_0 = arith.constant 0 : i32
    return %c0_i32, %arg1 : i32, i32
  }
  func.func @transform_3(%arg0: i32, %arg1: i32, %arg2: i32) -> (i32, i32) {
    %c0_i32 = arith.constant 0 : i32
    return %arg0, %arg1 : i32, i32
  }
}

module attributes {stable_mosaic.version = 11 : i64} {
  func.func @_gemm_kernel(%arg0: i32, %arg1: i32, %arg2: i32, %arg3: memref<32x128xbf16, #tpu.memory_space<vmem>>, %arg4: memref<128x128xbf16, #tpu.memory_space<vmem>>, %arg5: memref<1x128xf32, #tpu.memory_space<vmem>>, %arg6: memref<32x128xbf16, #tpu.memory_space<vmem>>, %arg7: memref<32x128xf32, #tpu.memory_space<vmem>>) attributes {dimension_semantics = [#tpu.dimension_semantics<parallel>, #tpu.dimension_semantics<parallel>, #tpu.dimension_semantics<arbitrary>], iteration_bounds = array<i64: 1, 2, 1>, scalar_prefetch = 0 : i64, scratch_operands = 1 : i64, tpu.core_type = #tpu.core_type<tc>, window_params = [{transform_indices = @transform_0, window_bounds = array<i64: 32, 128>}, {transform_indices = @transform_1, window_bounds = array<i64: 128, 128>}, {transform_indices = @transform_2, window_bounds = array<i64: 1, 128>}, {transform_indices = @transform_3, window_bounds = array<i64: 32, 128>}]} {
    %c0_i32 = arith.constant 0 : i32
    %0 = arith.cmpi eq, %arg2, %c0_i32 : i32
    %1 = arith.extui %0 : i1 to i32
    %c0_i32_0 = arith.constant 0 : i32
    %2 = arith.cmpi ne, %1, %c0_i32_0 : i32
    scf.if %2 {
      %cst_10 = arith.constant 0.000000e+00 : f32
      %12 = vector.broadcast %cst_10 : f32 to vector<32x128xf32>
      %c0_11 = arith.constant 0 : index
      %c0_12 = arith.constant 0 : index
      %13 = vector.load %arg7[%c0_11, %c0_12] : memref<32x128xf32, #tpu.memory_space<vmem>>, vector<32x128xf32>
      tpu.vector_store %arg7[%c0_11, %c0_12], %12 {strides = array<i32>} : memref<32x128xf32, #tpu.memory_space<vmem>>, vector<32x128xf32>,
    } else {
    }
    %c0 = arith.constant 0 : index
    %c0_1 = arith.constant 0 : index
    %3 = vector.load %arg7[%c0, %c0_1] : memref<32x128xf32, #tpu.memory_space<vmem>>, vector<32x128xf32>
    %c0_2 = arith.constant 0 : index
    %c0_3 = arith.constant 0 : index
    %4 = vector.load %arg3[%c0_2, %c0_3] : memref<32x128xbf16, #tpu.memory_space<vmem>>, vector<32x128xbf16>
    %c0_4 = arith.constant 0 : index
    %c0_5 = arith.constant 0 : index
    %5 = vector.load %arg4[%c0_4, %c0_5] : memref<128x128xbf16, #tpu.memory_space<vmem>>, vector<128x128xbf16>
    %cst = arith.constant dense<0.000000e+00> : vector<32x128xf32>
    %6 = tpu.matmul %4, %5, %cst {dimension_numbers = #tpu.dot_dimension_numbers<[1], [0], [0], [1], [0, 0, 1, 1], [], []>} : vector<32x128xbf16>, vector<128x128xbf16>, vector<32x128xf32> -> vector<32x128xf32>
    %7 = arith.addf %3, %6 : vector<32x128xf32>
    %c0_6 = arith.constant 0 : index
    %c0_7 = arith.constant 0 : index
    %8 = vector.load %arg7[%c0_6, %c0_7] : memref<32x128xf32, #tpu.memory_space<vmem>>, vector<32x128xf32>
    tpu.vector_store %arg7[%c0_6, %c0_7], %7 {strides = array<i32>} : memref<32x128xf32, #tpu.memory_space<vmem>>, vector<32x128xf32>,
    %c0_i32_8 = arith.constant 0 : i32
    %9 = arith.cmpi eq, %arg2, %c0_i32_8 : i32
    %10 = arith.extui %9 : i1 to i32
    %c0_i32_9 = arith.constant 0 : i32
    %11 = arith.cmpi ne, %10, %c0_i32_9 : i32
    scf.if %11 {
      %c0_10 = arith.constant 0 : index
      %c0_11 = arith.constant 0 : index
      %12 = vector.load %arg7[%c0_10, %c0_11] : memref<32x128xf32, #tpu.memory_space<vmem>>, vector<32x128xf32>
      %c0_12 = arith.constant 0 : index
      %c0_13 = arith.constant 0 : index
      %13 = vector.load %arg5[%c0_12, %c0_13] : memref<1x128xf32, #tpu.memory_space<vmem>>, vector<1x128xf32>
      %14 = vector.broadcast %13 : vector<1x128xf32> to vector<32x128xf32>
      %15 = arith.addf %12, %14 : vector<32x128xf32>
      %16 = arith.truncf %15 : vector<32x128xf32> to vector<32x128xbf16>
      %c0_14 = arith.constant 0 : index
      %c0_15 = arith.constant 0 : index
      %17 = vector.load %arg6[%c0_14, %c0_15] : memref<32x128xbf16, #tpu.memory_space<vmem>>, vector<32x128xbf16>
      tpu.vector_store %arg6[%c0_14, %c0_15], %16 {strides = array<i32>} : memref<32x128xbf16, #tpu.memory_space<vmem>>, vector<32x128xbf16>,
    } else {
    }
    return
  }
  func.func @transform_0(%arg0: i32, %arg1: i32, %arg2: i32) -> (i32, i32) {
    %c0_i32 = arith.constant 0 : i32
    return %arg0, %arg2 : i32, i32
  }
  func.func @transform_1(%arg0: i32, %arg1: i32, %arg2: i32) -> (i32, i32) {
    %c0_i32 = arith.constant 0 : i32
    return %arg2, %arg1 : i32, i32
  }
  func.func @transform_2(%arg0: i32, %arg1: i32, %arg2: i32) -> (i32, i32) {
    %c0_i32 = arith.constant 0 : i32
    %c0_i32_0 = arith.constant 0 : i32
    return %c0_i32, %arg1 : i32, i32
  }
  func.func @transform_3(%arg0: i32, %arg1: i32, %arg2: i32) -> (i32, i32) {
    %c0_i32 = arith.constant 0 : i32
    return %arg0, %arg1 : i32, i32
  }
}

module attributes {stable_mosaic.version = 11 : i64} {
  func.func @_gemm_kernel(%arg0: i32, %arg1: i32, %arg2: i32, %arg3: memref<32x256xbf16, #tpu.memory_space<vmem>>, %arg4: memref<256x128xbf16, #tpu.memory_space<vmem>>, %arg5: memref<1x128xf32, #tpu.memory_space<vmem>>, %arg6: memref<32x128xbf16, #tpu.memory_space<vmem>>, %arg7: memref<32x128xbf16, #tpu.memory_space<vmem>>, %arg8: memref<32x128xf32, #tpu.memory_space<vmem>>) attributes {dimension_semantics = [#tpu.dimension_semantics<parallel>, #tpu.dimension_semantics<parallel>, #tpu.dimension_semantics<arbitrary>], iteration_bounds = array<i64: 1, 2, 9>, scalar_prefetch = 0 : i64, scratch_operands = 1 : i64, tpu.core_type = #tpu.core_type<tc>, window_params = [{transform_indices = @transform_0, window_bounds = array<i64: 32, 256>}, {transform_indices = @transform_1, window_bounds = array<i64: 256, 128>}, {transform_indices = @transform_2, window_bounds = array<i64: 1, 128>}, {transform_indices = @transform_3, window_bounds = array<i64: 32, 128>}, {transform_indices = @transform_4, window_bounds = array<i64: 32, 128>}]} {
    %c0_i32 = arith.constant 0 : i32
    %0 = arith.cmpi eq, %arg2, %c0_i32 : i32
    %1 = arith.extui %0 : i1 to i32
    %c0_i32_0 = arith.constant 0 : i32
    %2 = arith.cmpi ne, %1, %c0_i32_0 : i32
    scf.if %2 {
      %cst_9 = arith.constant 0.000000e+00 : f32
      %12 = vector.broadcast %cst_9 : f32 to vector<32x128xf32>
      %c0_10 = arith.constant 0 : index
      %c0_11 = arith.constant 0 : index
      %13 = vector.load %arg8[%c0_10, %c0_11] : memref<32x128xf32, #tpu.memory_space<vmem>>, vector<32x128xf32>
      tpu.vector_store %arg8[%c0_10, %c0_11], %12 {strides = array<i32>} : memref<32x128xf32, #tpu.memory_space<vmem>>, vector<32x128xf32>,
    } else {
    }
    %c0 = arith.constant 0 : index
    %c0_1 = arith.constant 0 : index
    %3 = vector.load %arg8[%c0, %c0_1] : memref<32x128xf32, #tpu.memory_space<vmem>>, vector<32x128xf32>
    %c0_2 = arith.constant 0 : index
    %c0_3 = arith.constant 0 : index
    %4 = vector.load %arg3[%c0_2, %c0_3] : memref<32x256xbf16, #tpu.memory_space<vmem>>, vector<32x256xbf16>
    %c0_4 = arith.constant 0 : index
    %c0_5 = arith.constant 0 : index
    %5 = vector.load %arg4[%c0_4, %c0_5] : memref<256x128xbf16, #tpu.memory_space<vmem>>, vector<256x128xbf16>
    %cst = arith.constant dense<0.000000e+00> : vector<32x128xf32>
    %6 = tpu.matmul %4, %5, %cst {dimension_numbers = #tpu.dot_dimension_numbers<[1], [0], [0], [1], [0, 0, 1, 1], [], []>} : vector<32x256xbf16>, vector<256x128xbf16>, vector<32x128xf32> -> vector<32x128xf32>
    %7 = arith.addf %3, %6 : vector<32x128xf32>
    %c0_6 = arith.constant 0 : index
    %c0_7 = arith.constant 0 : index
    %8 = vector.load %arg8[%c0_6, %c0_7] : memref<32x128xf32, #tpu.memory_space<vmem>>, vector<32x128xf32>
    tpu.vector_store %arg8[%c0_6, %c0_7], %7 {strides = array<i32>} : memref<32x128xf32, #tpu.memory_space<vmem>>, vector<32x128xf32>,
    %c8_i32 = arith.constant 8 : i32
    %9 = arith.cmpi eq, %arg2, %c8_i32 : i32
    %10 = arith.extui %9 : i1 to i32
    %c0_i32_8 = arith.constant 0 : i32
    %11 = arith.cmpi ne, %10, %c0_i32_8 : i32
    scf.if %11 {
      %c0_9 = arith.constant 0 : index
      %c0_10 = arith.constant 0 : index
      %12 = vector.load %arg8[%c0_9, %c0_10] : memref<32x128xf32, #tpu.memory_space<vmem>>, vector<32x128xf32>
      %c0_11 = arith.constant 0 : index
      %c0_12 = arith.constant 0 : index
      %13 = vector.load %arg5[%c0_11, %c0_12] : memref<1x128xf32, #tpu.memory_space<vmem>>, vector<1x128xf32>
      %14 = vector.broadcast %13 : vector<1x128xf32> to vector<32x128xf32>
      %15 = arith.addf %12, %14 : vector<32x128xf32>
      %c0_13 = arith.constant 0 : index
      %c0_14 = arith.constant 0 : index
      %16 = vector.load %arg6[%c0_13, %c0_14] : memref<32x128xbf16, #tpu.memory_space<vmem>>, vector<32x128xbf16>
      %17 = arith.extf %16 : vector<32x128xbf16> to vector<32x128xf32>
      %18 = arith.addf %15, %17 : vector<32x128xf32>
      %cst_15 = arith.constant 0.000000e+00 : f32
      %19 = vector.broadcast %cst_15 : f32 to vector<32x128xf32>
      %20 = arith.maximumf %18, %19 : vector<32x128xf32>
      %21 = arith.truncf %20 : vector<32x128xf32> to vector<32x128xbf16>
      %c0_16 = arith.constant 0 : index
      %c0_17 = arith.constant 0 : index
      %22 = vector.load %arg7[%c0_16, %c0_17] : memref<32x128xbf16, #tpu.memory_space<vmem>>, vector<32x128xbf16>
      tpu.vector_store %arg7[%c0_16, %c0_17], %21 {strides = array<i32>} : memref<32x128xbf16, #tpu.memory_space<vmem>>, vector<32x128xbf16>,
    } else {
    }
    return
  }
  func.func @transform_0(%arg0: i32, %arg1: i32, %arg2: i32) -> (i32, i32) {
    %c0_i32 = arith.constant 0 : i32
    return %arg0, %arg2 : i32, i32
  }
  func.func @transform_1(%arg0: i32, %arg1: i32, %arg2: i32) -> (i32, i32) {
    %c0_i32 = arith.constant 0 : i32
    return %arg2, %arg1 : i32, i32
  }
  func.func @transform_2(%arg0: i32, %arg1: i32, %arg2: i32) -> (i32, i32) {
    %c0_i32 = arith.constant 0 : i32
    %c0_i32_0 = arith.constant 0 : i32
    return %c0_i32, %arg1 : i32, i32
  }
  func.func @transform_3(%arg0: i32, %arg1: i32, %arg2: i32) -> (i32, i32) {
    %c0_i32 = arith.constant 0 : i32
    return %arg0, %arg1 : i32, i32
  }
  func.func @transform_4(%arg0: i32, %arg1: i32, %arg2: i32) -> (i32, i32) {
    %c0_i32 = arith.constant 0 : i32
    return %arg0, %arg1 : i32, i32
  }
}

module attributes {stable_mosaic.version = 11 : i64} {
  func.func @_gemm_kernel(%arg0: i32, %arg1: i32, %arg2: i32, %arg3: memref<32x256xbf16, #tpu.memory_space<vmem>>, %arg4: memref<256x128xbf16, #tpu.memory_space<vmem>>, %arg5: memref<1x128xf32, #tpu.memory_space<vmem>>, %arg6: memref<32x128xbf16, #tpu.memory_space<vmem>>, %arg7: memref<32x128xf32, #tpu.memory_space<vmem>>) attributes {dimension_semantics = [#tpu.dimension_semantics<parallel>, #tpu.dimension_semantics<parallel>, #tpu.dimension_semantics<arbitrary>], iteration_bounds = array<i64: 1, 2, 9>, scalar_prefetch = 0 : i64, scratch_operands = 1 : i64, tpu.core_type = #tpu.core_type<tc>, window_params = [{transform_indices = @transform_0, window_bounds = array<i64: 32, 256>}, {transform_indices = @transform_1, window_bounds = array<i64: 256, 128>}, {transform_indices = @transform_2, window_bounds = array<i64: 1, 128>}, {transform_indices = @transform_3, window_bounds = array<i64: 32, 128>}]} {
    %c0_i32 = arith.constant 0 : i32
    %0 = arith.cmpi eq, %arg2, %c0_i32 : i32
    %1 = arith.extui %0 : i1 to i32
    %c0_i32_0 = arith.constant 0 : i32
    %2 = arith.cmpi ne, %1, %c0_i32_0 : i32
    scf.if %2 {
      %cst_9 = arith.constant 0.000000e+00 : f32
      %12 = vector.broadcast %cst_9 : f32 to vector<32x128xf32>
      %c0_10 = arith.constant 0 : index
      %c0_11 = arith.constant 0 : index
      %13 = vector.load %arg7[%c0_10, %c0_11] : memref<32x128xf32, #tpu.memory_space<vmem>>, vector<32x128xf32>
      tpu.vector_store %arg7[%c0_10, %c0_11], %12 {strides = array<i32>} : memref<32x128xf32, #tpu.memory_space<vmem>>, vector<32x128xf32>,
    } else {
    }
    %c0 = arith.constant 0 : index
    %c0_1 = arith.constant 0 : index
    %3 = vector.load %arg7[%c0, %c0_1] : memref<32x128xf32, #tpu.memory_space<vmem>>, vector<32x128xf32>
    %c0_2 = arith.constant 0 : index
    %c0_3 = arith.constant 0 : index
    %4 = vector.load %arg3[%c0_2, %c0_3] : memref<32x256xbf16, #tpu.memory_space<vmem>>, vector<32x256xbf16>
    %c0_4 = arith.constant 0 : index
    %c0_5 = arith.constant 0 : index
    %5 = vector.load %arg4[%c0_4, %c0_5] : memref<256x128xbf16, #tpu.memory_space<vmem>>, vector<256x128xbf16>
    %cst = arith.constant dense<0.000000e+00> : vector<32x128xf32>
    %6 = tpu.matmul %4, %5, %cst {dimension_numbers = #tpu.dot_dimension_numbers<[1], [0], [0], [1], [0, 0, 1, 1], [], []>} : vector<32x256xbf16>, vector<256x128xbf16>, vector<32x128xf32> -> vector<32x128xf32>
    %7 = arith.addf %3, %6 : vector<32x128xf32>
    %c0_6 = arith.constant 0 : index
    %c0_7 = arith.constant 0 : index
    %8 = vector.load %arg7[%c0_6, %c0_7] : memref<32x128xf32, #tpu.memory_space<vmem>>, vector<32x128xf32>
    tpu.vector_store %arg7[%c0_6, %c0_7], %7 {strides = array<i32>} : memref<32x128xf32, #tpu.memory_space<vmem>>, vector<32x128xf32>,
    %c8_i32 = arith.constant 8 : i32
    %9 = arith.cmpi eq, %arg2, %c8_i32 : i32
    %10 = arith.extui %9 : i1 to i32
    %c0_i32_8 = arith.constant 0 : i32
    %11 = arith.cmpi ne, %10, %c0_i32_8 : i32
    scf.if %11 {
      %c0_9 = arith.constant 0 : index
      %c0_10 = arith.constant 0 : index
      %12 = vector.load %arg7[%c0_9, %c0_10] : memref<32x128xf32, #tpu.memory_space<vmem>>, vector<32x128xf32>
      %c0_11 = arith.constant 0 : index
      %c0_12 = arith.constant 0 : index
      %13 = vector.load %arg5[%c0_11, %c0_12] : memref<1x128xf32, #tpu.memory_space<vmem>>, vector<1x128xf32>
      %14 = vector.broadcast %13 : vector<1x128xf32> to vector<32x128xf32>
      %15 = arith.addf %12, %14 : vector<32x128xf32>
      %cst_13 = arith.constant 0.000000e+00 : f32
      %16 = vector.broadcast %cst_13 : f32 to vector<32x128xf32>
      %17 = arith.maximumf %15, %16 : vector<32x128xf32>
      %18 = arith.truncf %17 : vector<32x128xf32> to vector<32x128xbf16>
      %c0_14 = arith.constant 0 : index
      %c0_15 = arith.constant 0 : index
      %19 = vector.load %arg6[%c0_14, %c0_15] : memref<32x128xbf16, #tpu.memory_space<vmem>>, vector<32x128xbf16>
      tpu.vector_store %arg6[%c0_14, %c0_15], %18 {strides = array<i32>} : memref<32x128xbf16, #tpu.memory_space<vmem>>, vector<32x128xbf16>,
    } else {
    }
    return
  }
  func.func @transform_0(%arg0: i32, %arg1: i32, %arg2: i32) -> (i32, i32) {
    %c0_i32 = arith.constant 0 : i32
    return %arg0, %arg2 : i32, i32
  }
  func.func @transform_1(%arg0: i32, %arg1: i32, %arg2: i32) -> (i32, i32) {
    %c0_i32 = arith.constant 0 : i32
    return %arg2, %arg1 : i32, i32
  }
  func.func @transform_2(%arg0: i32, %arg1: i32, %arg2: i32) -> (i32, i32) {
    %c0_i32 = arith.constant 0 : i32
    %c0_i32_0 = arith.constant 0 : i32
    return %c0_i32, %arg1 : i32, i32
  }
  func.func @transform_3(%arg0: i32, %arg1: i32, %arg2: i32) -> (i32, i32) {
    %c0_i32 = arith.constant 0 : i32
    return %arg0, %arg1 : i32, i32
  }
}

module attributes {stable_mosaic.version = 11 : i64} {
  func.func @_gemm_kernel(%arg0: i32, %arg1: i32, %arg2: i32, %arg3: memref<8x256xbf16, #tpu.memory_space<vmem>>, %arg4: memref<256x128xbf16, #tpu.memory_space<vmem>>, %arg5: memref<1x128xf32, #tpu.memory_space<vmem>>, %arg6: memref<8x128xbf16, #tpu.memory_space<vmem>>, %arg7: memref<8x128xf32, #tpu.memory_space<vmem>>) attributes {dimension_semantics = [#tpu.dimension_semantics<parallel>, #tpu.dimension_semantics<parallel>, #tpu.dimension_semantics<arbitrary>], iteration_bounds = array<i64: 1, 4, 9>, scalar_prefetch = 0 : i64, scratch_operands = 1 : i64, tpu.core_type = #tpu.core_type<tc>, window_params = [{transform_indices = @transform_0, window_bounds = array<i64: 8, 256>}, {transform_indices = @transform_1, window_bounds = array<i64: 256, 128>}, {transform_indices = @transform_2, window_bounds = array<i64: 1, 128>}, {transform_indices = @transform_3, window_bounds = array<i64: 8, 128>}]} {
    %c0_i32 = arith.constant 0 : i32
    %0 = arith.cmpi eq, %arg2, %c0_i32 : i32
    %1 = arith.extui %0 : i1 to i32
    %c0_i32_0 = arith.constant 0 : i32
    %2 = arith.cmpi ne, %1, %c0_i32_0 : i32
    scf.if %2 {
      %cst_9 = arith.constant 0.000000e+00 : f32
      %12 = vector.broadcast %cst_9 : f32 to vector<8x128xf32>
      %c0_10 = arith.constant 0 : index
      %c0_11 = arith.constant 0 : index
      %13 = vector.load %arg7[%c0_10, %c0_11] : memref<8x128xf32, #tpu.memory_space<vmem>>, vector<8x128xf32>
      tpu.vector_store %arg7[%c0_10, %c0_11], %12 {strides = array<i32>} : memref<8x128xf32, #tpu.memory_space<vmem>>, vector<8x128xf32>,
    } else {
    }
    %c0 = arith.constant 0 : index
    %c0_1 = arith.constant 0 : index
    %3 = vector.load %arg7[%c0, %c0_1] : memref<8x128xf32, #tpu.memory_space<vmem>>, vector<8x128xf32>
    %c0_2 = arith.constant 0 : index
    %c0_3 = arith.constant 0 : index
    %4 = vector.load %arg3[%c0_2, %c0_3] : memref<8x256xbf16, #tpu.memory_space<vmem>>, vector<8x256xbf16>
    %c0_4 = arith.constant 0 : index
    %c0_5 = arith.constant 0 : index
    %5 = vector.load %arg4[%c0_4, %c0_5] : memref<256x128xbf16, #tpu.memory_space<vmem>>, vector<256x128xbf16>
    %cst = arith.constant dense<0.000000e+00> : vector<8x128xf32>
    %6 = tpu.matmul %4, %5, %cst {dimension_numbers = #tpu.dot_dimension_numbers<[1], [0], [0], [1], [0, 0, 1, 1], [], []>} : vector<8x256xbf16>, vector<256x128xbf16>, vector<8x128xf32> -> vector<8x128xf32>
    %7 = arith.addf %3, %6 : vector<8x128xf32>
    %c0_6 = arith.constant 0 : index
    %c0_7 = arith.constant 0 : index
    %8 = vector.load %arg7[%c0_6, %c0_7] : memref<8x128xf32, #tpu.memory_space<vmem>>, vector<8x128xf32>
    tpu.vector_store %arg7[%c0_6, %c0_7], %7 {strides = array<i32>} : memref<8x128xf32, #tpu.memory_space<vmem>>, vector<8x128xf32>,
    %c8_i32 = arith.constant 8 : i32
    %9 = arith.cmpi eq, %arg2, %c8_i32 : i32
    %10 = arith.extui %9 : i1 to i32
    %c0_i32_8 = arith.constant 0 : i32
    %11 = arith.cmpi ne, %10, %c0_i32_8 : i32
    scf.if %11 {
      %c0_9 = arith.constant 0 : index
      %c0_10 = arith.constant 0 : index
      %12 = vector.load %arg7[%c0_9, %c0_10] : memref<8x128xf32, #tpu.memory_space<vmem>>, vector<8x128xf32>
      %c0_11 = arith.constant 0 : index
      %c0_12 = arith.constant 0 : index
      %13 = vector.load %arg5[%c0_11, %c0_12] : memref<1x128xf32, #tpu.memory_space<vmem>>, vector<1x128xf32>
      %14 = vector.broadcast %13 : vector<1x128xf32> to vector<8x128xf32>
      %15 = arith.addf %12, %14 : vector<8x128xf32>
      %cst_13 = arith.constant 0.000000e+00 : f32
      %16 = vector.broadcast %cst_13 : f32 to vector<8x128xf32>
      %17 = arith.maximumf %15, %16 : vector<8x128xf32>
      %18 = arith.truncf %17 : vector<8x128xf32> to vector<8x128xbf16>
      %c0_14 = arith.constant 0 : index
      %c0_15 = arith.constant 0 : index
      %19 = vector.load %arg6[%c0_14, %c0_15] : memref<8x128xbf16, #tpu.memory_space<vmem>>, vector<8x128xbf16>
      tpu.vector_store %arg6[%c0_14, %c0_15], %18 {strides = array<i32>} : memref<8x128xbf16, #tpu.memory_space<vmem>>, vector<8x128xbf16>,
    } else {
    }
    return
  }
  func.func @transform_0(%arg0: i32, %arg1: i32, %arg2: i32) -> (i32, i32) {
    %c0_i32 = arith.constant 0 : i32
    return %arg0, %arg2 : i32, i32
  }
  func.func @transform_1(%arg0: i32, %arg1: i32, %arg2: i32) -> (i32, i32) {
    %c0_i32 = arith.constant 0 : i32
    return %arg2, %arg1 : i32, i32
  }
  func.func @transform_2(%arg0: i32, %arg1: i32, %arg2: i32) -> (i32, i32) {
    %c0_i32 = arith.constant 0 : i32
    %c0_i32_0 = arith.constant 0 : i32
    return %c0_i32, %arg1 : i32, i32
  }
  func.func @transform_3(%arg0: i32, %arg1: i32, %arg2: i32) -> (i32, i32) {
    %c0_i32 = arith.constant 0 : i32
    return %arg0, %arg1 : i32, i32
  }
}

module attributes {stable_mosaic.version = 11 : i64} {
  func.func @_gemm_kernel(%arg0: i32, %arg1: i32, %arg2: i32, %arg3: memref<8x256xbf16, #tpu.memory_space<vmem>>, %arg4: memref<256x128xbf16, #tpu.memory_space<vmem>>, %arg5: memref<1x128xf32, #tpu.memory_space<vmem>>, %arg6: memref<8x128xbf16, #tpu.memory_space<vmem>>, %arg7: memref<8x128xf32, #tpu.memory_space<vmem>>) attributes {dimension_semantics = [#tpu.dimension_semantics<parallel>, #tpu.dimension_semantics<parallel>, #tpu.dimension_semantics<arbitrary>], iteration_bounds = array<i64: 1, 4, 1>, scalar_prefetch = 0 : i64, scratch_operands = 1 : i64, tpu.core_type = #tpu.core_type<tc>, window_params = [{transform_indices = @transform_0, window_bounds = array<i64: 8, 256>}, {transform_indices = @transform_1, window_bounds = array<i64: 256, 128>}, {transform_indices = @transform_2, window_bounds = array<i64: 1, 128>}, {transform_indices = @transform_3, window_bounds = array<i64: 8, 128>}]} {
    %c0_i32 = arith.constant 0 : i32
    %0 = arith.cmpi eq, %arg2, %c0_i32 : i32
    %1 = arith.extui %0 : i1 to i32
    %c0_i32_0 = arith.constant 0 : i32
    %2 = arith.cmpi ne, %1, %c0_i32_0 : i32
    scf.if %2 {
      %cst_10 = arith.constant 0.000000e+00 : f32
      %12 = vector.broadcast %cst_10 : f32 to vector<8x128xf32>
      %c0_11 = arith.constant 0 : index
      %c0_12 = arith.constant 0 : index
      %13 = vector.load %arg7[%c0_11, %c0_12] : memref<8x128xf32, #tpu.memory_space<vmem>>, vector<8x128xf32>
      tpu.vector_store %arg7[%c0_11, %c0_12], %12 {strides = array<i32>} : memref<8x128xf32, #tpu.memory_space<vmem>>, vector<8x128xf32>,
    } else {
    }
    %c0 = arith.constant 0 : index
    %c0_1 = arith.constant 0 : index
    %3 = vector.load %arg7[%c0, %c0_1] : memref<8x128xf32, #tpu.memory_space<vmem>>, vector<8x128xf32>
    %c0_2 = arith.constant 0 : index
    %c0_3 = arith.constant 0 : index
    %4 = vector.load %arg3[%c0_2, %c0_3] : memref<8x256xbf16, #tpu.memory_space<vmem>>, vector<8x256xbf16>
    %c0_4 = arith.constant 0 : index
    %c0_5 = arith.constant 0 : index
    %5 = vector.load %arg4[%c0_4, %c0_5] : memref<256x128xbf16, #tpu.memory_space<vmem>>, vector<256x128xbf16>
    %cst = arith.constant dense<0.000000e+00> : vector<8x128xf32>
    %6 = tpu.matmul %4, %5, %cst {dimension_numbers = #tpu.dot_dimension_numbers<[1], [0], [0], [1], [0, 0, 1, 1], [], []>} : vector<8x256xbf16>, vector<256x128xbf16>, vector<8x128xf32> -> vector<8x128xf32>
    %7 = arith.addf %3, %6 : vector<8x128xf32>
    %c0_6 = arith.constant 0 : index
    %c0_7 = arith.constant 0 : index
    %8 = vector.load %arg7[%c0_6, %c0_7] : memref<8x128xf32, #tpu.memory_space<vmem>>, vector<8x128xf32>
    tpu.vector_store %arg7[%c0_6, %c0_7], %7 {strides = array<i32>} : memref<8x128xf32, #tpu.memory_space<vmem>>, vector<8x128xf32>,
    %c0_i32_8 = arith.constant 0 : i32
    %9 = arith.cmpi eq, %arg2, %c0_i32_8 : i32
    %10 = arith.extui %9 : i1 to i32
    %c0_i32_9 = arith.constant 0 : i32
    %11 = arith.cmpi ne, %10, %c0_i32_9 : i32
    scf.if %11 {
      %c0_10 = arith.constant 0 : index
      %c0_11 = arith.constant 0 : index
      %12 = vector.load %arg7[%c0_10, %c0_11] : memref<8x128xf32, #tpu.memory_space<vmem>>, vector<8x128xf32>
      %c0_12 = arith.constant 0 : index
      %c0_13 = arith.constant 0 : index
      %13 = vector.load %arg5[%c0_12, %c0_13] : memref<1x128xf32, #tpu.memory_space<vmem>>, vector<1x128xf32>
      %14 = vector.broadcast %13 : vector<1x128xf32> to vector<8x128xf32>
      %15 = arith.addf %12, %14 : vector<8x128xf32>
      %16 = arith.truncf %15 : vector<8x128xf32> to vector<8x128xbf16>
      %c0_14 = arith.constant 0 : index
      %c0_15 = arith.constant 0 : index
      %17 = vector.load %arg6[%c0_14, %c0_15] : memref<8x128xbf16, #tpu.memory_space<vmem>>, vector<8x128xbf16>
      tpu.vector_store %arg6[%c0_14, %c0_15], %16 {strides = array<i32>} : memref<8x128xbf16, #tpu.memory_space<vmem>>, vector<8x128xbf16>,
    } else {
    }
    return
  }
  func.func @transform_0(%arg0: i32, %arg1: i32, %arg2: i32) -> (i32, i32) {
    %c0_i32 = arith.constant 0 : i32
    return %arg0, %arg2 : i32, i32
  }
  func.func @transform_1(%arg0: i32, %arg1: i32, %arg2: i32) -> (i32, i32) {
    %c0_i32 = arith.constant 0 : i32
    return %arg2, %arg1 : i32, i32
  }
  func.func @transform_2(%arg0: i32, %arg1: i32, %arg2: i32) -> (i32, i32) {
    %c0_i32 = arith.constant 0 : i32
    %c0_i32_0 = arith.constant 0 : i32
    return %c0_i32, %arg1 : i32, i32
  }
  func.func @transform_3(%arg0: i32, %arg1: i32, %arg2: i32) -> (i32, i32) {
    %c0_i32 = arith.constant 0 : i32
    return %arg0, %arg1 : i32, i32
  }
}

module attributes {stable_mosaic.version = 11 : i64} {
  func.func @_gemm_kernel(%arg0: i32, %arg1: i32, %arg2: i32, %arg3: memref<8x256xbf16, #tpu.memory_space<vmem>>, %arg4: memref<256x128xbf16, #tpu.memory_space<vmem>>, %arg5: memref<1x128xf32, #tpu.memory_space<vmem>>, %arg6: memref<8x128xbf16, #tpu.memory_space<vmem>>, %arg7: memref<8x128xbf16, #tpu.memory_space<vmem>>, %arg8: memref<8x128xf32, #tpu.memory_space<vmem>>) attributes {dimension_semantics = [#tpu.dimension_semantics<parallel>, #tpu.dimension_semantics<parallel>, #tpu.dimension_semantics<arbitrary>], iteration_bounds = array<i64: 1, 4, 18>, scalar_prefetch = 0 : i64, scratch_operands = 1 : i64, tpu.core_type = #tpu.core_type<tc>, window_params = [{transform_indices = @transform_0, window_bounds = array<i64: 8, 256>}, {transform_indices = @transform_1, window_bounds = array<i64: 256, 128>}, {transform_indices = @transform_2, window_bounds = array<i64: 1, 128>}, {transform_indices = @transform_3, window_bounds = array<i64: 8, 128>}, {transform_indices = @transform_4, window_bounds = array<i64: 8, 128>}]} {
    %c0_i32 = arith.constant 0 : i32
    %0 = arith.cmpi eq, %arg2, %c0_i32 : i32
    %1 = arith.extui %0 : i1 to i32
    %c0_i32_0 = arith.constant 0 : i32
    %2 = arith.cmpi ne, %1, %c0_i32_0 : i32
    scf.if %2 {
      %cst_9 = arith.constant 0.000000e+00 : f32
      %12 = vector.broadcast %cst_9 : f32 to vector<8x128xf32>
      %c0_10 = arith.constant 0 : index
      %c0_11 = arith.constant 0 : index
      %13 = vector.load %arg8[%c0_10, %c0_11] : memref<8x128xf32, #tpu.memory_space<vmem>>, vector<8x128xf32>
      tpu.vector_store %arg8[%c0_10, %c0_11], %12 {strides = array<i32>} : memref<8x128xf32, #tpu.memory_space<vmem>>, vector<8x128xf32>,
    } else {
    }
    %c0 = arith.constant 0 : index
    %c0_1 = arith.constant 0 : index
    %3 = vector.load %arg8[%c0, %c0_1] : memref<8x128xf32, #tpu.memory_space<vmem>>, vector<8x128xf32>
    %c0_2 = arith.constant 0 : index
    %c0_3 = arith.constant 0 : index
    %4 = vector.load %arg3[%c0_2, %c0_3] : memref<8x256xbf16, #tpu.memory_space<vmem>>, vector<8x256xbf16>
    %c0_4 = arith.constant 0 : index
    %c0_5 = arith.constant 0 : index
    %5 = vector.load %arg4[%c0_4, %c0_5] : memref<256x128xbf16, #tpu.memory_space<vmem>>, vector<256x128xbf16>
    %cst = arith.constant dense<0.000000e+00> : vector<8x128xf32>
    %6 = tpu.matmul %4, %5, %cst {dimension_numbers = #tpu.dot_dimension_numbers<[1], [0], [0], [1], [0, 0, 1, 1], [], []>} : vector<8x256xbf16>, vector<256x128xbf16>, vector<8x128xf32> -> vector<8x128xf32>
    %7 = arith.addf %3, %6 : vector<8x128xf32>
    %c0_6 = arith.constant 0 : index
    %c0_7 = arith.constant 0 : index
    %8 = vector.load %arg8[%c0_6, %c0_7] : memref<8x128xf32, #tpu.memory_space<vmem>>, vector<8x128xf32>
    tpu.vector_store %arg8[%c0_6, %c0_7], %7 {strides = array<i32>} : memref<8x128xf32, #tpu.memory_space<vmem>>, vector<8x128xf32>,
    %c17_i32 = arith.constant 17 : i32
    %9 = arith.cmpi eq, %arg2, %c17_i32 : i32
    %10 = arith.extui %9 : i1 to i32
    %c0_i32_8 = arith.constant 0 : i32
    %11 = arith.cmpi ne, %10, %c0_i32_8 : i32
    scf.if %11 {
      %c0_9 = arith.constant 0 : index
      %c0_10 = arith.constant 0 : index
      %12 = vector.load %arg8[%c0_9, %c0_10] : memref<8x128xf32, #tpu.memory_space<vmem>>, vector<8x128xf32>
      %c0_11 = arith.constant 0 : index
      %c0_12 = arith.constant 0 : index
      %13 = vector.load %arg5[%c0_11, %c0_12] : memref<1x128xf32, #tpu.memory_space<vmem>>, vector<1x128xf32>
      %14 = vector.broadcast %13 : vector<1x128xf32> to vector<8x128xf32>
      %15 = arith.addf %12, %14 : vector<8x128xf32>
      %c0_13 = arith.constant 0 : index
      %c0_14 = arith.constant 0 : index
      %16 = vector.load %arg6[%c0_13, %c0_14] : memref<8x128xbf16, #tpu.memory_space<vmem>>, vector<8x128xbf16>
      %17 = arith.extf %16 : vector<8x128xbf16> to vector<8x128xf32>
      %18 = arith.addf %15, %17 : vector<8x128xf32>
      %cst_15 = arith.constant 0.000000e+00 : f32
      %19 = vector.broadcast %cst_15 : f32 to vector<8x128xf32>
      %20 = arith.maximumf %18, %19 : vector<8x128xf32>
      %21 = arith.truncf %20 : vector<8x128xf32> to vector<8x128xbf16>
      %c0_16 = arith.constant 0 : index
      %c0_17 = arith.constant 0 : index
      %22 = vector.load %arg7[%c0_16, %c0_17] : memref<8x128xbf16, #tpu.memory_space<vmem>>, vector<8x128xbf16>
      tpu.vector_store %arg7[%c0_16, %c0_17], %21 {strides = array<i32>} : memref<8x128xbf16, #tpu.memory_space<vmem>>, vector<8x128xbf16>,
    } else {
    }
    return
  }
  func.func @transform_0(%arg0: i32, %arg1: i32, %arg2: i32) -> (i32, i32) {
    %c0_i32 = arith.constant 0 : i32
    return %arg0, %arg2 : i32, i32
  }
  func.func @transform_1(%arg0: i32, %arg1: i32, %arg2: i32) -> (i32, i32) {
    %c0_i32 = arith.constant 0 : i32
    return %arg2, %arg1 : i32, i32
  }
  func.func @transform_2(%arg0: i32, %arg1: i32, %arg2: i32) -> (i32, i32) {
    %c0_i32 = arith.constant 0 : i32
    %c0_i32_0 = arith.constant 0 : i32
    return %c0_i32, %arg1 : i32, i32
  }
  func.func @transform_3(%arg0: i32, %arg1: i32, %arg2: i32) -> (i32, i32) {
    %c0_i32 = arith.constant 0 : i32
    return %arg0, %arg1 : i32, i32
  }
  func.func @transform_4(%arg0: i32, %arg1: i32, %arg2: i32) -> (i32, i32) {
    %c0_i32 = arith.constant 0 : i32
    return %arg0, %arg1 : i32, i32
  }
}

module attributes {stable_mosaic.version = 11 : i64} {
  func.func @_gemm_kernel(%arg0: i32, %arg1: i32, %arg2: i32, %arg3: memref<8x256xbf16, #tpu.memory_space<vmem>>, %arg4: memref<256x128xbf16, #tpu.memory_space<vmem>>, %arg5: memref<1x128xf32, #tpu.memory_space<vmem>>, %arg6: memref<8x128xbf16, #tpu.memory_space<vmem>>, %arg7: memref<8x128xf32, #tpu.memory_space<vmem>>) attributes {dimension_semantics = [#tpu.dimension_semantics<parallel>, #tpu.dimension_semantics<parallel>, #tpu.dimension_semantics<arbitrary>], iteration_bounds = array<i64: 1, 4, 18>, scalar_prefetch = 0 : i64, scratch_operands = 1 : i64, tpu.core_type = #tpu.core_type<tc>, window_params = [{transform_indices = @transform_0, window_bounds = array<i64: 8, 256>}, {transform_indices = @transform_1, window_bounds = array<i64: 256, 128>}, {transform_indices = @transform_2, window_bounds = array<i64: 1, 128>}, {transform_indices = @transform_3, window_bounds = array<i64: 8, 128>}]} {
    %c0_i32 = arith.constant 0 : i32
    %0 = arith.cmpi eq, %arg2, %c0_i32 : i32
    %1 = arith.extui %0 : i1 to i32
    %c0_i32_0 = arith.constant 0 : i32
    %2 = arith.cmpi ne, %1, %c0_i32_0 : i32
    scf.if %2 {
      %cst_9 = arith.constant 0.000000e+00 : f32
      %12 = vector.broadcast %cst_9 : f32 to vector<8x128xf32>
      %c0_10 = arith.constant 0 : index
      %c0_11 = arith.constant 0 : index
      %13 = vector.load %arg7[%c0_10, %c0_11] : memref<8x128xf32, #tpu.memory_space<vmem>>, vector<8x128xf32>
      tpu.vector_store %arg7[%c0_10, %c0_11], %12 {strides = array<i32>} : memref<8x128xf32, #tpu.memory_space<vmem>>, vector<8x128xf32>,
    } else {
    }
    %c0 = arith.constant 0 : index
    %c0_1 = arith.constant 0 : index
    %3 = vector.load %arg7[%c0, %c0_1] : memref<8x128xf32, #tpu.memory_space<vmem>>, vector<8x128xf32>
    %c0_2 = arith.constant 0 : index
    %c0_3 = arith.constant 0 : index
    %4 = vector.load %arg3[%c0_2, %c0_3] : memref<8x256xbf16, #tpu.memory_space<vmem>>, vector<8x256xbf16>
    %c0_4 = arith.constant 0 : index
    %c0_5 = arith.constant 0 : index
    %5 = vector.load %arg4[%c0_4, %c0_5] : memref<256x128xbf16, #tpu.memory_space<vmem>>, vector<256x128xbf16>
    %cst = arith.constant dense<0.000000e+00> : vector<8x128xf32>
    %6 = tpu.matmul %4, %5, %cst {dimension_numbers = #tpu.dot_dimension_numbers<[1], [0], [0], [1], [0, 0, 1, 1], [], []>} : vector<8x256xbf16>, vector<256x128xbf16>, vector<8x128xf32> -> vector<8x128xf32>
    %7 = arith.addf %3, %6 : vector<8x128xf32>
    %c0_6 = arith.constant 0 : index
    %c0_7 = arith.constant 0 : index
    %8 = vector.load %arg7[%c0_6, %c0_7] : memref<8x128xf32, #tpu.memory_space<vmem>>, vector<8x128xf32>
    tpu.vector_store %arg7[%c0_6, %c0_7], %7 {strides = array<i32>} : memref<8x128xf32, #tpu.memory_space<vmem>>, vector<8x128xf32>,
    %c17_i32 = arith.constant 17 : i32
    %9 = arith.cmpi eq, %arg2, %c17_i32 : i32
    %10 = arith.extui %9 : i1 to i32
    %c0_i32_8 = arith.constant 0 : i32
    %11 = arith.cmpi ne, %10, %c0_i32_8 : i32
    scf.if %11 {
      %c0_9 = arith.constant 0 : index
      %c0_10 = arith.constant 0 : index
      %12 = vector.load %arg7[%c0_9, %c0_10] : memref<8x128xf32, #tpu.memory_space<vmem>>, vector<8x128xf32>
      %c0_11 = arith.constant 0 : index
      %c0_12 = arith.constant 0 : index
      %13 = vector.load %arg5[%c0_11, %c0_12] : memref<1x128xf32, #tpu.memory_space<vmem>>, vector<1x128xf32>
      %14 = vector.broadcast %13 : vector<1x128xf32> to vector<8x128xf32>
      %15 = arith.addf %12, %14 : vector<8x128xf32>
      %cst_13 = arith.constant 0.000000e+00 : f32
      %16 = vector.broadcast %cst_13 : f32 to vector<8x128xf32>
      %17 = arith.maximumf %15, %16 : vector<8x128xf32>
      %18 = arith.truncf %17 : vector<8x128xf32> to vector<8x128xbf16>
      %c0_14 = arith.constant 0 : index
      %c0_15 = arith.constant 0 : index
      %19 = vector.load %arg6[%c0_14, %c0_15] : memref<8x128xbf16, #tpu.memory_space<vmem>>, vector<8x128xbf16>
      tpu.vector_store %arg6[%c0_14, %c0_15], %18 {strides = array<i32>} : memref<8x128xbf16, #tpu.memory_space<vmem>>, vector<8x128xbf16>,
    } else {
    }
    return
  }
  func.func @transform_0(%arg0: i32, %arg1: i32, %arg2: i32) -> (i32, i32) {
    %c0_i32 = arith.constant 0 : i32
    return %arg0, %arg2 : i32, i32
  }
  func.func @transform_1(%arg0: i32, %arg1: i32, %arg2: i32) -> (i32, i32) {
    %c0_i32 = arith.constant 0 : i32
    return %arg2, %arg1 : i32, i32
  }
  func.func @transform_2(%arg0: i32, %arg1: i32, %arg2: i32) -> (i32, i32) {
    %c0_i32 = arith.constant 0 : i32
    %c0_i32_0 = arith.constant 0 : i32
    return %c0_i32, %arg1 : i32, i32
  }
  func.func @transform_3(%arg0: i32, %arg1: i32, %arg2: i32) -> (i32, i32) {
    %c0_i32 = arith.constant 0 : i32
    return %arg0, %arg1 : i32, i32
  }
}

module attributes {stable_mosaic.version = 11 : i64} {
  func.func @_head_kernel(%arg0: i32, %arg1: memref<2x4x512xbf16, #tpu.memory_space<vmem>>, %arg2: memref<512x128xbf16, #tpu.memory_space<vmem>>, %arg3: memref<1x128xf32, #tpu.memory_space<vmem>>, %arg4: memref<2x128xf32, #tpu.memory_space<vmem>>) attributes {dimension_semantics = [#tpu.dimension_semantics<arbitrary>], iteration_bounds = array<i64: 1>, scalar_prefetch = 0 : i64, scratch_operands = 0 : i64, tpu.core_type = #tpu.core_type<tc>, window_params = [{pipeline_mode = #tpu.pipeline_mode<synchronous>, transform_indices = @transform_0, window_bounds = array<i64: 2, 4, 512>}, {pipeline_mode = #tpu.pipeline_mode<synchronous>, transform_indices = @transform_1, window_bounds = array<i64: 512, 128>}, {pipeline_mode = #tpu.pipeline_mode<synchronous>, transform_indices = @transform_2, window_bounds = array<i64: 1, 128>}, {pipeline_mode = #tpu.pipeline_mode<synchronous>, transform_indices = @transform_3, window_bounds = array<i64: 2, 128>}]} {
    %c0 = arith.constant 0 : index
    %c0_0 = arith.constant 0 : index
    %c0_1 = arith.constant 0 : index
    %0 = vector.load %arg1[%c0, %c0_0, %c0_1] : memref<2x4x512xbf16, #tpu.memory_space<vmem>>, vector<2x4x512xbf16>
    %1 = arith.extf %0 : vector<2x4x512xbf16> to vector<2x4x512xf32>
    %cst = arith.constant dense<0.000000e+00> : vector<2x512xf32>
    %2 = vector.multi_reduction <add>, %1, %cst [1] : vector<2x4x512xf32> to vector<2x512xf32>
    %cst_2 = arith.constant 2.500000e-01 : f32
    %3 = vector.broadcast %cst_2 : f32 to vector<2x512xf32>
    %4 = arith.mulf %2, %3 : vector<2x512xf32>
    %5 = arith.truncf %4 : vector<2x512xf32> to vector<2x512xbf16>
    %c0_3 = arith.constant 0 : index
    %c0_4 = arith.constant 0 : index
    %6 = vector.load %arg2[%c0_3, %c0_4] : memref<512x128xbf16, #tpu.memory_space<vmem>>, vector<512x128xbf16>
    %cst_5 = arith.constant dense<0.000000e+00> : vector<2x128xf32>
    %7 = tpu.matmul %5, %6, %cst_5 {dimension_numbers = #tpu.dot_dimension_numbers<[1], [0], [0], [1], [0, 0, 1, 1], [], []>} : vector<2x512xbf16>, vector<512x128xbf16>, vector<2x128xf32> -> vector<2x128xf32>
    %c0_6 = arith.constant 0 : index
    %c0_7 = arith.constant 0 : index
    %8 = vector.load %arg3[%c0_6, %c0_7] : memref<1x128xf32, #tpu.memory_space<vmem>>, vector<1x128xf32>
    %9 = vector.broadcast %8 : vector<1x128xf32> to vector<2x128xf32>
    %10 = arith.addf %7, %9 : vector<2x128xf32>
    %c0_8 = arith.constant 0 : index
    %c0_9 = arith.constant 0 : index
    %11 = vector.load %arg4[%c0_8, %c0_9] : memref<2x128xf32, #tpu.memory_space<vmem>>, vector<2x128xf32>
    tpu.vector_store %arg4[%c0_8, %c0_9], %10 {strides = array<i32>} : memref<2x128xf32, #tpu.memory_space<vmem>>, vector<2x128xf32>,
    return
  }
  func.func @transform_0(%arg0: i32) -> (i32, i32, i32) {
    %c0_i32 = arith.constant 0 : i32
    %c0_i32_0 = arith.constant 0 : i32
    %c0_i32_1 = arith.constant 0 : i32
    %c0_i32_2 = arith.constant 0 : i32
    return %c0_i32, %c0_i32_0, %c0_i32_1 : i32, i32, i32
  }
  func.func @transform_1(%arg0: i32) -> (i32, i32) {
    %c0_i32 = arith.constant 0 : i32
    %c0_i32_0 = arith.constant 0 : i32
    %c0_i32_1 = arith.constant 0 : i32
    return %c0_i32, %c0_i32_0 : i32, i32
  }
  func.func @transform_2(%arg0: i32) -> (i32, i32) {
    %c0_i32 = arith.constant 0 : i32
    %c0_i32_0 = arith.constant 0 : i32
    %c0_i32_1 = arith.constant 0 : i32
    return %c0_i32, %c0_i32_0 : i32, i32
  }
  func.func @transform_3(%arg0: i32) -> (i32, i32) {
    %c0_i32 = arith.constant 0 : i32
    %c0_i32_0 = arith.constant 0 : i32
    %c0_i32_1 = arith.constant 0 : i32
    return %c0_i32, %c0_i32_0 : i32, i32
  }
}

</mosaic_0001>

<bundles_post_ra>
// kernel: my_resnet_forward.21
= control target key start
LH: loop header
LB: loop body
LE: loop exit
PB: predicated region body
PF: predicated region fallthrough
CT: control target
= control target key end

     0   :  { %s1059_s12 = smov 0   ;;  %s1061_s13 = smov 0   ;;  %s1146_s0 = inlined_call_operand.vmem [shape: bf16[2048,128], index: 0, kind: input, shape index: {}]   ;;  %s1147_s1 = inlined_call_operand.vmem [shape: bf16[128,128], index: 1, kind: input, shape index: {}]   ;;  %s1148_s2 = inlined_call_operand.vmem [shape: f32[1,128], index: 2, kind: input, shape index: {}]   ;;  %s1149_s3 = inlined_call_operand.vmem [shape: bf16[2048,128], index: 3, kind: output, shape index: {}]  }
   0x1   :  { %s1063_s14 = smov 0  }
   0x2 LB: > { %s32_s15 = sadd.s32 1, %s1033_s13  ;;  %p808_p0 = scmp.ge.s32.totalorder %s1037_s14, 1  ;;  %s1037_s14 = sphi %s1063_s14, %s13_s14   ;;  %s1033_s13 = sphi %s1061_s13, %s1151_s13   ;;  %s1029_s12 = sphi %s1059_s12, %s1150_s12  }
   0x3   : > { %p34_p1 = scmp.ge.s32.totalorder %s32_s15, 16  ;;  %p188_p2 = scmp.lt.s32.totalorder %s1037_s14, 17 }
   0x5   : > { %s1153_s15 = smov (%p34_p1, %s32_s15), 0  ;;  %p189_p3 = pnand %p808_p0, %p188_p2 }
   0x6   : > { %v999_v0 = vld [vmem:[%s1147_s1] sm:$0xff] (!%p189_p3)   ;;  %s809_s18 = sshll.u32 (!%p189_p3), %s1029_s12, 4  ;;  %v1000_v1 = vld [vmem:[%s1147_s1 + $0x8] sm:$0xff] (!%p189_p3)   ;;  %v1001_v2 = vld [vmem:[%s1147_s1 + $0x10] sm:$0xff] (!%p189_p3)  }
   0x7   : > { %192 = sbr.rel (%p189_p3) target bundleno = 269 (0x10d), region = 32  ;;  %p230_p4 = scmp.lt.s32.totalorder (!%p189_p3), %s809_s18, 255  ;;  %927 = vmatprep.subr.bf16.mxu0 (!%p189_p3), %v999_v0  ;;  %959 = vmatprep.subr.bf16.mxu1 (!%p189_p3), %v999_v0  ;;  %v1002_v3 = vld [vmem:[%s1147_s1 + $0x18] sm:$0xff] (!%p189_p3)   ;;  %v1003_v6 = vld [vmem:[%s1147_s1 + $0x20] sm:$0xff] (!%p189_p3)   ;;  %v1004_v7 = vld [vmem:[%s1147_s1 + $0x28] sm:$0xff] (!%p189_p3)  }
   0x8   : > { %928 = vmatpush3.bf16.msra.mxu0 (!%p189_p3), %v999_v0  ;;  %967 = vmatpush3.bf16.msra.mxu1 (!%p189_p3), %v999_v0  ;;  %v1005_v8 = vld [vmem:[%s1147_s1 + $0x30] sm:$0xff] (!%p189_p3)   ;;  %v1006_v9 = vld [vmem:[%s1147_s1 + $0x38] sm:$0xff] (!%p189_p3)   ;;  %v829_v16 = vld [vmem:[%s1148_s2] ss:$0 sm:$0xff] (!%p189_p3) }
   0x9   : > { %929 = vmatprep.subr.bf16.mxu0 (!%p189_p3), %v1000_v1  ;;  %960 = vmatprep.subr.bf16.mxu1 (!%p189_p3), %v1000_v1 }
   0xc   : > { %930 = vmatpush3.bf16.msra.mxu0 (!%p189_p3), %v1000_v1  ;;  %968 = vmatpush3.bf16.msra.mxu1 (!%p189_p3), %v1000_v1 }
   0xd   : > { %931 = vmatprep.subr.bf16.mxu0 (!%p189_p3), %v1001_v2  ;;  %961 = vmatprep.subr.bf16.mxu1 (!%p189_p3), %v1001_v2 }
   0xe   : > { %s1155_s18 = smov (!%p230_p4, %s809_s18), 255 }
   0xf   : > { %s810_s23 = sshll.u32 %s1155_s18, 2 }
  0x10   : > { %s1094_s26 = scalar_lea.vmem %s1146_s0, %s810_s23  ;;  %932 = vmatpush3.bf16.msra.mxu0 %v1001_v2  ;;  %969 = vmatpush3.bf16.msra.mxu1 %v1001_v2  ;;  %s1127_s17 = scalar_lea.vmem %s1149_s3, %s810_s23 }
  0x11   : > { %v1007_v4 = vld [vmem:[%s1094_s26] sm:$0xff]   ;;  %933 = vmatprep.subr.bf16.mxu0 %v1002_v3  ;;  %962 = vmatprep.subr.bf16.mxu1 %v1002_v3  ;;  %v1009_v10 = vld [vmem:[%s1094_s26 + $0x8] sm:$0xff]   ;;  %v1011_v12 = vld [vmem:[%s1094_s26 + $0x10] sm:$0xff]  }
  0x12   : > { %v1008_v5 = vld [vmem:[%s1094_s26 + $0x20] sm:$0xff]   ;;  %943 = vmatprep.mubr.bf16.mxu0 %v1007_v4  ;;  %v1010_v11 = vld [vmem:[%s1094_s26 + $0x28] sm:$0xff]   ;;  %v1012_v13 = vld [vmem:[%s1094_s26 + $0x30] sm:$0xff]  }
  0x13   : > { %951 = vmatprep.mubr.bf16.mxu1 %v1008_v5  ;;  %v1013_v14 = vld [vmem:[%s1094_s26 + $0x18] sm:$0xff]  }
  0x14   : > { %934 = vmatpush3.bf16.msra.mxu0 %v1002_v3  ;;  %970 = vmatpush3.bf16.msra.mxu1 %v1002_v3  ;;  %v1014_v15 = vld [vmem:[%s1094_s26 + $0x38] sm:$0xff]  }
  0x15   : > { %935 = vmatprep.subr.bf16.mxu0 %v1003_v6  ;;  %963 = vmatprep.subr.bf16.mxu1 %v1003_v6 }
  0x18   : > { %936 = vmatpush3.bf16.msra.mxu0 %v1003_v6  ;;  %971 = vmatpush3.bf16.msra.mxu1 %v1003_v6 }
  0x19   : > { %937 = vmatprep.subr.bf16.mxu0 %v1004_v7  ;;  %964 = vmatprep.subr.bf16.mxu1 %v1004_v7 }
  0x1c   : > { %938 = vmatpush3.bf16.msra.mxu0 %v1004_v7  ;;  %972 = vmatpush3.bf16.msra.mxu1 %v1004_v7 }
  0x1d   : > { %939 = vmatprep.subr.bf16.mxu0 %v1005_v8  ;;  %965 = vmatprep.subr.bf16.mxu1 %v1005_v8 }
  0x20   : > { %940 = vmatpush3.bf16.msra.mxu0 %v1005_v8  ;;  %973 = vmatpush3.bf16.msra.mxu1 %v1005_v8 }
  0x21   : > { %941 = vmatprep.subr.bf16.mxu0 %v1006_v9  ;;  %966 = vmatprep.subr.bf16.mxu1 %v1006_v9 }
  0x24   : > { %942 = vmatpush3.bf16.msra.mxu0 %v1006_v9  ;;  %974 = vmatpush3.bf16.msra.mxu1 %v1006_v9 }
  0x27   : > { %944 = vmatmul.mubr.bf16.vlgmr.msra.gmra.mrb[0].mxu0 %v1009_v10  ;;  %952 = vmatmul.mubr.bf16.vlgmr.msra.gmra.mrb[0].mxu1 %v1010_v11 }
  0x28   : > { %947 = vmatprep.mubr.bf16.mxu0 %v1011_v12  ;;  %955 = vmatprep.mubr.bf16.mxu1 %v1012_v13 }
  0x2f   : > { %948 = vmatmul.mubr.bf16.gmra.mrb[4].mxu0 %v1013_v14  ;;  %956 = vmatmul.mubr.bf16.gmra.mrb[4].mxu1 %v1014_v15 }
  0xfa   : > { %v945_v17 = vpop.f32.mrb[0].mxu0  ;;  %v953_v18 = vpop.f32.mrb[0].mxu1 }
  0xfb   : > { %v581_v19 = vadd.f32 %v945_v17, %v829_v16  ;;  %v589_v20 = vadd.f32 %v953_v18, %v829_v16  ;;  %v458_v21 = vpop.f32.mrb[1].mxu0  ;;  %v490_v22 = vpop.f32.mrb[1].mxu1 }
  0xfc   : > { %v579_v23 = vadd.f32 %v829_v16, %v458_v21  ;;  %v587_v24 = vadd.f32 %v829_v16, %v490_v22  ;;  %v946_v25 = vpop.f32.mrb[2].mxu0  ;;  %v954_v26 = vpop.f32.mrb[2].mxu1 }
  0xfd   : > { %v582_v27 = vadd.f32 %v946_v25, %v829_v16  ;;  %v590_v28 = vadd.f32 %v954_v26, %v829_v16  ;;  %v461_v29 = vpop.f32.mrb[3].mxu0  ;;  %v493_v30 = vpop.f32.mrb[3].mxu1  ;;  %v597_v33 = vmax.f32 %v581_v19, 0.0  ;;  %v605_v34 = vmax.f32 %v589_v20, 0.0 }
  0xfe   : > { %v580_v31 = vadd.f32 %v829_v16, %v461_v29  ;;  %v588_v32 = vadd.f32 %v829_v16, %v493_v30  ;;  %v595_v37 = vmax.f32 %v579_v23, 0.0  ;;  %v603_v38 = vmax.f32 %v587_v24, 0.0 }
  0xff   : > { %v598_v35 = vmax.f32 %v582_v27, 0.0  ;;  %v606_v36 = vmax.f32 %v590_v28, 0.0 }
 0x100   : > { %v596_v39 = vmax.f32 %v580_v31, 0.0  ;;  %v604_v40 = vmax.f32 %v588_v32, 0.0 }
 0x101   : > { %v872_v41 = vpack.c.bf16 %v598_v35, %v597_v33  ;;  %v892_v42 = vpack.c.bf16 %v606_v36, %v605_v34 }
 0x102   : > { %v867_v43 = vpack.c.bf16 %v596_v39, %v595_v37  ;;  %v887_v44 = vpack.c.bf16 %v604_v40, %v603_v38  ;;  %v949_v45 = vpop.f32.mrb[4].mxu0  ;;  %v957_v46 = vpop.f32.mrb[4].mxu1 }
 0x103   : > { %904 = vst [vmem:[%s1127_s17 + $0x8] sm:$0xff] %v872_v41   ;;  %908 = vst [vmem:[%s1127_s17 + $0x28] sm:$0xff] %v892_v42   ;;  %v585_v47 = vadd.f32 %v949_v45, %v829_v16  ;;  %v593_v48 = vadd.f32 %v957_v46, %v829_v16  ;;  %v474_v49 = vpop.f32.mrb[5].mxu0  ;;  %v506_v50 = vpop.f32.mrb[5].mxu1 }
 0x104   : > { %868 = vst [vmem:[%s1127_s17] sm:$0xff] %v867_v43   ;;  %907 = vst [vmem:[%s1127_s17 + $0x20] sm:$0xff] %v887_v44   ;;  %v583_v51 = vadd.f32 %v829_v16, %v474_v49  ;;  %v591_v52 = vadd.f32 %v829_v16, %v506_v50  ;;  %v950_v53 = vpop.f32.mrb[6].mxu0  ;;  %v958_v54 = vpop.f32.mrb[6].mxu1 }
 0x105   : > { %v586_v55 = vadd.f32 %v950_v53, %v829_v16  ;;  %v594_v56 = vadd.f32 %v958_v54, %v829_v16  ;;  %v477_v57 = vpop.f32.mrb[7].mxu0  ;;  %v509_v58 = vpop.f32.mrb[7].mxu1  ;;  %v601_v61 = vmax.f32 %v585_v47, 0.0  ;;  %v609_v62 = vmax.f32 %v593_v48, 0.0 }
 0x106   : > { %v584_v59 = vadd.f32 %v829_v16, %v477_v57  ;;  %v592_v60 = vadd.f32 %v829_v16, %v509_v58  ;;  %v599_v1 = vmax.f32 %v583_v51, 0.0  ;;  %v607_v2 = vmax.f32 %v591_v52, 0.0 }
 0x107   : > { %v602_v63 = vmax.f32 %v586_v55, 0.0  ;;  %v610_v0 = vmax.f32 %v594_v56, 0.0 }
 0x108   : > { %v600_v3 = vmax.f32 %v584_v59, 0.0  ;;  %v608_v4 = vmax.f32 %v592_v60, 0.0 }
 0x109   : > { %v882_v5 = vpack.c.bf16 %v602_v63, %v601_v61  ;;  %v902_v6 = vpack.c.bf16 %v610_v0, %v609_v62 }
 0x10a   : > { %v877_v7 = vpack.c.bf16 %v600_v3, %v599_v1  ;;  %v897_v8 = vpack.c.bf16 %v608_v4, %v607_v2 }
 0x10b   : > { %906 = vst [vmem:[%s1127_s17 + $0x18] sm:$0xff] %v882_v5   ;;  %910 = vst [vmem:[%s1127_s17 + $0x38] sm:$0xff] %v902_v6  }
 0x10c   : > { %905 = vst [vmem:[%s1127_s17 + $0x10] sm:$0xff] %v877_v7   ;;  %909 = vst [vmem:[%s1127_s17 + $0x30] sm:$0xff] %v897_v8  }
 0x10d PF: > { %s13_s14 = sadd.s32 1, %s1037_s14   ;;  %s1150_s12 = smov %s1033_s13 }
 0x10e   : > { %p10_p5 = scmp.ge.s32.totalorder %s13_s14, 18   ;;  %s1151_s13 = smov %s1153_s15 }
 0x110   :  { %12 = sbr.rel (!%p10_p5) target bundleno = 2 (0x2), region = 76 }

// kernel: my_resnet_forward.22
= control target key start
LH: loop header
LB: loop body
LE: loop exit
PB: predicated region body
PF: predicated region fallthrough
CT: control target
= control target key end

     0   :  { %s4781_s12 = smov 0   ;;  %s6016_s0 = inlined_call_operand.vmem [shape: bf16[2,18,18,64], index: 0, kind: input, shape index: {}]   ;;  %s6017_s1 = inlined_call_operand.vmem [shape: bf16[9,64,64], index: 1, kind: input, shape index: {}]   ;;  %s6018_s2 = inlined_call_operand.vmem [shape: f32[1,64], index: 2, kind: input, shape index: {}]   ;;  %s6019_s3 = inlined_call_operand.vmem [shape: bf16[2,16,16,64], index: 3, kind: output, shape index: {}]  }
   0x1 LB: > { %s3458_s13 = sadd.s32 4294967295, %s4759_s12   ;;  %p3462_p0 = scmp.ge.s32.totalorder %s4759_s12, 1  ;;  %s4759_s12 = sphi %s4781_s12, %s13_s12  }
   0x2   : > { %p137_p1 = scmp.lt.s32.totalorder %s4759_s12, 3 }
   0x4   : > { %p138_p2 = pnand %p3462_p0, %p137_p1 }
   0x6   : > { %141 = sbr.rel (%p138_p2) target bundleno = 542 (0x21e), region = 32 }
   0xd   : > { %v4695_v0 = vld [vmem:[%s6017_s1] sm:$0xff]   ;;  %p161_p3 = scmp.lt.s32.totalorder %s3458_s13, 1  ;;  %v4697_v2 = vld [vmem:[%s6017_s1 + $0x8] sm:$0xff]   ;;  %v4699_v4 = vld [vmem:[%s6017_s1 + $0x10] sm:$0xff]   ;;  %vm346_vm0 = vcmask 523264   ;;  %vm1313_vm4 = vcmask 1042432  }
   0xe   : > { %v4696_v1 = vld [vmem:[%s6017_s1 + $0x80] sm:$0xff]   ;;  %4030 = vmatprep.subr.bf16.mxu1 %v4695_v0  ;;  %v4698_v3 = vld [vmem:[%s6017_s1 + $0x88] sm:$0xff]   ;;  %v4700_v5 = vld [vmem:[%s6017_s1 + $0x90] sm:$0xff]   ;;  %vm588_vm1 = vsmask.f32 3328  ;;  %vm1314_vm5 = vcmask 1046532  }
   0xf   : > { %s6156_s13 = smov (!%p161_p3, %s3458_s13), 1  ;;  %4031 = vmatpush3.bf16.msra.mxu1 %v4695_v0  ;;  %4190 = vmatprep.subr.bf16.mxu0 %v4696_v1  ;;  %v4701_v6 = vld [vmem:[%s6017_s1 + $0x18] sm:$0xff]   ;;  %v4705_v14 = vld [vmem:[%s6017_s1 + $0x20] sm:$0xff]   ;;  %vm589_vm2 = vsmask.f32 7440  ;;  %v4712_v34 = vld [vmem:[%s6017_s1 + $0x28] sm:$0xff]  }
  0x10   : > { %4191 = vmatpush3.bf16.msra.mxu0 %v4696_v1  ;;  %4032 = vmatprep.subr.bf16.mxu1 %v4697_v2  ;;  %s4686_s24 = smul.u32 216, %s6156_s13  ;;  %v4702_v10 = vld [vmem:[%s6017_s1 + $0x98] sm:$0xff]   ;;  %v4846_v16 = vld [vmem:[%s6017_s1 + $0xa0] sm:$0xff]   ;;  %vm4876_vm3 = vmor %vm588_vm1, %vm589_vm2  ;;  %s3817_s26 = sshll.u32 %s6156_s13, 7  ;;  %vm3370_vm7 = vcmask 519168  }
  0x11   : > { %4192 = vmatprep.subr.bf16.mxu0 %v4698_v3  ;;  %v4719_v56 = vld [vmem:[%s6017_s1 + $0x30] sm:$0xff]   ;;  %vm5103_vm6 = vmor %vm1313_vm4, %vm1314_vm5  ;;  %s5915_s30 = scalar_lea.vmem %s6019_s3, %s3817_s26 }
  0x12   : > { %s4813_s29 = scalar_lea.vmem %s6016_s0, %s4686_s24 }
  0x13   : > { %4033 = vmatpush3.bf16.msra.mxu1 %v4697_v2  ;;  %v4819_v7 = vld [vmem:[%s4813_s29] sm:$0xf]  ;;  %v4822_v8 = vld [vmem:[%s4813_s29 + $0x4] sm:$0xf]  ;;  %v4825_v9 = vld [vmem:[%s4813_s29 + $0xc] sm:$0xf] }
  0x14   : > { %4193 = vmatpush3.bf16.msra.mxu0 %v4698_v3  ;;  %4034 = vmatprep.subr.bf16.mxu1 %v4699_v4  ;;  %v3467_v11 = vcombine.low %v4819_v7, %v4822_v8  ;;  %v4834_v12 = vld [vmem:[%s4813_s29 + $0x10] sm:$0xf]  ;;  %v616_v13 = vshrl.u32 %v4825_v9, 16  ;;  %v4841_v15 = vld [vmem:[%s4813_s29 + $0x14] sm:$0x1]  ;;  %v619_v18 = vshll.u32 %v4825_v9, 16 }
  0x15   : > { %4194 = vmatprep.subr.bf16.mxu0 %v4700_v5  ;;  %v4850_v19 = vld [vmem:[%s4813_s29 + $0x18] sm:$0xf]  ;;  %v4854_v20 = vcombine.low %v4825_v9, %v4834_v12  ;;  %v625_v21 = vshll.u32 %v4834_v12, 16  ;;  %v629_v22 = vshrl.u32 %v4834_v12, 16  ;;  %v635_v23 = vshll.u32 %v4841_v15, 16 }
  0x16   : > { %4038 = vmatprep.mubr.msk.bf16.mxu1 %vm346_vm0, %v3467_v11  ;;  %v618_v17 = vrot.slane %v616_v13, 4  ;;  %v4860_v24 = vld [vmem:[%s4813_s29 + $0x1c] sm:$0xf]  ;;  %v621_v25 = vrot.slane %v619_v18, 5  ;;  %v4863_v26 = vld [vmem:[%s4813_s29 + $0x20] sm:$0x1] }
  0x17   : > { %4035 = vmatpush3.bf16.msra.mxu1 %v4699_v4  ;;  %6071 = vst [vmem:[#allocation2_spill] sm:$0xff] %v4854_v20  ;;  %v640_v27 = vshrl.u32 %v4850_v19, 16  ;;  %v627_v28 = vrot.slane %v625_v21, 5  ;;  %v631_v29 = vrot.slane %v629_v22, 4  ;;  %v643_v32 = vshll.u32 %v4850_v19, 16 }
  0x18   : > { %4195 = vmatpush3.bf16.msra.mxu0 %v4700_v5  ;;  %4036 = vmatprep.subr.bf16.mxu1 %v4701_v6  ;;  %v622_v30 = vor.u32 %v621_v25, %v618_v17  ;;  %v649_v33 = vshll.u32 %v4860_v24, 16  ;;  %v637_v37 = vrot.slane %v635_v23, 5  ;;  %v653_v38 = vshrl.u32 %v4860_v24, 16  ;;  %v4883_v40 = vld [vmem:[%s4813_s29 + $0x24] sm:$0xf]  ;;  %v4725_v17 = vld [vmem:[%s6017_s1 + $0x38] sm:$0xff]  }
  0x19   : > { %4196 = vmatprep.subr.bf16.mxu0 %v4702_v10  ;;  %v642_v31 = vrot.slane %v640_v27, 4  ;;  %v632_v36 = vor.u32 %v631_v29, %v627_v28  ;;  %v659_v39 = vshll.u32 %v4863_v26, 16  ;;  %v645_v43 = vrot.slane %v643_v32, 5  ;;  %v4887_v45 = vld [vmem:[%s4813_s29 + $0x28] sm:$0xf] }
  0x1a   : > { %v623_v42 = vrot.slane %v622_v30, 4  ;;  %v651_v44 = vrot.slane %v649_v33, 5  ;;  %v655_v47 = vrot.slane %v653_v38, 4  ;;  %v4891_v49 = vcombine.low %v4850_v19, %v4860_v24  ;;  %v4901_v54 = vld [vmem:[%s4813_s29 + $0x2c] sm:$0x1] }
  0x1b   : > { %4037 = vmatpush3.bf16.msra.mxu1 %v4701_v6  ;;  %v633_v46 = vrot.slane %v632_v36, 4  ;;  %v661_v48 = vrot.slane %v659_v39, 5  ;;  %v646_v51 = vor.u32 %v645_v43, %v642_v31  ;;  %v4897_v52 = vcombine.low %v4883_v40, %v4887_v45  ;;  %v4904_v55 = vld [vmem:[%s4813_s29 + $0x30] sm:$0xf]  ;;  %v4916_v61 = vld [vmem:[%s4813_s29 + $0x34] sm:$0xf] }
  0x1c   : > { %4197 = vmatpush3.bf16.msra.mxu0 %v4702_v10  ;;  %4070 = vmatprep.subr.bf16.mxu1 %v4705_v14  ;;  %6074 = vst [vmem:[#allocation3_spill] sm:$0xff] %v4891_v49  ;;  %v628_v50 = vsel %vm4876_vm3, %v623_v42, %v627_v28  ;;  %v664_v53 = vshrl.u32 %v4883_v40, 16  ;;  %v656_v58 = vor.u32 %v655_v47, %v651_v44  ;;  %v667_v59 = vshll.u32 %v4883_v40, 16  ;;  %v4927_v11 = vld [vmem:[%s4813_s29 + $0x38] sm:$0x1]  ;;  %v4709_v30 = vld [vmem:[%s6017_s1 + $0xa8] sm:$0xff]  }
  0x1d   : > { %4230 = vmatprep.subr.bf16.mxu0 %v4846_v16  ;;  %6075 = vst [vmem:[#allocation4_spill] sm:$0xff] %v4897_v52  ;;  %v638_v57 = vsel %vm4876_vm3, %v633_v46, %v637_v37  ;;  %v677_v60 = vshrl.u32 %v4887_v45, 16  ;;  %v647_v63 = vrot.slane %v646_v51, 4  ;;  %v673_v1 = vshll.u32 %v4887_v45, 16  ;;  %v4945_v31 = vld [vmem:[%s4813_s29 + $0x3c] sm:$0xf] }
  0x1e   : > { %4039 = vmatmul.mubr.msk.bf16.vlgmr.msra.gmra.mrb[0].mxu1 %vm346_vm0, %v4854_v20  ;;  %v4918_v62 = vcombine.low %v628_v50, %v638_v57  ;;  %v666_v0 = vrot.slane %v664_v53, 4  ;;  %v657_v2 = vrot.slane %v656_v58, 4  ;;  %v669_v3 = vrot.slane %v667_v59, 5  ;;  %v4950_v37 = vld [vmem:[%s4813_s29 + $0x40] sm:$0xf]  ;;  %v4713_v59 = vld [vmem:[%s6017_s1 + $0xb0] sm:$0xff]  }
  0x1f   : > { %4071 = vmatpush3.bf16.msra.mxu1 %v4705_v14  ;;  %4042 = vmatprep.mubr.msk.bf16.mxu1 %vm346_vm0, %v4891_v49  ;;  %v679_v4 = vrot.slane %v677_v60, 4  ;;  %v683_v5 = vshll.u32 %v4901_v54, 16  ;;  %v652_v6 = vsel %vm4876_vm3, %v647_v63, %v651_v44  ;;  %v675_v10 = vrot.slane %v673_v1, 5  ;;  %v4963_v44 = vld [vmem:[%s4813_s29 + $0x44] sm:$0x1] }
  0x20   : > { %4072 = vmatprep.subr.bf16.mxu1 %v4712_v34  ;;  %4198 = vmatprep.mubr.msk.bf16.mxu0 %vm346_vm0, %v4918_v62  ;;  %v688_v13 = vshrl.u32 %v4904_v55, 16  ;;  %v691_v14 = vshll.u32 %v4904_v55, 16  ;;  %v662_v18 = vsel %vm4876_vm3, %v657_v2, %v661_v48  ;;  %v670_v21 = vor.u32 %v669_v3, %v666_v0  ;;  %v4972_v51 = vld [vmem:[%s6017_s1 + $0x40] sm:$0xff]   ;;  %v4981_v58 = vld [vmem:[%s4813_s29 + $0x48] sm:$0xf] }
  0x21   : > { %v685_v22 = vrot.slane %v683_v5, 5  ;;  %v697_v23 = vshll.u32 %v4916_v61, 16  ;;  %v4939_v25 = vcombine.low %v652_v6, %v662_v18  ;;  %v680_v27 = vor.u32 %v679_v4, %v675_v10  ;;  %v4990_v2 = vld [vmem:[%s4813_s29 + $0x4c] sm:$0xf]  ;;  %v5149_v20 = vld [vmem:[%s4813_s29 + $0x90] sm:$0xf] }
  0x22   : > { %v690_v28 = vrot.slane %v688_v13, 4  ;;  %v693_v29 = vrot.slane %v691_v14, 5  ;;  %v671_v32 = vrot.slane %v670_v21, 4  ;;  %v707_v36 = vshll.u32 %v4927_v11, 16  ;;  %v4999_v14 = vld [vmem:[%s4813_s29 + $0x50] sm:$0x1] }
  0x23   : > { %4073 = vmatpush3.bf16.msra.mxu1 %v4712_v34  ;;  %6076 = vst [vmem:[#allocation5_spill] sm:$0xff] %v4939_v25  ;;  %v699_v33 = vrot.slane %v697_v23, 5  ;;  %v701_v34 = vshrl.u32 %v4916_v61, 16  ;;  %4199 = vmatmul.mubr.msk.bf16.vlgmr.msra.gmra.mrb[0].mxu0 %vm346_vm0, %v4939_v25  ;;  %v681_v38 = vrot.slane %v680_v27, 4  ;;  %v4956_v42 = vcombine.low %v4904_v55, %v4916_v61 }
  0x24   : > { %4074 = vmatprep.subr.bf16.mxu1 %v4719_v56  ;;  %v694_v39 = vor.u32 %v693_v29, %v690_v28  ;;  %v4960_v43 = vcombine.low %v4945_v31, %v4950_v37  ;;  %4231 = vmatpush3.bf16.msra.mxu0 %v4846_v16  ;;  %v676_v46 = vsel %vm4876_vm3, %v671_v32, %v675_v10  ;;  %v709_v48 = vrot.slane %v707_v36, 5  ;;  %v5008_v28 = vld [vmem:[%s4813_s29 + $0x54] sm:$0xf]  ;;  %v4716_v29 = vld [vmem:[%s6017_s1 + $0xb8] sm:$0xff]  }
  0x25   : > { %6077 = vst [vmem:[#allocation6_spill] sm:$0xff] %v4956_v42  ;;  %v703_v47 = vrot.slane %v701_v34, 4  ;;  %v712_v50 = vshrl.u32 %v4945_v31, 16  ;;  %v686_v53 = vsel %vm4876_vm3, %v681_v38, %v685_v22  ;;  %4232 = vmatprep.subr.bf16.mxu0 %v4709_v30  ;;  %v715_v16 = vshll.u32 %v4945_v31, 16  ;;  %v5016_v36 = vld [vmem:[%s4813_s29 + $0x58] sm:$0xf] }
  0x26   : > { %4043 = vmatmul.mubr.msk.bf16.gmra.mrb[4].mxu1 %vm346_vm0, %v4897_v52  ;;  %6078 = vst [vmem:[#allocation7_spill] sm:$0xff] %v4960_v43  ;;  %v725_v57 = vshrl.u32 %v4950_v37, 16  ;;  %v4986_v60 = vcombine.low %v676_v46, %v686_v53  ;;  %v721_v1 = vshll.u32 %v4950_v37, 16  ;;  %v731_v6 = vshll.u32 %v4963_v44, 16 }
  0x27   : > { %4075 = vmatpush3.bf16.msra.mxu1 %v4719_v56  ;;  %v695_v56 = vrot.slane %v694_v39, 4  ;;  %4046 = vmatprep.mubr.msk.bf16.mxu1 %vm346_vm0, %v4956_v42  ;;  %v704_v63 = vor.u32 %v703_v47, %v699_v33  ;;  %v714_v0 = vrot.slane %v712_v50, 4  ;;  %v717_v4 = vrot.slane %v715_v16, 5  ;;  %v5021_v50 = vld [vmem:[%s4813_s29 + $0x5c] sm:$0x1] }
  0x28   : > { %4076 = vmatprep.subr.bf16.mxu1 %v4725_v17  ;;  %6079 = vst [vmem:[#allocation8_spill] sm:$0xff] %v4986_v60  ;;  %v727_v5 = vrot.slane %v725_v57, 4  ;;  %4202 = vmatprep.mubr.msk.bf16.mxu0 %vm346_vm0, %v4986_v60  ;;  %v723_v13 = vrot.slane %v721_v1, 5  ;;  %v739_v18 = vshll.u32 %v4981_v58, 16  ;;  %v733_v22 = vrot.slane %v731_v6, 5 }
  0x29   : > { %v700_v3 = vsel %vm4876_vm3, %v695_v56, %v699_v33  ;;  %v705_v10 = vrot.slane %v704_v63, 4  ;;  %4233 = vmatpush3.bf16.msra.mxu0 %v4709_v30  ;;  %v718_v21 = vor.u32 %v717_v4, %v714_v0  ;;  %v745_v23 = vshll.u32 %v4990_v2, 16  ;;  %v5029_v57 = vld [vmem:[%s4813_s29 + $0x60] sm:$0xf] }
  0x2a   : > { %v749_v27 = vshrl.u32 %v4990_v2, 16  ;;  %4234 = vmatprep.subr.bf16.mxu0 %v4713_v59  ;;  %v728_v32 = vor.u32 %v727_v5, %v723_v13  ;;  %v741_v34 = vrot.slane %v739_v18, 5  ;;  %v755_v16 = vshll.u32 %v4999_v14, 16 }
  0x2b   : > { %4077 = vmatpush3.bf16.msra.mxu1 %v4725_v17  ;;  %v736_v17 = vshrl.u32 %v4981_v58, 16  ;;  %v710_v30 = vsel %vm4876_vm3, %v705_v10, %v709_v48  ;;  %v719_v39 = vrot.slane %v718_v21, 4  ;;  %v747_v46 = vrot.slane %v745_v23, 5  ;;  %v5048_v10 = vld [vmem:[%s6017_s1 + $0xc0] sm:$0xff]  }
  0x2c   : > { %4110 = vmatprep.subr.bf16.mxu1 %v4972_v51  ;;  %v5018_v38 = vcombine.low %v700_v3, %v710_v30  ;;  %v751_v47 = vrot.slane %v749_v27, 4  ;;  %v729_v53 = vrot.slane %v728_v32, 4  ;;  %v5026_v48 = vcombine.low %v4981_v58, %v4990_v2  ;;  %v5058_v32 = vld [vmem:[%s4813_s29 + $0x64] sm:$0xf] }
  0x2d   : > { %v738_v33 = vrot.slane %v736_v17, 4  ;;  %4235 = vmatpush3.bf16.msra.mxu0 %v4713_v59  ;;  %v724_v63 = vsel %vm4876_vm3, %v719_v39, %v723_v13  ;;  %v5037_v1 = vcombine.low %v5008_v28, %v5016_v36  ;;  %v760_v59 = vshrl.u32 %v5008_v28, 16  ;;  %v5067_v39 = vld [vmem:[%s4813_s29 + $0x68] sm:$0x1] }
  0x2e   : > { %4047 = vmatmul.mubr.msk.bf16.gmra.mrb[8].mxu1 %vm346_vm0, %v4960_v43  ;;  %6080 = vst [vmem:[#allocation9_spill] sm:$0xff] %v5018_v38  ;;  %6081 = vst [vmem:[#allocation10_spill] sm:$0xff] %v5026_v48  ;;  %4203 = vmatmul.mubr.msk.bf16.gmra.mrb[4].mxu0 %vm346_vm0, %v5018_v38  ;;  %v752_v0 = vor.u32 %v751_v47, %v747_v46  ;;  %v734_v3 = vsel %vm4876_vm3, %v729_v53, %v733_v22  ;;  %v757_v5 = vrot.slane %v755_v16, 5 }
  0x2f   : > { %v742_v56 = vor.u32 %v741_v34, %v738_v33  ;;  %6082 = vst [vmem:[#allocation11_spill] sm:$0xff] %v5037_v1  ;;  %4236 = vmatprep.subr.bf16.mxu0 %v4716_v29  ;;  %4050 = vmatprep.mubr.msk.bf16.mxu1 %vm346_vm0, %v5026_v48  ;;  %v763_v6 = vshll.u32 %v5008_v28, 16  ;;  %v5050_v13 = vcombine.low %v724_v63, %v734_v3  ;;  %v773_v18 = vshrl.u32 %v5016_v36, 16  ;;  %v5074_v63 = vld [vmem:[%s4813_s29 + $0x6c] sm:$0xf] }
  0x30   : > { %v753_v17 = vrot.slane %v752_v0, 4  ;;  %v762_v21 = vrot.slane %v760_v59, 4  ;;  %v769_v27 = vshll.u32 %v5016_v36, 16  ;;  %v779_v30 = vshll.u32 %v5021_v50, 16  ;;  %v5077_v0 = vld [vmem:[%s4813_s29 + $0x70] sm:$0xf] }
  0x31   : > { %v743_v4 = vrot.slane %v742_v56, 4  ;;  %v765_v23 = vrot.slane %v763_v6, 5  ;;  %4237 = vmatpush3.bf16.msra.mxu0 %v4716_v29  ;;  %4206 = vmatprep.mubr.msk.bf16.mxu0 %vm346_vm0, %v5050_v13  ;;  %v775_v34 = vrot.slane %v773_v18, 4  ;;  %v787_v47 = vshll.u32 %v5029_v57, 16 }
  0x32   : > { %v758_v33 = vsel %vm4876_vm3, %v753_v17, %v757_v5  ;;  %v771_v29 = vrot.slane %v769_v27, 5  ;;  %v781_v16 = vrot.slane %v779_v30, 5  ;;  %4270 = vmatprep.subr.bf16.mxu0 %v5048_v10  ;;  %v797_v5 = vshrl.u32 %v5058_v32, 16 }
  0x33   : > { %v748_v22 = vsel %vm4876_vm3, %v743_v4, %v747_v46  ;;  %v784_v46 = vshrl.u32 %v5029_v57, 16  ;;  %v766_v56 = vor.u32 %v765_v23, %v762_v21  ;;  %v789_v3 = vrot.slane %v787_v47, 5  ;;  %v5099_v47 = vld [vmem:[%s4813_s29 + $0x78] sm:$0xf] }
  0x34   : > { %v5071_v53 = vcombine.low %v748_v22, %v758_v33  ;;  %v793_v4 = vshll.u32 %v5058_v32, 16  ;;  %v776_v17 = vor.u32 %v775_v34, %v771_v29  ;;  %v803_v18 = vshll.u32 %v5067_v39, 16 }
  0x35   : > { %v786_v59 = vrot.slane %v784_v46, 4  ;;  %v767_v6 = vrot.slane %v766_v56, 4  ;;  %v5085_v21 = vcombine.low %v5029_v57, %v5058_v32  ;;  %v799_v27 = vrot.slane %v797_v5, 4 }
  0x36   : > { %4051 = vmatmul.mubr.msk.bf16.gmra.mrb[12].mxu1 %vm346_vm0, %v5037_v1  ;;  %4207 = vmatmul.mubr.msk.bf16.gmra.mrb[8].mxu0 %vm346_vm0, %v5071_v53  ;;  %v795_v23 = vrot.slane %v793_v4, 5  ;;  %v5091_v30 = vcombine.low %v5074_v63, %v5077_v0  ;;  %v1332_v33 = vrot.slane %v4860_v24, 5  ;;  %v777_v46 = vrot.slane %v776_v17, 4  ;;  %v5108_v24 = vld [vmem:[%s4813_s29 + $0x7c] sm:$0xf] }
  0x37   : > { %6083 = vst [vmem:[#allocation12_spill] sm:$0xff] %v5085_v21  ;;  %v790_v22 = vor.u32 %v789_v3, %v786_v59  ;;  %v772_v34 = vsel %vm4876_vm3, %v767_v6, %v771_v29  ;;  %4054 = vmatprep.mubr.msk.bf16.mxu1 %vm346_vm0, %v5085_v21  ;;  %v805_v59 = vrot.slane %v803_v18, 5  ;;  %v1328_v29 = vrot.slane %v4841_v15, 5 }
  0x38   : > { %6084 = vst [vmem:[#allocation13_spill] sm:$0xff] %v5091_v30  ;;  %v800_v41 = vor.u32 %v799_v27, %v795_v23  ;;  %v782_v4 = vsel %vm4876_vm3, %v777_v46, %v781_v16  ;;  %v3548_v5 = vrot.slane %v4825_v9, 9  ;;  %v1325_v6 = vrot.slane %v4834_v12, 5  ;;  %v5133_v46 = vld [vmem:[%s4813_s29 + $0x88] sm:$0xf] }
  0x39   : > { %v791_v56 = vrot.slane %v790_v22, 4  ;;  %v595_v17 = vshll.u32 %v4819_v7, 16  ;;  %v5116_v18 = vcombine.low %v772_v34, %v782_v4  ;;  %v1335_v15 = vrot.slane %v4863_v26, 5  ;;  %v5130_v34 = vld [vmem:[%s4813_s29 + $0x84] sm:$0xf] }
  0x3a   : > { %v801_v27 = vrot.slane %v800_v41, 4  ;;  %v1326_v9 = vsel %vm5103_vm6, %v3548_v5, %v1325_v6  ;;  %v1327_v16 = vrot.slane %v1325_v6, 4  ;;  %v5127_v12 = vcombine.low %v5099_v47, %v5108_v24 }
  0x3b   : > { %v796_v22 = vsel %vm4876_vm3, %v791_v56, %v795_v23  ;;  %4210 = vmatprep.mubr.msk.bf16.mxu0 %vm346_vm0, %v5116_v18  ;;  %v3549_v26 = vrot.slane %v4850_v19, 9  ;;  %v1334_v23 = vrot.slane %v1332_v33, 4  ;;  %v601_v56 = vshll.u32 %v4822_v8, 16 }
  0x3c   : > { %6087 = vst [vmem:[#allocation14_spill] sm:$0xff] %v5127_v12  ;;  %v806_v41 = vsel %vm4876_vm3, %v801_v27, %v805_v59  ;;  %v605_v4 = vshrl.u32 %v4822_v8, 16  ;;  %v1329_v6 = vsel %vm5103_vm6, %v1327_v16, %v1328_v29  ;;  %v6088_v59 = vshrl.u32 %v4819_v7, 16 }
  0x3d   : > { %v5142_v5 = vcombine.low %v796_v22, %v806_v41  ;;  %v597_v27 = vrot.slane %v595_v17, 5  ;;  %v5156_v21 = vcombine.low %v1326_v9, %v1329_v6  ;;  %v5160_v22 = vcombine.low %v5130_v34, %v5133_v46 }
  0x3e   : > { %4055 = vmatmul.mubr.msk.bf16.gmra.mrb[16].mxu1 %vm346_vm0, %v5091_v30  ;;  %v5152_v30 = vld [vmem:[%s4813_s29 + $0x94] sm:$0xf]  ;;  %v594_v19 = vrot.slane %v6088_v59, 4  ;;  %v3550_v29 = vrot.slane %v4883_v40, 9  ;;  %v1339_v16 = vrot.slane %v4887_v45, 5  ;;  %v1342_v59 = vrot.slane %v4901_v54, 5 }
  0x3f   : > { %4058 = vmatprep.mubr.msk.bf16.mxu1 %vm346_vm0, %v5127_v12  ;;  %6089 = vst [vmem:[#allocation15_spill] sm:$0xff] %v5156_v21  ;;  %6090 = vst [vmem:[#allocation16_spill] sm:$0xff] %v5160_v22  ;;  %4211 = vmatmul.mubr.msk.bf16.gmra.mrb[12].mxu0 %vm346_vm0, %v5142_v5  ;;  %v1333_v17 = vsel %vm5103_vm6, %v3549_v26, %v1332_v33  ;;  %v1336_v9 = vsel %vm5103_vm6, %v1334_v23, %v1335_v15  ;;  %v1346_v6 = vrot.slane %v4916_v61, 5  ;;  %v5186_v33 = vld [vmem:[%s4813_s29 + $0x9c] sm:$0xf] }
  0x40   : > { %4238 = vmatprep.mubr.msk.bf16.mxu0 %vm346_vm0, %v5156_v21  ;;  %v5177_v40 = vcombine.low %v5149_v20, %v5152_v30  ;;  %v5179_v45 = vrot.slane %v601_v56, 5  ;;  %v607_v54 = vrot.slane %v605_v4, 4  ;;  %v1340_v41 = vsel %vm5103_vm6, %v3550_v29, %v1339_v16  ;;  %v5189_v15 = vld [vmem:[%s4813_s29 + $0xa0] sm:$0xf]  ;;  %v5200_v4 = vld [vmem:[%s4813_s29 + $0xa8] sm:$0xf] }
  0x41   : > { %v1341_v12 = vrot.slane %v1339_v16, 4  ;;  %v598_v21 = vor.u32 %v597_v27, %v594_v19  ;;  %v5191_v61 = vcombine.low %v1333_v17, %v1336_v9  ;;  %v3551_v23 = vrot.slane %v4904_v55, 9  ;;  %v5203_v19 = vld [vmem:[%s4813_s29 + $0xac] sm:$0xf] }
  0x42   : > { %6091 = vst [vmem:[#allocation17_spill] sm:$0xff] %v5177_v40  ;;  %v1349_v56 = vrot.slane %v4927_v11, 5  ;;  %v1348_v29 = vrot.slane %v1346_v6, 4  ;;  %v1353_v16 = vrot.slane %v4950_v37, 5  ;;  %v3552_v17 = vrot.slane %v4945_v31, 9  ;;  %v4726_v55 = vld [vmem:[%s6017_s1 + $0xc8] sm:$0xff]  }
  0x43   : > { %6092 = vst [vmem:[#allocation18_spill] sm:$0xff] %v5191_v61  ;;  %v1343_v26 = vsel %vm5103_vm6, %v1341_v12, %v1342_v59  ;;  %v1356_v12 = vrot.slane %v4963_v44, 5  ;;  %v608_v11 = vor.u32 %v607_v54, %v5179_v45  ;;  %v5216_v59 = vcombine.low %v5186_v33, %v5189_v15 }
  0x44   : > { %v5205_v27 = vcombine.low %v1340_v41, %v1343_v26  ;;  %v1355_v41 = vrot.slane %v1353_v16, 4  ;;  %v599_v9 = vrot.slane %v598_v21, 4  ;;  %v6095_v37 = vrot.slane %v4822_v8, 5  ;;  %v4730_v26 = vld [vmem:[%s6017_s1 + $0xd0] sm:$0xff]  }
  0x45   : > { %6094 = vst [vmem:[#allocation20_spill] sm:$0xff] %v5216_v59  ;;  %v5227_v44 = vcombine.low %v5200_v4, %v5203_v19  ;;  %v1347_v21 = vsel %vm5103_vm6, %v3551_v23, %v1346_v6  ;;  %v1350_v54 = vsel %vm5103_vm6, %v1348_v29, %v1349_v56  ;;  %v609_v6 = vrot.slane %v608_v11, 4  ;;  %v5250_v23 = vld [vmem:[%s4813_s29 + $0xb4] sm:$0xf] }
  0x46   : > { %4059 = vmatmul.mubr.msk.bf16.gmra.mrb[20].mxu1 %vm346_vm0, %v5160_v22  ;;  %6093 = vst [vmem:[#allocation19_spill] sm:$0xff] %v5205_v27  ;;  %v5221_v31 = vrot.slane %v6095_v37, 4  ;;  %v1360_v37 = vrot.slane %v4990_v2, 5  ;;  %v5245_v22 = vld [vmem:[%s4813_s29 + $0x8] sm:$0x1]  ;;  %v1367_v2 = vrot.slane %v5016_v36, 5  ;;  %v5254_v29 = vcombine.low %v1347_v21, %v1350_v54 }
  0x47   : > { %4062 = vmatprep.mubr.msk.bf16.mxu1 %vm346_vm0, %v5177_v40  ;;  %4239 = vmatmul.mubr.msk.bf16.vlgmr.msra.gmra.mrb[0].mxu0 %vm346_vm0, %v5191_v61  ;;  %6096 = vst [vmem:[#allocation21_spill] sm:$0xff] %v5227_v44  ;;  %v1354_v40 = vsel %vm5103_vm6, %v3552_v17, %v1353_v16  ;;  %v3553_v16 = vrot.slane %v4981_v58, 9  ;;  %v5260_v17 = vld [vmem:[%s4813_s29 + $0xb8] sm:$0xf]  ;;  %v3554_v58 = vrot.slane %v5008_v28, 9  ;;  %v1370_v56 = vrot.slane %v5021_v50, 5 }
  0x48   : > { %4271 = vmatpush3.bf16.msra.mxu0 %v5048_v10  ;;  %4242 = vmatprep.mubr.msk.bf16.mxu0 %vm346_vm0, %v5205_v27  ;;  %v1357_v10 = vsel %vm5103_vm6, %v1355_v41, %v1356_v12  ;;  %6097 = vst [vmem:[#allocation22_spill] sm:$0xff] %v5254_v29  ;;  %v1362_v11 = vrot.slane %v1360_v37, 4  ;;  %v1363_v41 = vrot.slane %v4999_v14, 5  ;;  %v4732_v36 = vld [vmem:[%s6017_s1 + $0xd8] sm:$0xff]   ;;  %v1369_v54 = vrot.slane %v1367_v2, 4 }
  0x49   : > { %4272 = vmatprep.subr.bf16.mxu0 %v4726_v55  ;;  %v5262_v12 = vcombine.low %v1354_v40, %v1357_v10  ;;  %v5275_v14 = vcombine.low %v5250_v23, %v5260_v17  ;;  %v1361_v28 = vsel %vm5103_vm6, %v3553_v16, %v1360_v37  ;;  %v1381_v40 = vrot.slane %v5077_v0, 5  ;;  %v5301_v37 = vld [vmem:[%s6017_s1 + $0xe0] sm:$0xff]  }
  0x4a   : > { %v1364_v50 = vsel %vm5103_vm6, %v1362_v11, %v1363_v41  ;;  %v1371_v21 = vsel %vm5103_vm6, %v1369_v54, %v1370_v56  ;;  %6100 = vst [vmem:[#allocation25_spill] sm:$0xff] %v5301_v37  ;;  %v3555_v11 = vrot.slane %v5029_v57, 9  ;;  %v5317_v41 = vld [vmem:[%s4813_s29 + $0x80] sm:$0x1]  ;;  %v3556_v56 = vrot.slane %v5074_v63, 9 }
  0x4b   : > { %6098 = vst [vmem:[#allocation23_spill] sm:$0xff] %v5262_v12  ;;  %6099 = vst [vmem:[#allocation24_spill] sm:$0xff] %v5275_v14  ;;  %v5312_v16 = vcombine.low %v1361_v28, %v1364_v50  ;;  %v1383_v28 = vrot.slane %v1381_v40, 4  ;;  %v5327_v57 = vld [vmem:[%s4813_s29 + $0x8c] sm:$0x1]  ;;  %v6110_v1 = vshll.u32 %v5099_v47, 16 }
  0x4c   : > { %4273 = vmatpush3.bf16.msra.mxu0 %v4726_v55  ;;  %v604_v55 = vsel %vm4876_vm3, %v599_v9, %v5179_v45  ;;  %v1374_v45 = vrot.slane %v5058_v32, 5  ;;  %v1368_v9 = vsel %vm5103_vm6, %v3554_v58, %v1367_v2  ;;  %v5374_v32 = vld [vmem:[%s4813_s29 + $0xa4] sm:$0x1] }
  0x4d   : > { %4274 = vmatprep.subr.bf16.mxu0 %v4730_v26  ;;  %6101 = vst [vmem:[#allocation26_spill] sm:$0xff] %v5312_v16  ;;  %v5319_v58 = vcombine.low %v1368_v9, %v1371_v21  ;;  %v1395_v21 = vrot.slane %v5133_v46, 5  ;;  %v3557_v9 = vrot.slane %v5099_v47, 9  ;;  %v837_v48 = vrot.slane %v6110_v1, 5 }
  0x4e   : > { %4063 = vmatmul.mubr.msk.bf16.gmra.mrb[24].mxu1 %vm346_vm0, %v5216_v59  ;;  %v611_v59 = vshll.u32 %v5245_v22, 16  ;;  %v1376_v54 = vrot.slane %v1374_v45, 4 }
  0x4f   : > { %4066 = vmatprep.mubr.msk.bf16.mxu1 %vm346_vm0, %v5227_v44  ;;  %4243 = vmatmul.mubr.msk.bf16.gmra.mrb[4].mxu0 %vm346_vm0, %v5254_v29  ;;  %6102 = vst [vmem:[#allocation27_spill] sm:$0xff] %v5319_v58 }
  0x50   : > { %v613_v10 = vrot.slane %v611_v59, 5  ;;  %4246 = vmatprep.mubr.msk.bf16.mxu0 %vm346_vm0, %v5262_v12  ;;  %4275 = vmatpush3.bf16.msra.mxu0 %v4730_v26  ;;  %v1391_v26 = vrot.slane %v5317_v41, 5  ;;  %v1412_v12 = vrot.slane %v5374_v32, 5 }
  0x51   : > { %4276 = vmatprep.subr.bf16.mxu0 %v4732_v36 }
  0x52   : > { %v614_v59 = vsel %vm4876_vm3, %v609_v6, %v613_v10  ;;  %v5308_v6 = vld [vmem:[%s4813_s29 + $0x74] sm:$0x1]  ;;  %v1388_v10 = vrot.slane %v5108_v24, 5 }
  0x53   : > { %v3511_v44 = vcombine.low %v604_v55, %v614_v59  ;;  %v1377_v55 = vrot.slane %v5067_v39, 5  ;;  %v1384_v50 = vrot.slane %v5308_v6, 5  ;;  %v4731_v39 = vld [vmem:[%s6017_s1 + $0x48] sm:$0xff]   ;;  %v1375_v59 = vsel %vm5103_vm6, %v3555_v11, %v1374_v45 }
  0x54   : > { %4277 = vmatpush3.bf16.msra.mxu0 %v4732_v36  ;;  %v1390_v2 = vrot.slane %v1388_v10, 4  ;;  %v1382_v36 = vsel %vm5103_vm6, %v3556_v56, %v1381_v40  ;;  %v3558_v11 = vrot.slane %v5130_v34, 9 }
  0x55   : > { %4310 = vmatprep.subr.bf16.mxu0 %v5301_v37 }
  0x56   : > { %4067 = vmatmul.mubr.msk.bf16.gmra.mrb[28].mxu1 %vm346_vm0, %v5275_v14  ;;  %v1385_v14 = vsel %vm5103_vm6, %v1383_v28, %v1384_v50  ;;  %v1389_v28 = vsel %vm5103_vm6, %v3557_v9, %v1388_v10  ;;  %v3559_v50 = vrot.slane %v5149_v20, 9  ;;  %v1392_v45 = vsel %vm5103_vm6, %v1390_v2, %v1391_v26  ;;  %v4733_v10 = vld [vmem:[%s6017_s1 + $0x50] sm:$0xff]  }
  0x57   : > { %4078 = vmatprep.mubr.msk.bf16.mxu1 %vm346_vm0, %v3511_v44  ;;  %4247 = vmatmul.mubr.msk.bf16.gmra.mrb[8].mxu0 %vm346_vm0, %v5312_v16  ;;  %v1378_v44 = vsel %vm5103_vm6, %v1376_v54, %v1377_v55  ;;  %v5352_v16 = vld [vmem:[%s4813_s29 + $0x98] sm:$0x1]  ;;  %v1397_v54 = vrot.slane %v1395_v21, 4  ;;  %v1398_v55 = vrot.slane %v5327_v57, 5  ;;  %v1396_v2 = vsel %vm5103_vm6, %v3558_v11, %v1395_v21  ;;  %v5398_v26 = vld [vmem:[%s4813_s29 + $0xb0] sm:$0x1] }
  0x58   : > { %4250 = vmatprep.mubr.msk.bf16.mxu0 %vm346_vm0, %v5319_v58  ;;  %v1402_v58 = vrot.slane %v5152_v30, 5  ;;  %v5361_v56 = vcombine.low %v1375_v59, %v1378_v44  ;;  %v3560_v59 = vrot.slane %v5186_v33, 9  ;;  %v1405_v9 = vrot.slane %v5352_v16, 5 }
  0x59   : > { %v1399_v40 = vsel %vm5103_vm6, %v1397_v54, %v1398_v55  ;;  %v5392_v44 = vcombine.low %v1389_v28, %v1392_v45  ;;  %v3561_v21 = vrot.slane %v5200_v4, 9  ;;  %v1416_v54 = vrot.slane %v5203_v19, 5  ;;  %v5407_v55 = vld [vmem:[%s4813_s29 + $0xc4] sm:$0xf] }
  0x5a   : > { %6103 = vst [vmem:[#allocation28_spill] sm:$0xff] %v5361_v56  ;;  %v5413_v28 = vcombine.low %v1396_v2, %v1399_v40  ;;  %v1419_v27 = vrot.slane %v5398_v26, 5  ;;  %v3562_v40 = vrot.slane %v5250_v23, 9  ;;  %v5429_v2 = vld [vmem:[%s4813_s29 + $0xc0] sm:$0xf] }
  0x5e   : > { %4079 = vmatmul.mubr.msk.bf16.vlgmr.msra.gmra.mrb[0].mxu1 %vm346_vm0, %v4918_v62  ;;  %v5369_v62 = vcombine.low %v1382_v36, %v1385_v14  ;;  %v1404_v36 = vrot.slane %v1402_v58, 4  ;;  %v1403_v14 = vsel %vm5103_vm6, %v3559_v50, %v1402_v58  ;;  %v841_v58 = vshll.u32 %v5108_v24, 16 }
  0x5f   : > { %4111 = vmatpush3.bf16.msra.mxu1 %v4972_v51  ;;  %4082 = vmatprep.mubr.msk.bf16.mxu1 %vm346_vm0, %v4939_v25  ;;  %v1409_v51 = vrot.slane %v5189_v15, 5  ;;  %v817_v25 = vshll.u32 %v5077_v0, 16 }
  0x60   : > { %6104 = vst [vmem:[#allocation29_spill] sm:$0xff] %v5369_v62  ;;  %4112 = vmatprep.subr.bf16.mxu1 %v4731_v39  ;;  %4251 = vmatmul.mubr.msk.bf16.gmra.mrb[12].mxu0 %vm346_vm0, %v5361_v56  ;;  %v1406_v50 = vsel %vm5103_vm6, %v1404_v36, %v1405_v9  ;;  %v6107_v56 = vshll.u32 %v5074_v63, 16  ;;  %v6108_v36 = vshrl.u32 %v5077_v0, 16  ;;  %v5448_v0 = vld [vmem:[%s4813_s29 + $0xc8] sm:$0x1] }
  0x61   : > { %4254 = vmatprep.mubr.msk.bf16.mxu0 %vm346_vm0, %v5369_v62  ;;  %v1410_v11 = vsel %vm5103_vm6, %v3560_v59, %v1409_v51  ;;  %v1411_v45 = vrot.slane %v1409_v51, 4  ;;  %v5418_v62 = vld [vmem:[%s4813_s29 + $0xbc] sm:$0x1]  ;;  %v6106_v59 = vshrl.u32 %v5074_v63, 16  ;;  %v5431_v61 = vrot.slane %v817_v25, 5 }
  0x62   : > { %6105 = vst [vmem:[#allocation30_spill] sm:$0xff] %v5418_v62  ;;  %v813_v29 = vrot.slane %v6107_v56, 5  ;;  %v823_v9 = vrot.slane %v6108_v36, 4  ;;  %v1423_v63 = vrot.slane %v5260_v17, 5  ;;  %v2243_v56 = vrot.slane %v5407_v55, 5 }
  0x63   : > { %4113 = vmatpush3.bf16.msra.mxu1 %v4731_v39  ;;  %v4735_v39 = vld [vmem:[%s6017_s1 + $0x58] sm:$0xff]   ;;  %v810_v51 = vrot.slane %v6106_v59, 4  ;;  %v6109_v59 = vshrl.u32 %v5099_v47, 16  ;;  %v5443_v43 = vcombine.low %v1403_v14, %v1406_v50  ;;  %v1413_v25 = vsel %vm5103_vm6, %v1411_v45, %v1412_v12 }
  0x64   : > { %4114 = vmatprep.subr.bf16.mxu1 %v4733_v10  ;;  %v5450_v36 = vrot.slane %v841_v58, 5  ;;  %v1418_v47 = vrot.slane %v1416_v54, 4  ;;  %v1426_v1 = vrot.slane %v5418_v62, 5  ;;  %v3665_v14 = vrot.slane %v5429_v2, 9 }
  0x65   : > { %v814_v50 = vor.u32 %v813_v29, %v810_v51  ;;  %v824_v12 = vor.u32 %v823_v9, %v5431_v61  ;;  %v827_v45 = vshll.u32 %v5308_v6, 16  ;;  %v6112_v58 = vshrl.u32 %v5130_v34, 16 }
  0x66   : > { %4083 = vmatmul.mubr.msk.bf16.gmra.mrb[4].mxu1 %vm346_vm0, %v4986_v60  ;;  %v834_v60 = vrot.slane %v6109_v59, 4  ;;  %v1425_v37 = vrot.slane %v1423_v63, 4  ;;  %v2245_v52 = vrot.slane %v2243_v56, 4  ;;  %v2246_v62 = vrot.slane %v5448_v0, 5 }
  0x67   : > { %4086 = vmatprep.mubr.msk.bf16.mxu1 %vm346_vm0, %v5018_v38  ;;  %4115 = vmatpush3.bf16.msra.mxu1 %v4733_v10  ;;  %v6111_v38 = vshrl.u32 %v5108_v24, 16  ;;  %v5457_v10 = vld [vmem:[%s6017_s1 + $0x60] sm:$0xff]   ;;  %v858_v24 = vrot.slane %v6112_v58, 4  ;;  %v1417_v29 = vsel %vm5103_vm6, %v3561_v21, %v1416_v54  ;;  %v865_v51 = vshll.u32 %v5133_v46, 16 }
  0x68   : > { %4116 = vmatprep.subr.bf16.mxu1 %v4735_v39  ;;  %4255 = vmatmul.mubr.msk.bf16.gmra.mrb[16].mxu0 %vm346_vm0, %v5392_v44  ;;  %v838_v49 = vor.u32 %v837_v48, %v834_v60  ;;  %v5478_v9 = vcombine.low %v1410_v11, %v1413_v25  ;;  %v1420_v60 = vsel %vm5103_vm6, %v1418_v47, %v1419_v27  ;;  %v825_v21 = vrot.slane %v824_v12, 4 }
  0x69   : > { %v847_v42 = vrot.slane %v6111_v38, 4  ;;  %v6113_v38 = vshll.u32 %v5130_v34, 16  ;;  %4258 = vmatprep.mubr.msk.bf16.mxu0 %vm346_vm0, %v5413_v28  ;;  %v851_v34 = vshll.u32 %v5317_v41, 16  ;;  %v1424_v48 = vsel %vm5103_vm6, %v3562_v40, %v1423_v63 }
  0x6a   : > { %v889_v41 = vshll.u32 %v5152_v30, 16  ;;  %v1427_v11 = vsel %vm5103_vm6, %v1425_v37, %v1426_v1  ;;  %v2244_v27 = vsel %vm5103_vm6, %v3665_v14, %v2243_v56  ;;  %v2247_v40 = vsel %vm5103_vm6, %v2245_v52, %v2246_v62 }
  0x6b   : > { %v861_v59 = vrot.slane %v6113_v38, 5  ;;  %4117 = vmatpush3.bf16.msra.mxu1 %v4735_v39  ;;  %v848_v6 = vor.u32 %v847_v42, %v5450_v36  ;;  %v815_v39 = vrot.slane %v814_v50, 4  ;;  %v829_v42 = vrot.slane %v827_v45, 5 }
  0x6c   : > { %4150 = vmatprep.subr.bf16.mxu1 %v5457_v10  ;;  %v839_v63 = vrot.slane %v838_v49, 4  ;;  %v853_v47 = vrot.slane %v851_v34, 5  ;;  %v5495_v50 = vrot.slane %v865_v51, 5  ;;  %v6114_v12 = vshrl.u32 %v5133_v46, 16 }
  0x6d   : > { %v862_v54 = vor.u32 %v861_v59, %v858_v24  ;;  %v849_v25 = vrot.slane %v848_v6, 4  ;;  %v820_v58 = vsel %vm4876_vm3, %v815_v39, %v5431_v61  ;;  %v875_v37 = vshll.u32 %v5327_v57, 16 }
  0x6e   : > { %4087 = vmatmul.mubr.msk.bf16.gmra.mrb[8].mxu1 %vm346_vm0, %v5050_v13  ;;  %v871_v45 = vrot.slane %v6114_v12, 4  ;;  %v6115_v1 = vshrl.u32 %v5149_v20, 16  ;;  %v6116_v14 = vshll.u32 %v5149_v20, 16  ;;  %v830_v49 = vsel %vm4876_vm3, %v825_v21, %v829_v42 }
  0x6f   : > { %4090 = vmatprep.mubr.msk.bf16.mxu1 %vm346_vm0, %v5071_v53  ;;  %v5509_v62 = vrot.slane %v862_v54, 4  ;;  %v5511_v24 = vrot.slane %v889_v41, 5  ;;  %v6117_v46 = vshrl.u32 %v5152_v30, 16  ;;  %v952_v61 = vshrl.u32 %v5250_v23, 16 }
  0x70   : > { %v882_v56 = vrot.slane %v6115_v1, 4  ;;  %v885_v52 = vrot.slane %v6116_v14, 5  ;;  %v955_v57 = vshll.u32 %v5250_v23, 16  ;;  %v965_v59 = vshrl.u32 %v5260_v17, 16  ;;  %4259 = vmatmul.mubr.msk.bf16.gmra.mrb[20].mxu0 %vm346_vm0, %v5443_v43 }
  0x71   : > { %v895_v38 = vrot.slane %v6117_v46, 4  ;;  %v5520_v20 = vcombine.low %v1417_v29, %v1420_v60  ;;  %4262 = vmatprep.mubr.msk.bf16.mxu0 %vm346_vm0, %v5478_v9  ;;  %v844_v6 = vsel %vm4876_vm3, %v839_v63, %v5450_v36  ;;  %v854_v30 = vsel %vm4876_vm3, %v849_v25, %v853_v47 }
  0x72   : > { %v872_v34 = vor.u32 %v871_v45, %v5495_v50  ;;  %v899_v51 = vshll.u32 %v5352_v16, 16  ;;  %v5531_v39 = vcombine.low %v1424_v48, %v1427_v11  ;;  %v5533_v21 = vcombine.low %v2244_v27, %v2247_v40 }
  0x73   : > { %v5535_v29 = vcombine.low %v820_v58, %v830_v49  ;;  %v886_v60 = vor.u32 %v885_v52, %v882_v56  ;;  %v868_v36 = vsel %vm4876_vm3, %v5509_v62, %v5495_v50  ;;  %v877_v42 = vrot.slane %v875_v37, 5 }
  0x74   : > { %v896_v54 = vor.u32 %v895_v38, %v5511_v24  ;;  %v913_v16 = vshll.u32 %v5189_v15, 16  ;;  %v5547_v48 = vcombine.low %v844_v6, %v854_v30  ;;  %v6118_v41 = vshrl.u32 %v5186_v33, 16 }
  0x75   : > { %v6119_v27 = vrot.slane %v4822_v8, 5  ;;  %v6120_v40 = vrot.slane %v4819_v7, 9  ;;  %v1321_v25 = vrot.slane %v5245_v22, 5  ;;  %v873_v47 = vrot.slane %v872_v34, 4 }
  0x76   : > { %4091 = vmatmul.mubr.msk.bf16.gmra.mrb[12].mxu1 %vm346_vm0, %v5116_v18  ;;  %v906_v11 = vrot.slane %v6118_v41, 4  ;;  %v901_v50 = vrot.slane %v899_v51, 5  ;;  %v6121_v12 = vshll.u32 %v5186_v33, 16  ;;  %v937_v58 = vshll.u32 %v5203_v19, 16 }
  0x77   : > { %4094 = vmatprep.mubr.msk.bf16.mxu1 %vm346_vm0, %v5142_v5  ;;  %v5557_v63 = vsel %vm5103_vm6, %v6120_v40, %v6119_v27  ;;  %v887_v37 = vrot.slane %v886_v60, 4  ;;  %v6122_v1 = vshrl.u32 %v5189_v15, 16  ;;  %v923_v8 = vshll.u32 %v5374_v32, 16 }
  0x78   : > { %v909_v45 = vrot.slane %v6121_v12, 5  ;;  %v5569_v7 = vsel %vm5103_vm6, %v5221_v31, %v1321_v25  ;;  %v897_v14 = vrot.slane %v896_v54, 4  ;;  %v915_v22 = vrot.slane %v913_v16, 5  ;;  %4263 = vmatmul.mubr.msk.bf16.gmra.mrb[24].mxu0 %vm346_vm0, %v5520_v20 }
  0x79   : > { %v919_v56 = vrot.slane %v6122_v1, 4  ;;  %v6123_v52 = vshrl.u32 %v5200_v4, 16  ;;  %v3571_v33 = vcombine.low %v5557_v63, %v5569_v7  ;;  %v6124_v15 = vshll.u32 %v5200_v4, 16  ;;  %4266 = vmatprep.mubr.msk.bf16.mxu0 %vm346_vm0, %v5531_v39  ;;  %v6136_v63 = vld [vmem:[#allocation18_spill] sm:$0xff]  ;;  %v4743_v7 = vld [vmem:[%s6017_s1 + $0x70] sm:$0xff]  }
  0x7a   : > { %v1985_v32 = vshrl.u32 %v5429_v2, 16  ;;  %v1988_v46 = vshll.u32 %v5429_v2, 16  ;;  %v1994_v31 = vshll.u32 %v5407_v55, 16  ;;  %v939_v38 = vrot.slane %v937_v58, 5 }
  0x7b   : > { %v930_v49 = vrot.slane %v6123_v52, 4  ;;  %v933_v62 = vrot.slane %v6124_v15, 5  ;;  %v6125_v6 = vshrl.u32 %v5203_v19, 16  ;;  %v1998_v34 = vshrl.u32 %v5407_v55, 16 }
  0x7c   : > { %v2004_v51 = vshll.u32 %v5448_v0, 16  ;;  %v910_v60 = vor.u32 %v909_v45, %v906_v11  ;;  %v1987_v4 = vrot.slane %v1985_v32, 4  ;;  %v1990_v54 = vrot.slane %v1988_v46, 5 }
  0x7d   : > { %v943_v30 = vrot.slane %v6125_v6, 4  ;;  %v1996_v16 = vrot.slane %v1994_v31, 5  ;;  %v878_v41 = vsel %vm4876_vm3, %v873_v47, %v877_v42  ;;  %v892_v27 = vsel %vm4876_vm3, %v887_v37, %v5511_v24 }
  0x7e   : > { %4095 = vmatmul.mubr.msk.bf16.gmra.mrb[16].mxu1 %vm346_vm0, %v5535_v29  ;;  %v920_v19 = vor.u32 %v919_v56, %v915_v22  ;;  %v2000_v40 = vrot.slane %v1998_v34, 4  ;;  %v902_v0 = vsel %vm4876_vm3, %v897_v14, %v901_v50  ;;  %v934_v11 = vor.u32 %v933_v62, %v930_v49  ;;  %v6126_v62 = vld [vmem:[#allocation3_spill] sm:$0xff] }
  0x7f   : > { %4098 = vmatprep.mubr.msk.bf16.mxu1 %vm346_vm0, %v5547_v48  ;;  %v961_v25 = vshll.u32 %v5260_v17, 16  ;;  %v1991_v12 = vor.u32 %v1990_v54, %v1987_v4  ;;  %v944_v45 = vor.u32 %v943_v30, %v939_v38  ;;  %v947_v58 = vshll.u32 %v5398_v26, 16  ;;  %v6127_v30 = vld [vmem:[#allocation30_spill] sm:$0xff]  ;;  %v6128_v54 = vld [vmem:[#allocation4_spill] sm:$0xff] }
  0x80   : > { %v2001_v42 = vor.u32 %v2000_v40, %v1996_v16  ;;  %v2006_v47 = vrot.slane %v2004_v51, 5  ;;  %v5601_v1 = vcombine.low %v868_v36, %v878_v41  ;;  %v911_v24 = vrot.slane %v910_v60, 4  ;;  %4267 = vmatmul.mubr.msk.bf16.gmra.mrb[28].mxu0 %vm346_vm0, %v5533_v21  ;;  %v6129_v40 = vld [vmem:[#allocation25_spill] sm:$0xff] }
  0x81   : > { %v925_v37 = vrot.slane %v923_v8, 5  ;;  %v1992_v56 = vrot.slane %v1991_v12, 4  ;;  %v5603_v52 = vcombine.low %v892_v27, %v902_v0  ;;  %v921_v15 = vrot.slane %v920_v19, 4  ;;  %4278 = vmatprep.mubr.msk.bf16.mxu0 %vm346_vm0, %v6126_v62  ;;  %v4738_v0 = vld [vmem:[%s6017_s1 + $0xf0] sm:$0xff]   ;;  %v4740_v12 = vld [vmem:[%s6017_s1 + $0xf8] sm:$0xff]  }
  0x82   : > { %v954_v50 = vrot.slane %v952_v61, 4  ;;  %v2002_v14 = vrot.slane %v2001_v42, 4  ;;  %v957_v26 = vrot.slane %v955_v57, 5  ;;  %v963_v49 = vrot.slane %v961_v25, 5  ;;  %v6132_v42 = vld [vmem:[#allocation10_spill] sm:$0xff] }
  0x83   : > { %v967_v36 = vrot.slane %v965_v59, 4  ;;  %v1997_v8 = vsel %vm4876_vm3, %v1992_v56, %v1996_v16  ;;  %v935_v32 = vrot.slane %v934_v11, 4  ;;  %v945_v46 = vrot.slane %v944_v45, 4  ;;  %v4739_v56 = vld [vmem:[%s6017_s1 + $0x68] sm:$0xff]  }
  0x84   : > { %v949_v61 = vrot.slane %v947_v58, 5  ;;  %v2007_v31 = vsel %vm4876_vm3, %v2002_v14, %v2006_v47  ;;  %v916_v23 = vsel %vm4876_vm3, %v911_v24, %v915_v22  ;;  %v926_v17 = vsel %vm4876_vm3, %v921_v15, %v925_v37  ;;  %v4736_v22 = vld [vmem:[%s6017_s1 + $0xe8] sm:$0xff]   ;;  %v4744_v47 = vld [vmem:[%s6017_s1 + $0x100] sm:$0xff]   ;;  %v6134_v37 = vld [vmem:[#allocation12_spill] sm:$0xff] }
  0x85   : > { %v5619_v6 = vcombine.low %v1997_v8, %v2007_v31  ;;  %v958_v57 = vor.u32 %v957_v26, %v954_v50  ;;  %v968_v59 = vor.u32 %v967_v36, %v963_v49  ;;  %v971_v34 = vshll.u32 %v6127_v30, 16  ;;  %v6131_v58 = vld [vmem:[#allocation7_spill] sm:$0xff]  ;;  %v6138_v50 = vld [vmem:[#allocation14_spill] sm:$0xff]  ;;  %v6142_v36 = vld [vmem:[#allocation17_spill] sm:$0xff] }
  0x86   : > { %4099 = vmatmul.mubr.msk.bf16.gmra.mrb[20].mxu1 %vm346_vm0, %v5601_v1  ;;  %v940_v51 = vsel %vm4876_vm3, %v935_v32, %v939_v38  ;;  %v950_v60 = vsel %vm4876_vm3, %v945_v46, %v949_v61  ;;  %v5637_v4 = vcombine.low %v916_v23, %v926_v17  ;;  %v6130_v38 = vld [vmem:[#allocation6_spill] sm:$0xff]  ;;  %v6133_v24 = vld [vmem:[#allocation11_spill] sm:$0xff]  ;;  %v6145_v61 = vld [vmem:[#allocation20_spill] sm:$0xff] }
  0x87   : > { %4102 = vmatprep.mubr.msk.bf16.mxu1 %vm346_vm0, %v5603_v52  ;;  %v5641_v16 = vcombine.low %v940_v51, %v950_v60  ;;  %v959_v41 = vrot.slane %v958_v57, 4  ;;  %v969_v27 = vrot.slane %v968_v59, 4  ;;  %v973_v19 = vrot.slane %v971_v34, 5  ;;  %v6135_v15 = vld [vmem:[#allocation15_spill] sm:$0xff]  ;;  %v6140_v26 = vld [vmem:[#allocation22_spill] sm:$0xff]  ;;  %v6146_v31 = vld [vmem:[#allocation21_spill] sm:$0xff] }
  0x88   : > { %4279 = vmatmul.mubr.msk.bf16.vlgmr.msra.gmra.mrb[0].mxu0 %vm346_vm0, %v6128_v54  ;;  %v6139_v14 = vld [vmem:[#allocation19_spill] sm:$0xff]  ;;  %v4749_v8 = vld [vmem:[%s6017_s1 + $0x80] sm:$0xff]   ;;  %v6148_v17 = vld [vmem:[#allocation28_spill] sm:$0xff]  ;;  %v5722_v57 = vcombine.low %v5429_v2, %v5407_v55 }
  0x89   : > { %4311 = vmatpush3.bf16.msra.mxu0 %v6129_v40  ;;  %4282 = vmatprep.mubr.msk.bf16.mxu0 %vm346_vm0, %v6130_v38  ;;  %v964_v11 = vsel %vm4876_vm3, %v959_v41, %v963_v49  ;;  %v974_v25 = vsel %vm4876_vm3, %v969_v27, %v973_v19  ;;  %v6141_v49 = vld [vmem:[#allocation16_spill] sm:$0xff]  ;;  %v6143_v32 = vld [vmem:[#allocation23_spill] sm:$0xff]  ;;  %v6144_v46 = vld [vmem:[#allocation26_spill] sm:$0xff] }
  0x8a   : > { %4312 = vmatprep.subr.bf16.mxu0 %v4736_v22  ;;  %v5660_v45 = vcombine.low %v964_v11, %v974_v25  ;;  %v6147_v23 = vld [vmem:[#allocation27_spill] sm:$0xff]  ;;  %v6149_v59 = vld [vmem:[#allocation24_spill] sm:$0xff]  ;;  %v6150_v51 = vld [vmem:[#allocation29_spill] sm:$0xff] }
  0x8b   : > { %v5729_v30 = vld [vmem:[%s4813_s29 + $0xcc] sm:$0xf]  ;;  %v5732_v34 = vld [vmem:[%s4813_s29 + $0xd0] sm:$0xf]  ;;  %v6151_v55 = vld [vmem:[#allocation5_spill] sm:$0xff] }
  0x8c   : > { %v3703_v60 = vcombine.low %v5729_v30, %v5732_v34  ;;  %v4746_v2 = vld [vmem:[%s6017_s1 + $0x108] sm:$0xff]   ;;  %v6153_v41 = vld [vmem:[#allocation9_spill] sm:$0xff]  ;;  %v4747_v27 = vld [vmem:[%s6017_s1 + $0x110] sm:$0xff]   ;;  %v2973_v35 = vrot.slane %v5732_v34, 5 }
  0x8d   : > { %4313 = vmatpush3.bf16.msra.mxu0 %v4736_v22  ;;  %v6152_v22 = vld [vmem:[#allocation8_spill] sm:$0xff]  ;;  %v4748_v19 = vld [vmem:[%s6017_s1 + $0x118] sm:$0xff]   ;;  %v6154_v40 = vld [vmem:[#allocation2_spill] sm:$0xff] }
  0x8e   : > { %4103 = vmatmul.mubr.msk.bf16.gmra.mrb[24].mxu1 %vm346_vm0, %v5637_v4  ;;  %4314 = vmatprep.subr.bf16.mxu0 %v4738_v0 }
  0x8f   : > { %4106 = vmatprep.mubr.msk.bf16.mxu1 %vm346_vm0, %v5641_v16 }
  0x90   : > { %4283 = vmatmul.mubr.msk.bf16.gmra.mrb[4].mxu0 %vm346_vm0, %v6131_v58 }
  0x91   : > { %4286 = vmatprep.mubr.msk.bf16.mxu0 %vm346_vm0, %v6132_v42  ;;  %4315 = vmatpush3.bf16.msra.mxu0 %v4738_v0 }
  0x92   : > { %4316 = vmatprep.subr.bf16.mxu0 %v4740_v12 }
  0x95   : > { %4317 = vmatpush3.bf16.msra.mxu0 %v4740_v12 }
  0x96   : > { %4107 = vmatmul.mubr.msk.bf16.gmra.mrb[28].mxu1 %vm346_vm0, %v5660_v45  ;;  %4350 = vmatprep.subr.bf16.mxu0 %v4744_v47 }
  0x97   : > { %4118 = vmatprep.mubr.msk.bf16.mxu1 %vm346_vm0, %v3571_v33  ;;  %v6137_v33 = vld [vmem:[#allocation13_spill] sm:$0xff] }
  0x98   : > { %4287 = vmatmul.mubr.msk.bf16.gmra.mrb[8].mxu0 %vm346_vm0, %v6133_v24 }
  0x99   : > { %4290 = vmatprep.mubr.msk.bf16.mxu0 %vm346_vm0, %v6134_v37 }
  0x9e   : > { %4119 = vmatmul.mubr.msk.bf16.vlgmr.msra.gmra.mrb[0].mxu1 %vm346_vm0, %v6135_v15 }
  0x9f   : > { %4151 = vmatpush3.bf16.msra.mxu1 %v5457_v10  ;;  %4122 = vmatprep.mubr.msk.bf16.mxu1 %vm346_vm0, %v6136_v63  ;;  %v4745_v10 = vld [vmem:[%s6017_s1 + $0x78] sm:$0xff]  }
  0xa0   : > { %4152 = vmatprep.subr.bf16.mxu1 %v4739_v56  ;;  %4291 = vmatmul.mubr.msk.bf16.gmra.mrb[12].mxu0 %vm346_vm0, %v6137_v33 }
  0xa1   : > { %4294 = vmatprep.mubr.msk.bf16.mxu0 %vm346_vm0, %v6138_v50 }
  0xa3   : > { %4153 = vmatpush3.bf16.msra.mxu1 %v4739_v56 }
  0xa4   : > { %4154 = vmatprep.subr.bf16.mxu1 %v4743_v7 }
  0xa6   : > { %4123 = vmatmul.mubr.msk.bf16.gmra.mrb[4].mxu1 %vm346_vm0, %v6139_v14 }
  0xa7   : > { %4126 = vmatprep.mubr.msk.bf16.mxu1 %vm346_vm0, %v6140_v26  ;;  %4155 = vmatpush3.bf16.msra.mxu1 %v4743_v7 }
  0xa8   : > { %4156 = vmatprep.subr.bf16.mxu1 %v4745_v10  ;;  %4295 = vmatmul.mubr.msk.bf16.gmra.mrb[16].mxu0 %vm346_vm0, %v6141_v49 }
  0xa9   : > { %4298 = vmatprep.mubr.msk.bf16.mxu0 %vm346_vm0, %v6142_v36 }
  0xab   : > { %4157 = vmatpush3.bf16.msra.mxu1 %v4745_v10 }
  0xac   : > { %4390 = vmatprep.subr.bf16.mxu1 %v4749_v8 }
  0xae   : > { %4127 = vmatmul.mubr.msk.bf16.gmra.mrb[8].mxu1 %vm346_vm0, %v6143_v32 }
  0xaf   : > { %4130 = vmatprep.mubr.msk.bf16.mxu1 %vm346_vm0, %v6144_v46 }
  0xb0   : > { %4299 = vmatmul.mubr.msk.bf16.gmra.mrb[20].mxu0 %vm346_vm0, %v6145_v61 }
  0xb1   : > { %4302 = vmatprep.mubr.msk.bf16.mxu0 %vm346_vm0, %v6146_v31 }
  0xb6   : > { %4131 = vmatmul.mubr.msk.bf16.gmra.mrb[12].mxu1 %vm346_vm0, %v6147_v23 }
  0xb7   : > { %4134 = vmatprep.mubr.msk.bf16.mxu1 %vm346_vm0, %v6148_v17 }
  0xb8   : > { %4303 = vmatmul.mubr.msk.bf16.gmra.mrb[24].mxu0 %vm346_vm0, %v6149_v59 }
  0xb9   : > { %4306 = vmatprep.mubr.msk.bf16.mxu0 %vm346_vm0, %v5722_v57 }
  0xbe   : > { %4135 = vmatmul.mubr.msk.bf16.gmra.mrb[16].mxu1 %vm346_vm0, %v6150_v51 }
  0xbf   : > { %4138 = vmatprep.mubr.msk.bf16.mxu1 %vm346_vm0, %v5392_v44 }
  0xc0   : > { %4307 = vmatmul.mubr.msk.bf16.gmra.mrb[28].mxu0 %vm346_vm0, %v3703_v60 }
  0xc1   : > { %4318 = vmatprep.mubr.msk.bf16.mxu0 %vm346_vm0, %v6151_v55 }
  0xc6   : > { %4139 = vmatmul.mubr.msk.bf16.gmra.mrb[20].mxu1 %vm346_vm0, %v5413_v28 }
  0xc7   : > { %4142 = vmatprep.mubr.msk.bf16.mxu1 %vm346_vm0, %v5443_v43 }
  0xc8   : > { %4319 = vmatmul.mubr.msk.bf16.vlgmr.msra.gmra.mrb[0].mxu0 %vm346_vm0, %v6152_v22 }
  0xc9   : > { %4351 = vmatpush3.bf16.msra.mxu0 %v4744_v47  ;;  %4322 = vmatprep.mubr.msk.bf16.mxu0 %vm346_vm0, %v6153_v41 }
  0xca   : > { %4352 = vmatprep.subr.bf16.mxu0 %v4746_v2 }
  0xcd   : > { %4353 = vmatpush3.bf16.msra.mxu0 %v4746_v2 }
  0xce   : > { %4143 = vmatmul.mubr.msk.bf16.gmra.mrb[24].mxu1 %vm346_vm0, %v5478_v9  ;;  %4354 = vmatprep.subr.bf16.mxu0 %v4747_v27 }
  0xcf   : > { %4146 = vmatprep.mubr.msk.bf16.mxu1 %vm346_vm0, %v5520_v20 }
  0xd0   : > { %4323 = vmatmul.mubr.msk.bf16.gmra.mrb[4].mxu0 %vm346_vm0, %v5050_v13  ;;  %v4750_v13 = vld [vmem:[%s6017_s1 + $0x88] sm:$0xff]  }
  0xd1   : > { %4326 = vmatprep.mubr.msk.bf16.mxu0 %vm346_vm0, %v5071_v53  ;;  %4355 = vmatpush3.bf16.msra.mxu0 %v4747_v27  ;;  %v4751_v53 = vld [vmem:[%s6017_s1 + $0x90] sm:$0xff]  }
  0xd2   : > { %4356 = vmatprep.subr.bf16.mxu0 %v4748_v19 }
  0xd5   : > { %4357 = vmatpush3.bf16.msra.mxu0 %v4748_v19 }
  0xd6   : > { %4147 = vmatmul.mubr.msk.bf16.gmra.mrb[28].mxu1 %vm346_vm0, %v5531_v39 }
  0xd7   : > { %4158 = vmatprep.mubr.msk.bf16.mxu1 %vm346_vm0, %v6154_v40 }
  0xd8   : > { %4327 = vmatmul.mubr.msk.bf16.gmra.mrb[8].mxu0 %vm346_vm0, %v5116_v18  ;;  %v4752_v18 = vld [vmem:[%s6017_s1 + $0x98] sm:$0xff]  }
  0xd9   : > { %4330 = vmatprep.mubr.msk.bf16.mxu0 %vm346_vm0, %v5142_v5  ;;  %v2715_v5 = vshrl.u32 %v5729_v30, 16 }
  0xdb   : > { %v2717_v0 = vrot.slane %v2715_v5, 4 }
  0xde   : > { %4159 = vmatmul.mubr.msk.bf16.vlgmr.msra.gmra.mrb[0].mxu1 %vm346_vm0, %v6126_v62  ;;  %v2718_v62 = vshll.u32 %v5729_v30, 16 }
  0xdf   : > { %4394 = vmatpush3.bf16.msra.mxu1 %v4749_v8  ;;  %4162 = vmatprep.mubr.msk.bf16.mxu1 %vm346_vm0, %v6128_v54  ;;  %v2728_v54 = vshrl.u32 %v5732_v34, 16 }
  0xe0   : > { %4391 = vmatprep.subr.bf16.mxu1 %v4750_v13  ;;  %4331 = vmatmul.mubr.msk.bf16.gmra.mrb[12].mxu0 %vm346_vm0, %v5535_v29  ;;  %v2720_v11 = vrot.slane %v2718_v62, 5 }
  0xe1   : > { %4334 = vmatprep.mubr.msk.bf16.mxu0 %vm346_vm0, %v5547_v48  ;;  %v2730_v12 = vrot.slane %v2728_v54, 4 }
  0xe2   : > { %v2721_v47 = vor.u32 %v2720_v11, %v2717_v0 }
  0xe3   : > { %4395 = vmatpush3.bf16.msra.mxu1 %v4750_v13 }
  0xe4   : > { %4392 = vmatprep.subr.bf16.mxu1 %v4751_v53 }
  0xe6   : > { %4163 = vmatmul.mubr.msk.bf16.gmra.mrb[4].mxu1 %vm346_vm0, %v6130_v38  ;;  %v2724_v38 = vshll.u32 %v5732_v34, 16 }
  0xe7   : > { %4166 = vmatprep.mubr.msk.bf16.mxu1 %vm346_vm0, %v6131_v58  ;;  %4396 = vmatpush3.bf16.msra.mxu1 %v4751_v53  ;;  %v225_v58 = vld [vmem:[%s4813_s29 + $0xd4] sm:$0x1] }
  0xe8   : > { %4393 = vmatprep.subr.bf16.mxu1 %v4752_v18  ;;  %4335 = vmatmul.mubr.msk.bf16.gmra.mrb[16].mxu0 %vm346_vm0, %v5601_v1  ;;  %v2726_v25 = vrot.slane %v2724_v38, 5  ;;  %v2734_v15 = vshll.u32 %v225_v58, 16 }
  0xe9   : > { %4338 = vmatprep.mubr.msk.bf16.mxu0 %vm346_vm0, %v5603_v52 }
  0xea   : > { %v2731_v56 = vor.u32 %v2730_v12, %v2726_v25  ;;  %v2736_v7 = vrot.slane %v2734_v15, 5 }
  0xeb   : > { %4397 = vmatpush3.bf16.msra.mxu1 %v4752_v18 }
  0xee   : > { %4167 = vmatmul.mubr.msk.bf16.gmra.mrb[8].mxu1 %vm346_vm0, %v6132_v42  ;;  %v2722_v42 = vrot.slane %v2721_v47, 4 }
  0xef   : > { %4170 = vmatprep.mubr.msk.bf16.mxu1 %vm346_vm0, %v6133_v24  ;;  %v2732_v24 = vrot.slane %v2731_v56, 4 }
  0xf0   : > { %4339 = vmatmul.mubr.msk.bf16.gmra.mrb[20].mxu0 %vm346_vm0, %v5637_v4  ;;  %v2727_v10 = vsel %vm4876_vm3, %v2722_v42, %v2726_v25 }
  0xf1   : > { %4342 = vmatprep.mubr.msk.bf16.mxu0 %vm346_vm0, %v5641_v16  ;;  %v2737_v8 = vsel %vm4876_vm3, %v2732_v24, %v2736_v7 }
  0xf6   : > { %4171 = vmatmul.mubr.msk.bf16.gmra.mrb[12].mxu1 %vm346_vm0, %v6134_v37  ;;  %v3732_v37 = vcombine.low %v2727_v10, %v2737_v8 }
  0xf7   : > { %4174 = vmatprep.mubr.msk.bf16.mxu1 %vm346_vm0, %v6137_v33 }
  0xf8   : > { %4343 = vmatmul.mubr.msk.bf16.gmra.mrb[24].mxu0 %vm346_vm0, %v5660_v45 }
  0xf9   : > { %4346 = vmatprep.mubr.msk.bf16.mxu0 %vm346_vm0, %v5619_v6 }
  0xfe   : > { %4175 = vmatmul.mubr.msk.bf16.gmra.mrb[16].mxu1 %vm346_vm0, %v6138_v50 }
  0xff   : > { %4178 = vmatprep.mubr.msk.bf16.mxu1 %vm346_vm0, %v6141_v49 }
 0x100   : > { %4347 = vmatmul.mubr.msk.bf16.gmra.mrb[28].mxu0 %vm346_vm0, %v3732_v37 }
 0x101   : > { %4358 = vmatprep.mubr.msk.bf16.mxu0 %vm346_vm0, %v6136_v63 }
 0x106   : > { %4179 = vmatmul.mubr.msk.bf16.gmra.mrb[20].mxu1 %vm346_vm0, %v6142_v36  ;;  %v5905_v36 = vld [vmem:[%s6018_s2] ss:$0 sm:$0xff] }
 0x107   : > { %4182 = vmatprep.mubr.msk.bf16.mxu1 %vm346_vm0, %v6145_v61 }
 0x108   : > { %4359 = vmatmul.mubr.msk.bf16.vlgmr.msra.gmra.mrb[0].mxu0 %vm346_vm0, %v6139_v14 }
 0x109   : > { %4362 = vmatprep.mubr.msk.bf16.mxu0 %vm346_vm0, %v6140_v26 }
 0x10e   : > { %4183 = vmatmul.mubr.msk.bf16.gmra.mrb[24].mxu1 %vm346_vm0, %v6146_v31 }
 0x10f   : > { %4186 = vmatprep.mubr.msk.bf16.mxu1 %vm346_vm0, %v6149_v59 }
 0x110   : > { %4363 = vmatmul.mubr.msk.bf16.gmra.mrb[4].mxu0 %vm346_vm0, %v6143_v32 }
 0x111   : > { %4366 = vmatprep.mubr.msk.bf16.mxu0 %vm346_vm0, %v6144_v46 }
 0x116   : > { %4187 = vmatmul.mubr.msk.bf16.gmra.mrb[28].mxu1 %vm346_vm0, %v5722_v57 }
 0x117   : > { %4214 = vmatprep.mubr.msk.bf16.mxu1 %vm346_vm0, %v5535_v29 }
 0x118   : > { %4367 = vmatmul.mubr.msk.bf16.gmra.mrb[8].mxu0 %vm346_vm0, %v6147_v23 }
 0x119   : > { %4370 = vmatprep.mubr.msk.bf16.mxu0 %vm346_vm0, %v6148_v17 }
 0x11e   : > { %4215 = vmatmul.mubr.msk.bf16.vlgmr.msra.gmra.mrb[16].mxu1 %vm346_vm0, %v5547_v48 }
 0x11f   : > { %4218 = vmatprep.mubr.msk.bf16.mxu1 %vm346_vm0, %v5601_v1 }
 0x120   : > { %4371 = vmatmul.mubr.msk.bf16.gmra.mrb[12].mxu0 %vm346_vm0, %v6150_v51 }
 0x121   : > { %4374 = vmatprep.mubr.msk.bf16.mxu0 %vm346_vm0, %v5392_v44  ;;  %v3753_v44 = vrot.slane %v5729_v30, 9 }
 0x126   : > { %4219 = vmatmul.mubr.msk.bf16.gmra.mrb[20].mxu1 %vm346_vm0, %v5603_v52 }
 0x127   : > { %4222 = vmatprep.mubr.msk.bf16.mxu1 %vm346_vm0, %v5637_v4 }
 0x128   : > { %4375 = vmatmul.mubr.msk.bf16.gmra.mrb[16].mxu0 %vm346_vm0, %v5413_v28  ;;  %v2976_v28 = vrot.slane %v225_v58, 5 }
 0x129   : > { %4378 = vmatprep.mubr.msk.bf16.mxu0 %vm346_vm0, %v5443_v43  ;;  %v2975_v43 = vrot.slane %v2973_v35, 4 }
 0x12e   : > { %4223 = vmatmul.mubr.msk.bf16.gmra.mrb[24].mxu1 %vm346_vm0, %v5641_v16 }
 0x12f   : > { %4226 = vmatprep.mubr.msk.bf16.mxu1 %vm346_vm0, %v5660_v45 }
 0x130   : > { %4379 = vmatmul.mubr.msk.bf16.gmra.mrb[20].mxu0 %vm346_vm0, %v5478_v9  ;;  %v2974_v9 = vsel %vm5103_vm6, %v3753_v44, %v2973_v35 }
 0x131   : > { %4382 = vmatprep.mubr.msk.bf16.mxu0 %vm346_vm0, %v5520_v20  ;;  %v2977_v20 = vsel %vm5103_vm6, %v2975_v43, %v2976_v28 }
 0x132   : > { %v3762_v29 = vcombine.low %v2974_v9, %v2977_v20 }
 0x136   : > { %4227 = vmatmul.mubr.msk.bf16.gmra.mrb[28].mxu1 %vm346_vm0, %v5619_v6 }
 0x138   : > { %4383 = vmatmul.mubr.msk.bf16.gmra.mrb[24].mxu0 %vm346_vm0, %v5531_v39 }
 0x139   : > { %4386 = vmatprep.mubr.msk.bf16.mxu0 %vm346_vm0, %v5533_v21 }
 0x140   : > { %4387 = vmatmul.mubr.msk.bf16.gmra.mrb[28].mxu0 %vm346_vm0, %v3762_v29 }
 0x1b1   : > { %v4160_v48 = vpop.f32.mrb[0].mxu1 }
 0x1b2   : > { %v1825_v1 = vpop.f32.mrb[1].mxu1  ;;  %v4398_v32 = vadd.f32 %v4160_v48, %v5905_v36 }
 0x1b3   : > { %v4161_v52 = vpop.f32.mrb[2].mxu1  ;;  %v4400_v46 = vadd.f32 %v5905_v36, %v1825_v1 }
 0x1b4   : > { %v1828_v6 = vpop.f32.mrb[3].mxu1  ;;  %v4402_v31 = vadd.f32 %v4161_v52, %v5905_v36 }
 0x1b5   : > { %v4404_v57 = vadd.f32 %v5905_v36, %v1828_v6 }
 0x1b9   : > { %v4164_v4 = vpop.f32.mrb[4].mxu1 }
 0x1ba   : > { %v1841_v16 = vpop.f32.mrb[5].mxu1  ;;  %v4406_v40 = vadd.f32 %v4164_v4, %v5905_v36 }
 0x1bb   : > { %v4165_v39 = vpop.f32.mrb[6].mxu1  ;;  %v4408_v53 = vadd.f32 %v5905_v36, %v1841_v16 }
 0x1bc   : > { %v1844_v45 = vpop.f32.mrb[7].mxu1  ;;  %v4410_v62 = vadd.f32 %v4165_v39, %v5905_v36 }
 0x1bd   : > { %v4412_v0 = vadd.f32 %v5905_v36, %v1844_v45 }
 0x1c1   : > { %v4168_v63 = vpop.f32.mrb[8].mxu1 }
 0x1c2   : > { %v1857_v21 = vpop.f32.mrb[9].mxu1  ;;  %v4414_v8 = vadd.f32 %v4168_v63, %v5905_v36 }
 0x1c3   : > { %v4169_v33 = vpop.f32.mrb[10].mxu1  ;;  %v4416_v35 = vadd.f32 %v5905_v36, %v1857_v21 }
 0x1c4   : > { %v1860_v50 = vpop.f32.mrb[11].mxu1  ;;  %v4418_v28 = vadd.f32 %v4169_v33, %v5905_v36 }
 0x1c5   : > { %v4420_v29 = vadd.f32 %v5905_v36, %v1860_v50 }
 0x1c9   : > { %v5894_v14 = vpop.f32.mrb[12].mxu1 }
 0x1ca   : > { %v5896_v3 = vpop.f32.mrb[13].mxu1 }
 0x1cb   : > { %v5898_v26 = vpop.f32.mrb[14].mxu1 }
 0x1cc   : > { %v5900_v49 = vpop.f32.mrb[15].mxu1 }
 0x1db   : > { %v4360_v61 = vpop.f32.mrb[0].mxu0 }
 0x1dc   : > { %v4399_v23 = vadd.f32 %v4398_v32, %v4360_v61  ;;  %v3051_v17 = vpop.f32.mrb[1].mxu0 }
 0x1dd   : > { %v4401_v59 = vadd.f32 %v4400_v46, %v3051_v17  ;;  %v4361_v30 = vpop.f32.mrb[2].mxu0  ;;  %v4424_v17 = vadd.f32 %v5905_v36, %v5896_v3 }
 0x1de   : > { %v3212_v34 = vmax.f32 %v4399_v23, 0.0  ;;  %v4403_v51 = vadd.f32 %v4402_v31, %v4361_v30  ;;  %v3054_v60 = vpop.f32.mrb[3].mxu0  ;;  %v4422_v31 = vadd.f32 %v5894_v14, %v5905_v36  ;;  %v4426_v30 = vadd.f32 %v5898_v26, %v5905_v36 }
 0x1df   : > { %v3210_v55 = vmax.f32 %v4401_v59, 0.0  ;;  %v4405_v2 = vadd.f32 %v4404_v57, %v3054_v60  ;;  %v4428_v14 = vadd.f32 %v5905_v36, %v5900_v49 }
 0x1e0   : > { %v3820_v22 = vpack.c.bf16 %v3212_v34, %v3212_v34  ;;  %v3213_v41 = vmax.f32 %v4403_v51, 0.0 }
 0x1e1   : > { %v3818_v27 = vpack.c.bf16 %v3210_v55, %v3210_v55  ;;  %v3211_v19 = vmax.f32 %v4405_v2, 0.0 }
 0x1e2   : > { %3373 = vst.msk [vmem:[%s5915_s30 + $0x8] sm:$0xf] %vm3370_vm7, %v3820_v22  ;;  %v3821_v13 = vpack.c.bf16 %v3213_v41, %v3213_v41 }
 0x1e3   : > { %3371 = vst.msk [vmem:[%s5915_s30] sm:$0xf] %vm3370_vm7, %v3818_v27  ;;  %v3819_v18 = vpack.c.bf16 %v3211_v19, %v3211_v19  ;;  %v4364_v5 = vpop.f32.mrb[4].mxu0 }
 0x1e4   : > { %3374 = vst.msk [vmem:[%s5915_s30 + $0xc] sm:$0xf] %vm3370_vm7, %v3821_v13  ;;  %v4407_v54 = vadd.f32 %v4406_v40, %v4364_v5  ;;  %v3067_v38 = vpop.f32.mrb[5].mxu0 }
 0x1e5   : > { %3372 = vst.msk [vmem:[%s5915_s30 + $0x4] sm:$0xf] %vm3370_vm7, %v3819_v18  ;;  %v4409_v11 = vadd.f32 %v4408_v53, %v3067_v38  ;;  %v4365_v25 = vpop.f32.mrb[6].mxu0 }
 0x1e6   : > { %v3216_v12 = vmax.f32 %v4407_v54, 0.0  ;;  %v4411_v58 = vadd.f32 %v4410_v62, %v4365_v25  ;;  %v3070_v47 = vpop.f32.mrb[7].mxu0 }
 0x1e7   : > { %v3214_v56 = vmax.f32 %v4409_v11, 0.0  ;;  %v4413_v15 = vadd.f32 %v4412_v0, %v3070_v47 }
 0x1e8   : > { %v3824_v42 = vpack.c.bf16 %v3216_v12, %v3216_v12  ;;  %v3217_v24 = vmax.f32 %v4411_v58, 0.0 }
 0x1e9   : > { %v3822_v7 = vpack.c.bf16 %v3214_v56, %v3214_v56  ;;  %v3215_v10 = vmax.f32 %v4413_v15, 0.0 }
 0x1ea   : > { %3377 = vst.msk [vmem:[%s5915_s30 + $0x18] sm:$0xf] %vm3370_vm7, %v3824_v42  ;;  %v3825_v37 = vpack.c.bf16 %v3217_v24, %v3217_v24 }
 0x1eb   : > { %3375 = vst.msk [vmem:[%s5915_s30 + $0x10] sm:$0xf] %vm3370_vm7, %v3822_v7  ;;  %v3823_v44 = vpack.c.bf16 %v3215_v10, %v3215_v10  ;;  %v4368_v43 = vpop.f32.mrb[8].mxu0 }
 0x1ec   : > { %3378 = vst.msk [vmem:[%s5915_s30 + $0x1c] sm:$0xf] %vm3370_vm7, %v3825_v37  ;;  %v4415_v9 = vadd.f32 %v4414_v8, %v4368_v43  ;;  %v3083_v20 = vpop.f32.mrb[9].mxu0 }
 0x1ed   : > { %3376 = vst.msk [vmem:[%s5915_s30 + $0x14] sm:$0xf] %vm3370_vm7, %v3823_v44  ;;  %v4417_v48 = vadd.f32 %v4416_v35, %v3083_v20  ;;  %v4369_v1 = vpop.f32.mrb[10].mxu0 }
 0x1ee   : > { %v3220_v52 = vmax.f32 %v4415_v9, 0.0  ;;  %v4419_v6 = vadd.f32 %v4418_v28, %v4369_v1  ;;  %v3086_v4 = vpop.f32.mrb[11].mxu0 }
 0x1ef   : > { %v3218_v39 = vmax.f32 %v4417_v48, 0.0  ;;  %v4421_v45 = vadd.f32 %v4420_v29, %v3086_v4 }
 0x1f0   : > { %v3828_v21 = vpack.c.bf16 %v3220_v52, %v3220_v52  ;;  %v3221_v33 = vmax.f32 %v4419_v6, 0.0 }
 0x1f1   : > { %v4216_v16 = vpop.f32.mrb[16].mxu1  ;;  %v3826_v46 = vpack.c.bf16 %v3218_v39, %v3218_v39  ;;  %v3219_v50 = vmax.f32 %v4421_v45, 0.0 }
 0x1f2   : > { %v2145_v63 = vpop.f32.mrb[17].mxu1  ;;  %3381 = vst.msk [vmem:[%s5915_s30 + $0x28] sm:$0xf] %vm3370_vm7, %v3828_v21  ;;  %v3829_v23 = vpack.c.bf16 %v3221_v33, %v3221_v33  ;;  %v4430_v53 = vadd.f32 %v4216_v16, %v5905_v36 }
 0x1f3   : > { %v4217_v32 = vpop.f32.mrb[18].mxu1  ;;  %3379 = vst.msk [vmem:[%s5915_s30 + $0x20] sm:$0xf] %vm3370_vm7, %v3826_v46  ;;  %v3827_v57 = vpack.c.bf16 %v3219_v50, %v3219_v50  ;;  %v4372_v59 = vpop.f32.mrb[12].mxu0  ;;  %v4432_v62 = vadd.f32 %v5905_v36, %v2145_v63 }
 0x1f4   : > { %v2148_v61 = vpop.f32.mrb[19].mxu1  ;;  %3382 = vst.msk [vmem:[%s5915_s30 + $0x2c] sm:$0xf] %vm3370_vm7, %v3829_v23  ;;  %v4423_v34 = vadd.f32 %v4422_v31, %v4372_v59  ;;  %v3099_v51 = vpop.f32.mrb[13].mxu0  ;;  %v4434_v0 = vadd.f32 %v4217_v32, %v5905_v36 }
 0x1f5   : > { %3380 = vst.msk [vmem:[%s5915_s30 + $0x24] sm:$0xf] %vm3370_vm7, %v3827_v57  ;;  %v4425_v60 = vadd.f32 %v4424_v17, %v3099_v51  ;;  %v4373_v55 = vpop.f32.mrb[14].mxu0  ;;  %v4436_v12 = vadd.f32 %v5905_v36, %v2148_v61 }
 0x1f6   : > { %v3224_v3 = vmax.f32 %v4423_v34, 0.0  ;;  %v4427_v2 = vadd.f32 %v4426_v30, %v4373_v55  ;;  %v3102_v22 = vpop.f32.mrb[15].mxu0 }
 0x1f7   : > { %v3222_v27 = vmax.f32 %v4425_v60, 0.0  ;;  %v4429_v19 = vadd.f32 %v4428_v14, %v3102_v22 }
 0x1f8   : > { %v3832_v40 = vpack.c.bf16 %v3224_v3, %v3224_v3  ;;  %v3225_v13 = vmax.f32 %v4427_v2, 0.0 }
 0x1f9   : > { %v4220_v41 = vpop.f32.mrb[20].mxu1  ;;  %v3830_v18 = vpack.c.bf16 %v3222_v27, %v3222_v27  ;;  %v3223_v5 = vmax.f32 %v4429_v19, 0.0 }
 0x1fa   : > { %v2161_v26 = vpop.f32.mrb[21].mxu1  ;;  %3385 = vst.msk [vmem:[%s5915_s30 + $0x38] sm:$0xf] %vm3370_vm7, %v3832_v40  ;;  %v3833_v38 = vpack.c.bf16 %v3225_v13, %v3225_v13  ;;  %v4438_v28 = vadd.f32 %v4220_v41, %v5905_v36 }
 0x1fb   : > { %v4221_v49 = vpop.f32.mrb[22].mxu1  ;;  %3383 = vst.msk [vmem:[%s5915_s30 + $0x30] sm:$0xf] %vm3370_vm7, %v3830_v18  ;;  %v3831_v11 = vpack.c.bf16 %v3223_v5, %v3223_v5  ;;  %v4376_v25 = vpop.f32.mrb[16].mxu0  ;;  %v4440_v48 = vadd.f32 %v5905_v36, %v2161_v26 }
 0x1fc   : > { %v2164_v54 = vpop.f32.mrb[23].mxu1  ;;  %3386 = vst.msk [vmem:[%s5915_s30 + $0x3c] sm:$0xf] %vm3370_vm7, %v3833_v38  ;;  %v4431_v58 = vadd.f32 %v4430_v53, %v4376_v25  ;;  %v3115_v47 = vpop.f32.mrb[17].mxu0  ;;  %v4442_v6 = vadd.f32 %v4221_v49, %v5905_v36 }
 0x1fd   : > { %3384 = vst.msk [vmem:[%s5915_s30 + $0x34] sm:$0xf] %vm3370_vm7, %v3831_v11  ;;  %v4433_v56 = vadd.f32 %v4432_v62, %v3115_v47  ;;  %v4377_v15 = vpop.f32.mrb[18].mxu0  ;;  %v4444_v39 = vadd.f32 %v5905_v36, %v2164_v54 }
 0x1fe   : > { %v3228_v42 = vmax.f32 %v4431_v58, 0.0  ;;  %v4435_v24 = vadd.f32 %v4434_v0, %v4377_v15  ;;  %v3118_v7 = vpop.f32.mrb[19].mxu0 }
 0x1ff   : > { %v3226_v8 = vmax.f32 %v4433_v56, 0.0  ;;  %v4437_v37 = vadd.f32 %v4436_v12, %v3118_v7 }
 0x200   : > { %v3836_v44 = vpack.c.bf16 %v3228_v42, %v3228_v42  ;;  %v3229_v43 = vmax.f32 %v4435_v24, 0.0 }
 0x201   : > { %v4224_v10 = vpop.f32.mrb[24].mxu1  ;;  %v3834_v20 = vpack.c.bf16 %v3226_v8, %v3226_v8  ;;  %v3227_v29 = vmax.f32 %v4437_v37, 0.0 }
 0x202   : > { %v2177_v35 = vpop.f32.mrb[25].mxu1  ;;  %3389 = vst.msk [vmem:[%s5915_s30 + $0x48] sm:$0xf] %vm3370_vm7, %v3836_v44  ;;  %v3837_v52 = vpack.c.bf16 %v3229_v43, %v3229_v43  ;;  %v4446_v30 = vadd.f32 %v4224_v10, %v5905_v36 }
 0x203   : > { %v4225_v9 = vpop.f32.mrb[26].mxu1  ;;  %3387 = vst.msk [vmem:[%s5915_s30 + $0x40] sm:$0xf] %vm3370_vm7, %v3834_v20  ;;  %v3835_v4 = vpack.c.bf16 %v3227_v29, %v3227_v29  ;;  %v4380_v16 = vpop.f32.mrb[20].mxu0  ;;  %v4448_v60 = vadd.f32 %v5905_v36, %v2177_v35 }
 0x204   : > { %v2180_v1 = vpop.f32.mrb[27].mxu1  ;;  %3390 = vst.msk [vmem:[%s5915_s30 + $0x4c] sm:$0xf] %vm3370_vm7, %v3837_v52  ;;  %v4439_v45 = vadd.f32 %v4438_v28, %v4380_v16  ;;  %v3131_v63 = vpop.f32.mrb[21].mxu0  ;;  %v4450_v2 = vadd.f32 %v4225_v9, %v5905_v36 }
 0x205   : > { %3388 = vst.msk [vmem:[%s5915_s30 + $0x44] sm:$0xf] %vm3370_vm7, %v3835_v4  ;;  %v4441_v21 = vadd.f32 %v4440_v48, %v3131_v63  ;;  %v4381_v33 = vpop.f32.mrb[22].mxu0  ;;  %v4452_v27 = vadd.f32 %v5905_v36, %v2180_v1 }
 0x206   : > { %v3232_v32 = vmax.f32 %v4439_v45, 0.0  ;;  %v4443_v46 = vadd.f32 %v4442_v6, %v4381_v33  ;;  %v3134_v50 = vpop.f32.mrb[23].mxu0 }
 0x207   : > { %v3230_v31 = vmax.f32 %v4441_v21, 0.0  ;;  %v4445_v23 = vadd.f32 %v4444_v39, %v3134_v50 }
 0x208   : > { %v3840_v57 = vpack.c.bf16 %v3232_v32, %v3232_v32  ;;  %v3233_v59 = vmax.f32 %v4443_v46, 0.0 }
 0x209   : > { %v4228_v61 = vpop.f32.mrb[28].mxu1  ;;  %v3838_v51 = vpack.c.bf16 %v3230_v31, %v3230_v31  ;;  %v3231_v14 = vmax.f32 %v4445_v23, 0.0 }
 0x20a   : > { %v2193_v17 = vpop.f32.mrb[29].mxu1  ;;  %3393 = vst.msk [vmem:[%s5915_s30 + $0x58] sm:$0xf] %vm3370_vm7, %v3840_v57  ;;  %v3841_v3 = vpack.c.bf16 %v3233_v59, %v3233_v59  ;;  %v4454_v0 = vadd.f32 %v4228_v61, %v5905_v36 }
 0x20b   : > { %v4229_v34 = vpop.f32.mrb[30].mxu1  ;;  %3391 = vst.msk [vmem:[%s5915_s30 + $0x50] sm:$0xf] %vm3370_vm7, %v3838_v51  ;;  %v3839_v22 = vpack.c.bf16 %v3231_v14, %v3231_v14  ;;  %v4384_v41 = vpop.f32.mrb[24].mxu0  ;;  %v4456_v12 = vadd.f32 %v5905_v36, %v2193_v17 }
 0x20c   : > { %v2196_v55 = vpop.f32.mrb[31].mxu1  ;;  %3394 = vst.msk [vmem:[%s5915_s30 + $0x5c] sm:$0xf] %vm3370_vm7, %v3841_v3  ;;  %v4447_v19 = vadd.f32 %v4446_v30, %v4384_v41  ;;  %v3147_v26 = vpop.f32.mrb[25].mxu0  ;;  %v4458_v47 = vadd.f32 %v4229_v34, %v5905_v36 }
 0x20d   : > { %3392 = vst.msk [vmem:[%s5915_s30 + $0x54] sm:$0xf] %vm3370_vm7, %v3839_v22  ;;  %v4449_v40 = vadd.f32 %v4448_v60, %v3147_v26  ;;  %v4385_v13 = vpop.f32.mrb[26].mxu0  ;;  %v4460_v42 = vadd.f32 %v5905_v36, %v2196_v55 }
 0x20e   : > { %v3236_v53 = vmax.f32 %v4447_v19, 0.0  ;;  %v4451_v49 = vadd.f32 %v4450_v2, %v4385_v13  ;;  %v3150_v18 = vpop.f32.mrb[27].mxu0 }
 0x20f   : > { %v3234_v5 = vmax.f32 %v4449_v40, 0.0  ;;  %v4453_v62 = vadd.f32 %v4452_v27, %v3150_v18 }
 0x210   : > { %v3844_v54 = vpack.c.bf16 %v3236_v53, %v3236_v53  ;;  %v3237_v38 = vmax.f32 %v4451_v49, 0.0 }
 0x211   : > { %v3842_v11 = vpack.c.bf16 %v3234_v5, %v3234_v5  ;;  %v3235_v25 = vmax.f32 %v4453_v62, 0.0 }
 0x212   : > { %3397 = vst.msk [vmem:[%s5915_s30 + $0x68] sm:$0xf] %vm3370_vm7, %v3844_v54  ;;  %v3845_v58 = vpack.c.bf16 %v3237_v38, %v3237_v38 }
 0x213   : > { %3395 = vst.msk [vmem:[%s5915_s30 + $0x60] sm:$0xf] %vm3370_vm7, %v3842_v11  ;;  %v3843_v56 = vpack.c.bf16 %v3235_v25, %v3235_v25  ;;  %v4388_v15 = vpop.f32.mrb[28].mxu0 }
 0x214   : > { %3398 = vst.msk [vmem:[%s5915_s30 + $0x6c] sm:$0xf] %vm3370_vm7, %v3845_v58  ;;  %v4455_v24 = vadd.f32 %v4454_v0, %v4388_v15  ;;  %v3163_v7 = vpop.f32.mrb[29].mxu0 }
 0x215   : > { %3396 = vst.msk [vmem:[%s5915_s30 + $0x64] sm:$0xf] %vm3370_vm7, %v3843_v56  ;;  %v4457_v10 = vadd.f32 %v4456_v12, %v3163_v7  ;;  %v4389_v8 = vpop.f32.mrb[30].mxu0 }
 0x216   : > { %v3240_v37 = vmax.f32 %v4455_v24, 0.0  ;;  %v4459_v35 = vadd.f32 %v4458_v47, %v4389_v8  ;;  %v3166_v44 = vpop.f32.mrb[31].mxu0 }
 0x217   : > { %v3238_v43 = vmax.f32 %v4457_v10, 0.0  ;;  %v4461_v28 = vadd.f32 %v4460_v42, %v3166_v44 }
 0x218   : > { %v3848_v9 = vpack.c.bf16 %v3240_v37, %v3240_v37  ;;  %v3241_v20 = vmax.f32 %v4459_v35, 0.0 }
 0x219   : > { %v3846_v36 = vpack.c.bf16 %v3238_v43, %v3238_v43  ;;  %v3239_v29 = vmax.f32 %v4461_v28, 0.0 }
 0x21a   : > { %3401 = vst.msk [vmem:[%s5915_s30 + $0x78] sm:$0xf] %vm3370_vm7, %v3848_v9  ;;  %v3849_v48 = vpack.c.bf16 %v3241_v20, %v3241_v20 }
 0x21b   : > { %3399 = vst.msk [vmem:[%s5915_s30 + $0x70] sm:$0xf] %vm3370_vm7, %v3846_v36  ;;  %v3847_v1 = vpack.c.bf16 %v3239_v29, %v3239_v29 }
 0x21c   : > { %3402 = vst.msk [vmem:[%s5915_s30 + $0x7c] sm:$0xf] %vm3370_vm7, %v3849_v48 }
 0x21d   : > { %3400 = vst.msk [vmem:[%s5915_s30 + $0x74] sm:$0xf] %vm3370_vm7, %v3847_v1 }
 0x21e PF: > { %s13_s12 = sadd.s32 1, %s4759_s12  }
 0x21f   : > { %p10_p4 = scmp.ge.s32.totalorder %s13_s12, 4  }
 0x221   :  { %12 = sbr.rel (!%p10_p4) target bundleno = 1 (0x1), region = 70 }

// kernel: my_resnet_forward.23
= control target key start
LH: loop header
LB: loop body
LE: loop exit
PB: predicated region body
PF: predicated region fallthrough
CT: control target
= control target key end

     0   :  { %s5023_s15 = smov 0   ;;  %s6291_s0 = inlined_call_operand.vmem [shape: bf16[2,18,18,64], index: 0, kind: input, shape index: {}]   ;;  %s6292_s1 = inlined_call_operand.vmem [shape: bf16[9,64,64], index: 1, kind: input, shape index: {}]   ;;  %s6293_s2 = inlined_call_operand.vmem [shape: f32[1,64], index: 2, kind: input, shape index: {}]   ;;  %s6294_s3 = inlined_call_operand.vmem [shape: bf16[2,16,16,64], index: 3, kind: input, shape index: {}]   ;;  %s6295_s4 = inlined_call_operand.vmem [shape: bf16[2,16,16,64], index: 4, kind: output, shape index: {}]  }
   0x1 LB: > { %s3613_s16 = sadd.s32 4294967295, %s4996_s15   ;;  %p3617_p0 = scmp.ge.s32.totalorder %s4996_s15, 1  ;;  %s4996_s15 = sphi %s5023_s15, %s14_s15  }
   0x2   : > { %p172_p1 = scmp.lt.s32.totalorder %s4996_s15, 3 }
   0x4   : > { %p173_p2 = pnand %p3617_p0, %p172_p1 }
   0x6   : > { %176 = sbr.rel (%p173_p2) target bundleno = 544 (0x220), region = 36 }
   0xd   : > { %v4932_v0 = vld [vmem:[%s6292_s1] sm:$0xff]   ;;  %p203_p3 = scmp.lt.s32.totalorder %s3613_s16, 1  ;;  %v4934_v2 = vld [vmem:[%s6292_s1 + $0x8] sm:$0xff]   ;;  %v4936_v4 = vld [vmem:[%s6292_s1 + $0x10] sm:$0xff]   ;;  %vm393_vm0 = vcmask 523264   ;;  %vm1360_vm4 = vcmask 1042432  }
   0xe   : > { %v4933_v1 = vld [vmem:[%s6292_s1 + $0x80] sm:$0xff]   ;;  %4267 = vmatprep.subr.bf16.mxu1 %v4932_v0  ;;  %v4935_v3 = vld [vmem:[%s6292_s1 + $0x88] sm:$0xff]   ;;  %v4937_v5 = vld [vmem:[%s6292_s1 + $0x90] sm:$0xff]   ;;  %vm635_vm1 = vsmask.f32 3328  ;;  %vm1361_vm5 = vcmask 1046532  }
   0xf   : > { %s6432_s16 = smov (!%p203_p3, %s3613_s16), 1  ;;  %4268 = vmatpush3.bf16.msra.mxu1 %v4932_v0  ;;  %4427 = vmatprep.subr.bf16.mxu0 %v4933_v1  ;;  %v4938_v6 = vld [vmem:[%s6292_s1 + $0x18] sm:$0xff]   ;;  %v4942_v14 = vld [vmem:[%s6292_s1 + $0x20] sm:$0xff]   ;;  %vm636_vm2 = vsmask.f32 7440  ;;  %v4949_v34 = vld [vmem:[%s6292_s1 + $0x28] sm:$0xff]  }
  0x10   : > { %4428 = vmatpush3.bf16.msra.mxu0 %v4933_v1  ;;  %4269 = vmatprep.subr.bf16.mxu1 %v4934_v2  ;;  %s4923_s27 = smul.u32 216, %s6432_s16  ;;  %v4939_v10 = vld [vmem:[%s6292_s1 + $0x98] sm:$0xff]   ;;  %v5088_v16 = vld [vmem:[%s6292_s1 + $0xa0] sm:$0xff]   ;;  %vm5118_vm3 = vmor %vm635_vm1, %vm636_vm2  ;;  %vm3513_vm7 = vcmask 519168  }
  0x11   : > { %4429 = vmatprep.subr.bf16.mxu0 %v4935_v3  ;;  %v4956_v56 = vld [vmem:[%s6292_s1 + $0x30] sm:$0xff]   ;;  %vm5345_vm6 = vmor %vm1360_vm4, %vm1361_vm5 }
  0x12   : > { %s5055_s6 = scalar_lea.vmem %s6291_s0, %s4923_s27 }
  0x13   : > { %4270 = vmatpush3.bf16.msra.mxu1 %v4934_v2  ;;  %v5061_v7 = vld [vmem:[%s5055_s6] sm:$0xf]  ;;  %v5064_v8 = vld [vmem:[%s5055_s6 + $0x4] sm:$0xf]  ;;  %v5067_v9 = vld [vmem:[%s5055_s6 + $0xc] sm:$0xf] }
  0x14   : > { %4430 = vmatpush3.bf16.msra.mxu0 %v4935_v3  ;;  %4271 = vmatprep.subr.bf16.mxu1 %v4936_v4  ;;  %v3624_v11 = vcombine.low %v5061_v7, %v5064_v8  ;;  %v5076_v12 = vld [vmem:[%s5055_s6 + $0x10] sm:$0xf]  ;;  %v663_v13 = vshrl.u32 %v5067_v9, 16  ;;  %v5083_v15 = vld [vmem:[%s5055_s6 + $0x14] sm:$0x1]  ;;  %v666_v18 = vshll.u32 %v5067_v9, 16 }
  0x15   : > { %4431 = vmatprep.subr.bf16.mxu0 %v4937_v5  ;;  %v5092_v19 = vld [vmem:[%s5055_s6 + $0x18] sm:$0xf]  ;;  %v5096_v20 = vcombine.low %v5067_v9, %v5076_v12  ;;  %v672_v21 = vshll.u32 %v5076_v12, 16  ;;  %v676_v22 = vshrl.u32 %v5076_v12, 16  ;;  %v682_v23 = vshll.u32 %v5083_v15, 16 }
  0x16   : > { %4275 = vmatprep.mubr.msk.bf16.mxu1 %vm393_vm0, %v3624_v11  ;;  %v665_v17 = vrot.slane %v663_v13, 4  ;;  %v5102_v24 = vld [vmem:[%s5055_s6 + $0x1c] sm:$0xf]  ;;  %v668_v25 = vrot.slane %v666_v18, 5  ;;  %v5105_v26 = vld [vmem:[%s5055_s6 + $0x20] sm:$0x1] }
  0x17   : > { %4272 = vmatpush3.bf16.msra.mxu1 %v4936_v4  ;;  %6347 = vst [vmem:[#allocation2_spill] sm:$0xff] %v5096_v20  ;;  %v687_v27 = vshrl.u32 %v5092_v19, 16  ;;  %v674_v28 = vrot.slane %v672_v21, 5  ;;  %v678_v29 = vrot.slane %v676_v22, 4  ;;  %v690_v32 = vshll.u32 %v5092_v19, 16 }
  0x18   : > { %4432 = vmatpush3.bf16.msra.mxu0 %v4937_v5  ;;  %4273 = vmatprep.subr.bf16.mxu1 %v4938_v6  ;;  %v669_v30 = vor.u32 %v668_v25, %v665_v17  ;;  %v696_v33 = vshll.u32 %v5102_v24, 16  ;;  %v684_v37 = vrot.slane %v682_v23, 5  ;;  %v700_v38 = vshrl.u32 %v5102_v24, 16  ;;  %v5125_v40 = vld [vmem:[%s5055_s6 + $0x24] sm:$0xf]  ;;  %v4962_v17 = vld [vmem:[%s6292_s1 + $0x38] sm:$0xff]  }
  0x19   : > { %4433 = vmatprep.subr.bf16.mxu0 %v4939_v10  ;;  %v689_v31 = vrot.slane %v687_v27, 4  ;;  %v679_v36 = vor.u32 %v678_v29, %v674_v28  ;;  %v706_v39 = vshll.u32 %v5105_v26, 16  ;;  %v692_v43 = vrot.slane %v690_v32, 5  ;;  %v5129_v45 = vld [vmem:[%s5055_s6 + $0x28] sm:$0xf] }
  0x1a   : > { %v670_v42 = vrot.slane %v669_v30, 4  ;;  %v698_v44 = vrot.slane %v696_v33, 5  ;;  %v702_v47 = vrot.slane %v700_v38, 4  ;;  %v5133_v49 = vcombine.low %v5092_v19, %v5102_v24  ;;  %v5143_v54 = vld [vmem:[%s5055_s6 + $0x2c] sm:$0x1] }
  0x1b   : > { %4274 = vmatpush3.bf16.msra.mxu1 %v4938_v6  ;;  %v680_v46 = vrot.slane %v679_v36, 4  ;;  %v708_v48 = vrot.slane %v706_v39, 5  ;;  %v693_v51 = vor.u32 %v692_v43, %v689_v31  ;;  %v5139_v52 = vcombine.low %v5125_v40, %v5129_v45  ;;  %v5146_v55 = vld [vmem:[%s5055_s6 + $0x30] sm:$0xf]  ;;  %v5158_v61 = vld [vmem:[%s5055_s6 + $0x34] sm:$0xf] }
  0x1c   : > { %4434 = vmatpush3.bf16.msra.mxu0 %v4939_v10  ;;  %4307 = vmatprep.subr.bf16.mxu1 %v4942_v14  ;;  %6350 = vst [vmem:[#allocation3_spill] sm:$0xff] %v5133_v49  ;;  %v675_v50 = vsel %vm5118_vm3, %v670_v42, %v674_v28  ;;  %v711_v53 = vshrl.u32 %v5125_v40, 16  ;;  %v703_v58 = vor.u32 %v702_v47, %v698_v44  ;;  %v714_v59 = vshll.u32 %v5125_v40, 16  ;;  %v5169_v11 = vld [vmem:[%s5055_s6 + $0x38] sm:$0x1]  ;;  %v4946_v30 = vld [vmem:[%s6292_s1 + $0xa8] sm:$0xff]  }
  0x1d   : > { %4467 = vmatprep.subr.bf16.mxu0 %v5088_v16  ;;  %6351 = vst [vmem:[#allocation4_spill] sm:$0xff] %v5139_v52  ;;  %v685_v57 = vsel %vm5118_vm3, %v680_v46, %v684_v37  ;;  %v724_v60 = vshrl.u32 %v5129_v45, 16  ;;  %v694_v63 = vrot.slane %v693_v51, 4  ;;  %v720_v1 = vshll.u32 %v5129_v45, 16  ;;  %v5187_v31 = vld [vmem:[%s5055_s6 + $0x3c] sm:$0xf] }
  0x1e   : > { %4276 = vmatmul.mubr.msk.bf16.vlgmr.msra.gmra.mrb[0].mxu1 %vm393_vm0, %v5096_v20  ;;  %v5160_v62 = vcombine.low %v675_v50, %v685_v57  ;;  %v713_v0 = vrot.slane %v711_v53, 4  ;;  %v704_v2 = vrot.slane %v703_v58, 4  ;;  %v716_v3 = vrot.slane %v714_v59, 5  ;;  %v5192_v37 = vld [vmem:[%s5055_s6 + $0x40] sm:$0xf]  ;;  %v4950_v59 = vld [vmem:[%s6292_s1 + $0xb0] sm:$0xff]  }
  0x1f   : > { %4308 = vmatpush3.bf16.msra.mxu1 %v4942_v14  ;;  %4279 = vmatprep.mubr.msk.bf16.mxu1 %vm393_vm0, %v5133_v49  ;;  %v726_v4 = vrot.slane %v724_v60, 4  ;;  %v730_v5 = vshll.u32 %v5143_v54, 16  ;;  %v699_v6 = vsel %vm5118_vm3, %v694_v63, %v698_v44  ;;  %v722_v10 = vrot.slane %v720_v1, 5  ;;  %v5205_v44 = vld [vmem:[%s5055_s6 + $0x44] sm:$0x1] }
  0x20   : > { %4309 = vmatprep.subr.bf16.mxu1 %v4949_v34  ;;  %4435 = vmatprep.mubr.msk.bf16.mxu0 %vm393_vm0, %v5160_v62  ;;  %v735_v13 = vshrl.u32 %v5146_v55, 16  ;;  %v738_v14 = vshll.u32 %v5146_v55, 16  ;;  %v709_v18 = vsel %vm5118_vm3, %v704_v2, %v708_v48  ;;  %v717_v21 = vor.u32 %v716_v3, %v713_v0  ;;  %v5214_v51 = vld [vmem:[%s6292_s1 + $0x40] sm:$0xff]   ;;  %v5223_v58 = vld [vmem:[%s5055_s6 + $0x48] sm:$0xf] }
  0x21   : > { %v732_v22 = vrot.slane %v730_v5, 5  ;;  %v744_v23 = vshll.u32 %v5158_v61, 16  ;;  %v5181_v25 = vcombine.low %v699_v6, %v709_v18  ;;  %v727_v27 = vor.u32 %v726_v4, %v722_v10  ;;  %v5232_v2 = vld [vmem:[%s5055_s6 + $0x4c] sm:$0xf]  ;;  %v5391_v20 = vld [vmem:[%s5055_s6 + $0x90] sm:$0xf] }
  0x22   : > { %v737_v28 = vrot.slane %v735_v13, 4  ;;  %v740_v29 = vrot.slane %v738_v14, 5  ;;  %v718_v32 = vrot.slane %v717_v21, 4  ;;  %v754_v36 = vshll.u32 %v5169_v11, 16  ;;  %v5241_v14 = vld [vmem:[%s5055_s6 + $0x50] sm:$0x1] }
  0x23   : > { %4310 = vmatpush3.bf16.msra.mxu1 %v4949_v34  ;;  %6352 = vst [vmem:[#allocation5_spill] sm:$0xff] %v5181_v25  ;;  %v746_v33 = vrot.slane %v744_v23, 5  ;;  %v748_v34 = vshrl.u32 %v5158_v61, 16  ;;  %4436 = vmatmul.mubr.msk.bf16.vlgmr.msra.gmra.mrb[0].mxu0 %vm393_vm0, %v5181_v25  ;;  %v728_v38 = vrot.slane %v727_v27, 4  ;;  %v5198_v42 = vcombine.low %v5146_v55, %v5158_v61 }
  0x24   : > { %4311 = vmatprep.subr.bf16.mxu1 %v4956_v56  ;;  %v741_v39 = vor.u32 %v740_v29, %v737_v28  ;;  %v5202_v43 = vcombine.low %v5187_v31, %v5192_v37  ;;  %4468 = vmatpush3.bf16.msra.mxu0 %v5088_v16  ;;  %v723_v46 = vsel %vm5118_vm3, %v718_v32, %v722_v10  ;;  %v756_v48 = vrot.slane %v754_v36, 5  ;;  %v5250_v28 = vld [vmem:[%s5055_s6 + $0x54] sm:$0xf]  ;;  %v4953_v29 = vld [vmem:[%s6292_s1 + $0xb8] sm:$0xff]  }
  0x25   : > { %6353 = vst [vmem:[#allocation6_spill] sm:$0xff] %v5198_v42  ;;  %v750_v47 = vrot.slane %v748_v34, 4  ;;  %v759_v50 = vshrl.u32 %v5187_v31, 16  ;;  %v733_v53 = vsel %vm5118_vm3, %v728_v38, %v732_v22  ;;  %4469 = vmatprep.subr.bf16.mxu0 %v4946_v30  ;;  %v762_v16 = vshll.u32 %v5187_v31, 16  ;;  %v5258_v36 = vld [vmem:[%s5055_s6 + $0x58] sm:$0xf] }
  0x26   : > { %4280 = vmatmul.mubr.msk.bf16.gmra.mrb[4].mxu1 %vm393_vm0, %v5139_v52  ;;  %6354 = vst [vmem:[#allocation7_spill] sm:$0xff] %v5202_v43  ;;  %v772_v57 = vshrl.u32 %v5192_v37, 16  ;;  %v5228_v60 = vcombine.low %v723_v46, %v733_v53  ;;  %v768_v1 = vshll.u32 %v5192_v37, 16  ;;  %v778_v6 = vshll.u32 %v5205_v44, 16 }
  0x27   : > { %4312 = vmatpush3.bf16.msra.mxu1 %v4956_v56  ;;  %v742_v56 = vrot.slane %v741_v39, 4  ;;  %4283 = vmatprep.mubr.msk.bf16.mxu1 %vm393_vm0, %v5198_v42  ;;  %v751_v63 = vor.u32 %v750_v47, %v746_v33  ;;  %v761_v0 = vrot.slane %v759_v50, 4  ;;  %v764_v4 = vrot.slane %v762_v16, 5  ;;  %v5263_v50 = vld [vmem:[%s5055_s6 + $0x5c] sm:$0x1] }
  0x28   : > { %4313 = vmatprep.subr.bf16.mxu1 %v4962_v17  ;;  %6355 = vst [vmem:[#allocation8_spill] sm:$0xff] %v5228_v60  ;;  %v774_v5 = vrot.slane %v772_v57, 4  ;;  %4439 = vmatprep.mubr.msk.bf16.mxu0 %vm393_vm0, %v5228_v60  ;;  %v770_v13 = vrot.slane %v768_v1, 5  ;;  %v786_v18 = vshll.u32 %v5223_v58, 16  ;;  %v780_v22 = vrot.slane %v778_v6, 5 }
  0x29   : > { %v747_v3 = vsel %vm5118_vm3, %v742_v56, %v746_v33  ;;  %v752_v10 = vrot.slane %v751_v63, 4  ;;  %4470 = vmatpush3.bf16.msra.mxu0 %v4946_v30  ;;  %v765_v21 = vor.u32 %v764_v4, %v761_v0  ;;  %v792_v23 = vshll.u32 %v5232_v2, 16  ;;  %v5271_v57 = vld [vmem:[%s5055_s6 + $0x60] sm:$0xf] }
  0x2a   : > { %v796_v27 = vshrl.u32 %v5232_v2, 16  ;;  %4471 = vmatprep.subr.bf16.mxu0 %v4950_v59  ;;  %v775_v32 = vor.u32 %v774_v5, %v770_v13  ;;  %v788_v34 = vrot.slane %v786_v18, 5  ;;  %v802_v16 = vshll.u32 %v5241_v14, 16 }
  0x2b   : > { %4314 = vmatpush3.bf16.msra.mxu1 %v4962_v17  ;;  %v783_v17 = vshrl.u32 %v5223_v58, 16  ;;  %v757_v30 = vsel %vm5118_vm3, %v752_v10, %v756_v48  ;;  %v766_v39 = vrot.slane %v765_v21, 4  ;;  %v794_v46 = vrot.slane %v792_v23, 5  ;;  %v5290_v10 = vld [vmem:[%s6292_s1 + $0xc0] sm:$0xff]  }
  0x2c   : > { %4347 = vmatprep.subr.bf16.mxu1 %v5214_v51  ;;  %v5260_v38 = vcombine.low %v747_v3, %v757_v30  ;;  %v798_v47 = vrot.slane %v796_v27, 4  ;;  %v776_v53 = vrot.slane %v775_v32, 4  ;;  %v5268_v48 = vcombine.low %v5223_v58, %v5232_v2  ;;  %v5300_v32 = vld [vmem:[%s5055_s6 + $0x64] sm:$0xf] }
  0x2d   : > { %v785_v33 = vrot.slane %v783_v17, 4  ;;  %4472 = vmatpush3.bf16.msra.mxu0 %v4950_v59  ;;  %v771_v63 = vsel %vm5118_vm3, %v766_v39, %v770_v13  ;;  %v5279_v1 = vcombine.low %v5250_v28, %v5258_v36  ;;  %v807_v59 = vshrl.u32 %v5250_v28, 16  ;;  %v5309_v39 = vld [vmem:[%s5055_s6 + $0x68] sm:$0x1] }
  0x2e   : > { %4284 = vmatmul.mubr.msk.bf16.gmra.mrb[8].mxu1 %vm393_vm0, %v5202_v43  ;;  %6356 = vst [vmem:[#allocation9_spill] sm:$0xff] %v5260_v38  ;;  %6357 = vst [vmem:[#allocation10_spill] sm:$0xff] %v5268_v48  ;;  %4440 = vmatmul.mubr.msk.bf16.gmra.mrb[4].mxu0 %vm393_vm0, %v5260_v38  ;;  %v799_v0 = vor.u32 %v798_v47, %v794_v46  ;;  %v781_v3 = vsel %vm5118_vm3, %v776_v53, %v780_v22  ;;  %v804_v5 = vrot.slane %v802_v16, 5 }
  0x2f   : > { %v789_v56 = vor.u32 %v788_v34, %v785_v33  ;;  %6358 = vst [vmem:[#allocation11_spill] sm:$0xff] %v5279_v1  ;;  %4473 = vmatprep.subr.bf16.mxu0 %v4953_v29  ;;  %4287 = vmatprep.mubr.msk.bf16.mxu1 %vm393_vm0, %v5268_v48  ;;  %v810_v6 = vshll.u32 %v5250_v28, 16  ;;  %v5292_v13 = vcombine.low %v771_v63, %v781_v3  ;;  %v820_v18 = vshrl.u32 %v5258_v36, 16  ;;  %v5316_v63 = vld [vmem:[%s5055_s6 + $0x6c] sm:$0xf] }
  0x30   : > { %v800_v17 = vrot.slane %v799_v0, 4  ;;  %v809_v21 = vrot.slane %v807_v59, 4  ;;  %v816_v27 = vshll.u32 %v5258_v36, 16  ;;  %v826_v30 = vshll.u32 %v5263_v50, 16  ;;  %v5319_v0 = vld [vmem:[%s5055_s6 + $0x70] sm:$0xf] }
  0x31   : > { %v790_v4 = vrot.slane %v789_v56, 4  ;;  %v812_v23 = vrot.slane %v810_v6, 5  ;;  %4474 = vmatpush3.bf16.msra.mxu0 %v4953_v29  ;;  %4443 = vmatprep.mubr.msk.bf16.mxu0 %vm393_vm0, %v5292_v13  ;;  %v822_v34 = vrot.slane %v820_v18, 4  ;;  %v834_v47 = vshll.u32 %v5271_v57, 16 }
  0x32   : > { %v805_v33 = vsel %vm5118_vm3, %v800_v17, %v804_v5  ;;  %v818_v29 = vrot.slane %v816_v27, 5  ;;  %v828_v16 = vrot.slane %v826_v30, 5  ;;  %4507 = vmatprep.subr.bf16.mxu0 %v5290_v10  ;;  %v844_v5 = vshrl.u32 %v5300_v32, 16 }
  0x33   : > { %v795_v22 = vsel %vm5118_vm3, %v790_v4, %v794_v46  ;;  %v831_v46 = vshrl.u32 %v5271_v57, 16  ;;  %v813_v56 = vor.u32 %v812_v23, %v809_v21  ;;  %v836_v3 = vrot.slane %v834_v47, 5  ;;  %v5341_v47 = vld [vmem:[%s5055_s6 + $0x78] sm:$0xf] }
  0x34   : > { %v5313_v53 = vcombine.low %v795_v22, %v805_v33  ;;  %v840_v4 = vshll.u32 %v5300_v32, 16  ;;  %v823_v17 = vor.u32 %v822_v34, %v818_v29  ;;  %v850_v18 = vshll.u32 %v5309_v39, 16 }
  0x35   : > { %v833_v59 = vrot.slane %v831_v46, 4  ;;  %v814_v6 = vrot.slane %v813_v56, 4  ;;  %v5327_v21 = vcombine.low %v5271_v57, %v5300_v32  ;;  %v846_v27 = vrot.slane %v844_v5, 4 }
  0x36   : > { %4288 = vmatmul.mubr.msk.bf16.gmra.mrb[12].mxu1 %vm393_vm0, %v5279_v1  ;;  %4444 = vmatmul.mubr.msk.bf16.gmra.mrb[8].mxu0 %vm393_vm0, %v5313_v53  ;;  %v842_v23 = vrot.slane %v840_v4, 5  ;;  %v5333_v30 = vcombine.low %v5316_v63, %v5319_v0  ;;  %v1379_v33 = vrot.slane %v5102_v24, 5  ;;  %v824_v46 = vrot.slane %v823_v17, 4  ;;  %v5350_v24 = vld [vmem:[%s5055_s6 + $0x7c] sm:$0xf] }
  0x37   : > { %6359 = vst [vmem:[#allocation12_spill] sm:$0xff] %v5327_v21  ;;  %v837_v22 = vor.u32 %v836_v3, %v833_v59  ;;  %v819_v34 = vsel %vm5118_vm3, %v814_v6, %v818_v29  ;;  %4291 = vmatprep.mubr.msk.bf16.mxu1 %vm393_vm0, %v5327_v21  ;;  %v852_v59 = vrot.slane %v850_v18, 5  ;;  %v1375_v29 = vrot.slane %v5083_v15, 5 }
  0x38   : > { %6360 = vst [vmem:[#allocation13_spill] sm:$0xff] %v5333_v30  ;;  %v847_v41 = vor.u32 %v846_v27, %v842_v23  ;;  %v829_v4 = vsel %vm5118_vm3, %v824_v46, %v828_v16  ;;  %v3705_v5 = vrot.slane %v5067_v9, 9  ;;  %v1372_v6 = vrot.slane %v5076_v12, 5  ;;  %v5375_v46 = vld [vmem:[%s5055_s6 + $0x88] sm:$0xf] }
  0x39   : > { %v838_v56 = vrot.slane %v837_v22, 4  ;;  %v642_v17 = vshll.u32 %v5061_v7, 16  ;;  %v5358_v18 = vcombine.low %v819_v34, %v829_v4  ;;  %v1382_v15 = vrot.slane %v5105_v26, 5  ;;  %v5372_v34 = vld [vmem:[%s5055_s6 + $0x84] sm:$0xf] }
  0x3a   : > { %v848_v27 = vrot.slane %v847_v41, 4  ;;  %v1373_v9 = vsel %vm5345_vm6, %v3705_v5, %v1372_v6  ;;  %v1374_v16 = vrot.slane %v1372_v6, 4  ;;  %v5369_v12 = vcombine.low %v5341_v47, %v5350_v24 }
  0x3b   : > { %v843_v22 = vsel %vm5118_vm3, %v838_v56, %v842_v23  ;;  %4447 = vmatprep.mubr.msk.bf16.mxu0 %vm393_vm0, %v5358_v18  ;;  %v3706_v26 = vrot.slane %v5092_v19, 9  ;;  %v1381_v23 = vrot.slane %v1379_v33, 4  ;;  %v648_v56 = vshll.u32 %v5064_v8, 16 }
  0x3c   : > { %6363 = vst [vmem:[#allocation14_spill] sm:$0xff] %v5369_v12  ;;  %v853_v41 = vsel %vm5118_vm3, %v848_v27, %v852_v59  ;;  %v652_v4 = vshrl.u32 %v5064_v8, 16  ;;  %v1376_v6 = vsel %vm5345_vm6, %v1374_v16, %v1375_v29  ;;  %v6364_v59 = vshrl.u32 %v5061_v7, 16 }
  0x3d   : > { %v5384_v5 = vcombine.low %v843_v22, %v853_v41  ;;  %v644_v27 = vrot.slane %v642_v17, 5  ;;  %v5398_v21 = vcombine.low %v1373_v9, %v1376_v6  ;;  %v5402_v22 = vcombine.low %v5372_v34, %v5375_v46 }
  0x3e   : > { %4292 = vmatmul.mubr.msk.bf16.gmra.mrb[16].mxu1 %vm393_vm0, %v5333_v30  ;;  %v5394_v30 = vld [vmem:[%s5055_s6 + $0x94] sm:$0xf]  ;;  %v641_v19 = vrot.slane %v6364_v59, 4  ;;  %v3707_v29 = vrot.slane %v5125_v40, 9  ;;  %v1386_v16 = vrot.slane %v5129_v45, 5  ;;  %v1389_v59 = vrot.slane %v5143_v54, 5 }
  0x3f   : > { %4295 = vmatprep.mubr.msk.bf16.mxu1 %vm393_vm0, %v5369_v12  ;;  %6365 = vst [vmem:[#allocation15_spill] sm:$0xff] %v5398_v21  ;;  %6366 = vst [vmem:[#allocation16_spill] sm:$0xff] %v5402_v22  ;;  %4448 = vmatmul.mubr.msk.bf16.gmra.mrb[12].mxu0 %vm393_vm0, %v5384_v5  ;;  %v1380_v17 = vsel %vm5345_vm6, %v3706_v26, %v1379_v33  ;;  %v1383_v9 = vsel %vm5345_vm6, %v1381_v23, %v1382_v15  ;;  %v1393_v6 = vrot.slane %v5158_v61, 5  ;;  %v5428_v33 = vld [vmem:[%s5055_s6 + $0x9c] sm:$0xf] }
  0x40   : > { %4475 = vmatprep.mubr.msk.bf16.mxu0 %vm393_vm0, %v5398_v21  ;;  %v5419_v40 = vcombine.low %v5391_v20, %v5394_v30  ;;  %v5421_v45 = vrot.slane %v648_v56, 5  ;;  %v654_v54 = vrot.slane %v652_v4, 4  ;;  %v1387_v41 = vsel %vm5345_vm6, %v3707_v29, %v1386_v16  ;;  %v5431_v15 = vld [vmem:[%s5055_s6 + $0xa0] sm:$0xf]  ;;  %v5442_v4 = vld [vmem:[%s5055_s6 + $0xa8] sm:$0xf] }
  0x41   : > { %v1388_v12 = vrot.slane %v1386_v16, 4  ;;  %v645_v21 = vor.u32 %v644_v27, %v641_v19  ;;  %v5433_v61 = vcombine.low %v1380_v17, %v1383_v9  ;;  %v3708_v23 = vrot.slane %v5146_v55, 9  ;;  %v5445_v19 = vld [vmem:[%s5055_s6 + $0xac] sm:$0xf] }
  0x42   : > { %6367 = vst [vmem:[#allocation17_spill] sm:$0xff] %v5419_v40  ;;  %v1396_v56 = vrot.slane %v5169_v11, 5  ;;  %v1395_v29 = vrot.slane %v1393_v6, 4  ;;  %v1400_v16 = vrot.slane %v5192_v37, 5  ;;  %v3709_v17 = vrot.slane %v5187_v31, 9  ;;  %v4963_v55 = vld [vmem:[%s6292_s1 + $0xc8] sm:$0xff]  }
  0x43   : > { %6368 = vst [vmem:[#allocation18_spill] sm:$0xff] %v5433_v61  ;;  %v1390_v26 = vsel %vm5345_vm6, %v1388_v12, %v1389_v59  ;;  %v1403_v12 = vrot.slane %v5205_v44, 5  ;;  %v655_v11 = vor.u32 %v654_v54, %v5421_v45  ;;  %v5458_v59 = vcombine.low %v5428_v33, %v5431_v15 }
  0x44   : > { %v5447_v27 = vcombine.low %v1387_v41, %v1390_v26  ;;  %v1402_v41 = vrot.slane %v1400_v16, 4  ;;  %v646_v9 = vrot.slane %v645_v21, 4  ;;  %v6371_v37 = vrot.slane %v5064_v8, 5  ;;  %v4967_v26 = vld [vmem:[%s6292_s1 + $0xd0] sm:$0xff]  }
  0x45   : > { %6370 = vst [vmem:[#allocation20_spill] sm:$0xff] %v5458_v59  ;;  %v5469_v44 = vcombine.low %v5442_v4, %v5445_v19  ;;  %v1394_v21 = vsel %vm5345_vm6, %v3708_v23, %v1393_v6  ;;  %v1397_v54 = vsel %vm5345_vm6, %v1395_v29, %v1396_v56  ;;  %v656_v6 = vrot.slane %v655_v11, 4  ;;  %v5492_v23 = vld [vmem:[%s5055_s6 + $0xb4] sm:$0xf] }
  0x46   : > { %4296 = vmatmul.mubr.msk.bf16.gmra.mrb[20].mxu1 %vm393_vm0, %v5402_v22  ;;  %6369 = vst [vmem:[#allocation19_spill] sm:$0xff] %v5447_v27  ;;  %v5463_v31 = vrot.slane %v6371_v37, 4  ;;  %v1407_v37 = vrot.slane %v5232_v2, 5  ;;  %v5487_v22 = vld [vmem:[%s5055_s6 + $0x8] sm:$0x1]  ;;  %v1414_v2 = vrot.slane %v5258_v36, 5  ;;  %v5496_v29 = vcombine.low %v1394_v21, %v1397_v54 }
  0x47   : > { %4299 = vmatprep.mubr.msk.bf16.mxu1 %vm393_vm0, %v5419_v40  ;;  %4476 = vmatmul.mubr.msk.bf16.vlgmr.msra.gmra.mrb[0].mxu0 %vm393_vm0, %v5433_v61  ;;  %6372 = vst [vmem:[#allocation21_spill] sm:$0xff] %v5469_v44  ;;  %v1401_v40 = vsel %vm5345_vm6, %v3709_v17, %v1400_v16  ;;  %v3710_v16 = vrot.slane %v5223_v58, 9  ;;  %v5502_v17 = vld [vmem:[%s5055_s6 + $0xb8] sm:$0xf]  ;;  %v3711_v58 = vrot.slane %v5250_v28, 9  ;;  %v1417_v56 = vrot.slane %v5263_v50, 5 }
  0x48   : > { %4508 = vmatpush3.bf16.msra.mxu0 %v5290_v10  ;;  %4479 = vmatprep.mubr.msk.bf16.mxu0 %vm393_vm0, %v5447_v27  ;;  %v1404_v10 = vsel %vm5345_vm6, %v1402_v41, %v1403_v12  ;;  %6373 = vst [vmem:[#allocation22_spill] sm:$0xff] %v5496_v29  ;;  %v1409_v11 = vrot.slane %v1407_v37, 4  ;;  %v1410_v41 = vrot.slane %v5241_v14, 5  ;;  %v4969_v36 = vld [vmem:[%s6292_s1 + $0xd8] sm:$0xff]   ;;  %v1416_v54 = vrot.slane %v1414_v2, 4 }
  0x49   : > { %4509 = vmatprep.subr.bf16.mxu0 %v4963_v55  ;;  %v5504_v12 = vcombine.low %v1401_v40, %v1404_v10  ;;  %v5517_v14 = vcombine.low %v5492_v23, %v5502_v17  ;;  %v1408_v28 = vsel %vm5345_vm6, %v3710_v16, %v1407_v37  ;;  %v1428_v40 = vrot.slane %v5319_v0, 5  ;;  %v5543_v37 = vld [vmem:[%s6292_s1 + $0xe0] sm:$0xff]  }
  0x4a   : > { %v1411_v50 = vsel %vm5345_vm6, %v1409_v11, %v1410_v41  ;;  %v1418_v21 = vsel %vm5345_vm6, %v1416_v54, %v1417_v56  ;;  %6376 = vst [vmem:[#allocation25_spill] sm:$0xff] %v5543_v37  ;;  %v3712_v11 = vrot.slane %v5271_v57, 9  ;;  %v5559_v41 = vld [vmem:[%s5055_s6 + $0x80] sm:$0x1]  ;;  %v3713_v56 = vrot.slane %v5316_v63, 9 }
  0x4b   : > { %6374 = vst [vmem:[#allocation23_spill] sm:$0xff] %v5504_v12  ;;  %6375 = vst [vmem:[#allocation24_spill] sm:$0xff] %v5517_v14  ;;  %v5554_v16 = vcombine.low %v1408_v28, %v1411_v50  ;;  %v1430_v28 = vrot.slane %v1428_v40, 4  ;;  %v5569_v57 = vld [vmem:[%s5055_s6 + $0x8c] sm:$0x1]  ;;  %v6386_v1 = vshll.u32 %v5341_v47, 16 }
  0x4c   : > { %4510 = vmatpush3.bf16.msra.mxu0 %v4963_v55  ;;  %v651_v55 = vsel %vm5118_vm3, %v646_v9, %v5421_v45  ;;  %v1421_v45 = vrot.slane %v5300_v32, 5  ;;  %v1415_v9 = vsel %vm5345_vm6, %v3711_v58, %v1414_v2  ;;  %v5616_v32 = vld [vmem:[%s5055_s6 + $0xa4] sm:$0x1] }
  0x4d   : > { %4511 = vmatprep.subr.bf16.mxu0 %v4967_v26  ;;  %6377 = vst [vmem:[#allocation26_spill] sm:$0xff] %v5554_v16  ;;  %v5561_v58 = vcombine.low %v1415_v9, %v1418_v21  ;;  %v1442_v21 = vrot.slane %v5375_v46, 5  ;;  %v3714_v9 = vrot.slane %v5341_v47, 9  ;;  %v884_v48 = vrot.slane %v6386_v1, 5 }
  0x4e   : > { %4300 = vmatmul.mubr.msk.bf16.gmra.mrb[24].mxu1 %vm393_vm0, %v5458_v59  ;;  %v658_v59 = vshll.u32 %v5487_v22, 16  ;;  %v1423_v54 = vrot.slane %v1421_v45, 4 }
  0x4f   : > { %4303 = vmatprep.mubr.msk.bf16.mxu1 %vm393_vm0, %v5469_v44  ;;  %4480 = vmatmul.mubr.msk.bf16.gmra.mrb[4].mxu0 %vm393_vm0, %v5496_v29  ;;  %6378 = vst [vmem:[#allocation27_spill] sm:$0xff] %v5561_v58 }
  0x50   : > { %v660_v10 = vrot.slane %v658_v59, 5  ;;  %4483 = vmatprep.mubr.msk.bf16.mxu0 %vm393_vm0, %v5504_v12  ;;  %4512 = vmatpush3.bf16.msra.mxu0 %v4967_v26  ;;  %v1438_v26 = vrot.slane %v5559_v41, 5  ;;  %v1459_v12 = vrot.slane %v5616_v32, 5 }
  0x51   : > { %4513 = vmatprep.subr.bf16.mxu0 %v4969_v36 }
  0x52   : > { %v661_v59 = vsel %vm5118_vm3, %v656_v6, %v660_v10  ;;  %v5550_v6 = vld [vmem:[%s5055_s6 + $0x74] sm:$0x1]  ;;  %v1435_v10 = vrot.slane %v5350_v24, 5 }
  0x53   : > { %v3668_v44 = vcombine.low %v651_v55, %v661_v59  ;;  %v1424_v55 = vrot.slane %v5309_v39, 5  ;;  %v1431_v50 = vrot.slane %v5550_v6, 5  ;;  %v4968_v39 = vld [vmem:[%s6292_s1 + $0x48] sm:$0xff]   ;;  %v1422_v59 = vsel %vm5345_vm6, %v3712_v11, %v1421_v45 }
  0x54   : > { %4514 = vmatpush3.bf16.msra.mxu0 %v4969_v36  ;;  %v1437_v2 = vrot.slane %v1435_v10, 4  ;;  %v1429_v36 = vsel %vm5345_vm6, %v3713_v56, %v1428_v40  ;;  %v3715_v11 = vrot.slane %v5372_v34, 9 }
  0x55   : > { %4547 = vmatprep.subr.bf16.mxu0 %v5543_v37 }
  0x56   : > { %4304 = vmatmul.mubr.msk.bf16.gmra.mrb[28].mxu1 %vm393_vm0, %v5517_v14  ;;  %v1432_v14 = vsel %vm5345_vm6, %v1430_v28, %v1431_v50  ;;  %v1436_v28 = vsel %vm5345_vm6, %v3714_v9, %v1435_v10  ;;  %v3716_v50 = vrot.slane %v5391_v20, 9  ;;  %v1439_v45 = vsel %vm5345_vm6, %v1437_v2, %v1438_v26  ;;  %v4970_v10 = vld [vmem:[%s6292_s1 + $0x50] sm:$0xff]  }
  0x57   : > { %4315 = vmatprep.mubr.msk.bf16.mxu1 %vm393_vm0, %v3668_v44  ;;  %4484 = vmatmul.mubr.msk.bf16.gmra.mrb[8].mxu0 %vm393_vm0, %v5554_v16  ;;  %v1425_v44 = vsel %vm5345_vm6, %v1423_v54, %v1424_v55  ;;  %v5594_v16 = vld [vmem:[%s5055_s6 + $0x98] sm:$0x1]  ;;  %v1444_v54 = vrot.slane %v1442_v21, 4  ;;  %v1445_v55 = vrot.slane %v5569_v57, 5  ;;  %v1443_v2 = vsel %vm5345_vm6, %v3715_v11, %v1442_v21  ;;  %v5640_v26 = vld [vmem:[%s5055_s6 + $0xb0] sm:$0x1] }
  0x58   : > { %4487 = vmatprep.mubr.msk.bf16.mxu0 %vm393_vm0, %v5561_v58  ;;  %v1449_v58 = vrot.slane %v5394_v30, 5  ;;  %v5603_v56 = vcombine.low %v1422_v59, %v1425_v44  ;;  %v3717_v59 = vrot.slane %v5428_v33, 9  ;;  %v1452_v9 = vrot.slane %v5594_v16, 5 }
  0x59   : > { %v1446_v40 = vsel %vm5345_vm6, %v1444_v54, %v1445_v55  ;;  %v5634_v44 = vcombine.low %v1436_v28, %v1439_v45  ;;  %v3718_v21 = vrot.slane %v5442_v4, 9  ;;  %v1463_v54 = vrot.slane %v5445_v19, 5  ;;  %v5649_v55 = vld [vmem:[%s5055_s6 + $0xc4] sm:$0xf] }
  0x5a   : > { %6379 = vst [vmem:[#allocation28_spill] sm:$0xff] %v5603_v56  ;;  %v5655_v28 = vcombine.low %v1443_v2, %v1446_v40  ;;  %v1466_v27 = vrot.slane %v5640_v26, 5  ;;  %v3719_v40 = vrot.slane %v5492_v23, 9  ;;  %v5671_v2 = vld [vmem:[%s5055_s6 + $0xc0] sm:$0xf] }
  0x5e   : > { %4316 = vmatmul.mubr.msk.bf16.vlgmr.msra.gmra.mrb[0].mxu1 %vm393_vm0, %v5160_v62  ;;  %v5611_v62 = vcombine.low %v1429_v36, %v1432_v14  ;;  %v1451_v36 = vrot.slane %v1449_v58, 4  ;;  %v1450_v14 = vsel %vm5345_vm6, %v3716_v50, %v1449_v58  ;;  %v888_v58 = vshll.u32 %v5350_v24, 16 }
  0x5f   : > { %4348 = vmatpush3.bf16.msra.mxu1 %v5214_v51  ;;  %4319 = vmatprep.mubr.msk.bf16.mxu1 %vm393_vm0, %v5181_v25  ;;  %v1456_v51 = vrot.slane %v5431_v15, 5  ;;  %v864_v25 = vshll.u32 %v5319_v0, 16 }
  0x60   : > { %6380 = vst [vmem:[#allocation29_spill] sm:$0xff] %v5611_v62  ;;  %4349 = vmatprep.subr.bf16.mxu1 %v4968_v39  ;;  %4488 = vmatmul.mubr.msk.bf16.gmra.mrb[12].mxu0 %vm393_vm0, %v5603_v56  ;;  %v1453_v50 = vsel %vm5345_vm6, %v1451_v36, %v1452_v9  ;;  %v6383_v56 = vshll.u32 %v5316_v63, 16  ;;  %v6384_v36 = vshrl.u32 %v5319_v0, 16  ;;  %v5690_v0 = vld [vmem:[%s5055_s6 + $0xc8] sm:$0x1] }
  0x61   : > { %4491 = vmatprep.mubr.msk.bf16.mxu0 %vm393_vm0, %v5611_v62  ;;  %v1457_v11 = vsel %vm5345_vm6, %v3717_v59, %v1456_v51  ;;  %v1458_v45 = vrot.slane %v1456_v51, 4  ;;  %v5660_v62 = vld [vmem:[%s5055_s6 + $0xbc] sm:$0x1]  ;;  %v6382_v59 = vshrl.u32 %v5316_v63, 16  ;;  %v5673_v61 = vrot.slane %v864_v25, 5 }
  0x62   : > { %6381 = vst [vmem:[#allocation30_spill] sm:$0xff] %v5660_v62  ;;  %v860_v29 = vrot.slane %v6383_v56, 5  ;;  %v870_v9 = vrot.slane %v6384_v36, 4  ;;  %v1470_v63 = vrot.slane %v5502_v17, 5  ;;  %v2290_v56 = vrot.slane %v5649_v55, 5 }
  0x63   : > { %4350 = vmatpush3.bf16.msra.mxu1 %v4968_v39  ;;  %v4972_v39 = vld [vmem:[%s6292_s1 + $0x58] sm:$0xff]   ;;  %v857_v51 = vrot.slane %v6382_v59, 4  ;;  %v6385_v59 = vshrl.u32 %v5341_v47, 16  ;;  %v5685_v43 = vcombine.low %v1450_v14, %v1453_v50  ;;  %v1460_v25 = vsel %vm5345_vm6, %v1458_v45, %v1459_v12 }
  0x64   : > { %4351 = vmatprep.subr.bf16.mxu1 %v4970_v10  ;;  %v5692_v36 = vrot.slane %v888_v58, 5  ;;  %v1465_v47 = vrot.slane %v1463_v54, 4  ;;  %v1473_v1 = vrot.slane %v5660_v62, 5  ;;  %v3822_v14 = vrot.slane %v5671_v2, 9 }
  0x65   : > { %v861_v50 = vor.u32 %v860_v29, %v857_v51  ;;  %v871_v12 = vor.u32 %v870_v9, %v5673_v61  ;;  %v874_v45 = vshll.u32 %v5550_v6, 16  ;;  %v6388_v58 = vshrl.u32 %v5372_v34, 16 }
  0x66   : > { %4320 = vmatmul.mubr.msk.bf16.gmra.mrb[4].mxu1 %vm393_vm0, %v5228_v60  ;;  %v881_v60 = vrot.slane %v6385_v59, 4  ;;  %v1472_v37 = vrot.slane %v1470_v63, 4  ;;  %v2292_v52 = vrot.slane %v2290_v56, 4  ;;  %v2293_v62 = vrot.slane %v5690_v0, 5 }
  0x67   : > { %4323 = vmatprep.mubr.msk.bf16.mxu1 %vm393_vm0, %v5260_v38  ;;  %4352 = vmatpush3.bf16.msra.mxu1 %v4970_v10  ;;  %v6387_v38 = vshrl.u32 %v5350_v24, 16  ;;  %v5699_v10 = vld [vmem:[%s6292_s1 + $0x60] sm:$0xff]   ;;  %v905_v24 = vrot.slane %v6388_v58, 4  ;;  %v1464_v29 = vsel %vm5345_vm6, %v3718_v21, %v1463_v54  ;;  %v912_v51 = vshll.u32 %v5375_v46, 16 }
  0x68   : > { %4353 = vmatprep.subr.bf16.mxu1 %v4972_v39  ;;  %4492 = vmatmul.mubr.msk.bf16.gmra.mrb[16].mxu0 %vm393_vm0, %v5634_v44  ;;  %v885_v49 = vor.u32 %v884_v48, %v881_v60  ;;  %v5720_v9 = vcombine.low %v1457_v11, %v1460_v25  ;;  %v1467_v60 = vsel %vm5345_vm6, %v1465_v47, %v1466_v27  ;;  %v872_v21 = vrot.slane %v871_v12, 4 }
  0x69   : > { %v894_v42 = vrot.slane %v6387_v38, 4  ;;  %v6389_v38 = vshll.u32 %v5372_v34, 16  ;;  %4495 = vmatprep.mubr.msk.bf16.mxu0 %vm393_vm0, %v5655_v28  ;;  %v898_v34 = vshll.u32 %v5559_v41, 16  ;;  %v1471_v48 = vsel %vm5345_vm6, %v3719_v40, %v1470_v63 }
  0x6a   : > { %v936_v41 = vshll.u32 %v5394_v30, 16  ;;  %v1474_v11 = vsel %vm5345_vm6, %v1472_v37, %v1473_v1  ;;  %v2291_v27 = vsel %vm5345_vm6, %v3822_v14, %v2290_v56  ;;  %v2294_v40 = vsel %vm5345_vm6, %v2292_v52, %v2293_v62 }
  0x6b   : > { %v908_v59 = vrot.slane %v6389_v38, 5  ;;  %4354 = vmatpush3.bf16.msra.mxu1 %v4972_v39  ;;  %v895_v6 = vor.u32 %v894_v42, %v5692_v36  ;;  %v862_v39 = vrot.slane %v861_v50, 4  ;;  %v876_v42 = vrot.slane %v874_v45, 5 }
  0x6c   : > { %4387 = vmatprep.subr.bf16.mxu1 %v5699_v10  ;;  %v886_v63 = vrot.slane %v885_v49, 4  ;;  %v900_v47 = vrot.slane %v898_v34, 5  ;;  %v5737_v50 = vrot.slane %v912_v51, 5  ;;  %v6390_v12 = vshrl.u32 %v5375_v46, 16 }
  0x6d   : > { %v909_v54 = vor.u32 %v908_v59, %v905_v24  ;;  %v896_v25 = vrot.slane %v895_v6, 4  ;;  %v867_v58 = vsel %vm5118_vm3, %v862_v39, %v5673_v61  ;;  %v922_v37 = vshll.u32 %v5569_v57, 16 }
  0x6e   : > { %4324 = vmatmul.mubr.msk.bf16.gmra.mrb[8].mxu1 %vm393_vm0, %v5292_v13  ;;  %v918_v45 = vrot.slane %v6390_v12, 4  ;;  %v6391_v1 = vshrl.u32 %v5391_v20, 16  ;;  %v6392_v14 = vshll.u32 %v5391_v20, 16  ;;  %v877_v49 = vsel %vm5118_vm3, %v872_v21, %v876_v42 }
  0x6f   : > { %4327 = vmatprep.mubr.msk.bf16.mxu1 %vm393_vm0, %v5313_v53  ;;  %v5751_v62 = vrot.slane %v909_v54, 4  ;;  %v5753_v24 = vrot.slane %v936_v41, 5  ;;  %v6393_v46 = vshrl.u32 %v5394_v30, 16  ;;  %v999_v61 = vshrl.u32 %v5492_v23, 16 }
  0x70   : > { %v929_v56 = vrot.slane %v6391_v1, 4  ;;  %v932_v52 = vrot.slane %v6392_v14, 5  ;;  %v1002_v57 = vshll.u32 %v5492_v23, 16  ;;  %v1012_v59 = vshrl.u32 %v5502_v17, 16  ;;  %4496 = vmatmul.mubr.msk.bf16.gmra.mrb[20].mxu0 %vm393_vm0, %v5685_v43 }
  0x71   : > { %v942_v38 = vrot.slane %v6393_v46, 4  ;;  %v5762_v20 = vcombine.low %v1464_v29, %v1467_v60  ;;  %4499 = vmatprep.mubr.msk.bf16.mxu0 %vm393_vm0, %v5720_v9  ;;  %v891_v6 = vsel %vm5118_vm3, %v886_v63, %v5692_v36  ;;  %v901_v30 = vsel %vm5118_vm3, %v896_v25, %v900_v47 }
  0x72   : > { %v919_v34 = vor.u32 %v918_v45, %v5737_v50  ;;  %v946_v51 = vshll.u32 %v5594_v16, 16  ;;  %v5773_v39 = vcombine.low %v1471_v48, %v1474_v11  ;;  %v5775_v21 = vcombine.low %v2291_v27, %v2294_v40 }
  0x73   : > { %v5777_v29 = vcombine.low %v867_v58, %v877_v49  ;;  %v933_v60 = vor.u32 %v932_v52, %v929_v56  ;;  %v915_v36 = vsel %vm5118_vm3, %v5751_v62, %v5737_v50  ;;  %v924_v42 = vrot.slane %v922_v37, 5 }
  0x74   : > { %v943_v54 = vor.u32 %v942_v38, %v5753_v24  ;;  %v960_v16 = vshll.u32 %v5431_v15, 16  ;;  %v5789_v48 = vcombine.low %v891_v6, %v901_v30  ;;  %v6394_v41 = vshrl.u32 %v5428_v33, 16 }
  0x75   : > { %v6395_v27 = vrot.slane %v5064_v8, 5  ;;  %v6396_v40 = vrot.slane %v5061_v7, 9  ;;  %v1368_v25 = vrot.slane %v5487_v22, 5  ;;  %v920_v47 = vrot.slane %v919_v34, 4 }
  0x76   : > { %4328 = vmatmul.mubr.msk.bf16.gmra.mrb[12].mxu1 %vm393_vm0, %v5358_v18  ;;  %v953_v11 = vrot.slane %v6394_v41, 4  ;;  %v948_v50 = vrot.slane %v946_v51, 5  ;;  %v6397_v12 = vshll.u32 %v5428_v33, 16  ;;  %v984_v58 = vshll.u32 %v5445_v19, 16 }
  0x77   : > { %4331 = vmatprep.mubr.msk.bf16.mxu1 %vm393_vm0, %v5384_v5  ;;  %v5799_v63 = vsel %vm5345_vm6, %v6396_v40, %v6395_v27  ;;  %v934_v37 = vrot.slane %v933_v60, 4  ;;  %v6398_v1 = vshrl.u32 %v5431_v15, 16  ;;  %v970_v8 = vshll.u32 %v5616_v32, 16 }
  0x78   : > { %v956_v45 = vrot.slane %v6397_v12, 5  ;;  %v5811_v7 = vsel %vm5345_vm6, %v5463_v31, %v1368_v25  ;;  %v944_v14 = vrot.slane %v943_v54, 4  ;;  %v962_v22 = vrot.slane %v960_v16, 5  ;;  %4500 = vmatmul.mubr.msk.bf16.gmra.mrb[24].mxu0 %vm393_vm0, %v5762_v20 }
  0x79   : > { %v966_v56 = vrot.slane %v6398_v1, 4  ;;  %v6399_v52 = vshrl.u32 %v5442_v4, 16  ;;  %v3728_v33 = vcombine.low %v5799_v63, %v5811_v7  ;;  %v6400_v15 = vshll.u32 %v5442_v4, 16  ;;  %4503 = vmatprep.mubr.msk.bf16.mxu0 %vm393_vm0, %v5773_v39  ;;  %v6412_v63 = vld [vmem:[#allocation18_spill] sm:$0xff]  ;;  %v4980_v7 = vld [vmem:[%s6292_s1 + $0x70] sm:$0xff]  }
  0x7a   : > { %v2032_v32 = vshrl.u32 %v5671_v2, 16  ;;  %v2035_v46 = vshll.u32 %v5671_v2, 16  ;;  %v2041_v31 = vshll.u32 %v5649_v55, 16  ;;  %v986_v38 = vrot.slane %v984_v58, 5 }
  0x7b   : > { %v977_v49 = vrot.slane %v6399_v52, 4  ;;  %v980_v62 = vrot.slane %v6400_v15, 5  ;;  %v6401_v6 = vshrl.u32 %v5445_v19, 16  ;;  %v2045_v34 = vshrl.u32 %v5649_v55, 16 }
  0x7c   : > { %v2051_v51 = vshll.u32 %v5690_v0, 16  ;;  %v957_v60 = vor.u32 %v956_v45, %v953_v11  ;;  %v2034_v4 = vrot.slane %v2032_v32, 4  ;;  %v2037_v54 = vrot.slane %v2035_v46, 5 }
  0x7d   : > { %v990_v30 = vrot.slane %v6401_v6, 4  ;;  %v2043_v16 = vrot.slane %v2041_v31, 5  ;;  %v925_v41 = vsel %vm5118_vm3, %v920_v47, %v924_v42  ;;  %v939_v27 = vsel %vm5118_vm3, %v934_v37, %v5753_v24 }
  0x7e   : > { %4332 = vmatmul.mubr.msk.bf16.gmra.mrb[16].mxu1 %vm393_vm0, %v5777_v29  ;;  %v967_v19 = vor.u32 %v966_v56, %v962_v22  ;;  %v2047_v40 = vrot.slane %v2045_v34, 4  ;;  %v949_v0 = vsel %vm5118_vm3, %v944_v14, %v948_v50  ;;  %v981_v11 = vor.u32 %v980_v62, %v977_v49  ;;  %v6402_v62 = vld [vmem:[#allocation3_spill] sm:$0xff] }
  0x7f   : > { %4335 = vmatprep.mubr.msk.bf16.mxu1 %vm393_vm0, %v5789_v48  ;;  %v1008_v25 = vshll.u32 %v5502_v17, 16  ;;  %v2038_v12 = vor.u32 %v2037_v54, %v2034_v4  ;;  %v991_v45 = vor.u32 %v990_v30, %v986_v38  ;;  %v994_v58 = vshll.u32 %v5640_v26, 16  ;;  %v6403_v30 = vld [vmem:[#allocation30_spill] sm:$0xff]  ;;  %v6404_v54 = vld [vmem:[#allocation4_spill] sm:$0xff] }
  0x80   : > { %v2048_v42 = vor.u32 %v2047_v40, %v2043_v16  ;;  %v2053_v47 = vrot.slane %v2051_v51, 5  ;;  %v5843_v1 = vcombine.low %v915_v36, %v925_v41  ;;  %v958_v24 = vrot.slane %v957_v60, 4  ;;  %4504 = vmatmul.mubr.msk.bf16.gmra.mrb[28].mxu0 %vm393_vm0, %v5775_v21  ;;  %v6405_v40 = vld [vmem:[#allocation25_spill] sm:$0xff] }
  0x81   : > { %v972_v37 = vrot.slane %v970_v8, 5  ;;  %v2039_v56 = vrot.slane %v2038_v12, 4  ;;  %v5845_v52 = vcombine.low %v939_v27, %v949_v0  ;;  %v968_v15 = vrot.slane %v967_v19, 4  ;;  %4515 = vmatprep.mubr.msk.bf16.mxu0 %vm393_vm0, %v6402_v62  ;;  %v4975_v0 = vld [vmem:[%s6292_s1 + $0xf0] sm:$0xff]   ;;  %v4977_v12 = vld [vmem:[%s6292_s1 + $0xf8] sm:$0xff]  }
  0x82   : > { %v1001_v50 = vrot.slane %v999_v61, 4  ;;  %v2049_v14 = vrot.slane %v2048_v42, 4  ;;  %v1004_v26 = vrot.slane %v1002_v57, 5  ;;  %v1010_v49 = vrot.slane %v1008_v25, 5  ;;  %v6408_v42 = vld [vmem:[#allocation10_spill] sm:$0xff] }
  0x83   : > { %v1014_v36 = vrot.slane %v1012_v59, 4  ;;  %v2044_v8 = vsel %vm5118_vm3, %v2039_v56, %v2043_v16  ;;  %v982_v32 = vrot.slane %v981_v11, 4  ;;  %v992_v46 = vrot.slane %v991_v45, 4  ;;  %v4976_v56 = vld [vmem:[%s6292_s1 + $0x68] sm:$0xff]  }
  0x84   : > { %v996_v61 = vrot.slane %v994_v58, 5  ;;  %v2054_v31 = vsel %vm5118_vm3, %v2049_v14, %v2053_v47  ;;  %v963_v23 = vsel %vm5118_vm3, %v958_v24, %v962_v22  ;;  %v973_v17 = vsel %vm5118_vm3, %v968_v15, %v972_v37  ;;  %v4973_v22 = vld [vmem:[%s6292_s1 + $0xe8] sm:$0xff]   ;;  %v4981_v47 = vld [vmem:[%s6292_s1 + $0x100] sm:$0xff]   ;;  %v6410_v37 = vld [vmem:[#allocation12_spill] sm:$0xff] }
  0x85   : > { %v5861_v6 = vcombine.low %v2044_v8, %v2054_v31  ;;  %v1005_v57 = vor.u32 %v1004_v26, %v1001_v50  ;;  %v1015_v59 = vor.u32 %v1014_v36, %v1010_v49  ;;  %v1018_v34 = vshll.u32 %v6403_v30, 16  ;;  %v6407_v58 = vld [vmem:[#allocation7_spill] sm:$0xff]  ;;  %v6414_v50 = vld [vmem:[#allocation14_spill] sm:$0xff]  ;;  %v6418_v36 = vld [vmem:[#allocation17_spill] sm:$0xff] }
  0x86   : > { %4336 = vmatmul.mubr.msk.bf16.gmra.mrb[20].mxu1 %vm393_vm0, %v5843_v1  ;;  %v987_v51 = vsel %vm5118_vm3, %v982_v32, %v986_v38  ;;  %v997_v60 = vsel %vm5118_vm3, %v992_v46, %v996_v61  ;;  %v5879_v4 = vcombine.low %v963_v23, %v973_v17  ;;  %v6406_v38 = vld [vmem:[#allocation6_spill] sm:$0xff]  ;;  %v6409_v24 = vld [vmem:[#allocation11_spill] sm:$0xff]  ;;  %v6421_v61 = vld [vmem:[#allocation20_spill] sm:$0xff] }
  0x87   : > { %4339 = vmatprep.mubr.msk.bf16.mxu1 %vm393_vm0, %v5845_v52  ;;  %v5883_v16 = vcombine.low %v987_v51, %v997_v60  ;;  %v1006_v41 = vrot.slane %v1005_v57, 4  ;;  %v1016_v27 = vrot.slane %v1015_v59, 4  ;;  %v1020_v19 = vrot.slane %v1018_v34, 5  ;;  %v6411_v15 = vld [vmem:[#allocation15_spill] sm:$0xff]  ;;  %v6416_v26 = vld [vmem:[#allocation22_spill] sm:$0xff]  ;;  %v6422_v31 = vld [vmem:[#allocation21_spill] sm:$0xff] }
  0x88   : > { %4516 = vmatmul.mubr.msk.bf16.vlgmr.msra.gmra.mrb[0].mxu0 %vm393_vm0, %v6404_v54  ;;  %v6415_v14 = vld [vmem:[#allocation19_spill] sm:$0xff]  ;;  %v4986_v8 = vld [vmem:[%s6292_s1 + $0x80] sm:$0xff]   ;;  %v6424_v17 = vld [vmem:[#allocation28_spill] sm:$0xff]  ;;  %v5964_v57 = vcombine.low %v5671_v2, %v5649_v55 }
  0x89   : > { %4548 = vmatpush3.bf16.msra.mxu0 %v6405_v40  ;;  %4519 = vmatprep.mubr.msk.bf16.mxu0 %vm393_vm0, %v6406_v38  ;;  %v1011_v11 = vsel %vm5118_vm3, %v1006_v41, %v1010_v49  ;;  %v1021_v25 = vsel %vm5118_vm3, %v1016_v27, %v1020_v19  ;;  %v6417_v49 = vld [vmem:[#allocation16_spill] sm:$0xff]  ;;  %v6419_v32 = vld [vmem:[#allocation23_spill] sm:$0xff]  ;;  %v6420_v46 = vld [vmem:[#allocation26_spill] sm:$0xff] }
  0x8a   : > { %4549 = vmatprep.subr.bf16.mxu0 %v4973_v22  ;;  %v5902_v45 = vcombine.low %v1011_v11, %v1021_v25  ;;  %v6423_v23 = vld [vmem:[#allocation27_spill] sm:$0xff]  ;;  %v6425_v59 = vld [vmem:[#allocation24_spill] sm:$0xff]  ;;  %v6426_v51 = vld [vmem:[#allocation29_spill] sm:$0xff] }
  0x8b   : > { %v5971_v30 = vld [vmem:[%s5055_s6 + $0xcc] sm:$0xf]  ;;  %v5974_v34 = vld [vmem:[%s5055_s6 + $0xd0] sm:$0xf]  ;;  %v6427_v55 = vld [vmem:[#allocation5_spill] sm:$0xff] }
  0x8c   : > { %v3860_v60 = vcombine.low %v5971_v30, %v5974_v34  ;;  %v4983_v2 = vld [vmem:[%s6292_s1 + $0x108] sm:$0xff]   ;;  %v6429_v41 = vld [vmem:[#allocation9_spill] sm:$0xff]  ;;  %v4984_v27 = vld [vmem:[%s6292_s1 + $0x110] sm:$0xff]   ;;  %v3020_v35 = vrot.slane %v5974_v34, 5 }
  0x8d   : > { %4550 = vmatpush3.bf16.msra.mxu0 %v4973_v22  ;;  %v6428_v22 = vld [vmem:[#allocation8_spill] sm:$0xff]  ;;  %v4985_v19 = vld [vmem:[%s6292_s1 + $0x118] sm:$0xff]   ;;  %v6430_v40 = vld [vmem:[#allocation2_spill] sm:$0xff] }
  0x8e   : > { %4340 = vmatmul.mubr.msk.bf16.gmra.mrb[24].mxu1 %vm393_vm0, %v5879_v4  ;;  %4551 = vmatprep.subr.bf16.mxu0 %v4975_v0 }
  0x8f   : > { %4343 = vmatprep.mubr.msk.bf16.mxu1 %vm393_vm0, %v5883_v16 }
  0x90   : > { %4520 = vmatmul.mubr.msk.bf16.gmra.mrb[4].mxu0 %vm393_vm0, %v6407_v58 }
  0x91   : > { %4523 = vmatprep.mubr.msk.bf16.mxu0 %vm393_vm0, %v6408_v42  ;;  %4552 = vmatpush3.bf16.msra.mxu0 %v4975_v0 }
  0x92   : > { %4553 = vmatprep.subr.bf16.mxu0 %v4977_v12 }
  0x95   : > { %4554 = vmatpush3.bf16.msra.mxu0 %v4977_v12 }
  0x96   : > { %4344 = vmatmul.mubr.msk.bf16.gmra.mrb[28].mxu1 %vm393_vm0, %v5902_v45  ;;  %4587 = vmatprep.subr.bf16.mxu0 %v4981_v47 }
  0x97   : > { %4355 = vmatprep.mubr.msk.bf16.mxu1 %vm393_vm0, %v3728_v33  ;;  %v6413_v33 = vld [vmem:[#allocation13_spill] sm:$0xff] }
  0x98   : > { %4524 = vmatmul.mubr.msk.bf16.gmra.mrb[8].mxu0 %vm393_vm0, %v6409_v24 }
  0x99   : > { %4527 = vmatprep.mubr.msk.bf16.mxu0 %vm393_vm0, %v6410_v37 }
  0x9e   : > { %4356 = vmatmul.mubr.msk.bf16.vlgmr.msra.gmra.mrb[0].mxu1 %vm393_vm0, %v6411_v15 }
  0x9f   : > { %4388 = vmatpush3.bf16.msra.mxu1 %v5699_v10  ;;  %4359 = vmatprep.mubr.msk.bf16.mxu1 %vm393_vm0, %v6412_v63  ;;  %v4982_v10 = vld [vmem:[%s6292_s1 + $0x78] sm:$0xff]  }
  0xa0   : > { %4389 = vmatprep.subr.bf16.mxu1 %v4976_v56  ;;  %4528 = vmatmul.mubr.msk.bf16.gmra.mrb[12].mxu0 %vm393_vm0, %v6413_v33 }
  0xa1   : > { %4531 = vmatprep.mubr.msk.bf16.mxu0 %vm393_vm0, %v6414_v50 }
  0xa3   : > { %4390 = vmatpush3.bf16.msra.mxu1 %v4976_v56 }
  0xa4   : > { %4391 = vmatprep.subr.bf16.mxu1 %v4980_v7 }
  0xa6   : > { %4360 = vmatmul.mubr.msk.bf16.gmra.mrb[4].mxu1 %vm393_vm0, %v6415_v14 }
  0xa7   : > { %4363 = vmatprep.mubr.msk.bf16.mxu1 %vm393_vm0, %v6416_v26  ;;  %4392 = vmatpush3.bf16.msra.mxu1 %v4980_v7 }
  0xa8   : > { %4393 = vmatprep.subr.bf16.mxu1 %v4982_v10  ;;  %4532 = vmatmul.mubr.msk.bf16.gmra.mrb[16].mxu0 %vm393_vm0, %v6417_v49 }
  0xa9   : > { %4535 = vmatprep.mubr.msk.bf16.mxu0 %vm393_vm0, %v6418_v36 }
  0xab   : > { %4394 = vmatpush3.bf16.msra.mxu1 %v4982_v10 }
  0xac   : > { %4627 = vmatprep.subr.bf16.mxu1 %v4986_v8 }
  0xae   : > { %4364 = vmatmul.mubr.msk.bf16.gmra.mrb[8].mxu1 %vm393_vm0, %v6419_v32 }
  0xaf   : > { %4367 = vmatprep.mubr.msk.bf16.mxu1 %vm393_vm0, %v6420_v46 }
  0xb0   : > { %4536 = vmatmul.mubr.msk.bf16.gmra.mrb[20].mxu0 %vm393_vm0, %v6421_v61 }
  0xb1   : > { %4539 = vmatprep.mubr.msk.bf16.mxu0 %vm393_vm0, %v6422_v31 }
  0xb6   : > { %4368 = vmatmul.mubr.msk.bf16.gmra.mrb[12].mxu1 %vm393_vm0, %v6423_v23 }
  0xb7   : > { %4371 = vmatprep.mubr.msk.bf16.mxu1 %vm393_vm0, %v6424_v17 }
  0xb8   : > { %4540 = vmatmul.mubr.msk.bf16.gmra.mrb[24].mxu0 %vm393_vm0, %v6425_v59 }
  0xb9   : > { %4543 = vmatprep.mubr.msk.bf16.mxu0 %vm393_vm0, %v5964_v57 }
  0xbe   : > { %4372 = vmatmul.mubr.msk.bf16.gmra.mrb[16].mxu1 %vm393_vm0, %v6426_v51 }
  0xbf   : > { %4375 = vmatprep.mubr.msk.bf16.mxu1 %vm393_vm0, %v5634_v44 }
  0xc0   : > { %4544 = vmatmul.mubr.msk.bf16.gmra.mrb[28].mxu0 %vm393_vm0, %v3860_v60 }
  0xc1   : > { %4555 = vmatprep.mubr.msk.bf16.mxu0 %vm393_vm0, %v6427_v55 }
  0xc6   : > { %4376 = vmatmul.mubr.msk.bf16.gmra.mrb[20].mxu1 %vm393_vm0, %v5655_v28 }
  0xc7   : > { %4379 = vmatprep.mubr.msk.bf16.mxu1 %vm393_vm0, %v5685_v43 }
  0xc8   : > { %4556 = vmatmul.mubr.msk.bf16.vlgmr.msra.gmra.mrb[0].mxu0 %vm393_vm0, %v6428_v22 }
  0xc9   : > { %4588 = vmatpush3.bf16.msra.mxu0 %v4981_v47  ;;  %4559 = vmatprep.mubr.msk.bf16.mxu0 %vm393_vm0, %v6429_v41 }
  0xca   : > { %4589 = vmatprep.subr.bf16.mxu0 %v4983_v2 }
  0xcd   : > { %4590 = vmatpush3.bf16.msra.mxu0 %v4983_v2 }
  0xce   : > { %4380 = vmatmul.mubr.msk.bf16.gmra.mrb[24].mxu1 %vm393_vm0, %v5720_v9  ;;  %4591 = vmatprep.subr.bf16.mxu0 %v4984_v27 }
  0xcf   : > { %4383 = vmatprep.mubr.msk.bf16.mxu1 %vm393_vm0, %v5762_v20 }
  0xd0   : > { %4560 = vmatmul.mubr.msk.bf16.gmra.mrb[4].mxu0 %vm393_vm0, %v5292_v13  ;;  %v4987_v13 = vld [vmem:[%s6292_s1 + $0x88] sm:$0xff]  }
  0xd1   : > { %4563 = vmatprep.mubr.msk.bf16.mxu0 %vm393_vm0, %v5313_v53  ;;  %4592 = vmatpush3.bf16.msra.mxu0 %v4984_v27  ;;  %v4988_v53 = vld [vmem:[%s6292_s1 + $0x90] sm:$0xff]  }
  0xd2   : > { %4593 = vmatprep.subr.bf16.mxu0 %v4985_v19 }
  0xd5   : > { %4594 = vmatpush3.bf16.msra.mxu0 %v4985_v19 }
  0xd6   : > { %4384 = vmatmul.mubr.msk.bf16.gmra.mrb[28].mxu1 %vm393_vm0, %v5773_v39 }
  0xd7   : > { %4395 = vmatprep.mubr.msk.bf16.mxu1 %vm393_vm0, %v6430_v40 }
  0xd8   : > { %4564 = vmatmul.mubr.msk.bf16.gmra.mrb[8].mxu0 %vm393_vm0, %v5358_v18  ;;  %v4989_v18 = vld [vmem:[%s6292_s1 + $0x98] sm:$0xff]  }
  0xd9   : > { %4567 = vmatprep.mubr.msk.bf16.mxu0 %vm393_vm0, %v5384_v5  ;;  %v2762_v5 = vshrl.u32 %v5971_v30, 16 }
  0xdb   : > { %v2764_v0 = vrot.slane %v2762_v5, 4 }
  0xde   : > { %4396 = vmatmul.mubr.msk.bf16.vlgmr.msra.gmra.mrb[0].mxu1 %vm393_vm0, %v6402_v62  ;;  %v2765_v62 = vshll.u32 %v5971_v30, 16 }
  0xdf   : > { %4631 = vmatpush3.bf16.msra.mxu1 %v4986_v8  ;;  %4399 = vmatprep.mubr.msk.bf16.mxu1 %vm393_vm0, %v6404_v54  ;;  %v2775_v54 = vshrl.u32 %v5974_v34, 16 }
  0xe0   : > { %4628 = vmatprep.subr.bf16.mxu1 %v4987_v13  ;;  %4568 = vmatmul.mubr.msk.bf16.gmra.mrb[12].mxu0 %vm393_vm0, %v5777_v29  ;;  %v2767_v11 = vrot.slane %v2765_v62, 5 }
  0xe1   : > { %4571 = vmatprep.mubr.msk.bf16.mxu0 %vm393_vm0, %v5789_v48  ;;  %v2777_v12 = vrot.slane %v2775_v54, 4 }
  0xe2   : > { %v2768_v47 = vor.u32 %v2767_v11, %v2764_v0 }
  0xe3   : > { %4632 = vmatpush3.bf16.msra.mxu1 %v4987_v13 }
  0xe4   : > { %4629 = vmatprep.subr.bf16.mxu1 %v4988_v53 }
  0xe6   : > { %4400 = vmatmul.mubr.msk.bf16.gmra.mrb[4].mxu1 %vm393_vm0, %v6406_v38  ;;  %v2771_v38 = vshll.u32 %v5974_v34, 16 }
  0xe7   : > { %4403 = vmatprep.mubr.msk.bf16.mxu1 %vm393_vm0, %v6407_v58  ;;  %4633 = vmatpush3.bf16.msra.mxu1 %v4988_v53  ;;  %v272_v58 = vld [vmem:[%s5055_s6 + $0xd4] sm:$0x1]  ;;  %s3974_s6 = sshll.u32 %s6432_s16, 7 }
  0xe8   : > { %4630 = vmatprep.subr.bf16.mxu1 %v4989_v18  ;;  %4572 = vmatmul.mubr.msk.bf16.gmra.mrb[16].mxu0 %vm393_vm0, %v5843_v1  ;;  %v2773_v25 = vrot.slane %v2771_v38, 5  ;;  %v2781_v15 = vshll.u32 %v272_v58, 16  ;;  %s6156_s8 = scalar_lea.vmem %s6294_s3, %s3974_s6  ;;  %s6174_s12 = scalar_lea.vmem %s6295_s4, %s3974_s6 }
  0xe9   : > { %4575 = vmatprep.mubr.msk.bf16.mxu0 %vm393_vm0, %v5845_v52  ;;  %v4074_v53 = vld [vmem:[%s6156_s8 + $0x18] sm:$0xff]   ;;  %v4073_v62 = vld [vmem:[%s6156_s8 + $0x10] sm:$0xff]  }
  0xea   : > { %v2778_v56 = vor.u32 %v2777_v12, %v2773_v25  ;;  %v2783_v7 = vrot.slane %v2781_v15, 5  ;;  %v4022_v12 = vunpack.c.l.bf16 %v4074_v53 }
  0xeb   : > { %4634 = vmatpush3.bf16.msra.mxu1 %v4989_v18 }
  0xee   : > { %4404 = vmatmul.mubr.msk.bf16.gmra.mrb[8].mxu1 %vm393_vm0, %v6408_v42  ;;  %v2769_v42 = vrot.slane %v2768_v47, 4 }
  0xef   : > { %4407 = vmatprep.mubr.msk.bf16.mxu1 %vm393_vm0, %v6409_v24  ;;  %v2779_v24 = vrot.slane %v2778_v56, 4 }
  0xf0   : > { %4576 = vmatmul.mubr.msk.bf16.gmra.mrb[20].mxu0 %vm393_vm0, %v5879_v4  ;;  %v2774_v10 = vsel %vm5118_vm3, %v2769_v42, %v2773_v25  ;;  %v4018_v42 = vunpack.c.l.bf16 %v4073_v62 }
  0xf1   : > { %4579 = vmatprep.mubr.msk.bf16.mxu0 %vm393_vm0, %v5883_v16  ;;  %v2784_v8 = vsel %vm5118_vm3, %v2779_v24, %v2783_v7 }
  0xf6   : > { %4408 = vmatmul.mubr.msk.bf16.gmra.mrb[12].mxu1 %vm393_vm0, %v6410_v37  ;;  %v3889_v37 = vcombine.low %v2774_v10, %v2784_v8 }
  0xf7   : > { %4411 = vmatprep.mubr.msk.bf16.mxu1 %vm393_vm0, %v6413_v33 }
  0xf8   : > { %4580 = vmatmul.mubr.msk.bf16.gmra.mrb[24].mxu0 %vm393_vm0, %v5902_v45 }
  0xf9   : > { %4583 = vmatprep.mubr.msk.bf16.mxu0 %vm393_vm0, %v5861_v6 }
  0xfe   : > { %4412 = vmatmul.mubr.msk.bf16.gmra.mrb[16].mxu1 %vm393_vm0, %v6414_v50 }
  0xff   : > { %4415 = vmatprep.mubr.msk.bf16.mxu1 %vm393_vm0, %v6417_v49 }
 0x100   : > { %4584 = vmatmul.mubr.msk.bf16.gmra.mrb[28].mxu0 %vm393_vm0, %v3889_v37  ;;  %v4023_v37 = vunpack.c.h.bf16 %v4074_v53 }
 0x101   : > { %4595 = vmatprep.mubr.msk.bf16.mxu0 %vm393_vm0, %v6412_v63 }
 0x106   : > { %4416 = vmatmul.mubr.msk.bf16.gmra.mrb[20].mxu1 %vm393_vm0, %v6418_v36  ;;  %v6161_v36 = vld [vmem:[%s6293_s2] ss:$0 sm:$0xff] }
 0x107   : > { %4419 = vmatprep.mubr.msk.bf16.mxu1 %vm393_vm0, %v6421_v61 }
 0x108   : > { %4596 = vmatmul.mubr.msk.bf16.vlgmr.msra.gmra.mrb[0].mxu0 %vm393_vm0, %v6415_v14 }
 0x109   : > { %4599 = vmatprep.mubr.msk.bf16.mxu0 %vm393_vm0, %v6416_v26 }
 0x10e   : > { %4420 = vmatmul.mubr.msk.bf16.gmra.mrb[24].mxu1 %vm393_vm0, %v6422_v31 }
 0x10f   : > { %4423 = vmatprep.mubr.msk.bf16.mxu1 %vm393_vm0, %v6425_v59 }
 0x110   : > { %4600 = vmatmul.mubr.msk.bf16.gmra.mrb[4].mxu0 %vm393_vm0, %v6419_v32  ;;  %v4072_v32 = vld [vmem:[%s6156_s8 + $0x8] sm:$0xff]  }
 0x111   : > { %4603 = vmatprep.mubr.msk.bf16.mxu0 %vm393_vm0, %v6420_v46  ;;  %v4009_v46 = vld [vmem:[%s6156_s8] sm:$0xff]   ;;  %v4014_v31 = vunpack.c.l.bf16 %v4072_v32 }
 0x112   : > { %v4011_v22 = vunpack.c.h.bf16 %v4009_v46 }
 0x116   : > { %4424 = vmatmul.mubr.msk.bf16.gmra.mrb[28].mxu1 %vm393_vm0, %v5964_v57  ;;  %v4010_v57 = vunpack.c.l.bf16 %v4009_v46 }
 0x117   : > { %4451 = vmatprep.mubr.msk.bf16.mxu1 %vm393_vm0, %v5777_v29 }
 0x118   : > { %4604 = vmatmul.mubr.msk.bf16.gmra.mrb[8].mxu0 %vm393_vm0, %v6423_v23 }
 0x119   : > { %4607 = vmatprep.mubr.msk.bf16.mxu0 %vm393_vm0, %v6424_v17 }
 0x11e   : > { %4452 = vmatmul.mubr.msk.bf16.vlgmr.msra.gmra.mrb[16].mxu1 %vm393_vm0, %v5789_v48 }
 0x11f   : > { %4455 = vmatprep.mubr.msk.bf16.mxu1 %vm393_vm0, %v5843_v1 }
 0x120   : > { %4608 = vmatmul.mubr.msk.bf16.gmra.mrb[12].mxu0 %vm393_vm0, %v6426_v51  ;;  %v4015_v51 = vunpack.c.h.bf16 %v4072_v32 }
 0x121   : > { %4611 = vmatprep.mubr.msk.bf16.mxu0 %vm393_vm0, %v5634_v44  ;;  %v3910_v44 = vrot.slane %v5971_v30, 9 }
 0x126   : > { %4456 = vmatmul.mubr.msk.bf16.gmra.mrb[20].mxu1 %vm393_vm0, %v5845_v52 }
 0x127   : > { %4459 = vmatprep.mubr.msk.bf16.mxu1 %vm393_vm0, %v5879_v4 }
 0x128   : > { %4612 = vmatmul.mubr.msk.bf16.gmra.mrb[16].mxu0 %vm393_vm0, %v5655_v28  ;;  %v3023_v28 = vrot.slane %v272_v58, 5 }
 0x129   : > { %4615 = vmatprep.mubr.msk.bf16.mxu0 %vm393_vm0, %v5685_v43  ;;  %v3022_v43 = vrot.slane %v3020_v35, 4 }
 0x12e   : > { %4460 = vmatmul.mubr.msk.bf16.gmra.mrb[24].mxu1 %vm393_vm0, %v5883_v16 }
 0x12f   : > { %4463 = vmatprep.mubr.msk.bf16.mxu1 %vm393_vm0, %v5902_v45 }
 0x130   : > { %4616 = vmatmul.mubr.msk.bf16.gmra.mrb[20].mxu0 %vm393_vm0, %v5720_v9  ;;  %v3021_v9 = vsel %vm5345_vm6, %v3910_v44, %v3020_v35 }
 0x131   : > { %4619 = vmatprep.mubr.msk.bf16.mxu0 %vm393_vm0, %v5762_v20  ;;  %v3024_v20 = vsel %vm5345_vm6, %v3022_v43, %v3023_v28 }
 0x132   : > { %v3919_v29 = vcombine.low %v3021_v9, %v3024_v20  ;;  %v4019_v9 = vunpack.c.h.bf16 %v4073_v62  ;;  %v4078_v62 = vld [vmem:[%s6156_s8 + $0x38] sm:$0xff]  }
 0x136   : > { %4464 = vmatmul.mubr.msk.bf16.gmra.mrb[28].mxu1 %vm393_vm0, %v5861_v6 }
 0x138   : > { %4620 = vmatmul.mubr.msk.bf16.gmra.mrb[24].mxu0 %vm393_vm0, %v5773_v39 }
 0x139   : > { %4623 = vmatprep.mubr.msk.bf16.mxu0 %vm393_vm0, %v5775_v21 }
 0x140   : > { %4624 = vmatmul.mubr.msk.bf16.gmra.mrb[28].mxu0 %vm393_vm0, %v3919_v29 }
 0x1b1   : > { %v4397_v48 = vpop.f32.mrb[0].mxu1 }
 0x1b2   : > { %v1872_v1 = vpop.f32.mrb[1].mxu1  ;;  %v4635_v61 = vadd.f32 %v4397_v48, %v6161_v36 }
 0x1b3   : > { %v4398_v52 = vpop.f32.mrb[2].mxu1  ;;  %v4637_v23 = vadd.f32 %v6161_v36, %v1872_v1 }
 0x1b4   : > { %v1875_v6 = vpop.f32.mrb[3].mxu1  ;;  %v4639_v59 = vadd.f32 %v4398_v52, %v6161_v36 }
 0x1b5   : > { %v4641_v60 = vadd.f32 %v6161_v36, %v1875_v6  ;;  %v4076_v6 = vld [vmem:[%s6156_s8 + $0x28] sm:$0xff]  }
 0x1b9   : > { %v4401_v4 = vpop.f32.mrb[4].mxu1 }
 0x1ba   : > { %v1888_v16 = vpop.f32.mrb[5].mxu1  ;;  %v4643_v0 = vadd.f32 %v4401_v4, %v6161_v36 }
 0x1bb   : > { %v4402_v39 = vpop.f32.mrb[6].mxu1  ;;  %v4645_v58 = vadd.f32 %v6161_v36, %v1888_v16 }
 0x1bc   : > { %v1891_v45 = vpop.f32.mrb[7].mxu1  ;;  %v4647_v24 = vadd.f32 %v4402_v39, %v6161_v36  ;;  %v4075_v39 = vld [vmem:[%s6156_s8 + $0x20] sm:$0xff]  }
 0x1bd   : > { %v4649_v35 = vadd.f32 %v6161_v36, %v1891_v45 }
 0x1c1   : > { %v6136_v63 = vpop.f32.mrb[8].mxu1 }
 0x1c2   : > { %v6138_v21 = vpop.f32.mrb[9].mxu1  ;;  %v4651_v46 = vadd.f32 %v6136_v63, %v6161_v36 }
 0x1c3   : > { %v6140_v33 = vpop.f32.mrb[10].mxu1 }
 0x1c4   : > { %v6142_v3 = vpop.f32.mrb[11].mxu1 }
 0x1c9   : > { %v6144_v50 = vpop.f32.mrb[12].mxu1 }
 0x1ca   : > { %v6146_v14 = vpop.f32.mrb[13].mxu1 }
 0x1cb   : > { %v6148_v26 = vpop.f32.mrb[14].mxu1 }
 0x1cc   : > { %v6150_v49 = vpop.f32.mrb[15].mxu1 }
 0x1db   : > { %v4597_v17 = vpop.f32.mrb[0].mxu0 }
 0x1dc   : > { %v4636_v30 = vadd.f32 %v4635_v61, %v4597_v17  ;;  %v3098_v34 = vpop.f32.mrb[1].mxu0  ;;  %v4653_v17 = vadd.f32 %v6161_v36, %v6138_v21 }
 0x1dd   : > { %v4638_v55 = vadd.f32 %v4637_v23, %v3098_v34  ;;  %v4598_v2 = vpop.f32.mrb[2].mxu0  ;;  %v4030_v23 = vunpack.c.l.bf16 %v4076_v6  ;;  %v4026_v34 = vunpack.c.l.bf16 %v4075_v39 }
 0x1de   : > { %v3323_v41 = vadd.f32 %v4636_v30, %v4014_v31  ;;  %v4640_v27 = vadd.f32 %v4639_v59, %v4598_v2  ;;  %v3101_v19 = vpop.f32.mrb[3].mxu0  ;;  %v4031_v2 = vunpack.c.h.bf16 %v4076_v6 }
 0x1df   : > { %v3321_v40 = vadd.f32 %v4638_v55, %v4010_v57  ;;  %v4642_v13 = vadd.f32 %v4641_v60, %v3101_v19  ;;  %v4027_v19 = vunpack.c.h.bf16 %v4075_v39  ;;  %v4080_v39 = vld [vmem:[%s6156_s8 + $0x48] sm:$0xff]  }
 0x1e0   : > { %v3355_v18 = vmax.f32 %v3323_v41, 0.0  ;;  %v3324_v5 = vadd.f32 %v4640_v27, %v4015_v51  ;;  %v4655_v51 = vadd.f32 %v6140_v33, %v6161_v36 }
 0x1e1   : > { %v3353_v54 = vmax.f32 %v3321_v40, 0.0  ;;  %v3322_v38 = vadd.f32 %v4642_v13, %v4011_v22  ;;  %v4657_v22 = vadd.f32 %v6161_v36, %v6142_v3 }
 0x1e2   : > { %v3978_v11 = vpack.c.bf16 %v3355_v18, %v3355_v18  ;;  %v3356_v25 = vmax.f32 %v3324_v5, 0.0 }
 0x1e3   : > { %v3976_v47 = vpack.c.bf16 %v3353_v54, %v3353_v54  ;;  %v3354_v56 = vmax.f32 %v3322_v38, 0.0  ;;  %v4601_v15 = vpop.f32.mrb[4].mxu0 }
 0x1e4   : > { %3516 = vst.msk [vmem:[%s6174_s12 + $0x8] sm:$0xf] %vm3513_vm7, %v3978_v11  ;;  %v3979_v7 = vpack.c.bf16 %v3356_v25, %v3356_v25  ;;  %v4644_v10 = vadd.f32 %v4643_v0, %v4601_v15  ;;  %v3114_v8 = vpop.f32.mrb[5].mxu0  ;;  %v4077_v0 = vld [vmem:[%s6156_s8 + $0x30] sm:$0xff]  }
 0x1e5   : > { %3514 = vst.msk [vmem:[%s6174_s12] sm:$0xf] %vm3513_vm7, %v3976_v47  ;;  %v3977_v44 = vpack.c.bf16 %v3354_v56, %v3354_v56  ;;  %v4646_v43 = vadd.f32 %v4645_v58, %v3114_v8  ;;  %v4602_v28 = vpop.f32.mrb[6].mxu0  ;;  %v4659_v47 = vadd.f32 %v6144_v50, %v6161_v36 }
 0x1e6   : > { %3517 = vst.msk [vmem:[%s6174_s12 + $0xc] sm:$0xf] %vm3513_vm7, %v3979_v7  ;;  %v3327_v20 = vadd.f32 %v4644_v10, %v4022_v12  ;;  %v4648_v29 = vadd.f32 %v4647_v24, %v4602_v28  ;;  %v3117_v48 = vpop.f32.mrb[7].mxu0  ;;  %v4661_v24 = vadd.f32 %v6161_v36, %v6146_v14  ;;  %v4039_v28 = vunpack.c.h.bf16 %v4078_v62 }
 0x1e7   : > { %3515 = vst.msk [vmem:[%s6174_s12 + $0x4] sm:$0xf] %vm3513_vm7, %v3977_v44  ;;  %v3325_v1 = vadd.f32 %v4646_v43, %v4018_v42  ;;  %v4650_v52 = vadd.f32 %v4649_v35, %v3117_v48  ;;  %v4038_v42 = vunpack.c.l.bf16 %v4078_v62  ;;  %v4663_v35 = vadd.f32 %v6148_v26, %v6161_v36 }
 0x1e8   : > { %v3359_v4 = vmax.f32 %v3327_v20, 0.0  ;;  %v3328_v16 = vadd.f32 %v4648_v29, %v4023_v37  ;;  %v4034_v37 = vunpack.c.l.bf16 %v4077_v0  ;;  %v4035_v48 = vunpack.c.h.bf16 %v4077_v0 }
 0x1e9   : > { %v3357_v45 = vmax.f32 %v3325_v1, 0.0  ;;  %v3326_v32 = vadd.f32 %v4650_v52, %v4019_v9  ;;  %v4665_v9 = vadd.f32 %v6161_v36, %v6150_v49 }
 0x1ea   : > { %v3982_v61 = vpack.c.bf16 %v3359_v4, %v3359_v4  ;;  %v3360_v31 = vmax.f32 %v3328_v16, 0.0 }
 0x1eb   : > { %v3980_v57 = vpack.c.bf16 %v3357_v45, %v3357_v45  ;;  %v3358_v59 = vmax.f32 %v3326_v32, 0.0  ;;  %v4605_v30 = vpop.f32.mrb[8].mxu0 }
 0x1ec   : > { %3520 = vst.msk [vmem:[%s6174_s12 + $0x18] sm:$0xf] %vm3513_vm7, %v3982_v61  ;;  %v3983_v60 = vpack.c.bf16 %v3360_v31, %v3360_v31  ;;  %v4652_v63 = vadd.f32 %v4651_v46, %v4605_v30  ;;  %v3130_v55 = vpop.f32.mrb[9].mxu0  ;;  %v4079_v61 = vld [vmem:[%s6156_s8 + $0x40] sm:$0xff]  }
 0x1ed   : > { %3518 = vst.msk [vmem:[%s6174_s12 + $0x10] sm:$0xf] %vm3513_vm7, %v3980_v57  ;;  %v3981_v21 = vpack.c.bf16 %v3358_v59, %v3358_v59  ;;  %v4654_v41 = vadd.f32 %v4653_v17, %v3130_v55  ;;  %v4606_v27 = vpop.f32.mrb[10].mxu0 }
 0x1ee   : > { %3521 = vst.msk [vmem:[%s6174_s12 + $0x1c] sm:$0xf] %vm3513_vm7, %v3983_v60  ;;  %v3331_v33 = vadd.f32 %v4652_v63, %v4030_v23  ;;  %v4656_v40 = vadd.f32 %v4655_v51, %v4606_v27  ;;  %v3133_v13 = vpop.f32.mrb[11].mxu0  ;;  %v4046_v51 = vunpack.c.l.bf16 %v4080_v39 }
 0x1ef   : > { %3519 = vst.msk [vmem:[%s6174_s12 + $0x14] sm:$0xf] %vm3513_vm7, %v3981_v21  ;;  %v3329_v18 = vadd.f32 %v4654_v41, %v4026_v34  ;;  %v4658_v5 = vadd.f32 %v4657_v22, %v3133_v13  ;;  %v4042_v22 = vunpack.c.l.bf16 %v4079_v61 }
 0x1f0   : > { %v3363_v3 = vmax.f32 %v3331_v33, 0.0  ;;  %v3332_v38 = vadd.f32 %v4656_v40, %v4031_v2  ;;  %v4047_v33 = vunpack.c.h.bf16 %v4080_v39 }
 0x1f1   : > { %v4453_v53 = vpop.f32.mrb[16].mxu1  ;;  %v3361_v25 = vmax.f32 %v3329_v18, 0.0  ;;  %v3330_v12 = vadd.f32 %v4658_v5, %v4027_v19  ;;  %v4043_v18 = vunpack.c.h.bf16 %v4079_v61  ;;  %v4084_v61 = vld [vmem:[%s6156_s8 + $0x68] sm:$0xff]  }
 0x1f2   : > { %v2192_v54 = vpop.f32.mrb[17].mxu1  ;;  %v3986_v56 = vpack.c.bf16 %v3363_v3, %v3363_v3  ;;  %v3364_v15 = vmax.f32 %v3332_v38, 0.0  ;;  %v4667_v46 = vadd.f32 %v4453_v53, %v6161_v36 }
 0x1f3   : > { %v4454_v11 = vpop.f32.mrb[18].mxu1  ;;  %v3984_v7 = vpack.c.bf16 %v3361_v25, %v3361_v25  ;;  %v3362_v10 = vmax.f32 %v3330_v12, 0.0  ;;  %v4609_v8 = vpop.f32.mrb[12].mxu0  ;;  %v4669_v57 = vadd.f32 %v6161_v36, %v2192_v54 }
 0x1f4   : > { %v2195_v58 = vpop.f32.mrb[19].mxu1  ;;  %3524 = vst.msk [vmem:[%s6174_s12 + $0x28] sm:$0xf] %vm3513_vm7, %v3986_v56  ;;  %v3987_v44 = vpack.c.bf16 %v3364_v15, %v3364_v15  ;;  %v4660_v50 = vadd.f32 %v4659_v47, %v4609_v8  ;;  %v3146_v43 = vpop.f32.mrb[13].mxu0  ;;  %v4671_v60 = vadd.f32 %v4454_v11, %v6161_v36  ;;  %v4082_v11 = vld [vmem:[%s6156_s8 + $0x58] sm:$0xff]   ;;  %v4081_v56 = vld [vmem:[%s6156_s8 + $0x50] sm:$0xff]  }
 0x1f5   : > { %3522 = vst.msk [vmem:[%s6174_s12 + $0x20] sm:$0xf] %vm3513_vm7, %v3984_v7  ;;  %v3985_v14 = vpack.c.bf16 %v3362_v10, %v3362_v10  ;;  %v4662_v20 = vadd.f32 %v4661_v24, %v3146_v43  ;;  %v4610_v29 = vpop.f32.mrb[14].mxu0  ;;  %v4673_v21 = vadd.f32 %v6161_v36, %v2195_v58 }
 0x1f6   : > { %3525 = vst.msk [vmem:[%s6174_s12 + $0x2c] sm:$0xf] %vm3513_vm7, %v3987_v44  ;;  %v3335_v26 = vadd.f32 %v4660_v50, %v4038_v42  ;;  %v4664_v1 = vadd.f32 %v4663_v35, %v4610_v29  ;;  %v3149_v52 = vpop.f32.mrb[15].mxu0  ;;  %v4054_v35 = vunpack.c.l.bf16 %v4082_v11 }
 0x1f7   : > { %3523 = vst.msk [vmem:[%s6174_s12 + $0x24] sm:$0xf] %vm3513_vm7, %v3985_v14  ;;  %v3333_v4 = vadd.f32 %v4662_v20, %v4034_v37  ;;  %v4666_v16 = vadd.f32 %v4665_v9, %v3149_v52  ;;  %v4050_v9 = vunpack.c.l.bf16 %v4081_v56 }
 0x1f8   : > { %v3367_v49 = vmax.f32 %v3335_v26, 0.0  ;;  %v3336_v32 = vadd.f32 %v4664_v1, %v4039_v28  ;;  %v4055_v26 = vunpack.c.h.bf16 %v4082_v11 }
 0x1f9   : > { %v4457_v6 = vpop.f32.mrb[20].mxu1  ;;  %v3365_v23 = vmax.f32 %v3333_v4, 0.0  ;;  %v3334_v17 = vadd.f32 %v4666_v16, %v4035_v48  ;;  %v4051_v4 = vunpack.c.h.bf16 %v4081_v56 }
 0x1fa   : > { %v2208_v45 = vpop.f32.mrb[21].mxu1  ;;  %v3990_v30 = vpack.c.bf16 %v3367_v49, %v3367_v49  ;;  %v3368_v34 = vmax.f32 %v3336_v32, 0.0  ;;  %v4675_v47 = vadd.f32 %v4457_v6, %v6161_v36 }
 0x1fb   : > { %v4458_v31 = vpop.f32.mrb[22].mxu1  ;;  %v3988_v63 = vpack.c.bf16 %v3365_v23, %v3365_v23  ;;  %v3366_v55 = vmax.f32 %v3334_v17, 0.0  ;;  %v4613_v2 = vpop.f32.mrb[16].mxu0  ;;  %v4677_v7 = vadd.f32 %v6161_v36, %v2208_v45 }
 0x1fc   : > { %v2211_v59 = vpop.f32.mrb[23].mxu1  ;;  %3528 = vst.msk [vmem:[%s6174_s12 + $0x38] sm:$0xf] %vm3513_vm7, %v3990_v30  ;;  %v3991_v41 = vpack.c.bf16 %v3368_v34, %v3368_v34  ;;  %v4668_v27 = vadd.f32 %v4667_v46, %v4613_v2  ;;  %v3162_v19 = vpop.f32.mrb[17].mxu0  ;;  %v4679_v44 = vadd.f32 %v4458_v31, %v6161_v36 }
 0x1fd   : > { %3526 = vst.msk [vmem:[%s6174_s12 + $0x30] sm:$0xf] %vm3513_vm7, %v3988_v63  ;;  %v3989_v40 = vpack.c.bf16 %v3366_v55, %v3366_v55  ;;  %v4670_v13 = vadd.f32 %v4669_v57, %v3162_v19  ;;  %v4614_v53 = vpop.f32.mrb[18].mxu0  ;;  %v4681_v14 = vadd.f32 %v6161_v36, %v2211_v59  ;;  %v4083_v59 = vld [vmem:[%s6156_s8 + $0x60] sm:$0xff]  }
 0x1fe   : > { %3529 = vst.msk [vmem:[%s6174_s12 + $0x3c] sm:$0xf] %vm3513_vm7, %v3991_v41  ;;  %v3339_v5 = vadd.f32 %v4668_v27, %v4046_v51  ;;  %v4672_v62 = vadd.f32 %v4671_v60, %v4614_v53  ;;  %v3165_v54 = vpop.f32.mrb[19].mxu0 }
 0x1ff   : > { %3527 = vst.msk [vmem:[%s6174_s12 + $0x34] sm:$0xf] %vm3513_vm7, %v3989_v40  ;;  %v3337_v38 = vadd.f32 %v4670_v13, %v4042_v22  ;;  %v4674_v0 = vadd.f32 %v4673_v21, %v3165_v54  ;;  %v4062_v22 = vunpack.c.l.bf16 %v4084_v61 }
 0x200   : > { %v3371_v12 = vmax.f32 %v3339_v5, 0.0  ;;  %v3340_v58 = vadd.f32 %v4672_v62, %v4047_v33  ;;  %v4058_v33 = vunpack.c.l.bf16 %v4083_v59  ;;  %v4063_v5 = vunpack.c.h.bf16 %v4084_v61 }
 0x201   : > { %v4461_v3 = vpop.f32.mrb[24].mxu1  ;;  %v3369_v42 = vmax.f32 %v3337_v38, 0.0  ;;  %v3338_v24 = vadd.f32 %v4674_v0, %v4043_v18  ;;  %v4059_v38 = vunpack.c.h.bf16 %v4083_v59 }
 0x202   : > { %v2224_v25 = vpop.f32.mrb[25].mxu1  ;;  %v3994_v8 = vpack.c.bf16 %v3371_v12, %v3371_v12  ;;  %v3372_v37 = vmax.f32 %v3340_v58, 0.0  ;;  %v4683_v57 = vadd.f32 %v4461_v3, %v6161_v36 }
 0x203   : > { %v4462_v15 = vpop.f32.mrb[26].mxu1  ;;  %v3992_v50 = vpack.c.bf16 %v3369_v42, %v3369_v42  ;;  %v3370_v43 = vmax.f32 %v3338_v24, 0.0  ;;  %v4617_v28 = vpop.f32.mrb[20].mxu0  ;;  %v4685_v60 = vadd.f32 %v6161_v36, %v2224_v25  ;;  %v4085_v24 = vld [vmem:[%s6156_s8 + $0x70] sm:$0xff]  }
 0x204   : > { %v2227_v10 = vpop.f32.mrb[27].mxu1  ;;  %3532 = vst.msk [vmem:[%s6174_s12 + $0x48] sm:$0xf] %vm3513_vm7, %v3994_v8  ;;  %v3995_v20 = vpack.c.bf16 %v3372_v37, %v3372_v37  ;;  %v4676_v29 = vadd.f32 %v4675_v47, %v4617_v28  ;;  %v3178_v48 = vpop.f32.mrb[21].mxu0  ;;  %v4687_v21 = vadd.f32 %v4462_v15, %v6161_v36  ;;  %v4086_v47 = vld [vmem:[%s6156_s8 + $0x78] sm:$0xff]  }
 0x205   : > { %3530 = vst.msk [vmem:[%s6174_s12 + $0x40] sm:$0xf] %vm3513_vm7, %v3992_v50  ;;  %v3993_v1 = vpack.c.bf16 %v3370_v43, %v3370_v43  ;;  %v4678_v52 = vadd.f32 %v4677_v7, %v3178_v48  ;;  %v4618_v6 = vpop.f32.mrb[22].mxu0  ;;  %v4689_v40 = vadd.f32 %v6161_v36, %v2227_v10 }
 0x206   : > { %3533 = vst.msk [vmem:[%s6174_s12 + $0x4c] sm:$0xf] %vm3513_vm7, %v3995_v20  ;;  %v3343_v16 = vadd.f32 %v4676_v29, %v4054_v35  ;;  %v4680_v39 = vadd.f32 %v4679_v44, %v4618_v6  ;;  %v3181_v45 = vpop.f32.mrb[23].mxu0  ;;  %v4070_v44 = vunpack.c.l.bf16 %v4086_v47 }
 0x207   : > { %3531 = vst.msk [vmem:[%s6174_s12 + $0x44] sm:$0xf] %vm3513_vm7, %v3993_v1  ;;  %v3341_v32 = vadd.f32 %v4678_v52, %v4050_v9  ;;  %v4682_v46 = vadd.f32 %v4681_v14, %v3181_v45  ;;  %v4066_v14 = vunpack.c.l.bf16 %v4085_v24  ;;  %v4071_v1 = vunpack.c.h.bf16 %v4086_v47 }
 0x208   : > { %v3375_v23 = vmax.f32 %v3343_v16, 0.0  ;;  %v3344_v17 = vadd.f32 %v4680_v39, %v4055_v26  ;;  %v4067_v16 = vunpack.c.h.bf16 %v4085_v24 }
 0x209   : > { %v4465_v49 = vpop.f32.mrb[28].mxu1  ;;  %v3373_v34 = vmax.f32 %v3341_v32, 0.0  ;;  %v3342_v51 = vadd.f32 %v4682_v46, %v4051_v4 }
 0x20a   : > { %v2240_v31 = vpop.f32.mrb[29].mxu1  ;;  %v3998_v55 = vpack.c.bf16 %v3375_v23, %v3375_v23  ;;  %v3376_v2 = vmax.f32 %v3344_v17, 0.0  ;;  %v4691_v42 = vadd.f32 %v4465_v49, %v6161_v36 }
 0x20b   : > { %v4466_v30 = vpop.f32.mrb[30].mxu1  ;;  %v3996_v41 = vpack.c.bf16 %v3373_v34, %v3373_v34  ;;  %v3374_v27 = vmax.f32 %v3342_v51, 0.0  ;;  %v4621_v19 = vpop.f32.mrb[24].mxu0  ;;  %v4693_v8 = vadd.f32 %v6161_v36, %v2240_v31 }
 0x20c   : > { %v2243_v63 = vpop.f32.mrb[31].mxu1  ;;  %3536 = vst.msk [vmem:[%s6174_s12 + $0x58] sm:$0xf] %vm3513_vm7, %v3998_v55  ;;  %v3999_v13 = vpack.c.bf16 %v3376_v2, %v3376_v2  ;;  %v4684_v53 = vadd.f32 %v4683_v57, %v4621_v19  ;;  %v3194_v18 = vpop.f32.mrb[25].mxu0  ;;  %v4695_v50 = vadd.f32 %v4466_v30, %v6161_v36 }
 0x20d   : > { %3534 = vst.msk [vmem:[%s6174_s12 + $0x50] sm:$0xf] %vm3513_vm7, %v3996_v41  ;;  %v3997_v62 = vpack.c.bf16 %v3374_v27, %v3374_v27  ;;  %v4686_v54 = vadd.f32 %v4685_v60, %v3194_v18  ;;  %v4622_v3 = vpop.f32.mrb[26].mxu0  ;;  %v4697_v20 = vadd.f32 %v6161_v36, %v2243_v63 }
 0x20e   : > { %3537 = vst.msk [vmem:[%s6174_s12 + $0x5c] sm:$0xf] %vm3513_vm7, %v3999_v13  ;;  %v3347_v0 = vadd.f32 %v4684_v53, %v4062_v22  ;;  %v4688_v11 = vadd.f32 %v4687_v21, %v4622_v3  ;;  %v3197_v25 = vpop.f32.mrb[27].mxu0 }
 0x20f   : > { %3535 = vst.msk [vmem:[%s6174_s12 + $0x54] sm:$0xf] %vm3513_vm7, %v3997_v62  ;;  %v3345_v12 = vadd.f32 %v4686_v54, %v4058_v33  ;;  %v4690_v58 = vadd.f32 %v4689_v40, %v3197_v25 }
 0x210   : > { %v3379_v56 = vmax.f32 %v3347_v0, 0.0  ;;  %v3348_v15 = vadd.f32 %v4688_v11, %v4063_v5 }
 0x211   : > { %v3377_v7 = vmax.f32 %v3345_v12, 0.0  ;;  %v3346_v10 = vadd.f32 %v4690_v58, %v4059_v38 }
 0x212   : > { %v4002_v37 = vpack.c.bf16 %v3379_v56, %v3379_v56  ;;  %v3380_v35 = vmax.f32 %v3348_v15, 0.0 }
 0x213   : > { %v4000_v43 = vpack.c.bf16 %v3377_v7, %v3377_v7  ;;  %v3378_v28 = vmax.f32 %v3346_v10, 0.0  ;;  %v4625_v9 = vpop.f32.mrb[28].mxu0 }
 0x214   : > { %3540 = vst.msk [vmem:[%s6174_s12 + $0x68] sm:$0xf] %vm3513_vm7, %v4002_v37  ;;  %v4003_v29 = vpack.c.bf16 %v3380_v35, %v3380_v35  ;;  %v4692_v48 = vadd.f32 %v4691_v42, %v4625_v9  ;;  %v3210_v26 = vpop.f32.mrb[29].mxu0 }
 0x215   : > { %3538 = vst.msk [vmem:[%s6174_s12 + $0x60] sm:$0xf] %vm3513_vm7, %v4000_v43  ;;  %v4001_v52 = vpack.c.bf16 %v3378_v28, %v3378_v28  ;;  %v4694_v6 = vadd.f32 %v4693_v8, %v3210_v26  ;;  %v4626_v4 = vpop.f32.mrb[30].mxu0 }
 0x216   : > { %3541 = vst.msk [vmem:[%s6174_s12 + $0x6c] sm:$0xf] %vm3513_vm7, %v4003_v29  ;;  %v3351_v39 = vadd.f32 %v4692_v48, %v4070_v44  ;;  %v4696_v45 = vadd.f32 %v4695_v50, %v4626_v4  ;;  %v3213_v49 = vpop.f32.mrb[31].mxu0 }
 0x217   : > { %3539 = vst.msk [vmem:[%s6174_s12 + $0x64] sm:$0xf] %vm3513_vm7, %v4001_v52  ;;  %v3349_v36 = vadd.f32 %v4694_v6, %v4066_v14  ;;  %v4698_v32 = vadd.f32 %v4697_v20, %v3213_v49 }
 0x218   : > { %v3383_v46 = vmax.f32 %v3351_v39, 0.0  ;;  %v3352_v61 = vadd.f32 %v4696_v45, %v4071_v1 }
 0x219   : > { %v3381_v31 = vmax.f32 %v3349_v36, 0.0  ;;  %v3350_v23 = vadd.f32 %v4698_v32, %v4067_v16 }
 0x21a   : > { %v4006_v17 = vpack.c.bf16 %v3383_v46, %v3383_v46  ;;  %v3384_v57 = vmax.f32 %v3352_v61, 0.0 }
 0x21b   : > { %v4004_v59 = vpack.c.bf16 %v3381_v31, %v3381_v31  ;;  %v3382_v30 = vmax.f32 %v3350_v23, 0.0 }
 0x21c   : > { %3544 = vst.msk [vmem:[%s6174_s12 + $0x78] sm:$0xf] %vm3513_vm7, %v4006_v17  ;;  %v4007_v34 = vpack.c.bf16 %v3384_v57, %v3384_v57 }
 0x21d   : > { %3542 = vst.msk [vmem:[%s6174_s12 + $0x70] sm:$0xf] %vm3513_vm7, %v4004_v59  ;;  %v4005_v51 = vpack.c.bf16 %v3382_v30, %v3382_v30 }
 0x21e   : > { %3545 = vst.msk [vmem:[%s6174_s12 + $0x7c] sm:$0xf] %vm3513_vm7, %v4007_v34 }
 0x21f   : > { %3543 = vst.msk [vmem:[%s6174_s12 + $0x74] sm:$0xf] %vm3513_vm7, %v4005_v51 }
 0x220 PF: > { %s14_s15 = sadd.s32 1, %s4996_s15  }
 0x221   : > { %p11_p4 = scmp.ge.s32.totalorder %s14_s15, 4  }
 0x223   :  { %13 = sbr.rel (!%p11_p4) target bundleno = 1 (0x1), region = 77 }

// kernel: my_resnet_forward.26
= control target key start
LH: loop header
LB: loop body
LE: loop exit
PB: predicated region body
PF: predicated region fallthrough
CT: control target
= control target key end

     0   :  { %s1190_s12 = smov 0   ;;  %s1192_s13 = smov 0   ;;  %s1322_s0 = inlined_call_operand.vmem [shape: bf16[128,640], index: 0, kind: input, shape index: {}]   ;;  %s1323_s1 = inlined_call_operand.vmem [shape: bf16[640,128], index: 1, kind: input, shape index: {}]   ;;  %s1324_s2 = inlined_call_operand.vmem [shape: f32[1,128], index: 2, kind: input, shape index: {}]   ;;  %s1325_s3 = inlined_call_operand.vmem [shape: bf16[128,128], index: 3, kind: output, shape index: {}]  }
   0x1   :  { %s1194_s14 = smov 0   ;;  %s1196_s15 = smov 0  }
   0x2   :  { %s1198_s16 = smov 0  }
   0x3 LB: > { %s25_s17 = sadd.s32 1, %s1163_s15  ;;  %p48_p1 = scmp.ne.s32.totalorder %s1155_s13, %s1151_s12  ;;  %s1167_s16 = sphi %s1198_s16, %s13_s16   ;;  %s1163_s15 = sphi %s1196_s15, %s1329_s15   ;;  %s1159_s14 = sphi %s1194_s14, %s1328_s14   ;;  %s1155_s13 = sphi %s1192_s13, %s1327_s13   ;;  %s1151_s12 = sphi %s1190_s12, %s1326_s12  }
   0x4   : > { %p26_p0 = scmp.ge.s32.totalorder %s25_s17, 5  ;;  %p49_p2 = scmp.eq.s32.totalorder %s1167_s16, 0 }
   0x5   : > { %s41_s19 = sadd.s32 1, %s1155_s13  ;;  %p899_p5 = scmp.ge.s32.totalorder %s1167_s16, 5 }
   0x6   : > { %s1331_s17 = smov (%p26_p0, %s25_s17), 0  ;;  %p50_p3 = por %p49_p2, %p48_p1 }
   0x7   : > { %s37_s18 = ssub.s32 %s1163_s15, %s1331_s17  ;;  %162 = sbr.rel (%p899_p5) target bundleno = 28 (0x1c), region = 20 }
   0x8   : > { %p39_p4 = scmp.eq.s32.totalorder %s37_s18, 0 }
   0xa   : > { %s1225_s20 = scalar_select %p39_p4, %s1155_s13, %s41_s19  }
   0xe   : > { %165 = sbr.rel (!%p50_p3) target bundleno = 28 (0x1c), region = 24  ;;  %s167_s21 = sand.u32 (%p50_p3), 1, %s1155_s13  }
   0xf   : > { %s901_s22 = sshll.u32 (%p50_p3), %s1163_s15, 2  ;;  %s900_s23 = sshll.u32 (%p50_p3), %s167_s21, 6 }
  0x10   : > { %s1233_s26 = scalar_lea.vmem (%p50_p3), %s1322_s0, %s901_s22  ;;  %s169_s27 = scalar_lea.vmem (%p50_p3), [#allocation3], %s900_s23 }
  0x11   : > { %v190_v0 = vld [vmem:[%s1233_s26] sm:$0xf] (%p50_p3)  ;;  %v192_v1 = vld [vmem:[%s1233_s26 + $0x14] sm:$0xf] (%p50_p3)  ;;  %v194_v2 = vld [vmem:[%s1233_s26 + $0x28] sm:$0xf] (%p50_p3) }
  0x12   : > { %191 = vst [vmem:[%s169_s27] sm:$0xf] (%p50_p3), %v190_v0  ;;  %193 = vst [vmem:[%s169_s27 + $0x4] sm:$0xf] (%p50_p3), %v192_v1  ;;  %v196_v3 = vld [vmem:[%s1233_s26 + $0x3c] sm:$0xf] (%p50_p3) }
  0x13   : > { %v198_v4 = vld [vmem:[%s1233_s26 + $0x50] sm:$0xf] (%p50_p3)  ;;  %195 = vst [vmem:[%s169_s27 + $0x8] sm:$0xf] (%p50_p3), %v194_v2  ;;  %197 = vst [vmem:[%s169_s27 + $0xc] sm:$0xf] (%p50_p3), %v196_v3 }
  0x14   : > { %199 = vst [vmem:[%s169_s27 + $0x10] sm:$0xf] (%p50_p3), %v198_v4  ;;  %v200_v5 = vld [vmem:[%s1233_s26 + $0x64] sm:$0xf] (%p50_p3)  ;;  %v202_v6 = vld [vmem:[%s1233_s26 + $0x78] sm:$0xf] (%p50_p3) }
  0x15   : > { %v204_v7 = vld [vmem:[%s1233_s26 + $0x8c] sm:$0xf]  ;;  %201 = vst [vmem:[%s169_s27 + $0x14] sm:$0xf] %v200_v5  ;;  %203 = vst [vmem:[%s169_s27 + $0x18] sm:$0xf] %v202_v6 }
  0x16   : > { %205 = vst [vmem:[%s169_s27 + $0x1c] sm:$0xf] %v204_v7  ;;  %v206_v8 = vld [vmem:[%s1233_s26 + $0xa0] sm:$0xf]  ;;  %v208_v9 = vld [vmem:[%s1233_s26 + $0xb4] sm:$0xf] }
  0x17   : > { %v210_v10 = vld [vmem:[%s1233_s26 + $0xc8] sm:$0xf]  ;;  %207 = vst [vmem:[%s169_s27 + $0x20] sm:$0xf] %v206_v8  ;;  %209 = vst [vmem:[%s169_s27 + $0x24] sm:$0xf] %v208_v9 }
  0x18   : > { %211 = vst [vmem:[%s169_s27 + $0x28] sm:$0xf] %v210_v10  ;;  %v212_v11 = vld [vmem:[%s1233_s26 + $0xdc] sm:$0xf]  ;;  %v214_v12 = vld [vmem:[%s1233_s26 + $0xf0] sm:$0xf] }
  0x19   : > { %v216_v13 = vld [vmem:[%s1233_s26 + $0x104] sm:$0xf]  ;;  %213 = vst [vmem:[%s169_s27 + $0x2c] sm:$0xf] %v212_v11  ;;  %215 = vst [vmem:[%s169_s27 + $0x30] sm:$0xf] %v214_v12 }
  0x1a   : > { %217 = vst [vmem:[%s169_s27 + $0x34] sm:$0xf] %v216_v13  ;;  %v218_v14 = vld [vmem:[%s1233_s26 + $0x118] sm:$0xf]  ;;  %v220_v15 = vld [vmem:[%s1233_s26 + $0x12c] sm:$0xf] }
  0x1b   : > { %219 = vst [vmem:[%s169_s27 + $0x38] sm:$0xf] %v218_v14  ;;  %221 = vst [vmem:[%s169_s27 + $0x3c] sm:$0xf] %v220_v15 }
  0x1c PF: > { %p902_p6 = scmp.ge.s32.totalorder %s1167_s16, 1  ;;  %p287_p7 = scmp.lt.s32.totalorder %s1167_s16, 6 }
  0x1e   : > { %p288_p8 = pnand %p902_p6, %p287_p7 }
  0x1f   : > { %s294_s28 = sand.u32 (!%p288_p8), 1, %s1151_s12   ;;  %s904_s29 = sshll.u32 (!%p288_p8), %s1159_s14, 4 }
  0x20   : > { %291 = sbr.rel (%p288_p8) target bundleno = 323 (0x143), region = 69  ;;  %s903_s30 = sshll.u32 (!%p288_p8), %s294_s28, 6 }
  0x21   : > { %p333_p9 = scmp.lt.s32.totalorder (!%p288_p8), %s904_s29, 79  ;;  %s1260_s8 = scalar_lea.vmem (!%p288_p8), [#allocation3], %s903_s30 }
  0x22   : > { %p906_p10 = scmp.ne.s32.totalorder (!%p288_p8), %s1159_s14, 0 }
  0x27   : > { %s1333_s29 = smov (!%p333_p9, %s904_s29), 79  ;;  %357 = sbr.rel (%p906_p10) target bundleno = 49 (0x31), region = 77 }
  0x28   : > { %s905_s4 = sshll.u32 %s1333_s29, 2  ;;  %v1169_v16 = vmov (!%p906_p10), 0.0  }
  0x29   : > { %s1258_s7 = scalar_lea.vmem %s1323_s1, %s905_s4  ;;  %358 = vst [vmem:[#allocation2] sm:$0xff] (!%p906_p10), %v1169_v16  ;;  %359 = vst [vmem:[#allocation2 + $0x8] sm:$0xff] (!%p906_p10), %v1169_v16 }
  0x2a   : > { %360 = vst [vmem:[#allocation2 + $0x10] sm:$0xff] (!%p906_p10), %v1169_v16  ;;  %361 = vst [vmem:[#allocation2 + $0x18] sm:$0xff] (!%p906_p10), %v1169_v16 }
  0x2b   : > { %362 = vst [vmem:[#allocation2 + $0x20] sm:$0xff] (!%p906_p10), %v1169_v16  ;;  %363 = vst [vmem:[#allocation2 + $0x28] sm:$0xff] (!%p906_p10), %v1169_v16 }
  0x2c   : > { %364 = vst [vmem:[#allocation2 + $0x30] sm:$0xff] (!%p906_p10), %v1169_v16  ;;  %365 = vst [vmem:[#allocation2 + $0x38] sm:$0xff] (!%p906_p10), %v1169_v16 }
  0x2d   : > { %366 = vst [vmem:[#allocation2 + $0x40] sm:$0xff] (!%p906_p10), %v1169_v16  ;;  %367 = vst [vmem:[#allocation2 + $0x48] sm:$0xff] (!%p906_p10), %v1169_v16 }
  0x2e   : > { %368 = vst [vmem:[#allocation2 + $0x50] sm:$0xff] %v1169_v16  ;;  %369 = vst [vmem:[#allocation2 + $0x58] sm:$0xff] %v1169_v16 }
  0x2f   : > { %370 = vst [vmem:[#allocation2 + $0x60] sm:$0xff] %v1169_v16  ;;  %371 = vst [vmem:[#allocation2 + $0x68] sm:$0xff] %v1169_v16 }
  0x30   : > { %372 = vst [vmem:[#allocation2 + $0x70] sm:$0xff] %v1169_v16  ;;  %373 = vst [vmem:[#allocation2 + $0x78] sm:$0xff] %v1169_v16 }
  0x31 PF: > { %v1113_v17 = vld [vmem:[%s1258_s7] sm:$0xff]   ;;  %v1114_v18 = vld [vmem:[%s1258_s7 + $0x8] sm:$0xff]   ;;  %v1115_v19 = vld [vmem:[%s1258_s7 + $0x10] sm:$0xff]   ;;  %p923_p11 = scmp.ne.s32.totalorder %s1159_s14, 4 }
  0x32   : > { %1024 = vmatprep.subr.bf16.mxu0 %v1113_v17  ;;  %1056 = vmatprep.subr.bf16.mxu1 %v1113_v17  ;;  %v1116_v20 = vld [vmem:[%s1258_s7 + $0x18] sm:$0xff]   ;;  %v1121_v21 = vld [vmem:[%s1260_s8] sm:$0xff]   ;;  %v1118_v24 = vld [vmem:[%s1258_s7 + $0x28] sm:$0xff]  }
  0x33   : > { %1025 = vmatpush3.bf16.msra.mxu0 %v1113_v17  ;;  %1064 = vmatpush3.bf16.msra.mxu1 %v1113_v17  ;;  %v1122_v22 = vld [vmem:[%s1260_s8 + $0x20] sm:$0xff]   ;;  %v1119_v25 = vld [vmem:[%s1258_s7 + $0x30] sm:$0xff]   ;;  %v1120_v26 = vld [vmem:[%s1258_s7 + $0x38] sm:$0xff]  }
  0x34   : > { %1026 = vmatprep.subr.bf16.mxu0 %v1114_v18  ;;  %1057 = vmatprep.subr.bf16.mxu1 %v1114_v18  ;;  %v1117_v23 = vld [vmem:[%s1258_s7 + $0x20] sm:$0xff]   ;;  %v1123_v27 = vld [vmem:[%s1260_s8 + $0x8] sm:$0xff]   ;;  %v1125_v29 = vld [vmem:[%s1260_s8 + $0x10] sm:$0xff]  }
  0x35   : > { %1040 = vmatprep.mubr.bf16.mxu0 %v1121_v21  ;;  %1048 = vmatprep.mubr.bf16.mxu1 %v1122_v22  ;;  %v1124_v28 = vld [vmem:[%s1260_s8 + $0x28] sm:$0xff]   ;;  %v1126_v30 = vld [vmem:[%s1260_s8 + $0x30] sm:$0xff]   ;;  %v1127_v31 = vld [vmem:[%s1260_s8 + $0x18] sm:$0xff]  }
  0x36   : > { %v1128_v32 = vld [vmem:[%s1260_s8 + $0x38] sm:$0xff]   ;;  %v376_v33 = vld [vmem:[#allocation2 + $0x10] sm:$0xff]  ;;  %v374_v35 = vld [vmem:[#allocation2] sm:$0xff] }
  0x37   : > { %1027 = vmatpush3.bf16.msra.mxu0 %v1114_v18  ;;  %1065 = vmatpush3.bf16.msra.mxu1 %v1114_v18  ;;  %v384_v34 = vld [vmem:[#allocation2 + $0x50] sm:$0xff]  ;;  %v382_v36 = vld [vmem:[#allocation2 + $0x40] sm:$0xff]  ;;  %v377_v39 = vld [vmem:[#allocation2 + $0x18] sm:$0xff] }
  0x38   : > { %1028 = vmatprep.subr.bf16.mxu0 %v1115_v19  ;;  %1058 = vmatprep.subr.bf16.mxu1 %v1115_v19  ;;  %v385_v40 = vld [vmem:[#allocation2 + $0x58] sm:$0xff]  ;;  %v375_v45 = vld [vmem:[#allocation2 + $0x8] sm:$0xff]  ;;  %v380_v57 = vld [vmem:[#allocation2 + $0x30] sm:$0xff] }
  0x39   : > { %v383_v46 = vld [vmem:[#allocation2 + $0x48] sm:$0xff]  ;;  %v388_v58 = vld [vmem:[#allocation2 + $0x70] sm:$0xff]  ;;  %v378_v59 = vld [vmem:[#allocation2 + $0x20] sm:$0xff] }
  0x3a   : > { %v386_v60 = vld [vmem:[#allocation2 + $0x60] sm:$0xff]  ;;  %v381_v63 = vld [vmem:[#allocation2 + $0x38] sm:$0xff]  ;;  %v379_v5 = vld [vmem:[#allocation2 + $0x28] sm:$0xff] }
  0x3b   : > { %1029 = vmatpush3.bf16.msra.mxu0 %v1115_v19  ;;  %1066 = vmatpush3.bf16.msra.mxu1 %v1115_v19  ;;  %v389_v0 = vld [vmem:[#allocation2 + $0x78] sm:$0xff]  ;;  %v387_v6 = vld [vmem:[#allocation2 + $0x68] sm:$0xff]  ;;  %v924_v19 = vld [vmem:[%s1324_s2] ss:$0 sm:$0xff] (!%p923_p11) }
  0x3c   : > { %1030 = vmatprep.subr.bf16.mxu0 %v1116_v20  ;;  %1059 = vmatprep.subr.bf16.mxu1 %v1116_v20 }
  0x3f   : > { %1031 = vmatpush3.bf16.msra.mxu0 %v1116_v20  ;;  %1067 = vmatpush3.bf16.msra.mxu1 %v1116_v20 }
  0x40   : > { %1032 = vmatprep.subr.bf16.mxu0 %v1117_v23  ;;  %1060 = vmatprep.subr.bf16.mxu1 %v1117_v23 }
  0x43   : > { %1033 = vmatpush3.bf16.msra.mxu0 %v1117_v23  ;;  %1068 = vmatpush3.bf16.msra.mxu1 %v1117_v23 }
  0x44   : > { %1034 = vmatprep.subr.bf16.mxu0 %v1118_v24  ;;  %1061 = vmatprep.subr.bf16.mxu1 %v1118_v24 }
  0x47   : > { %1035 = vmatpush3.bf16.msra.mxu0 %v1118_v24  ;;  %1069 = vmatpush3.bf16.msra.mxu1 %v1118_v24 }
  0x48   : > { %1036 = vmatprep.subr.bf16.mxu0 %v1119_v25  ;;  %1062 = vmatprep.subr.bf16.mxu1 %v1119_v25 }
  0x4b   : > { %1037 = vmatpush3.bf16.msra.mxu0 %v1119_v25  ;;  %1070 = vmatpush3.bf16.msra.mxu1 %v1119_v25 }
  0x4c   : > { %1038 = vmatprep.subr.bf16.mxu0 %v1120_v26  ;;  %1063 = vmatprep.subr.bf16.mxu1 %v1120_v26 }
  0x4f   : > { %1039 = vmatpush3.bf16.msra.mxu0 %v1120_v26  ;;  %1071 = vmatpush3.bf16.msra.mxu1 %v1120_v26 }
  0x52   : > { %1041 = vmatmul.mubr.bf16.vlgmr.msra.gmra.mrb[0].mxu0 %v1123_v27  ;;  %1049 = vmatmul.mubr.bf16.vlgmr.msra.gmra.mrb[0].mxu1 %v1124_v28 }
  0x53   : > { %1044 = vmatprep.mubr.bf16.mxu0 %v1125_v29  ;;  %1052 = vmatprep.mubr.bf16.mxu1 %v1126_v30 }
  0x5a   : > { %1045 = vmatmul.mubr.bf16.gmra.mrb[4].mxu0 %v1127_v31  ;;  %1053 = vmatmul.mubr.bf16.gmra.mrb[4].mxu1 %v1128_v32 }
 0x125   : > { %v1042_v37 = vpop.f32.mrb[0].mxu0  ;;  %v1050_v38 = vpop.f32.mrb[0].mxu1 }
 0x126   : > { %v617_v41 = vadd.f32 %v1042_v37, %v376_v33  ;;  %v625_v42 = vadd.f32 %v1050_v38, %v384_v34  ;;  %v552_v43 = vpop.f32.mrb[1].mxu0  ;;  %v584_v44 = vpop.f32.mrb[1].mxu1 }
 0x127   : > { %v615_v47 = vadd.f32 %v552_v43, %v374_v35  ;;  %v623_v48 = vadd.f32 %v584_v44, %v382_v36  ;;  %v1043_v49 = vpop.f32.mrb[2].mxu0  ;;  %v1051_v50 = vpop.f32.mrb[2].mxu1 }
 0x128   : > { %633 = vst [vmem:[#allocation2 + $0x10] sm:$0xff] %v617_v41  ;;  %641 = vst [vmem:[#allocation2 + $0x50] sm:$0xff] %v625_v42  ;;  %v618_v51 = vadd.f32 %v1043_v49, %v377_v39  ;;  %v626_v52 = vadd.f32 %v1051_v50, %v385_v40  ;;  %v555_v53 = vpop.f32.mrb[3].mxu0  ;;  %v587_v54 = vpop.f32.mrb[3].mxu1 }
 0x129   : > { %631 = vst [vmem:[#allocation2] sm:$0xff] %v615_v47  ;;  %639 = vst [vmem:[#allocation2 + $0x40] sm:$0xff] %v623_v48  ;;  %v616_v55 = vadd.f32 %v555_v53, %v375_v45  ;;  %v624_v56 = vadd.f32 %v587_v54, %v383_v46 }
 0x12a   : > { %634 = vst [vmem:[#allocation2 + $0x18] sm:$0xff] %v618_v51  ;;  %642 = vst [vmem:[#allocation2 + $0x58] sm:$0xff] %v626_v52 }
 0x12b   : > { %632 = vst [vmem:[#allocation2 + $0x8] sm:$0xff] %v616_v55  ;;  %640 = vst [vmem:[#allocation2 + $0x48] sm:$0xff] %v624_v56 }
 0x12d   : > { %v1046_v61 = vpop.f32.mrb[4].mxu0  ;;  %v1054_v62 = vpop.f32.mrb[4].mxu1  ;;  %650 = sbr.rel (%p923_p11) target bundleno = 323 (0x143), region = 81 }
 0x12e   : > { %v621_v1 = vadd.f32 %v1046_v61, %v380_v57  ;;  %v629_v2 = vadd.f32 %v1054_v62, %v388_v58  ;;  %v568_v3 = vpop.f32.mrb[5].mxu0  ;;  %v600_v4 = vpop.f32.mrb[5].mxu1 }
 0x12f   : > { %v619_v7 = vadd.f32 %v568_v3, %v378_v59  ;;  %v627_v8 = vadd.f32 %v600_v4, %v386_v60  ;;  %v1047_v9 = vpop.f32.mrb[6].mxu0  ;;  %v1055_v10 = vpop.f32.mrb[6].mxu1  ;;  %v653_v22 = vld [vmem:[#allocation2 + $0x10] sm:$0xff] (!%p923_p11) }
 0x130   : > { %637 = vst [vmem:[#allocation2 + $0x30] sm:$0xff] %v621_v1  ;;  %645 = vst [vmem:[#allocation2 + $0x70] sm:$0xff] %v629_v2  ;;  %v622_v11 = vadd.f32 %v1047_v9, %v381_v63  ;;  %v630_v12 = vadd.f32 %v1055_v10, %v389_v0  ;;  %v571_v13 = vpop.f32.mrb[7].mxu0  ;;  %v603_v14 = vpop.f32.mrb[7].mxu1  ;;  %v651_v17 = vld [vmem:[#allocation2] sm:$0xff] (!%p923_p11)  ;;  %v676_v25 = vadd.f32 (!%p923_p11), %v924_v19, %v653_v22  ;;  %v661_v37 = vld [vmem:[#allocation2 + $0x50] sm:$0xff] (!%p923_p11) }
 0x131   : > { %635 = vst [vmem:[#allocation2 + $0x20] sm:$0xff] %v619_v7  ;;  %643 = vst [vmem:[#allocation2 + $0x60] sm:$0xff] %v627_v8  ;;  %v620_v15 = vadd.f32 %v571_v13, %v379_v5  ;;  %v628_v16 = vadd.f32 %v603_v14, %v387_v6  ;;  %v674_v20 = vadd.f32 (!%p923_p11), %v924_v19, %v651_v17  ;;  %v654_v23 = vld [vmem:[#allocation2 + $0x18] sm:$0xff] (!%p923_p11)  ;;  %v659_v35 = vld [vmem:[#allocation2 + $0x40] sm:$0xff] (!%p923_p11) }
 0x132   : > { %638 = vst [vmem:[#allocation2 + $0x38] sm:$0xff] %v622_v11  ;;  %646 = vst [vmem:[#allocation2 + $0x78] sm:$0xff] %v630_v12  ;;  %v652_v18 = vld [vmem:[#allocation2 + $0x8] sm:$0xff] (!%p923_p11)  ;;  %v677_v26 = vadd.f32 (!%p923_p11), %v924_v19, %v654_v23  ;;  %v692_v38 = vmax.f32 (!%p923_p11), %v676_v25, 0.0  ;;  %v662_v42 = vld [vmem:[#allocation2 + $0x58] sm:$0xff] (!%p923_p11)  ;;  %v682_v47 = vadd.f32 (!%p923_p11), %v924_v19, %v659_v35  ;;  %v684_v52 = vadd.f32 (!%p923_p11), %v924_v19, %v661_v37 }
 0x133   : > { %636 = vst [vmem:[#allocation2 + $0x28] sm:$0xff] %v620_v15  ;;  %644 = vst [vmem:[#allocation2 + $0x68] sm:$0xff] %v628_v16  ;;  %v675_v21 = vadd.f32 (!%p923_p11), %v924_v19, %v652_v18  ;;  %v690_v31 = vmax.f32 (!%p923_p11), %v674_v20, 0.0  ;;  %v660_v36 = vld [vmem:[#allocation2 + $0x48] sm:$0xff] (!%p923_p11)  ;;  %v685_v57 = vadd.f32 (!%p923_p11), %v924_v19, %v662_v42 }
 0x134   : > { %v693_v39 = vmax.f32 %v677_v26, 0.0  ;;  %v683_v51 = vadd.f32 %v924_v19, %v660_v36  ;;  %v698_v56 = vmax.f32 %v682_v47, 0.0  ;;  %v700_v61 = vmax.f32 %v684_v52, 0.0 }
 0x135   : > { %v691_v32 = vmax.f32 %v675_v21, 0.0  ;;  %v701_v63 = vmax.f32 %v685_v57, 0.0 }
 0x136   : > { %v969_v49 = vpack.c.bf16 %v693_v39, %v692_v38  ;;  %v699_v60 = vmax.f32 %v683_v51, 0.0 }
 0x137   : > { %v657_v29 = vld [vmem:[#allocation2 + $0x30] sm:$0xff]  ;;  %v964_v44 = vpack.c.bf16 %v691_v32, %v690_v31  ;;  %v989_v5 = vpack.c.bf16 %v701_v63, %v700_v61 }
 0x138   : > { %v655_v24 = vld [vmem:[#allocation2 + $0x20] sm:$0xff]  ;;  %v680_v34 = vadd.f32 %v924_v19, %v657_v29  ;;  %v665_v53 = vld [vmem:[#allocation2 + $0x70] sm:$0xff]  ;;  %1001 = vst [vmem:[%s1325_s3 + $0x8] sm:$0xff] %v969_v49   ;;  %v984_v3 = vpack.c.bf16 %v699_v60, %v698_v56 }
 0x139   : > { %v678_v28 = vadd.f32 %v924_v19, %v655_v24  ;;  %v658_v30 = vld [vmem:[#allocation2 + $0x38] sm:$0xff]  ;;  %v663_v43 = vld [vmem:[#allocation2 + $0x60] sm:$0xff]  ;;  %965 = vst [vmem:[%s1325_s3] sm:$0xff] %v964_v44   ;;  %v688_v1 = vadd.f32 %v924_v19, %v665_v53  ;;  %1005 = vst [vmem:[%s1325_s3 + $0x28] sm:$0xff] %v989_v5  }
 0x13a   : > { %v656_v27 = vld [vmem:[#allocation2 + $0x28] sm:$0xff]  ;;  %v681_v41 = vadd.f32 %v924_v19, %v658_v30  ;;  %v696_v46 = vmax.f32 %v680_v34, 0.0  ;;  %v666_v54 = vld [vmem:[#allocation2 + $0x78] sm:$0xff]  ;;  %v686_v58 = vadd.f32 %v924_v19, %v663_v43  ;;  %1004 = vst [vmem:[%s1325_s3 + $0x20] sm:$0xff] %v984_v3  }
 0x13b   : > { %v679_v33 = vadd.f32 %v924_v19, %v656_v27  ;;  %v694_v40 = vmax.f32 %v678_v28, 0.0  ;;  %v664_v48 = vld [vmem:[#allocation2 + $0x68] sm:$0xff]  ;;  %v689_v2 = vadd.f32 %v924_v19, %v666_v54  ;;  %v704_v6 = vmax.f32 %v688_v1, 0.0 }
 0x13c   : > { %v697_v50 = vmax.f32 %v681_v41, 0.0  ;;  %v687_v62 = vadd.f32 %v924_v19, %v664_v48  ;;  %v702_v0 = vmax.f32 %v686_v58, 0.0 }
 0x13d   : > { %v695_v45 = vmax.f32 %v679_v33, 0.0  ;;  %v705_v7 = vmax.f32 %v689_v2, 0.0 }
 0x13e   : > { %v979_v59 = vpack.c.bf16 %v697_v50, %v696_v46  ;;  %v703_v4 = vmax.f32 %v687_v62, 0.0 }
 0x13f   : > { %v974_v55 = vpack.c.bf16 %v695_v45, %v694_v40  ;;  %v999_v9 = vpack.c.bf16 %v705_v7, %v704_v6 }
 0x140   : > { %1003 = vst [vmem:[%s1325_s3 + $0x18] sm:$0xff] %v979_v59   ;;  %v994_v8 = vpack.c.bf16 %v703_v4, %v702_v0 }
 0x141   : > { %1002 = vst [vmem:[%s1325_s3 + $0x10] sm:$0xff] %v974_v55   ;;  %1007 = vst [vmem:[%s1325_s3 + $0x38] sm:$0xff] %v999_v9  }
 0x142   : > { %1006 = vst [vmem:[%s1325_s3 + $0x30] sm:$0xff] %v994_v8  }
 0x143 PF: > { %s13_s16 = sadd.s32 1, %s1167_s16   ;;  %s1326_s12 = smov %s1155_s13 }
 0x144   : > { %p10_p12 = scmp.ge.s32.totalorder %s13_s16, 7   ;;  %s1327_s13 = smov %s1225_s20 }
 0x145   : > { %s1328_s14 = smov %s1163_s15  ;;  %s1329_s15 = smov %s1331_s17 }
 0x146   :  { %12 = sbr.rel (!%p10_p12) target bundleno = 3 (0x3), region = 122 }

// kernel: my_resnet_forward.27
= control target key start
LH: loop header
LB: loop body
LE: loop exit
PB: predicated region body
PF: predicated region fallthrough
CT: control target
= control target key end

     0   :  { %s705_s1 = inlined_call_operand.vmem [shape: bf16[128,128], index: 1, kind: input, shape index: {}]   ;;  %s706_s0 = inlined_call_operand.vmem [shape: bf16[128,128], index: 0, kind: input, shape index: {}]   ;;  %s707_s2 = inlined_call_operand.vmem [shape: f32[1,128], index: 2, kind: input, shape index: {}]   ;;  %s708_s3 = inlined_call_operand.vmem [shape: bf16[128,128], index: 3, kind: output, shape index: {}]  }
   0x1   :  { %v594_v0 = vld [vmem:[%s705_s1] sm:$0xff]   ;;  %v595_v1 = vld [vmem:[%s705_s1 + $0x8] sm:$0xff]   ;;  %v596_v2 = vld [vmem:[%s705_s1 + $0x10] sm:$0xff]  }
   0x2   :  { %546 = vmatprep.subr.bf16.mxu0 %v594_v0  ;;  %578 = vmatprep.subr.bf16.mxu1 %v594_v0  ;;  %v597_v3 = vld [vmem:[%s705_s1 + $0x18] sm:$0xff]   ;;  %v602_v4 = vld [vmem:[%s706_s0] sm:$0xff]   ;;  %v599_v7 = vld [vmem:[%s705_s1 + $0x28] sm:$0xff]  }
   0x3   :  { %547 = vmatpush3.bf16.msra.mxu0 %v594_v0  ;;  %586 = vmatpush3.bf16.msra.mxu1 %v594_v0  ;;  %v603_v5 = vld [vmem:[%s706_s0 + $0x20] sm:$0xff]   ;;  %v600_v8 = vld [vmem:[%s705_s1 + $0x30] sm:$0xff]   ;;  %v601_v9 = vld [vmem:[%s705_s1 + $0x38] sm:$0xff]  }
   0x4   :  { %548 = vmatprep.subr.bf16.mxu0 %v595_v1  ;;  %579 = vmatprep.subr.bf16.mxu1 %v595_v1  ;;  %v598_v6 = vld [vmem:[%s705_s1 + $0x20] sm:$0xff]   ;;  %v604_v10 = vld [vmem:[%s706_s0 + $0x8] sm:$0xff]   ;;  %v606_v12 = vld [vmem:[%s706_s0 + $0x10] sm:$0xff]  }
   0x5   :  { %562 = vmatprep.mubr.bf16.mxu0 %v602_v4  ;;  %570 = vmatprep.mubr.bf16.mxu1 %v603_v5  ;;  %v605_v11 = vld [vmem:[%s706_s0 + $0x28] sm:$0xff]   ;;  %v607_v13 = vld [vmem:[%s706_s0 + $0x30] sm:$0xff]   ;;  %v608_v14 = vld [vmem:[%s706_s0 + $0x18] sm:$0xff]  }
   0x6   :  { %v609_v15 = vld [vmem:[%s706_s0 + $0x38] sm:$0xff]   ;;  %v450_v17 = vld [vmem:[%s707_s2] ss:$0 sm:$0xff] }
   0x7   :  { %549 = vmatpush3.bf16.msra.mxu0 %v595_v1  ;;  %587 = vmatpush3.bf16.msra.mxu1 %v595_v1 }
   0x8   :  { %550 = vmatprep.subr.bf16.mxu0 %v596_v2  ;;  %580 = vmatprep.subr.bf16.mxu1 %v596_v2 }
   0xb   :  { %551 = vmatpush3.bf16.msra.mxu0 %v596_v2  ;;  %588 = vmatpush3.bf16.msra.mxu1 %v596_v2 }
   0xc   :  { %552 = vmatprep.subr.bf16.mxu0 %v597_v3  ;;  %581 = vmatprep.subr.bf16.mxu1 %v597_v3 }
   0xf   :  { %553 = vmatpush3.bf16.msra.mxu0 %v597_v3  ;;  %589 = vmatpush3.bf16.msra.mxu1 %v597_v3 }
  0x10   :  { %554 = vmatprep.subr.bf16.mxu0 %v598_v6  ;;  %582 = vmatprep.subr.bf16.mxu1 %v598_v6 }
  0x13   :  { %555 = vmatpush3.bf16.msra.mxu0 %v598_v6  ;;  %590 = vmatpush3.bf16.msra.mxu1 %v598_v6 }
  0x14   :  { %556 = vmatprep.subr.bf16.mxu0 %v599_v7  ;;  %583 = vmatprep.subr.bf16.mxu1 %v599_v7 }
  0x17   :  { %557 = vmatpush3.bf16.msra.mxu0 %v599_v7  ;;  %591 = vmatpush3.bf16.msra.mxu1 %v599_v7 }
  0x18   :  { %558 = vmatprep.subr.bf16.mxu0 %v600_v8  ;;  %584 = vmatprep.subr.bf16.mxu1 %v600_v8 }
  0x1b   :  { %559 = vmatpush3.bf16.msra.mxu0 %v600_v8  ;;  %592 = vmatpush3.bf16.msra.mxu1 %v600_v8 }
  0x1c   :  { %560 = vmatprep.subr.bf16.mxu0 %v601_v9  ;;  %585 = vmatprep.subr.bf16.mxu1 %v601_v9 }
  0x1f   :  { %561 = vmatpush3.bf16.msra.mxu0 %v601_v9  ;;  %593 = vmatpush3.bf16.msra.mxu1 %v601_v9 }
  0x22   :  { %563 = vmatmul.mubr.bf16.vlgmr.msra.gmra.mrb[0].mxu0 %v604_v10  ;;  %571 = vmatmul.mubr.bf16.vlgmr.msra.gmra.mrb[0].mxu1 %v605_v11 }
  0x23   :  { %566 = vmatprep.mubr.bf16.mxu0 %v606_v12  ;;  %574 = vmatprep.mubr.bf16.mxu1 %v607_v13 }
  0x2a   :  { %567 = vmatmul.mubr.bf16.gmra.mrb[4].mxu0 %v608_v14  ;;  %575 = vmatmul.mubr.bf16.gmra.mrb[4].mxu1 %v609_v15 }
  0xf5   :  { %v564_v16 = vpop.f32.mrb[0].mxu0  ;;  %v572_v18 = vpop.f32.mrb[0].mxu1 }
  0xf6   :  { %v213_v19 = vpop.f32.mrb[1].mxu0  ;;  %v245_v20 = vpop.f32.mrb[1].mxu1  ;;  %v336_v23 = vadd.f32 %v564_v16, %v450_v17  ;;  %v344_v24 = vadd.f32 %v572_v18, %v450_v17 }
  0xf7   :  { %v565_v21 = vpop.f32.mrb[2].mxu0  ;;  %v573_v22 = vpop.f32.mrb[2].mxu1  ;;  %v334_v29 = vadd.f32 %v450_v17, %v213_v19  ;;  %v342_v30 = vadd.f32 %v450_v17, %v245_v20 }
  0xf8   :  { %v337_v25 = vadd.f32 %v565_v21, %v450_v17  ;;  %v345_v26 = vadd.f32 %v573_v22, %v450_v17  ;;  %v216_v27 = vpop.f32.mrb[3].mxu0  ;;  %v248_v28 = vpop.f32.mrb[3].mxu1 }
  0xf9   :  { %v335_v31 = vadd.f32 %v450_v17, %v216_v27  ;;  %v343_v32 = vadd.f32 %v450_v17, %v248_v28 }
  0xfa   :  { %v491_v33 = vpack.c.bf16 %v337_v25, %v336_v23  ;;  %v511_v34 = vpack.c.bf16 %v345_v26, %v344_v24 }
  0xfb   :  { %v486_v35 = vpack.c.bf16 %v335_v31, %v334_v29  ;;  %v506_v36 = vpack.c.bf16 %v343_v32, %v342_v30 }
  0xfc   :  { %523 = vst [vmem:[%s708_s3 + $0x8] sm:$0xff] %v491_v33   ;;  %527 = vst [vmem:[%s708_s3 + $0x28] sm:$0xff] %v511_v34  }
  0xfd   :  { %487 = vst [vmem:[%s708_s3] sm:$0xff] %v486_v35   ;;  %526 = vst [vmem:[%s708_s3 + $0x20] sm:$0xff] %v506_v36   ;;  %v568_v37 = vpop.f32.mrb[4].mxu0  ;;  %v576_v38 = vpop.f32.mrb[4].mxu1 }
  0xfe   :  { %v229_v39 = vpop.f32.mrb[5].mxu0  ;;  %v261_v40 = vpop.f32.mrb[5].mxu1  ;;  %v340_v43 = vadd.f32 %v568_v37, %v450_v17  ;;  %v348_v44 = vadd.f32 %v576_v38, %v450_v17 }
  0xff   :  { %v569_v41 = vpop.f32.mrb[6].mxu0  ;;  %v577_v42 = vpop.f32.mrb[6].mxu1  ;;  %v338_v49 = vadd.f32 %v450_v17, %v229_v39  ;;  %v346_v50 = vadd.f32 %v450_v17, %v261_v40 }
 0x100   :  { %v341_v45 = vadd.f32 %v569_v41, %v450_v17  ;;  %v349_v46 = vadd.f32 %v577_v42, %v450_v17  ;;  %v232_v47 = vpop.f32.mrb[7].mxu0  ;;  %v264_v48 = vpop.f32.mrb[7].mxu1 }
 0x101   :  { %v339_v51 = vadd.f32 %v450_v17, %v232_v47  ;;  %v347_v52 = vadd.f32 %v450_v17, %v264_v48 }
 0x102   :  { %v501_v53 = vpack.c.bf16 %v341_v45, %v340_v43  ;;  %v521_v54 = vpack.c.bf16 %v349_v46, %v348_v44 }
 0x103   :  { %v496_v55 = vpack.c.bf16 %v339_v51, %v338_v49  ;;  %v516_v56 = vpack.c.bf16 %v347_v52, %v346_v50 }
 0x104   :  { %525 = vst [vmem:[%s708_s3 + $0x18] sm:$0xff] %v501_v53   ;;  %529 = vst [vmem:[%s708_s3 + $0x38] sm:$0xff] %v521_v54  }
 0x105   :  { %524 = vst [vmem:[%s708_s3 + $0x10] sm:$0xff] %v496_v55   ;;  %528 = vst [vmem:[%s708_s3 + $0x30] sm:$0xff] %v516_v56  }

// kernel: my_resnet_forward.28
= control target key start
LH: loop header
LB: loop body
LE: loop exit
PB: predicated region body
PF: predicated region fallthrough
CT: control target
= control target key end

     0   :  { %s2722_s15 = smov 0   ;;  %s3260_s0 = inlined_call_operand.vmem [shape: bf16[2,10,10,128], index: 0, kind: input, shape index: {}]   ;;  %s3261_s1 = inlined_call_operand.vmem [shape: bf16[9,128,128], index: 1, kind: input, shape index: {}]   ;;  %s3262_s2 = inlined_call_operand.vmem [shape: f32[1,128], index: 2, kind: input, shape index: {}]   ;;  %s3263_s3 = inlined_call_operand.vmem [shape: bf16[2,8,8,128], index: 3, kind: input, shape index: {}]   ;;  %s3264_s4 = inlined_call_operand.vmem [shape: bf16[2,8,8,128], index: 4, kind: output, shape index: {}]  }
   0x1 LB: > { %s1893_s16 = sadd.s32 4294967295, %s2695_s15   ;;  %p1897_p0 = scmp.ge.s32.totalorder %s2695_s15, 1  ;;  %s2695_s15 = sphi %s2722_s15, %s14_s15  }
   0x2   : > { %p172_p1 = scmp.lt.s32.totalorder %s2695_s15, 3 }
   0x4   : > { %p173_p2 = pnand %p1897_p0, %p172_p1 }
   0x5   : > { %v2608_v0 = vld [vmem:[%s3261_s1] sm:$0xff] (!%p173_p2)   ;;  %p203_p3 = scmp.lt.s32.totalorder (!%p173_p2), %s1893_s16, 1  ;;  %v2610_v2 = vld [vmem:[%s3261_s1 + $0x8] sm:$0xff] (!%p173_p2)   ;;  %v2612_v4 = vld [vmem:[%s3261_s1 + $0x10] sm:$0xff] (!%p173_p2)   ;;  %vm408_vm0 = vsmask.f32 (!%p173_p2), 3328 }
   0x6   : > { %176 = sbr.rel (%p173_p2) target bundleno = 392 (0x188), region = 36  ;;  %v2609_v1 = vld [vmem:[%s3261_s1 + $0x100] sm:$0xff] (!%p173_p2)   ;;  %2295 = vmatprep.subr.bf16.mxu1 (!%p173_p2), %v2608_v0  ;;  %v2611_v3 = vld [vmem:[%s3261_s1 + $0x108] sm:$0xff] (!%p173_p2)   ;;  %v2613_v5 = vld [vmem:[%s3261_s1 + $0x110] sm:$0xff] (!%p173_p2)   ;;  %vm409_vm1 = vsmask.f32 (!%p173_p2), 7440 }
   0x7   : > { %2391 = vmatprep.subr.bf16.mxu0 (!%p173_p2), %v2609_v1  ;;  %2296 = vmatpush3.bf16.msra.mxu1 (!%p173_p2), %v2608_v0  ;;  %v2614_v6 = vld [vmem:[%s3261_s1 + $0x18] sm:$0xff] (!%p173_p2)   ;;  %v2616_v8 = vld [vmem:[%s3261_s1 + $0x20] sm:$0xff] (!%p173_p2)   ;;  %v2618_v10 = vld [vmem:[%s3261_s1 + $0x28] sm:$0xff] (!%p173_p2)   ;;  %vm685_vm3 = vcmask (!%p173_p2), 1042432   ;;  %vm686_vm4 = vcmask (!%p173_p2), 1046532  }
   0x8   : > { %2392 = vmatpush3.bf16.msra.mxu0 (!%p173_p2), %v2609_v1  ;;  %2297 = vmatprep.subr.bf16.mxu1 (!%p173_p2), %v2610_v2  ;;  %v2615_v7 = vld [vmem:[%s3261_s1 + $0x118] sm:$0xff] (!%p173_p2)   ;;  %v2617_v9 = vld [vmem:[%s3261_s1 + $0x120] sm:$0xff] (!%p173_p2)   ;;  %v2619_v13 = vld [vmem:[%s3261_s1 + $0x128] sm:$0xff] (!%p173_p2)  }
   0x9   : > { %2393 = vmatprep.subr.bf16.mxu0 (!%p173_p2), %v2611_v3  ;;  %v2620_v17 = vld [vmem:[%s3261_s1 + $0x30] sm:$0xff] (!%p173_p2)   ;;  %v2622_v29 = vld [vmem:[%s3261_s1 + $0x38] sm:$0xff] (!%p173_p2)   ;;  %vm2830_vm2 = vmor (!%p173_p2), %vm408_vm0, %vm409_vm1 }
   0xa   : > { %v2621_v24 = vld [vmem:[%s3261_s1 + $0x130] sm:$0xff] (!%p173_p2)   ;;  %v2623_v34 = vld [vmem:[%s3261_s1 + $0x138] sm:$0xff] (!%p173_p2)   ;;  %v2625_v56 = vld [vmem:[%s3261_s1 + $0x40] sm:$0xff] (!%p173_p2)  }
   0xb   : > { %2298 = vmatpush3.bf16.msra.mxu1 (!%p173_p2), %v2610_v2  ;;  %v2626_v59 = vld [vmem:[%s3261_s1 + $0x140] sm:$0xff] (!%p173_p2)   ;;  %vm2956_vm5 = vmor (!%p173_p2), %vm685_vm3, %vm686_vm4 }
   0xc   : > { %2394 = vmatpush3.bf16.msra.mxu0 (!%p173_p2), %v2611_v3  ;;  %2299 = vmatprep.subr.bf16.mxu1 (!%p173_p2), %v2612_v4  ;;  %v2652_v47 = vld [vmem:[%s3261_s1 + $0xa0] sm:$0xff] (!%p173_p2)  }
   0xd   : > { %s3270_s16 = smov (!%p203_p3, %s1893_s16), 1  ;;  %2395 = vmatprep.subr.bf16.mxu0 %v2613_v5 }
   0xe   : > { %s2599_s7 = smul.u32 80, %s3270_s16  ;;  %s2143_s24 = sshll.u32 %s3270_s16, 5 }
   0xf   : > { %2300 = vmatpush3.bf16.msra.mxu1 %v2612_v4  ;;  %s212_s27 = scalar_lea.vmem %s3263_s3, %s2143_s24  ;;  %s217_s30 = scalar_lea.vmem %s3264_s4, %s2143_s24 }
  0x10   : > { %2396 = vmatpush3.bf16.msra.mxu0 %v2613_v5  ;;  %2301 = vmatprep.subr.bf16.mxu1 %v2614_v6  ;;  %s2766_s14 = scalar_lea.vmem %s3260_s0, %s2599_s7 }
  0x11   : > { %2397 = vmatprep.subr.bf16.mxu0 %v2615_v7  ;;  %v2772_v11 = vld [vmem:[%s2766_s14] sm:$0xf]  ;;  %v2775_v12 = vld [vmem:[%s2766_s14 + $0x8] sm:$0xf]  ;;  %v2788_v18 = vld [vmem:[%s2766_s14 + $0x10] sm:$0xf] }
  0x12   : > { %v1904_v14 = vcombine.low %v2772_v11, %v2775_v12  ;;  %v412_v15 = vshrl.u32 %v2772_v11, 16  ;;  %v415_v16 = vshll.u32 %v2772_v11, 16  ;;  %v2791_v21 = vld [vmem:[%s2766_s14 + $0xc] sm:$0x1]  ;;  %v2794_v22 = vld [vmem:[%s2766_s14 + $0x14] sm:$0x1]  ;;  %v1996_v23 = vcombine.low %v2775_v12, %v2788_v18 }
  0x13   : > { %2302 = vmatpush3.bf16.msra.mxu1 %v2614_v6  ;;  %v2802_v25 = vld [vmem:[%s2766_s14 + $0x4] sm:$0x1]  ;;  %v2805_v26 = vld [vmem:[%s2766_s14 + $0x18] sm:$0xf]  ;;  %v426_v27 = vshrl.u32 %v2775_v12, 16  ;;  %v429_v28 = vshll.u32 %v2775_v12, 16 }
  0x14   : > { %2398 = vmatpush3.bf16.msra.mxu0 %v2615_v7  ;;  %2303 = vmatprep.subr.bf16.mxu1 %v2616_v8  ;;  %v414_v19 = vrot.slane %v412_v15, 4  ;;  %v417_v20 = vrot.slane %v415_v16, 5  ;;  %v435_v30 = vshll.u32 %v2791_v21, 16  ;;  %v440_v31 = vshrl.u32 %v2788_v18, 16  ;;  %v2820_v35 = vld [vmem:[%s2766_s14 + $0x1c] sm:$0x1] }
  0x15   : > { %2399 = vmatprep.subr.bf16.mxu0 %v2617_v9  ;;  %2311 = vmatprep.mubr.bf16.mxu1 %v1904_v14  ;;  %v443_v32 = vshll.u32 %v2788_v18, 16  ;;  %v449_v33 = vshll.u32 %v2794_v22, 16  ;;  %v428_v37 = vrot.slane %v426_v27, 4  ;;  %v431_v38 = vrot.slane %v429_v28, 5  ;;  %v2824_v43 = vld [vmem:[%s2766_s14 + $0x20] sm:$0xf] }
  0x16   : > { %v418_v36 = vor.u32 %v417_v20, %v414_v19  ;;  %v421_v39 = vshll.u32 %v2802_v25, 16  ;;  %v437_v40 = vrot.slane %v435_v30, 5  ;;  %v442_v41 = vrot.slane %v440_v31, 4  ;;  %v2836_v51 = vld [vmem:[%s2766_s14 + $0x24] sm:$0x1]  ;;  %v2630_v20 = vld [vmem:[%s3261_s1 + $0x50] sm:$0xff]  }
  0x17   : > { %2304 = vmatpush3.bf16.msra.mxu1 %v2616_v8  ;;  %v445_v42 = vrot.slane %v443_v32, 5  ;;  %v432_v44 = vor.u32 %v431_v38, %v428_v37  ;;  %v454_v45 = vshrl.u32 %v2805_v26, 16  ;;  %v457_v46 = vshll.u32 %v2805_v26, 16  ;;  %v2629_v28 = vld [vmem:[%s3261_s1 + $0x148] sm:$0xff]   ;;  %v2632_v30 = vld [vmem:[%s3261_s1 + $0x58] sm:$0xff]  }
  0x18   : > { %2400 = vmatpush3.bf16.msra.mxu0 %v2617_v9  ;;  %2305 = vmatprep.subr.bf16.mxu1 %v2618_v10  ;;  %v451_v49 = vrot.slane %v449_v33, 5  ;;  %v463_v50 = vshll.u32 %v2820_v35, 16  ;;  %v419_v52 = vrot.slane %v418_v36, 4  ;;  %v423_v57 = vrot.slane %v421_v39, 5  ;;  %v2628_v9 = vld [vmem:[%s3261_s1 + $0x48] sm:$0xff]  }
  0x19   : > { %2401 = vmatprep.subr.bf16.mxu0 %v2619_v13  ;;  %v446_v48 = vor.u32 %v445_v42, %v442_v41  ;;  %v433_v53 = vrot.slane %v432_v44, 4  ;;  %v456_v54 = vrot.slane %v454_v45, 4  ;;  %v459_v55 = vrot.slane %v457_v46, 5  ;;  %v2895_v32 = vld [vmem:[%s2766_s14 + $0x2c] sm:$0x1]  ;;  %v2631_v45 = vld [vmem:[%s3261_s1 + $0x150] sm:$0xff]  }
  0x1a   : > { %v468_v60 = vshrl.u32 %v2824_v43, 16  ;;  %v471_v61 = vshll.u32 %v2824_v43, 16  ;;  %v465_v0 = vrot.slane %v463_v50, 5  ;;  %v477_v1 = vshll.u32 %v2836_v51, 16  ;;  %v2899_v36 = vld [vmem:[%s2766_s14 + $0x30] sm:$0xf] }
  0x1b   : > { %2306 = vmatpush3.bf16.msra.mxu1 %v2618_v10  ;;  %v447_v58 = vrot.slane %v446_v48, 4  ;;  %v438_v62 = vsel %vm2830_vm2, %v433_v53, %v437_v40  ;;  %v460_v63 = vor.u32 %v459_v55, %v456_v54  ;;  %v2855_v3 = vcombine.low %v2788_v18, %v2805_v26  ;;  %v2902_v37 = vld [vmem:[%s2766_s14 + $0x34] sm:$0x1] }
  0x1c   : > { %2402 = vmatpush3.bf16.msra.mxu0 %v2619_v13  ;;  %2307 = vmatprep.subr.bf16.mxu1 %v2620_v17  ;;  %v470_v4 = vrot.slane %v468_v60, 4  ;;  %v473_v5 = vrot.slane %v471_v61, 5  ;;  %v479_v8 = vrot.slane %v477_v1, 5  ;;  %v1997_v10 = vcombine.low %v2805_v26, %v2824_v43  ;;  %v2928_v60 = vld [vmem:[%s2766_s14 + $0x3c] sm:$0x1] }
  0x1d   : > { %2403 = vmatprep.subr.bf16.mxu0 %v2621_v24  ;;  %v2851_v2 = vsel %vm2830_vm2, %v447_v58, %v451_v49  ;;  %v461_v6 = vrot.slane %v460_v63, 4  ;;  %v424_v16 = vsel %vm2830_vm2, %v419_v52, %v423_v57  ;;  %v491_v39 = vshll.u32 %v2895_v32, 16  ;;  %v2633_v57 = vld [vmem:[%s3261_s1 + $0x158] sm:$0xff]   ;;  %v2931_v61 = vld [vmem:[%s2766_s14 + $0x40] sm:$0xf] }
  0x1e   : > { %v2024_v7 = vcombine.low %v438_v62, %v2851_v2  ;;  %v474_v13 = vor.u32 %v473_v5, %v470_v4  ;;  %v496_v41 = vshrl.u32 %v2899_v36, 16  ;;  %v499_v42 = vshll.u32 %v2899_v36, 16  ;;  %v2634_v63 = vld [vmem:[%s3261_s1 + $0x60] sm:$0xff]  }
  0x1f   : > { %2308 = vmatpush3.bf16.msra.mxu1 %v2620_v17  ;;  %v2865_v14 = vsel %vm2830_vm2, %v461_v6, %v465_v0  ;;  %v694_v17 = vrot.slane %v2791_v21, 5  ;;  %v505_v44 = vshll.u32 %v2902_v37, 16  ;;  %v1945_v48 = vrot.slane %v2775_v12, 9  ;;  %v2637_v21 = vld [vmem:[%s3261_s1 + $0x168] sm:$0xff]  }
  0x20   : > { %2404 = vmatpush3.bf16.msra.mxu0 %v2621_v24  ;;  %2309 = vmatprep.subr.bf16.mxu1 %v2622_v29  ;;  %v475_v15 = vrot.slane %v474_v13, 4  ;;  %v698_v24 = vrot.slane %v2794_v22, 5  ;;  %v1946_v49 = vrot.slane %v2788_v18, 9  ;;  %v493_v52 = vrot.slane %v491_v39, 5  ;;  %v2670_v12 = vld [vmem:[%s3261_s1 + $0xe8] sm:$0xff]   ;;  %v2669_v18 = vld [vmem:[%s3261_s1 + $0x1e0] sm:$0xff]  }
  0x21   : > { %2405 = vmatprep.subr.bf16.mxu0 %v2623_v34  ;;  %2407 = vmatprep.mubr.bf16.mxu0 %v2024_v7  ;;  %v498_v53 = vrot.slane %v496_v41, 4  ;;  %v501_v54 = vrot.slane %v499_v42, 5  ;;  %v507_v55 = vrot.slane %v505_v44, 5  ;;  %v519_v5 = vshll.u32 %v2928_v60, 16  ;;  %v2651_v41 = vld [vmem:[%s3261_s1 + $0x198] sm:$0xff]  }
  0x22   : > { %v2873_v19 = vsel %vm2830_vm2, %v475_v15, %v479_v8  ;;  %v1023_v7 = vshrl.u32 %v2931_v61, 16  ;;  %v1026_v8 = vshll.u32 %v2931_v61, 16 }
  0x23   : > { %2310 = vmatpush3.bf16.msra.mxu1 %v2622_v29  ;;  %v2025_v27 = vcombine.low %v2865_v14, %v2873_v19  ;;  %v2885_v29 = vld [vmem:[%s2766_s14 + $0x28] sm:$0xf]  ;;  %v502_v0 = vor.u32 %v501_v54, %v498_v53  ;;  %v2977_v54 = vsel %vm2956_vm5, %v1946_v49, %v698_v24  ;;  %v702_v49 = vrot.slane %v2820_v35, 5  ;;  %v2644_v35 = vld [vmem:[%s3261_s1 + $0x80] sm:$0xff]  }
  0x24   : > { %2406 = vmatpush3.bf16.msra.mxu0 %v2623_v34  ;;  %2319 = vmatprep.subr.bf16.mxu1 %v2625_v56  ;;  %v2892_v31 = vcombine.low %v2824_v43, %v2885_v29  ;;  %v482_v33 = vshrl.u32 %v2885_v29, 16  ;;  %v1932_v34 = vcombine.low %v424_v16, %v438_v62  ;;  %v485_v38 = vshll.u32 %v2885_v29, 16  ;;  %v2934_v62 = vld [vmem:[%s2766_s14 + $0x44] sm:$0x1] }
  0x25   : > { %2415 = vmatprep.subr.bf16.mxu0 %v2626_v59  ;;  %v1998_v50 = vcombine.low %v2885_v29, %v2899_v36  ;;  %v503_v13 = vrot.slane %v502_v0, 4  ;;  %v1028_v39 = vrot.slane %v1026_v8, 5  ;;  %v2640_v0 = vld [vmem:[%s3261_s1 + $0x170] sm:$0xff]   ;;  %v1950_v8 = vrot.slane %v2899_v36, 9 }
  0x26   : > { %2312 = vmatmul.mubr.bf16.vlgmr.msra.gmra.mrb[0].mxu1 %v2855_v3  ;;  %v484_v40 = vrot.slane %v482_v33, 4  ;;  %v487_v46 = vrot.slane %v485_v38, 5  ;;  %v1025_v38 = vrot.slane %v1023_v7, 4  ;;  %v1186_v7 = vrot.slane %v2934_v62, 5 }
  0x27   : > { %2320 = vmatpush3.bf16.msra.mxu1 %v2625_v56  ;;  %2408 = vmatmul.mubr.bf16.vlgmr.msra.gmra.mrb[0].mxu0 %v2025_v27  ;;  %v2918_v56 = vld [vmem:[%s2766_s14 + $0x38] sm:$0xf]  ;;  %v2635_v27 = vld [vmem:[%s3261_s1 + $0x160] sm:$0xff]  }
  0x28   : > { %2321 = vmatprep.subr.bf16.mxu1 %v2628_v9  ;;  %2416 = vmatpush3.bf16.msra.mxu0 %v2626_v59  ;;  %v488_v58 = vor.u32 %v487_v46, %v484_v40  ;;  %v2925_v59 = vcombine.low %v2899_v36, %v2918_v56  ;;  %v510_v1 = vshrl.u32 %v2918_v56, 16  ;;  %v513_v4 = vshll.u32 %v2918_v56, 16  ;;  %v2688_v36 = vld [vmem:[%s3261_s1 + $0x238] sm:$0xff]  }
  0x29   : > { %2417 = vmatprep.subr.bf16.mxu0 %v2629_v28  ;;  %2315 = vmatprep.mubr.bf16.mxu1 %v2892_v31  ;;  %v1029_v44 = vor.u32 %v1028_v39, %v1025_v38  ;;  %v1999_v46 = vcombine.low %v2918_v56, %v2931_v61  ;;  %v690_v39 = vrot.slane %v2802_v25, 5 }
  0x2a   : > { %v489_v6 = vrot.slane %v488_v58, 4  ;;  %v512_v15 = vrot.slane %v510_v1, 4  ;;  %v515_v16 = vrot.slane %v513_v4, 5  ;;  %v2643_v1 = vld [vmem:[%s3261_s1 + $0x178] sm:$0xff]   ;;  %v1949_v4 = vrot.slane %v2885_v29, 9  ;;  %v2687_v29 = vld [vmem:[%s3261_s1 + $0x230] sm:$0xff]  }
  0x2b   : > { %2322 = vmatpush3.bf16.msra.mxu1 %v2628_v9  ;;  %v1032_v9 = vshll.u32 %v2934_v62, 16  ;;  %v1030_v53 = vrot.slane %v1029_v44, 4 }
  0x2c   : > { %2323 = vmatprep.subr.bf16.mxu1 %v2630_v20  ;;  %2418 = vmatpush3.bf16.msra.mxu0 %v2629_v28  ;;  %v2636_v28 = vld [vmem:[%s3261_s1 + $0x68] sm:$0xff]   ;;  %v494_v33 = vsel %vm2830_vm2, %v489_v6, %v493_v52  ;;  %v2036_v6 = vrot.slane %v2931_v61, 9 }
  0x2d   : > { %2419 = vmatprep.subr.bf16.mxu0 %v2631_v45  ;;  %v1034_v40 = vrot.slane %v1032_v9, 5  ;;  %v714_v9 = vrot.slane %v2902_v37, 5  ;;  %v2646_v37 = vld [vmem:[%s3261_s1 + $0x88] sm:$0xff]  }
  0x2e   : > { %2316 = vmatmul.mubr.bf16.gmra.mrb[4].mxu1 %v2925_v59 }
  0x2f   : > { %2324 = vmatpush3.bf16.msra.mxu1 %v2630_v20  ;;  %v521_v20 = vrot.slane %v519_v5, 5  ;;  %2335 = vmatprep.mubr.bf16.mxu1 %v1932_v34  ;;  %v516_v34 = vor.u32 %v515_v16, %v512_v15  ;;  %v2991_v22 = vsel %vm2830_vm2, %v1030_v53, %v1034_v40  ;;  %v710_v5 = vrot.slane %v2895_v32, 5  ;;  %v238_v15 = vld [vmem:[%s2766_s14 + $0x4c] sm:$0x1]  ;;  %v2648_v53 = vld [vmem:[%s3261_s1 + $0x90] sm:$0xff]  }
  0x30   : > { %2325 = vmatprep.subr.bf16.mxu1 %v2632_v30  ;;  %2420 = vmatpush3.bf16.msra.mxu0 %v2631_v45  ;;  %v2971_v45 = vsel %vm2956_vm5, %v1945_v48, %v694_v17  ;;  %v1944_v48 = vrot.slane %v2772_v11, 9  ;;  %v1947_v11 = vrot.slane %v2805_v26, 9  ;;  %v3026_v16 = vcombine.low %v2851_v2, %v2865_v14  ;;  %v2684_v26 = vld [vmem:[%s3261_s1 + $0x218] sm:$0xff]  }
  0x31   : > { %2421 = vmatprep.subr.bf16.mxu0 %v2633_v57  ;;  %v517_v52 = vrot.slane %v516_v34, 4  ;;  %v2053_v24 = vcombine.low %v2971_v45, %v2977_v54  ;;  %v3046_v14 = vsel %vm2956_vm5, %v2036_v6, %v1186_v7  ;;  %v3066_v25 = vsel %vm2956_vm5, %v1950_v8, %v714_v9  ;;  %v2655_v6 = vld [vmem:[%s3261_s1 + $0x1a8] sm:$0xff]   ;;  %v2658_v7 = vld [vmem:[%s3261_s1 + $0xb8] sm:$0xff]   ;;  %v2660_v8 = vld [vmem:[%s3261_s1 + $0xc0] sm:$0xff]  }
  0x32   : > { %v2659_v9 = vld [vmem:[%s3261_s1 + $0x1b8] sm:$0xff]  }
  0x33   : > { %2326 = vmatpush3.bf16.msra.mxu1 %v2632_v30  ;;  %v2962_v30 = vsel %vm2830_vm2, %v503_v13, %v507_v55  ;;  %v2639_v55 = vld [vmem:[%s3261_s1 + $0x70] sm:$0xff]   ;;  %v2984_v58 = vsel %vm2830_vm2, %v517_v52, %v521_v20  ;;  %v3021_v13 = vld [vmem:[%s2766_s14 + $0x48] sm:$0xf]  ;;  %v1635_v20 = vrot.slane %v238_v15, 5 }
  0x34   : > { %2327 = vmatprep.subr.bf16.mxu1 %v2634_v63  ;;  %v2026_v42 = vcombine.low %v494_v33, %v2962_v30  ;;  %2422 = vmatpush3.bf16.msra.mxu0 %v2633_v57  ;;  %v2027_v17 = vcombine.low %v2984_v58, %v2991_v22  ;;  %v706_v57 = vrot.slane %v2836_v51, 5  ;;  %v1948_v51 = vrot.slane %v2824_v43, 9  ;;  %v2685_v43 = vld [vmem:[%s3261_s1 + $0x220] sm:$0xff]  }
  0x35   : > { %2423 = vmatprep.subr.bf16.mxu0 %v2635_v27  ;;  %v2115_v32 = vrot.slane %v3021_v13, 9  ;;  %v1478_v2 = vshrl.u32 %v3021_v13, 16  ;;  %v1481_v40 = vshll.u32 %v3021_v13, 16 }
  0x36   : > { %2411 = vmatprep.mubr.bf16.mxu0 %v2026_v42  ;;  %v3035_v62 = vsel %vm2956_vm5, %v1948_v51, %v706_v57  ;;  %v3062_v42 = vsel %vm2956_vm5, %v1949_v4, %v710_v5  ;;  %v2647_v57 = vld [vmem:[%s3261_s1 + $0x188] sm:$0xff]   ;;  %v2653_v4 = vld [vmem:[%s3261_s1 + $0x1a0] sm:$0xff]   ;;  %v2656_v5 = vld [vmem:[%s3261_s1 + $0xb0] sm:$0xff]  }
  0x37   : > { %2328 = vmatpush3.bf16.msra.mxu1 %v2634_v63  ;;  %v2642_v63 = vld [vmem:[%s3261_s1 + $0x78] sm:$0xff]   ;;  %2412 = vmatmul.mubr.bf16.gmra.mrb[4].mxu0 %v2027_v17  ;;  %v3050_v38 = vsel %vm2956_vm5, %v2115_v32, %v1635_v20  ;;  %v1480_v34 = vrot.slane %v1478_v2, 4  ;;  %v1483_v44 = vrot.slane %v1481_v40, 5  ;;  %v718_v17 = vrot.slane %v2928_v60, 5  ;;  %v2662_v20 = vld [vmem:[%s3261_s1 + $0xc8] sm:$0xff]   ;;  %v2668_v40 = vld [vmem:[%s3261_s1 + $0xe0] sm:$0xff]  }
  0x38   : > { %2329 = vmatprep.subr.bf16.mxu1 %v2636_v28  ;;  %2424 = vmatpush3.bf16.msra.mxu0 %v2635_v27  ;;  %v3031_v27 = vsel %vm2956_vm5, %v1947_v11, %v702_v49  ;;  %v3085_v11 = vcombine.low %v2962_v30, %v2984_v58  ;;  %v2649_v30 = vld [vmem:[%s3261_s1 + $0x190] sm:$0xff]   ;;  %v3140_v32 = vcombine.low %v3035_v62, %v3062_v42  ;;  %v2666_v2 = vld [vmem:[%s3261_s1 + $0xd8] sm:$0xff]  }
  0x39   : > { %2425 = vmatprep.subr.bf16.mxu0 %v2637_v21  ;;  %2431 = vmatprep.mubr.bf16.mxu0 %v2053_v24  ;;  %v2054_v52 = vcombine.low %v3031_v27, %v3035_v62  ;;  %v691_v24 = vsel %vm2956_vm5, %v1944_v48, %v690_v39  ;;  %v1484_v49 = vor.u32 %v1483_v44, %v1480_v34  ;;  %v2650_v48 = vld [vmem:[%s3261_s1 + $0x98] sm:$0xff]   ;;  %v2665_v39 = vld [vmem:[%s3261_s1 + $0x1d0] sm:$0xff]   ;;  %v2679_v34 = vld [vmem:[%s3261_s1 + $0x200] sm:$0xff]  }
  0x3a   : > { %v1968_v60 = vcombine.low %v691_v24, %v2971_v45  ;;  %v2683_v44 = vld [vmem:[%s3261_s1 + $0x210] sm:$0xff]  }
  0x3b   : > { %2330 = vmatpush3.bf16.msra.mxu1 %v2636_v28  ;;  %v3041_v28 = vcombine.low %v2873_v19, %v494_v33  ;;  %v2645_v19 = vld [vmem:[%s3261_s1 + $0x180] sm:$0xff]   ;;  %v2132_v33 = vcombine.low %v3046_v14, %v3050_v38 }
  0x3c   : > { %2331 = vmatprep.subr.bf16.mxu1 %v2639_v55  ;;  %2426 = vmatpush3.bf16.msra.mxu0 %v2637_v21  ;;  %v1951_v21 = vrot.slane %v2918_v56, 9 }
  0x3d   : > { %2427 = vmatprep.subr.bf16.mxu0 %v2640_v0 }
  0x3e   : > { %v719_v51 = vsel %vm2956_vm5, %v1951_v21, %v718_v17 }
  0x3f   : > { %2332 = vmatpush3.bf16.msra.mxu1 %v2639_v55  ;;  %v1487_v55 = vshll.u32 %v238_v15, 16  ;;  %v2056_v58 = vcombine.low %v719_v51, %v3046_v14  ;;  %v3136_v15 = vcombine.low %v2977_v54, %v3031_v27  ;;  %v2664_v54 = vld [vmem:[%s3261_s1 + $0xd0] sm:$0xff]   ;;  %v2663_v27 = vld [vmem:[%s3261_s1 + $0x1c8] sm:$0xff]   ;;  %v3157_v62 = vcombine.low %v3066_v25, %v719_v51 }
  0x40   : > { %2333 = vmatprep.subr.bf16.mxu1 %v2642_v63  ;;  %2428 = vmatpush3.bf16.msra.mxu0 %v2640_v0  ;;  %v2182_v51 = vld [vmem:[%s212_s27 + $0x10] sm:$0xff]  }
  0x41   : > { %2429 = vmatprep.subr.bf16.mxu0 %v2643_v1  ;;  %v1489_v0 = vrot.slane %v1487_v55, 5 }
  0x43   : > { %2334 = vmatpush3.bf16.msra.mxu1 %v2642_v63  ;;  %v2055_v63 = vcombine.low %v3062_v42, %v3066_v25  ;;  %v2676_v42 = vld [vmem:[%s3261_s1 + $0x1f8] sm:$0xff]   ;;  %v2680_v25 = vld [vmem:[%s3261_s1 + $0x208] sm:$0xff]  }
  0x44   : > { %2343 = vmatprep.subr.bf16.mxu1 %v2644_v35  ;;  %2430 = vmatpush3.bf16.msra.mxu0 %v2643_v1 }
  0x45   : > { %2439 = vmatprep.subr.bf16.mxu0 %v2645_v19 }
  0x46   : > { %2336 = vmatmul.mubr.bf16.vlgmr.msra.gmra.mrb[0].mxu1 %v3026_v16 }
  0x47   : > { %2344 = vmatpush3.bf16.msra.mxu1 %v2644_v35  ;;  %2339 = vmatprep.mubr.bf16.mxu1 %v3041_v28  ;;  %v1485_v35 = vrot.slane %v1484_v49, 4 }
  0x48   : > { %2345 = vmatprep.subr.bf16.mxu1 %v2646_v37  ;;  %2432 = vmatmul.mubr.bf16.vlgmr.msra.gmra.mrb[0].mxu0 %v2054_v52  ;;  %v1903_v52 = vld [vmem:[%s3262_s2] ss:$0 sm:$0xff] }
  0x49   : > { %2440 = vmatpush3.bf16.msra.mxu0 %v2645_v19  ;;  %v1490_v1 = vsel %vm2830_vm2, %v1485_v35, %v1489_v0  ;;  %2435 = vmatprep.mubr.bf16.mxu0 %v2055_v63  ;;  %v2675_v19 = vld [vmem:[%s3261_s1 + $0xf8] sm:$0xff]  }
  0x4a   : > { %2441 = vmatprep.subr.bf16.mxu0 %v2647_v57  ;;  %v3099_v45 = vcombine.low %v2991_v22, %v1490_v1  ;;  %v2654_v22 = vld [vmem:[%s3261_s1 + $0xa8] sm:$0xff]  }
  0x4b   : > { %2346 = vmatpush3.bf16.msra.mxu1 %v2646_v37  ;;  %v2661_v37 = vld [vmem:[%s3261_s1 + $0x1c0] sm:$0xff]  }
  0x4c   : > { %2347 = vmatprep.subr.bf16.mxu1 %v2648_v53 }
  0x4d   : > { %2442 = vmatpush3.bf16.msra.mxu0 %v2647_v57 }
  0x4e   : > { %2340 = vmatmul.mubr.bf16.gmra.mrb[4].mxu1 %v3085_v11  ;;  %2443 = vmatprep.subr.bf16.mxu0 %v2649_v30 }
  0x4f   : > { %2348 = vmatpush3.bf16.msra.mxu1 %v2648_v53  ;;  %2359 = vmatprep.mubr.bf16.mxu1 %v1968_v60 }
  0x50   : > { %2349 = vmatprep.subr.bf16.mxu1 %v2650_v48  ;;  %2436 = vmatmul.mubr.bf16.gmra.mrb[4].mxu0 %v2056_v58  ;;  %v2181_v58 = vld [vmem:[%s212_s27 + $0x8] sm:$0xff]  }
  0x51   : > { %2444 = vmatpush3.bf16.msra.mxu0 %v2649_v30  ;;  %2455 = vmatprep.mubr.bf16.mxu0 %v2855_v3  ;;  %v2657_v3 = vld [vmem:[%s3261_s1 + $0x1b0] sm:$0xff]  }
  0x52   : > { %2445 = vmatprep.subr.bf16.mxu0 %v2651_v41 }
  0x53   : > { %2350 = vmatpush3.bf16.msra.mxu1 %v2650_v48  ;;  %v2183_v48 = vld [vmem:[%s212_s27 + $0x18] sm:$0xff]  }
  0x54   : > { %2351 = vmatprep.subr.bf16.mxu1 %v2652_v47  ;;  %v2159_v1 = vunpack.c.l.bf16 %v2183_v48 }
  0x55   : > { %2446 = vmatpush3.bf16.msra.mxu0 %v2651_v41 }
  0x56   : > { %2447 = vmatprep.subr.bf16.mxu0 %v2653_v4 }
  0x57   : > { %2352 = vmatpush3.bf16.msra.mxu1 %v2652_v47 }
  0x58   : > { %2353 = vmatprep.subr.bf16.mxu1 %v2654_v22 }
  0x59   : > { %2448 = vmatpush3.bf16.msra.mxu0 %v2653_v4  ;;  %v2146_v4 = vld [vmem:[%s212_s27] sm:$0xff]  }
  0x5a   : > { %2449 = vmatprep.subr.bf16.mxu0 %v2655_v6 }
  0x5b   : > { %2354 = vmatpush3.bf16.msra.mxu1 %v2654_v22  ;;  %v2160_v22 = vunpack.c.h.bf16 %v2183_v48 }
  0x5c   : > { %2355 = vmatprep.subr.bf16.mxu1 %v2656_v5 }
  0x5d   : > { %2450 = vmatpush3.bf16.msra.mxu0 %v2655_v6 }
  0x5e   : > { %2451 = vmatprep.subr.bf16.mxu0 %v2657_v3 }
  0x5f   : > { %2356 = vmatpush3.bf16.msra.mxu1 %v2656_v5 }
  0x60   : > { %2357 = vmatprep.subr.bf16.mxu1 %v2658_v7 }
  0x61   : > { %2452 = vmatpush3.bf16.msra.mxu0 %v2657_v3 }
  0x62   : > { %2453 = vmatprep.subr.bf16.mxu0 %v2659_v9 }
  0x63   : > { %2358 = vmatpush3.bf16.msra.mxu1 %v2658_v7  ;;  %v2156_v7 = vunpack.c.h.bf16 %v2182_v51 }
  0x64   : > { %2367 = vmatprep.subr.bf16.mxu1 %v2660_v8 }
  0x65   : > { %2454 = vmatpush3.bf16.msra.mxu0 %v2659_v9 }
  0x66   : > { %2360 = vmatmul.mubr.bf16.vlgmr.msra.gmra.mrb[0].mxu1 %v3136_v15  ;;  %2463 = vmatprep.subr.bf16.mxu0 %v2661_v37 }
  0x67   : > { %2368 = vmatpush3.bf16.msra.mxu1 %v2660_v8  ;;  %2363 = vmatprep.mubr.bf16.mxu1 %v3140_v32 }
  0x68   : > { %2369 = vmatprep.subr.bf16.mxu1 %v2662_v20  ;;  %2456 = vmatmul.mubr.bf16.vlgmr.msra.gmra.mrb[0].mxu0 %v2892_v31  ;;  %v2081_v31 = vcombine.low %v2931_v61, %v3021_v13  ;;  %v2671_v13 = vld [vmem:[%s3261_s1 + $0x1e8] sm:$0xff]  }
  0x69   : > { %2464 = vmatpush3.bf16.msra.mxu0 %v2661_v37  ;;  %2459 = vmatprep.mubr.bf16.mxu0 %v2925_v59  ;;  %v2667_v59 = vld [vmem:[%s3261_s1 + $0x1d8] sm:$0xff]  }
  0x6a   : > { %2465 = vmatprep.subr.bf16.mxu0 %v2663_v27 }
  0x6b   : > { %2370 = vmatpush3.bf16.msra.mxu1 %v2662_v20 }
  0x6c   : > { %2371 = vmatprep.subr.bf16.mxu1 %v2664_v54 }
  0x6d   : > { %2466 = vmatpush3.bf16.msra.mxu0 %v2663_v27 }
  0x6e   : > { %2364 = vmatmul.mubr.bf16.gmra.mrb[4].mxu1 %v3157_v62  ;;  %2467 = vmatprep.subr.bf16.mxu0 %v2665_v39 }
  0x6f   : > { %2372 = vmatpush3.bf16.msra.mxu1 %v2664_v54  ;;  %2383 = vmatprep.mubr.bf16.mxu1 %v1996_v23  ;;  %v2672_v23 = vld [vmem:[%s3261_s1 + $0xf0] sm:$0xff]  }
  0x70   : > { %2373 = vmatprep.subr.bf16.mxu1 %v2666_v2  ;;  %2460 = vmatmul.mubr.bf16.gmra.mrb[4].mxu0 %v2081_v31 }
  0x71   : > { %2468 = vmatpush3.bf16.msra.mxu0 %v2665_v39  ;;  %2479 = vmatprep.mubr.bf16.mxu0 %v3026_v16  ;;  %v2674_v16 = vld [vmem:[%s3261_s1 + $0x1f0] sm:$0xff]  }
  0x72   : > { %2469 = vmatprep.subr.bf16.mxu0 %v2667_v59 }
  0x73   : > { %2374 = vmatpush3.bf16.msra.mxu1 %v2666_v2  ;;  %v2152_v2 = vunpack.c.h.bf16 %v2181_v58 }
  0x74   : > { %2375 = vmatprep.subr.bf16.mxu1 %v2668_v40 }
  0x75   : > { %2470 = vmatpush3.bf16.msra.mxu0 %v2667_v59 }
  0x76   : > { %2471 = vmatprep.subr.bf16.mxu0 %v2669_v18 }
  0x77   : > { %2376 = vmatpush3.bf16.msra.mxu1 %v2668_v40 }
  0x78   : > { %2377 = vmatprep.subr.bf16.mxu1 %v2670_v12 }
  0x79   : > { %2472 = vmatpush3.bf16.msra.mxu0 %v2669_v18 }
  0x7a   : > { %2473 = vmatprep.subr.bf16.mxu0 %v2671_v13 }
  0x7b   : > { %2378 = vmatpush3.bf16.msra.mxu1 %v2670_v12  ;;  %v2148_v12 = vunpack.c.h.bf16 %v2146_v4 }
  0x7c   : > { %2379 = vmatprep.subr.bf16.mxu1 %v2672_v23 }
  0x7d   : > { %2474 = vmatpush3.bf16.msra.mxu0 %v2671_v13 }
  0x7e   : > { %2475 = vmatprep.subr.bf16.mxu0 %v2674_v16 }
  0x7f   : > { %2380 = vmatpush3.bf16.msra.mxu1 %v2672_v23 }
  0x80   : > { %2381 = vmatprep.subr.bf16.mxu1 %v2675_v19 }
  0x81   : > { %2476 = vmatpush3.bf16.msra.mxu0 %v2674_v16 }
  0x82   : > { %2477 = vmatprep.subr.bf16.mxu0 %v2676_v42 }
  0x83   : > { %2382 = vmatpush3.bf16.msra.mxu1 %v2675_v19 }
  0x84   : > { %2511 = vmatprep.subr.bf16.mxu1 %v2679_v34 }
  0x85   : > { %2478 = vmatpush3.bf16.msra.mxu0 %v2676_v42 }
  0x86   : > { %2384 = vmatmul.mubr.bf16.vlgmr.msra.gmra.mrb[0].mxu1 %v1997_v10  ;;  %2487 = vmatprep.subr.bf16.mxu0 %v2679_v34  ;;  %v2686_v10 = vld [vmem:[%s3261_s1 + $0x228] sm:$0xff]  }
  0x87   : > { %2519 = vmatpush3.bf16.msra.mxu1 %v2679_v34  ;;  %2387 = vmatprep.mubr.bf16.mxu1 %v1998_v50 }
  0x88   : > { %2512 = vmatprep.subr.bf16.mxu1 %v2680_v25  ;;  %2480 = vmatmul.mubr.bf16.vlgmr.msra.gmra.mrb[0].mxu0 %v3041_v28 }
  0x89   : > { %2488 = vmatpush3.bf16.msra.mxu0 %v2679_v34  ;;  %2483 = vmatprep.mubr.bf16.mxu0 %v3085_v11 }
  0x8a   : > { %2489 = vmatprep.subr.bf16.mxu0 %v2680_v25 }
  0x8b   : > { %2520 = vmatpush3.bf16.msra.mxu1 %v2680_v25 }
  0x8c   : > { %2513 = vmatprep.subr.bf16.mxu1 %v2683_v44 }
  0x8d   : > { %2490 = vmatpush3.bf16.msra.mxu0 %v2680_v25 }
  0x8e   : > { %2388 = vmatmul.mubr.bf16.gmra.mrb[4].mxu1 %v1999_v46  ;;  %2491 = vmatprep.subr.bf16.mxu0 %v2683_v44 }
  0x8f   : > { %2521 = vmatpush3.bf16.msra.mxu1 %v2683_v44  ;;  %2507 = vmatprep.mubr.bf16.mxu1 %v3157_v62  ;;  %v2147_v62 = vunpack.c.l.bf16 %v2146_v4 }
  0x90   : > { %2514 = vmatprep.subr.bf16.mxu1 %v2684_v26  ;;  %2484 = vmatmul.mubr.bf16.gmra.mrb[4].mxu0 %v3099_v45  ;;  %v2155_v45 = vunpack.c.l.bf16 %v2182_v51 }
  0x91   : > { %2492 = vmatpush3.bf16.msra.mxu0 %v2683_v44  ;;  %2503 = vmatprep.mubr.bf16.mxu0 %v3136_v15 }
  0x92   : > { %2493 = vmatprep.subr.bf16.mxu0 %v2684_v26 }
  0x93   : > { %2522 = vmatpush3.bf16.msra.mxu1 %v2684_v26 }
  0x94   : > { %2515 = vmatprep.subr.bf16.mxu1 %v2685_v43 }
  0x95   : > { %2494 = vmatpush3.bf16.msra.mxu0 %v2684_v26 }
  0x96   : > { %2495 = vmatprep.subr.bf16.mxu0 %v2685_v43 }
  0x97   : > { %2523 = vmatpush3.bf16.msra.mxu1 %v2685_v43 }
  0x98   : > { %2516 = vmatprep.subr.bf16.mxu1 %v2686_v10 }
  0x99   : > { %2496 = vmatpush3.bf16.msra.mxu0 %v2685_v43 }
  0x9a   : > { %2497 = vmatprep.subr.bf16.mxu0 %v2686_v10 }
  0x9b   : > { %2524 = vmatpush3.bf16.msra.mxu1 %v2686_v10 }
  0x9c   : > { %2517 = vmatprep.subr.bf16.mxu1 %v2687_v29 }
  0x9d   : > { %2498 = vmatpush3.bf16.msra.mxu0 %v2686_v10 }
  0x9e   : > { %2499 = vmatprep.subr.bf16.mxu0 %v2687_v29 }
  0x9f   : > { %2525 = vmatpush3.bf16.msra.mxu1 %v2687_v29 }
  0xa0   : > { %2518 = vmatprep.subr.bf16.mxu1 %v2688_v36 }
  0xa1   : > { %2500 = vmatpush3.bf16.msra.mxu0 %v2687_v29 }
  0xa2   : > { %2501 = vmatprep.subr.bf16.mxu0 %v2688_v36 }
  0xa3   : > { %2526 = vmatpush3.bf16.msra.mxu1 %v2688_v36 }
  0xa5   : > { %2502 = vmatpush3.bf16.msra.mxu0 %v2688_v36 }
  0xa6   : > { %2508 = vmatmul.mubr.bf16.vlgmr.msra.gmra.mrb[8].mxu1 %v2132_v33 }
  0xa8   : > { %2504 = vmatmul.mubr.bf16.vlgmr.msra.gmra.mrb[0].mxu0 %v3140_v32  ;;  %v2151_v32 = vunpack.c.l.bf16 %v2181_v58 }
 0x159   : > { %v2385_v50 = vpop.f32.mrb[0].mxu1 }
 0x15a   : > { %v983_v56 = vpop.f32.mrb[1].mxu1  ;;  %v2527_v15 = vadd.f32 %v2385_v50, %v1903_v52 }
 0x15b   : > { %v2386_v61 = vpop.f32.mrb[2].mxu1  ;;  %v2529_v54 = vadd.f32 %v1903_v52, %v983_v56 }
 0x15c   : > { %v986_v46 = vpop.f32.mrb[3].mxu1  ;;  %v2531_v31 = vadd.f32 %v2386_v61, %v1903_v52 }
 0x15d   : > { %v2533_v23 = vadd.f32 %v1903_v52, %v986_v46 }
 0x161   : > { %v2389_v28 = vpop.f32.mrb[4].mxu1 }
 0x162   : > { %v999_v53 = vpop.f32.mrb[5].mxu1  ;;  %v2535_v55 = vadd.f32 %v2389_v28, %v1903_v52 }
 0x163   : > { %v2390_v21 = vpop.f32.mrb[6].mxu1  ;;  %v2538_v17 = vadd.f32 %v1903_v52, %v999_v53  ;;  %v2485_v33 = vpop.f32.mrb[4].mxu0 }
 0x164   : > { %v1002_v14 = vpop.f32.mrb[7].mxu1  ;;  %v2541_v38 = vadd.f32 %v2390_v21, %v1903_v52  ;;  %v2536_v49 = vadd.f32 %v2535_v55, %v2485_v33  ;;  %v1609_v57 = vpop.f32.mrb[5].mxu0 }
 0x165   : > { %v2544_v24 = vadd.f32 %v1903_v52, %v1002_v14  ;;  %v2539_v63 = vadd.f32 %v2538_v17, %v1609_v57  ;;  %v2486_v0 = vpop.f32.mrb[6].mxu0 }
 0x166   : > { %v2542_v11 = vadd.f32 %v2541_v38, %v2486_v0  ;;  %v1612_v35 = vpop.f32.mrb[7].mxu0 }
 0x167   : > { %v2545_v60 = vadd.f32 %v2544_v24, %v1612_v35 }
 0x179   : > { %v2509_v30 = vpop.f32.mrb[8].mxu1 }
 0x17a   : > { %v2537_v47 = vadd.f32 %v2536_v49, %v2509_v30  ;;  %v1755_v41 = vpop.f32.mrb[9].mxu1 }
 0x17b   : > { %v2540_v5 = vadd.f32 %v2539_v63, %v1755_v41  ;;  %v2510_v6 = vpop.f32.mrb[10].mxu1  ;;  %v2505_v27 = vpop.f32.mrb[0].mxu0 }
 0x17c   : > { %v1800_v3 = vadd.f32 %v2537_v47, %v2159_v1  ;;  %v2543_v8 = vadd.f32 %v2542_v11, %v2510_v6  ;;  %v1758_v9 = vpop.f32.mrb[11].mxu1  ;;  %v2528_v40 = vadd.f32 %v2527_v15, %v2505_v27  ;;  %v1739_v59 = vpop.f32.mrb[1].mxu0 }
 0x17d   : > { %v1798_v20 = vadd.f32 %v2540_v5, %v2155_v45  ;;  %v2546_v37 = vadd.f32 %v2545_v60, %v1758_v9  ;;  %v2530_v19 = vadd.f32 %v2529_v54, %v1739_v59  ;;  %v2506_v16 = vpop.f32.mrb[2].mxu0 }
 0x17e   : > { %v1801_v39 = vadd.f32 %v2543_v8, %v2160_v22  ;;  %v1808_v13 = vmax.f32 %v1800_v3, 0.0  ;;  %v1796_v42 = vadd.f32 %v2528_v40, %v2151_v32  ;;  %v2532_v44 = vadd.f32 %v2531_v31, %v2506_v16  ;;  %v1742_v26 = vpop.f32.mrb[3].mxu0 }
 0x17f   : > { %v1799_v18 = vadd.f32 %v2546_v37, %v2156_v7  ;;  %v1806_v25 = vmax.f32 %v1798_v20, 0.0  ;;  %v1794_v10 = vadd.f32 %v2530_v19, %v2147_v62  ;;  %v2534_v36 = vadd.f32 %v2533_v23, %v1742_v26 }
 0x180   : > { %v1809_v34 = vmax.f32 %v1801_v39, 0.0  ;;  %v1797_v50 = vadd.f32 %v2532_v44, %v2152_v2  ;;  %v1804_v46 = vmax.f32 %v1796_v42, 0.0 }
 0x181   : > { %v1807_v43 = vmax.f32 %v1799_v18, 0.0  ;;  %v1795_v61 = vadd.f32 %v2534_v36, %v2148_v12  ;;  %v1802_v52 = vmax.f32 %v1794_v10, 0.0 }
 0x182   : > { %v2179_v29 = vpack.c.bf16 %v1809_v34, %v1808_v13  ;;  %v1805_v28 = vmax.f32 %v1797_v50, 0.0 }
 0x183   : > { %v2174_v56 = vpack.c.bf16 %v1807_v43, %v1806_v25  ;;  %v1803_v53 = vmax.f32 %v1795_v61, 0.0 }
 0x184   : > { %2186 = vst [vmem:[%s217_s30 + $0x18] sm:$0xff] %v2179_v29   ;;  %v2169_v55 = vpack.c.bf16 %v1805_v28, %v1804_v46 }
 0x185   : > { %2185 = vst [vmem:[%s217_s30 + $0x10] sm:$0xff] %v2174_v56   ;;  %v2164_v21 = vpack.c.bf16 %v1803_v53, %v1802_v52 }
 0x186   : > { %2184 = vst [vmem:[%s217_s30 + $0x8] sm:$0xff] %v2169_v55  }
 0x187   : > { %2165 = vst [vmem:[%s217_s30] sm:$0xff] %v2164_v21  }
 0x188 PF: > { %s14_s15 = sadd.s32 1, %s2695_s15  }
 0x189   : > { %p11_p4 = scmp.ge.s32.totalorder %s14_s15, 4  }
 0x18b   :  { %13 = sbr.rel (!%p11_p4) target bundleno = 1 (0x1), region = 77 }

// kernel: my_resnet_forward.29
= control target key start
LH: loop header
LB: loop body
LE: loop exit
PB: predicated region body
PF: predicated region fallthrough
CT: control target
= control target key end

     0   :  { %s2612_s12 = smov 0   ;;  %s3143_s0 = inlined_call_operand.vmem [shape: bf16[2,10,10,128], index: 0, kind: input, shape index: {}]   ;;  %s3144_s1 = inlined_call_operand.vmem [shape: bf16[9,128,128], index: 1, kind: input, shape index: {}]   ;;  %s3145_s2 = inlined_call_operand.vmem [shape: f32[1,128], index: 2, kind: input, shape index: {}]   ;;  %s3146_s3 = inlined_call_operand.vmem [shape: bf16[2,8,8,128], index: 3, kind: output, shape index: {}]  }
   0x1 LB: > { %s1810_s13 = sadd.s32 4294967295, %s2590_s12   ;;  %p1814_p0 = scmp.ge.s32.totalorder %s2590_s12, 1  ;;  %s2590_s12 = sphi %s2612_s12, %s13_s12  }
   0x2   : > { %p137_p1 = scmp.lt.s32.totalorder %s2590_s12, 3 }
   0x4   : > { %p138_p2 = pnand %p1814_p0, %p137_p1 }
   0x5   : > { %v2503_v0 = vld [vmem:[%s3144_s1] sm:$0xff] (!%p138_p2)   ;;  %p161_p3 = scmp.lt.s32.totalorder (!%p138_p2), %s1810_s13, 1  ;;  %v2505_v2 = vld [vmem:[%s3144_s1 + $0x8] sm:$0xff] (!%p138_p2)   ;;  %v2507_v4 = vld [vmem:[%s3144_s1 + $0x10] sm:$0xff] (!%p138_p2)   ;;  %vm361_vm0 = vsmask.f32 (!%p138_p2), 3328 }
   0x6   : > { %141 = sbr.rel (%p138_p2) target bundleno = 390 (0x186), region = 32  ;;  %v2504_v1 = vld [vmem:[%s3144_s1 + $0x100] sm:$0xff] (!%p138_p2)   ;;  %2190 = vmatprep.subr.bf16.mxu1 (!%p138_p2), %v2503_v0  ;;  %v2506_v3 = vld [vmem:[%s3144_s1 + $0x108] sm:$0xff] (!%p138_p2)   ;;  %v2508_v5 = vld [vmem:[%s3144_s1 + $0x110] sm:$0xff] (!%p138_p2)   ;;  %vm362_vm1 = vsmask.f32 (!%p138_p2), 7440 }
   0x7   : > { %2286 = vmatprep.subr.bf16.mxu0 (!%p138_p2), %v2504_v1  ;;  %2191 = vmatpush3.bf16.msra.mxu1 (!%p138_p2), %v2503_v0  ;;  %v2509_v6 = vld [vmem:[%s3144_s1 + $0x18] sm:$0xff] (!%p138_p2)   ;;  %v2511_v8 = vld [vmem:[%s3144_s1 + $0x20] sm:$0xff] (!%p138_p2)   ;;  %v2513_v10 = vld [vmem:[%s3144_s1 + $0x28] sm:$0xff] (!%p138_p2)   ;;  %vm638_vm3 = vcmask (!%p138_p2), 1042432   ;;  %vm639_vm4 = vcmask (!%p138_p2), 1046532  }
   0x8   : > { %2287 = vmatpush3.bf16.msra.mxu0 (!%p138_p2), %v2504_v1  ;;  %2192 = vmatprep.subr.bf16.mxu1 (!%p138_p2), %v2505_v2  ;;  %v2510_v7 = vld [vmem:[%s3144_s1 + $0x118] sm:$0xff] (!%p138_p2)   ;;  %v2512_v9 = vld [vmem:[%s3144_s1 + $0x120] sm:$0xff] (!%p138_p2)   ;;  %v2514_v13 = vld [vmem:[%s3144_s1 + $0x128] sm:$0xff] (!%p138_p2)  }
   0x9   : > { %2288 = vmatprep.subr.bf16.mxu0 (!%p138_p2), %v2506_v3  ;;  %v2515_v17 = vld [vmem:[%s3144_s1 + $0x30] sm:$0xff] (!%p138_p2)   ;;  %v2517_v29 = vld [vmem:[%s3144_s1 + $0x38] sm:$0xff] (!%p138_p2)   ;;  %vm2720_vm2 = vmor (!%p138_p2), %vm361_vm0, %vm362_vm1 }
   0xa   : > { %v2516_v24 = vld [vmem:[%s3144_s1 + $0x130] sm:$0xff] (!%p138_p2)   ;;  %v2518_v34 = vld [vmem:[%s3144_s1 + $0x138] sm:$0xff] (!%p138_p2)   ;;  %v2520_v56 = vld [vmem:[%s3144_s1 + $0x40] sm:$0xff] (!%p138_p2)  }
   0xb   : > { %2193 = vmatpush3.bf16.msra.mxu1 (!%p138_p2), %v2505_v2  ;;  %v2521_v59 = vld [vmem:[%s3144_s1 + $0x140] sm:$0xff] (!%p138_p2)   ;;  %vm2846_vm5 = vmor (!%p138_p2), %vm638_vm3, %vm639_vm4 }
   0xc   : > { %2289 = vmatpush3.bf16.msra.mxu0 (!%p138_p2), %v2506_v3  ;;  %2194 = vmatprep.subr.bf16.mxu1 (!%p138_p2), %v2507_v4  ;;  %v2547_v47 = vld [vmem:[%s3144_s1 + $0xa0] sm:$0xff] (!%p138_p2)  }
   0xd   : > { %s3152_s13 = smov (!%p161_p3, %s1810_s13), 1  ;;  %2290 = vmatprep.subr.bf16.mxu0 %v2508_v5 }
   0xe   : > { %s2494_s30 = smul.u32 80, %s3152_s13  ;;  %s2058_s15 = sshll.u32 %s3152_s13, 5 }
   0xf   : > { %2195 = vmatpush3.bf16.msra.mxu1 %v2507_v4  ;;  %s170_s18 = scalar_lea.vmem %s3146_s3, %s2058_s15 }
  0x10   : > { %2291 = vmatpush3.bf16.msra.mxu0 %v2508_v5  ;;  %2196 = vmatprep.subr.bf16.mxu1 %v2509_v6  ;;  %s2656_s10 = scalar_lea.vmem %s3143_s0, %s2494_s30 }
  0x11   : > { %2292 = vmatprep.subr.bf16.mxu0 %v2510_v7  ;;  %v2662_v11 = vld [vmem:[%s2656_s10] sm:$0xf]  ;;  %v2665_v12 = vld [vmem:[%s2656_s10 + $0x8] sm:$0xf]  ;;  %v2678_v18 = vld [vmem:[%s2656_s10 + $0x10] sm:$0xf] }
  0x12   : > { %v1819_v14 = vcombine.low %v2662_v11, %v2665_v12  ;;  %v365_v15 = vshrl.u32 %v2662_v11, 16  ;;  %v368_v16 = vshll.u32 %v2662_v11, 16  ;;  %v2681_v21 = vld [vmem:[%s2656_s10 + $0xc] sm:$0x1]  ;;  %v2684_v22 = vld [vmem:[%s2656_s10 + $0x14] sm:$0x1]  ;;  %v1911_v23 = vcombine.low %v2665_v12, %v2678_v18 }
  0x13   : > { %2197 = vmatpush3.bf16.msra.mxu1 %v2509_v6  ;;  %v2692_v25 = vld [vmem:[%s2656_s10 + $0x4] sm:$0x1]  ;;  %v2695_v26 = vld [vmem:[%s2656_s10 + $0x18] sm:$0xf]  ;;  %v379_v27 = vshrl.u32 %v2665_v12, 16  ;;  %v382_v28 = vshll.u32 %v2665_v12, 16 }
  0x14   : > { %2293 = vmatpush3.bf16.msra.mxu0 %v2510_v7  ;;  %2198 = vmatprep.subr.bf16.mxu1 %v2511_v8  ;;  %v367_v19 = vrot.slane %v365_v15, 4  ;;  %v370_v20 = vrot.slane %v368_v16, 5  ;;  %v388_v30 = vshll.u32 %v2681_v21, 16  ;;  %v393_v31 = vshrl.u32 %v2678_v18, 16  ;;  %v2710_v35 = vld [vmem:[%s2656_s10 + $0x1c] sm:$0x1] }
  0x15   : > { %2294 = vmatprep.subr.bf16.mxu0 %v2512_v9  ;;  %2206 = vmatprep.mubr.bf16.mxu1 %v1819_v14  ;;  %v396_v32 = vshll.u32 %v2678_v18, 16  ;;  %v402_v33 = vshll.u32 %v2684_v22, 16  ;;  %v381_v37 = vrot.slane %v379_v27, 4  ;;  %v384_v38 = vrot.slane %v382_v28, 5  ;;  %v2714_v43 = vld [vmem:[%s2656_s10 + $0x20] sm:$0xf] }
  0x16   : > { %v371_v36 = vor.u32 %v370_v20, %v367_v19  ;;  %v374_v39 = vshll.u32 %v2692_v25, 16  ;;  %v390_v40 = vrot.slane %v388_v30, 5  ;;  %v395_v41 = vrot.slane %v393_v31, 4  ;;  %v2726_v51 = vld [vmem:[%s2656_s10 + $0x24] sm:$0x1]  ;;  %v2525_v20 = vld [vmem:[%s3144_s1 + $0x50] sm:$0xff]  }
  0x17   : > { %2199 = vmatpush3.bf16.msra.mxu1 %v2511_v8  ;;  %v398_v42 = vrot.slane %v396_v32, 5  ;;  %v385_v44 = vor.u32 %v384_v38, %v381_v37  ;;  %v407_v45 = vshrl.u32 %v2695_v26, 16  ;;  %v410_v46 = vshll.u32 %v2695_v26, 16  ;;  %v2524_v28 = vld [vmem:[%s3144_s1 + $0x148] sm:$0xff]   ;;  %v2527_v30 = vld [vmem:[%s3144_s1 + $0x58] sm:$0xff]  }
  0x18   : > { %2295 = vmatpush3.bf16.msra.mxu0 %v2512_v9  ;;  %2200 = vmatprep.subr.bf16.mxu1 %v2513_v10  ;;  %v404_v49 = vrot.slane %v402_v33, 5  ;;  %v416_v50 = vshll.u32 %v2710_v35, 16  ;;  %v372_v52 = vrot.slane %v371_v36, 4  ;;  %v376_v57 = vrot.slane %v374_v39, 5  ;;  %v2523_v9 = vld [vmem:[%s3144_s1 + $0x48] sm:$0xff]  }
  0x19   : > { %2296 = vmatprep.subr.bf16.mxu0 %v2514_v13  ;;  %v399_v48 = vor.u32 %v398_v42, %v395_v41  ;;  %v386_v53 = vrot.slane %v385_v44, 4  ;;  %v409_v54 = vrot.slane %v407_v45, 4  ;;  %v412_v55 = vrot.slane %v410_v46, 5  ;;  %v2785_v32 = vld [vmem:[%s2656_s10 + $0x2c] sm:$0x1]  ;;  %v2526_v45 = vld [vmem:[%s3144_s1 + $0x150] sm:$0xff]  }
  0x1a   : > { %v421_v60 = vshrl.u32 %v2714_v43, 16  ;;  %v424_v61 = vshll.u32 %v2714_v43, 16  ;;  %v418_v0 = vrot.slane %v416_v50, 5  ;;  %v430_v1 = vshll.u32 %v2726_v51, 16  ;;  %v2789_v36 = vld [vmem:[%s2656_s10 + $0x30] sm:$0xf] }
  0x1b   : > { %2201 = vmatpush3.bf16.msra.mxu1 %v2513_v10  ;;  %v400_v58 = vrot.slane %v399_v48, 4  ;;  %v391_v62 = vsel %vm2720_vm2, %v386_v53, %v390_v40  ;;  %v413_v63 = vor.u32 %v412_v55, %v409_v54  ;;  %v2745_v3 = vcombine.low %v2678_v18, %v2695_v26  ;;  %v2792_v37 = vld [vmem:[%s2656_s10 + $0x34] sm:$0x1] }
  0x1c   : > { %2297 = vmatpush3.bf16.msra.mxu0 %v2514_v13  ;;  %2202 = vmatprep.subr.bf16.mxu1 %v2515_v17  ;;  %v423_v4 = vrot.slane %v421_v60, 4  ;;  %v426_v5 = vrot.slane %v424_v61, 5  ;;  %v432_v8 = vrot.slane %v430_v1, 5  ;;  %v1912_v10 = vcombine.low %v2695_v26, %v2714_v43  ;;  %v2818_v60 = vld [vmem:[%s2656_s10 + $0x3c] sm:$0x1] }
  0x1d   : > { %2298 = vmatprep.subr.bf16.mxu0 %v2516_v24  ;;  %v2741_v2 = vsel %vm2720_vm2, %v400_v58, %v404_v49  ;;  %v414_v6 = vrot.slane %v413_v63, 4  ;;  %v377_v16 = vsel %vm2720_vm2, %v372_v52, %v376_v57  ;;  %v444_v39 = vshll.u32 %v2785_v32, 16  ;;  %v2528_v57 = vld [vmem:[%s3144_s1 + $0x158] sm:$0xff]   ;;  %v2821_v61 = vld [vmem:[%s2656_s10 + $0x40] sm:$0xf] }
  0x1e   : > { %v1939_v7 = vcombine.low %v391_v62, %v2741_v2  ;;  %v427_v13 = vor.u32 %v426_v5, %v423_v4  ;;  %v449_v41 = vshrl.u32 %v2789_v36, 16  ;;  %v452_v42 = vshll.u32 %v2789_v36, 16  ;;  %v2529_v63 = vld [vmem:[%s3144_s1 + $0x60] sm:$0xff]  }
  0x1f   : > { %2203 = vmatpush3.bf16.msra.mxu1 %v2515_v17  ;;  %v2755_v14 = vsel %vm2720_vm2, %v414_v6, %v418_v0  ;;  %v647_v17 = vrot.slane %v2681_v21, 5  ;;  %v458_v44 = vshll.u32 %v2792_v37, 16  ;;  %v1860_v48 = vrot.slane %v2665_v12, 9  ;;  %v2532_v21 = vld [vmem:[%s3144_s1 + $0x168] sm:$0xff]  }
  0x20   : > { %2299 = vmatpush3.bf16.msra.mxu0 %v2516_v24  ;;  %2204 = vmatprep.subr.bf16.mxu1 %v2517_v29  ;;  %v428_v15 = vrot.slane %v427_v13, 4  ;;  %v651_v24 = vrot.slane %v2684_v22, 5  ;;  %v1861_v49 = vrot.slane %v2678_v18, 9  ;;  %v446_v52 = vrot.slane %v444_v39, 5  ;;  %v2565_v12 = vld [vmem:[%s3144_s1 + $0xe8] sm:$0xff]   ;;  %v2564_v18 = vld [vmem:[%s3144_s1 + $0x1e0] sm:$0xff]  }
  0x21   : > { %2300 = vmatprep.subr.bf16.mxu0 %v2518_v34  ;;  %2302 = vmatprep.mubr.bf16.mxu0 %v1939_v7  ;;  %v451_v53 = vrot.slane %v449_v41, 4  ;;  %v454_v54 = vrot.slane %v452_v42, 5  ;;  %v460_v55 = vrot.slane %v458_v44, 5  ;;  %v472_v5 = vshll.u32 %v2818_v60, 16  ;;  %v2546_v41 = vld [vmem:[%s3144_s1 + $0x198] sm:$0xff]  }
  0x22   : > { %v2763_v19 = vsel %vm2720_vm2, %v428_v15, %v432_v8  ;;  %v976_v7 = vshrl.u32 %v2821_v61, 16  ;;  %v979_v8 = vshll.u32 %v2821_v61, 16 }
  0x23   : > { %2205 = vmatpush3.bf16.msra.mxu1 %v2517_v29  ;;  %v1940_v27 = vcombine.low %v2755_v14, %v2763_v19  ;;  %v2775_v29 = vld [vmem:[%s2656_s10 + $0x28] sm:$0xf]  ;;  %v455_v0 = vor.u32 %v454_v54, %v451_v53  ;;  %v2867_v54 = vsel %vm2846_vm5, %v1861_v49, %v651_v24  ;;  %v655_v49 = vrot.slane %v2710_v35, 5  ;;  %v2539_v35 = vld [vmem:[%s3144_s1 + $0x80] sm:$0xff]  }
  0x24   : > { %2301 = vmatpush3.bf16.msra.mxu0 %v2518_v34  ;;  %2214 = vmatprep.subr.bf16.mxu1 %v2520_v56  ;;  %v2782_v31 = vcombine.low %v2714_v43, %v2775_v29  ;;  %v435_v33 = vshrl.u32 %v2775_v29, 16  ;;  %v1847_v34 = vcombine.low %v377_v16, %v391_v62  ;;  %v438_v38 = vshll.u32 %v2775_v29, 16  ;;  %v2824_v62 = vld [vmem:[%s2656_s10 + $0x44] sm:$0x1] }
  0x25   : > { %2310 = vmatprep.subr.bf16.mxu0 %v2521_v59  ;;  %v1913_v50 = vcombine.low %v2775_v29, %v2789_v36  ;;  %v456_v13 = vrot.slane %v455_v0, 4  ;;  %v981_v39 = vrot.slane %v979_v8, 5  ;;  %v2535_v0 = vld [vmem:[%s3144_s1 + $0x170] sm:$0xff]   ;;  %v1865_v8 = vrot.slane %v2789_v36, 9 }
  0x26   : > { %2207 = vmatmul.mubr.bf16.vlgmr.msra.gmra.mrb[0].mxu1 %v2745_v3  ;;  %v437_v40 = vrot.slane %v435_v33, 4  ;;  %v440_v46 = vrot.slane %v438_v38, 5  ;;  %v978_v38 = vrot.slane %v976_v7, 4  ;;  %v1139_v7 = vrot.slane %v2824_v62, 5 }
  0x27   : > { %2215 = vmatpush3.bf16.msra.mxu1 %v2520_v56  ;;  %2303 = vmatmul.mubr.bf16.vlgmr.msra.gmra.mrb[0].mxu0 %v1940_v27  ;;  %v2808_v56 = vld [vmem:[%s2656_s10 + $0x38] sm:$0xf]  ;;  %v2530_v27 = vld [vmem:[%s3144_s1 + $0x160] sm:$0xff]  }
  0x28   : > { %2216 = vmatprep.subr.bf16.mxu1 %v2523_v9  ;;  %2311 = vmatpush3.bf16.msra.mxu0 %v2521_v59  ;;  %v441_v58 = vor.u32 %v440_v46, %v437_v40  ;;  %v2815_v59 = vcombine.low %v2789_v36, %v2808_v56  ;;  %v463_v1 = vshrl.u32 %v2808_v56, 16  ;;  %v466_v4 = vshll.u32 %v2808_v56, 16  ;;  %v2583_v36 = vld [vmem:[%s3144_s1 + $0x238] sm:$0xff]  }
  0x29   : > { %2312 = vmatprep.subr.bf16.mxu0 %v2524_v28  ;;  %2210 = vmatprep.mubr.bf16.mxu1 %v2782_v31  ;;  %v982_v44 = vor.u32 %v981_v39, %v978_v38  ;;  %v1914_v46 = vcombine.low %v2808_v56, %v2821_v61  ;;  %v643_v39 = vrot.slane %v2692_v25, 5 }
  0x2a   : > { %v442_v6 = vrot.slane %v441_v58, 4  ;;  %v465_v15 = vrot.slane %v463_v1, 4  ;;  %v468_v16 = vrot.slane %v466_v4, 5  ;;  %v2538_v1 = vld [vmem:[%s3144_s1 + $0x178] sm:$0xff]   ;;  %v1864_v4 = vrot.slane %v2775_v29, 9  ;;  %v2582_v29 = vld [vmem:[%s3144_s1 + $0x230] sm:$0xff]  }
  0x2b   : > { %2217 = vmatpush3.bf16.msra.mxu1 %v2523_v9  ;;  %v985_v9 = vshll.u32 %v2824_v62, 16  ;;  %v983_v53 = vrot.slane %v982_v44, 4 }
  0x2c   : > { %2218 = vmatprep.subr.bf16.mxu1 %v2525_v20  ;;  %2313 = vmatpush3.bf16.msra.mxu0 %v2524_v28  ;;  %v2531_v28 = vld [vmem:[%s3144_s1 + $0x68] sm:$0xff]   ;;  %v447_v33 = vsel %vm2720_vm2, %v442_v6, %v446_v52  ;;  %v1951_v6 = vrot.slane %v2821_v61, 9 }
  0x2d   : > { %2314 = vmatprep.subr.bf16.mxu0 %v2526_v45  ;;  %v987_v40 = vrot.slane %v985_v9, 5  ;;  %v667_v9 = vrot.slane %v2792_v37, 5  ;;  %v2541_v37 = vld [vmem:[%s3144_s1 + $0x88] sm:$0xff]  }
  0x2e   : > { %2211 = vmatmul.mubr.bf16.gmra.mrb[4].mxu1 %v2815_v59 }
  0x2f   : > { %2219 = vmatpush3.bf16.msra.mxu1 %v2525_v20  ;;  %v474_v20 = vrot.slane %v472_v5, 5  ;;  %2230 = vmatprep.mubr.bf16.mxu1 %v1847_v34  ;;  %v469_v34 = vor.u32 %v468_v16, %v465_v15  ;;  %v2881_v22 = vsel %vm2720_vm2, %v983_v53, %v987_v40  ;;  %v663_v5 = vrot.slane %v2785_v32, 5  ;;  %v191_v15 = vld [vmem:[%s2656_s10 + $0x4c] sm:$0x1]  ;;  %v2543_v53 = vld [vmem:[%s3144_s1 + $0x90] sm:$0xff]  }
  0x30   : > { %2220 = vmatprep.subr.bf16.mxu1 %v2527_v30  ;;  %2315 = vmatpush3.bf16.msra.mxu0 %v2526_v45  ;;  %v2861_v45 = vsel %vm2846_vm5, %v1860_v48, %v647_v17  ;;  %v1859_v48 = vrot.slane %v2662_v11, 9  ;;  %v1862_v11 = vrot.slane %v2695_v26, 9  ;;  %v2916_v16 = vcombine.low %v2741_v2, %v2755_v14  ;;  %v2579_v26 = vld [vmem:[%s3144_s1 + $0x218] sm:$0xff]  }
  0x31   : > { %2316 = vmatprep.subr.bf16.mxu0 %v2528_v57  ;;  %v470_v52 = vrot.slane %v469_v34, 4  ;;  %v1968_v24 = vcombine.low %v2861_v45, %v2867_v54  ;;  %v2936_v14 = vsel %vm2846_vm5, %v1951_v6, %v1139_v7  ;;  %v2956_v25 = vsel %vm2846_vm5, %v1865_v8, %v667_v9  ;;  %v2550_v6 = vld [vmem:[%s3144_s1 + $0x1a8] sm:$0xff]   ;;  %v2553_v7 = vld [vmem:[%s3144_s1 + $0xb8] sm:$0xff]   ;;  %v2555_v8 = vld [vmem:[%s3144_s1 + $0xc0] sm:$0xff]  }
  0x32   : > { %v2554_v9 = vld [vmem:[%s3144_s1 + $0x1b8] sm:$0xff]  }
  0x33   : > { %2221 = vmatpush3.bf16.msra.mxu1 %v2527_v30  ;;  %v2852_v30 = vsel %vm2720_vm2, %v456_v13, %v460_v55  ;;  %v2534_v55 = vld [vmem:[%s3144_s1 + $0x70] sm:$0xff]   ;;  %v2874_v58 = vsel %vm2720_vm2, %v470_v52, %v474_v20  ;;  %v2911_v13 = vld [vmem:[%s2656_s10 + $0x48] sm:$0xf]  ;;  %v1588_v20 = vrot.slane %v191_v15, 5 }
  0x34   : > { %2222 = vmatprep.subr.bf16.mxu1 %v2529_v63  ;;  %v1941_v42 = vcombine.low %v447_v33, %v2852_v30  ;;  %2317 = vmatpush3.bf16.msra.mxu0 %v2528_v57  ;;  %v1942_v17 = vcombine.low %v2874_v58, %v2881_v22  ;;  %v659_v57 = vrot.slane %v2726_v51, 5  ;;  %v1863_v51 = vrot.slane %v2714_v43, 9  ;;  %v2580_v43 = vld [vmem:[%s3144_s1 + $0x220] sm:$0xff]  }
  0x35   : > { %2318 = vmatprep.subr.bf16.mxu0 %v2530_v27  ;;  %v2030_v32 = vrot.slane %v2911_v13, 9  ;;  %v1431_v2 = vshrl.u32 %v2911_v13, 16  ;;  %v1434_v40 = vshll.u32 %v2911_v13, 16 }
  0x36   : > { %2306 = vmatprep.mubr.bf16.mxu0 %v1941_v42  ;;  %v2925_v62 = vsel %vm2846_vm5, %v1863_v51, %v659_v57  ;;  %v2952_v42 = vsel %vm2846_vm5, %v1864_v4, %v663_v5  ;;  %v2542_v57 = vld [vmem:[%s3144_s1 + $0x188] sm:$0xff]   ;;  %v2548_v4 = vld [vmem:[%s3144_s1 + $0x1a0] sm:$0xff]   ;;  %v2551_v5 = vld [vmem:[%s3144_s1 + $0xb0] sm:$0xff]  }
  0x37   : > { %2223 = vmatpush3.bf16.msra.mxu1 %v2529_v63  ;;  %v2537_v63 = vld [vmem:[%s3144_s1 + $0x78] sm:$0xff]   ;;  %2307 = vmatmul.mubr.bf16.gmra.mrb[4].mxu0 %v1942_v17  ;;  %v2940_v38 = vsel %vm2846_vm5, %v2030_v32, %v1588_v20  ;;  %v1433_v34 = vrot.slane %v1431_v2, 4  ;;  %v1436_v44 = vrot.slane %v1434_v40, 5  ;;  %v671_v17 = vrot.slane %v2818_v60, 5  ;;  %v2557_v20 = vld [vmem:[%s3144_s1 + $0xc8] sm:$0xff]   ;;  %v2563_v40 = vld [vmem:[%s3144_s1 + $0xe0] sm:$0xff]  }
  0x38   : > { %2224 = vmatprep.subr.bf16.mxu1 %v2531_v28  ;;  %2319 = vmatpush3.bf16.msra.mxu0 %v2530_v27  ;;  %v2921_v27 = vsel %vm2846_vm5, %v1862_v11, %v655_v49  ;;  %v2975_v11 = vcombine.low %v2852_v30, %v2874_v58  ;;  %v2544_v30 = vld [vmem:[%s3144_s1 + $0x190] sm:$0xff]   ;;  %v3030_v32 = vcombine.low %v2925_v62, %v2952_v42  ;;  %v2561_v2 = vld [vmem:[%s3144_s1 + $0xd8] sm:$0xff]  }
  0x39   : > { %2320 = vmatprep.subr.bf16.mxu0 %v2532_v21  ;;  %2326 = vmatprep.mubr.bf16.mxu0 %v1968_v24  ;;  %v1969_v52 = vcombine.low %v2921_v27, %v2925_v62  ;;  %v644_v24 = vsel %vm2846_vm5, %v1859_v48, %v643_v39  ;;  %v1437_v49 = vor.u32 %v1436_v44, %v1433_v34  ;;  %v2545_v48 = vld [vmem:[%s3144_s1 + $0x98] sm:$0xff]   ;;  %v2560_v39 = vld [vmem:[%s3144_s1 + $0x1d0] sm:$0xff]   ;;  %v2574_v34 = vld [vmem:[%s3144_s1 + $0x200] sm:$0xff]  }
  0x3a   : > { %v1883_v60 = vcombine.low %v644_v24, %v2861_v45  ;;  %v2578_v44 = vld [vmem:[%s3144_s1 + $0x210] sm:$0xff]  }
  0x3b   : > { %2225 = vmatpush3.bf16.msra.mxu1 %v2531_v28  ;;  %v2931_v28 = vcombine.low %v2763_v19, %v447_v33  ;;  %v2540_v19 = vld [vmem:[%s3144_s1 + $0x180] sm:$0xff]   ;;  %v2047_v33 = vcombine.low %v2936_v14, %v2940_v38 }
  0x3c   : > { %2226 = vmatprep.subr.bf16.mxu1 %v2534_v55  ;;  %2321 = vmatpush3.bf16.msra.mxu0 %v2532_v21  ;;  %v1866_v21 = vrot.slane %v2808_v56, 9 }
  0x3d   : > { %2322 = vmatprep.subr.bf16.mxu0 %v2535_v0 }
  0x3e   : > { %v672_v51 = vsel %vm2846_vm5, %v1866_v21, %v671_v17 }
  0x3f   : > { %2227 = vmatpush3.bf16.msra.mxu1 %v2534_v55  ;;  %v1440_v55 = vshll.u32 %v191_v15, 16  ;;  %v1971_v58 = vcombine.low %v672_v51, %v2936_v14  ;;  %v3026_v15 = vcombine.low %v2867_v54, %v2921_v27  ;;  %v2559_v54 = vld [vmem:[%s3144_s1 + $0xd0] sm:$0xff]   ;;  %v2558_v27 = vld [vmem:[%s3144_s1 + $0x1c8] sm:$0xff]   ;;  %v3047_v62 = vcombine.low %v2956_v25, %v672_v51 }
  0x40   : > { %2228 = vmatprep.subr.bf16.mxu1 %v2537_v63  ;;  %2323 = vmatpush3.bf16.msra.mxu0 %v2535_v0 }
  0x41   : > { %2324 = vmatprep.subr.bf16.mxu0 %v2538_v1  ;;  %v1442_v0 = vrot.slane %v1440_v55, 5 }
  0x43   : > { %2229 = vmatpush3.bf16.msra.mxu1 %v2537_v63  ;;  %v1970_v63 = vcombine.low %v2952_v42, %v2956_v25  ;;  %v2571_v42 = vld [vmem:[%s3144_s1 + $0x1f8] sm:$0xff]   ;;  %v2575_v25 = vld [vmem:[%s3144_s1 + $0x208] sm:$0xff]  }
  0x44   : > { %2238 = vmatprep.subr.bf16.mxu1 %v2539_v35  ;;  %2325 = vmatpush3.bf16.msra.mxu0 %v2538_v1 }
  0x45   : > { %2334 = vmatprep.subr.bf16.mxu0 %v2540_v19 }
  0x46   : > { %2231 = vmatmul.mubr.bf16.vlgmr.msra.gmra.mrb[0].mxu1 %v2916_v16 }
  0x47   : > { %2239 = vmatpush3.bf16.msra.mxu1 %v2539_v35  ;;  %2234 = vmatprep.mubr.bf16.mxu1 %v2931_v28  ;;  %v1438_v35 = vrot.slane %v1437_v49, 4 }
  0x48   : > { %2240 = vmatprep.subr.bf16.mxu1 %v2541_v37  ;;  %2327 = vmatmul.mubr.bf16.vlgmr.msra.gmra.mrb[0].mxu0 %v1969_v52  ;;  %v1818_v52 = vld [vmem:[%s3145_s2] ss:$0 sm:$0xff] }
  0x49   : > { %2335 = vmatpush3.bf16.msra.mxu0 %v2540_v19  ;;  %v1443_v1 = vsel %vm2720_vm2, %v1438_v35, %v1442_v0  ;;  %2330 = vmatprep.mubr.bf16.mxu0 %v1970_v63  ;;  %v2570_v19 = vld [vmem:[%s3144_s1 + $0xf8] sm:$0xff]  }
  0x4a   : > { %2336 = vmatprep.subr.bf16.mxu0 %v2542_v57  ;;  %v2989_v45 = vcombine.low %v2881_v22, %v1443_v1  ;;  %v2549_v22 = vld [vmem:[%s3144_s1 + $0xa8] sm:$0xff]  }
  0x4b   : > { %2241 = vmatpush3.bf16.msra.mxu1 %v2541_v37  ;;  %v2556_v37 = vld [vmem:[%s3144_s1 + $0x1c0] sm:$0xff]  }
  0x4c   : > { %2242 = vmatprep.subr.bf16.mxu1 %v2543_v53 }
  0x4d   : > { %2337 = vmatpush3.bf16.msra.mxu0 %v2542_v57 }
  0x4e   : > { %2235 = vmatmul.mubr.bf16.gmra.mrb[4].mxu1 %v2975_v11  ;;  %2338 = vmatprep.subr.bf16.mxu0 %v2544_v30 }
  0x4f   : > { %2243 = vmatpush3.bf16.msra.mxu1 %v2543_v53  ;;  %2254 = vmatprep.mubr.bf16.mxu1 %v1883_v60 }
  0x50   : > { %2244 = vmatprep.subr.bf16.mxu1 %v2545_v48  ;;  %2331 = vmatmul.mubr.bf16.gmra.mrb[4].mxu0 %v1971_v58 }
  0x51   : > { %2339 = vmatpush3.bf16.msra.mxu0 %v2544_v30  ;;  %2350 = vmatprep.mubr.bf16.mxu0 %v2745_v3  ;;  %v2552_v3 = vld [vmem:[%s3144_s1 + $0x1b0] sm:$0xff]  }
  0x52   : > { %2340 = vmatprep.subr.bf16.mxu0 %v2546_v41 }
  0x53   : > { %2245 = vmatpush3.bf16.msra.mxu1 %v2545_v48 }
  0x54   : > { %2246 = vmatprep.subr.bf16.mxu1 %v2547_v47 }
  0x55   : > { %2341 = vmatpush3.bf16.msra.mxu0 %v2546_v41 }
  0x56   : > { %2342 = vmatprep.subr.bf16.mxu0 %v2548_v4 }
  0x57   : > { %2247 = vmatpush3.bf16.msra.mxu1 %v2547_v47 }
  0x58   : > { %2248 = vmatprep.subr.bf16.mxu1 %v2549_v22 }
  0x59   : > { %2343 = vmatpush3.bf16.msra.mxu0 %v2548_v4 }
  0x5a   : > { %2344 = vmatprep.subr.bf16.mxu0 %v2550_v6 }
  0x5b   : > { %2249 = vmatpush3.bf16.msra.mxu1 %v2549_v22 }
  0x5c   : > { %2250 = vmatprep.subr.bf16.mxu1 %v2551_v5 }
  0x5d   : > { %2345 = vmatpush3.bf16.msra.mxu0 %v2550_v6 }
  0x5e   : > { %2346 = vmatprep.subr.bf16.mxu0 %v2552_v3 }
  0x5f   : > { %2251 = vmatpush3.bf16.msra.mxu1 %v2551_v5 }
  0x60   : > { %2252 = vmatprep.subr.bf16.mxu1 %v2553_v7 }
  0x61   : > { %2347 = vmatpush3.bf16.msra.mxu0 %v2552_v3 }
  0x62   : > { %2348 = vmatprep.subr.bf16.mxu0 %v2554_v9 }
  0x63   : > { %2253 = vmatpush3.bf16.msra.mxu1 %v2553_v7 }
  0x64   : > { %2262 = vmatprep.subr.bf16.mxu1 %v2555_v8 }
  0x65   : > { %2349 = vmatpush3.bf16.msra.mxu0 %v2554_v9 }
  0x66   : > { %2255 = vmatmul.mubr.bf16.vlgmr.msra.gmra.mrb[0].mxu1 %v3026_v15  ;;  %2358 = vmatprep.subr.bf16.mxu0 %v2556_v37 }
  0x67   : > { %2263 = vmatpush3.bf16.msra.mxu1 %v2555_v8  ;;  %2258 = vmatprep.mubr.bf16.mxu1 %v3030_v32 }
  0x68   : > { %2264 = vmatprep.subr.bf16.mxu1 %v2557_v20  ;;  %2351 = vmatmul.mubr.bf16.vlgmr.msra.gmra.mrb[0].mxu0 %v2782_v31  ;;  %v1996_v31 = vcombine.low %v2821_v61, %v2911_v13  ;;  %v2566_v13 = vld [vmem:[%s3144_s1 + $0x1e8] sm:$0xff]  }
  0x69   : > { %2359 = vmatpush3.bf16.msra.mxu0 %v2556_v37  ;;  %2354 = vmatprep.mubr.bf16.mxu0 %v2815_v59  ;;  %v2562_v59 = vld [vmem:[%s3144_s1 + $0x1d8] sm:$0xff]  }
  0x6a   : > { %2360 = vmatprep.subr.bf16.mxu0 %v2558_v27 }
  0x6b   : > { %2265 = vmatpush3.bf16.msra.mxu1 %v2557_v20 }
  0x6c   : > { %2266 = vmatprep.subr.bf16.mxu1 %v2559_v54 }
  0x6d   : > { %2361 = vmatpush3.bf16.msra.mxu0 %v2558_v27 }
  0x6e   : > { %2259 = vmatmul.mubr.bf16.gmra.mrb[4].mxu1 %v3047_v62  ;;  %2362 = vmatprep.subr.bf16.mxu0 %v2560_v39 }
  0x6f   : > { %2267 = vmatpush3.bf16.msra.mxu1 %v2559_v54  ;;  %2278 = vmatprep.mubr.bf16.mxu1 %v1911_v23  ;;  %v2567_v23 = vld [vmem:[%s3144_s1 + $0xf0] sm:$0xff]  }
  0x70   : > { %2268 = vmatprep.subr.bf16.mxu1 %v2561_v2  ;;  %2355 = vmatmul.mubr.bf16.gmra.mrb[4].mxu0 %v1996_v31 }
  0x71   : > { %2363 = vmatpush3.bf16.msra.mxu0 %v2560_v39  ;;  %2374 = vmatprep.mubr.bf16.mxu0 %v2916_v16  ;;  %v2569_v16 = vld [vmem:[%s3144_s1 + $0x1f0] sm:$0xff]  }
  0x72   : > { %2364 = vmatprep.subr.bf16.mxu0 %v2562_v59 }
  0x73   : > { %2269 = vmatpush3.bf16.msra.mxu1 %v2561_v2 }
  0x74   : > { %2270 = vmatprep.subr.bf16.mxu1 %v2563_v40 }
  0x75   : > { %2365 = vmatpush3.bf16.msra.mxu0 %v2562_v59 }
  0x76   : > { %2366 = vmatprep.subr.bf16.mxu0 %v2564_v18 }
  0x77   : > { %2271 = vmatpush3.bf16.msra.mxu1 %v2563_v40 }
  0x78   : > { %2272 = vmatprep.subr.bf16.mxu1 %v2565_v12 }
  0x79   : > { %2367 = vmatpush3.bf16.msra.mxu0 %v2564_v18 }
  0x7a   : > { %2368 = vmatprep.subr.bf16.mxu0 %v2566_v13 }
  0x7b   : > { %2273 = vmatpush3.bf16.msra.mxu1 %v2565_v12 }
  0x7c   : > { %2274 = vmatprep.subr.bf16.mxu1 %v2567_v23 }
  0x7d   : > { %2369 = vmatpush3.bf16.msra.mxu0 %v2566_v13 }
  0x7e   : > { %2370 = vmatprep.subr.bf16.mxu0 %v2569_v16 }
  0x7f   : > { %2275 = vmatpush3.bf16.msra.mxu1 %v2567_v23 }
  0x80   : > { %2276 = vmatprep.subr.bf16.mxu1 %v2570_v19 }
  0x81   : > { %2371 = vmatpush3.bf16.msra.mxu0 %v2569_v16 }
  0x82   : > { %2372 = vmatprep.subr.bf16.mxu0 %v2571_v42 }
  0x83   : > { %2277 = vmatpush3.bf16.msra.mxu1 %v2570_v19 }
  0x84   : > { %2406 = vmatprep.subr.bf16.mxu1 %v2574_v34 }
  0x85   : > { %2373 = vmatpush3.bf16.msra.mxu0 %v2571_v42 }
  0x86   : > { %2279 = vmatmul.mubr.bf16.vlgmr.msra.gmra.mrb[0].mxu1 %v1912_v10  ;;  %2382 = vmatprep.subr.bf16.mxu0 %v2574_v34  ;;  %v2581_v10 = vld [vmem:[%s3144_s1 + $0x228] sm:$0xff]  }
  0x87   : > { %2414 = vmatpush3.bf16.msra.mxu1 %v2574_v34  ;;  %2282 = vmatprep.mubr.bf16.mxu1 %v1913_v50 }
  0x88   : > { %2407 = vmatprep.subr.bf16.mxu1 %v2575_v25  ;;  %2375 = vmatmul.mubr.bf16.vlgmr.msra.gmra.mrb[0].mxu0 %v2931_v28 }
  0x89   : > { %2383 = vmatpush3.bf16.msra.mxu0 %v2574_v34  ;;  %2378 = vmatprep.mubr.bf16.mxu0 %v2975_v11 }
  0x8a   : > { %2384 = vmatprep.subr.bf16.mxu0 %v2575_v25 }
  0x8b   : > { %2415 = vmatpush3.bf16.msra.mxu1 %v2575_v25 }
  0x8c   : > { %2408 = vmatprep.subr.bf16.mxu1 %v2578_v44 }
  0x8d   : > { %2385 = vmatpush3.bf16.msra.mxu0 %v2575_v25 }
  0x8e   : > { %2283 = vmatmul.mubr.bf16.gmra.mrb[4].mxu1 %v1914_v46  ;;  %2386 = vmatprep.subr.bf16.mxu0 %v2578_v44 }
  0x8f   : > { %2416 = vmatpush3.bf16.msra.mxu1 %v2578_v44  ;;  %2402 = vmatprep.mubr.bf16.mxu1 %v3047_v62 }
  0x90   : > { %2409 = vmatprep.subr.bf16.mxu1 %v2579_v26  ;;  %2379 = vmatmul.mubr.bf16.gmra.mrb[4].mxu0 %v2989_v45 }
  0x91   : > { %2387 = vmatpush3.bf16.msra.mxu0 %v2578_v44  ;;  %2398 = vmatprep.mubr.bf16.mxu0 %v3026_v15 }
  0x92   : > { %2388 = vmatprep.subr.bf16.mxu0 %v2579_v26 }
  0x93   : > { %2417 = vmatpush3.bf16.msra.mxu1 %v2579_v26 }
  0x94   : > { %2410 = vmatprep.subr.bf16.mxu1 %v2580_v43 }
  0x95   : > { %2389 = vmatpush3.bf16.msra.mxu0 %v2579_v26 }
  0x96   : > { %2390 = vmatprep.subr.bf16.mxu0 %v2580_v43 }
  0x97   : > { %2418 = vmatpush3.bf16.msra.mxu1 %v2580_v43 }
  0x98   : > { %2411 = vmatprep.subr.bf16.mxu1 %v2581_v10 }
  0x99   : > { %2391 = vmatpush3.bf16.msra.mxu0 %v2580_v43 }
  0x9a   : > { %2392 = vmatprep.subr.bf16.mxu0 %v2581_v10 }
  0x9b   : > { %2419 = vmatpush3.bf16.msra.mxu1 %v2581_v10 }
  0x9c   : > { %2412 = vmatprep.subr.bf16.mxu1 %v2582_v29 }
  0x9d   : > { %2393 = vmatpush3.bf16.msra.mxu0 %v2581_v10 }
  0x9e   : > { %2394 = vmatprep.subr.bf16.mxu0 %v2582_v29 }
  0x9f   : > { %2420 = vmatpush3.bf16.msra.mxu1 %v2582_v29 }
  0xa0   : > { %2413 = vmatprep.subr.bf16.mxu1 %v2583_v36 }
  0xa1   : > { %2395 = vmatpush3.bf16.msra.mxu0 %v2582_v29 }
  0xa2   : > { %2396 = vmatprep.subr.bf16.mxu0 %v2583_v36 }
  0xa3   : > { %2421 = vmatpush3.bf16.msra.mxu1 %v2583_v36 }
  0xa5   : > { %2397 = vmatpush3.bf16.msra.mxu0 %v2583_v36 }
  0xa6   : > { %2403 = vmatmul.mubr.bf16.vlgmr.msra.gmra.mrb[8].mxu1 %v2047_v33 }
  0xa8   : > { %2399 = vmatmul.mubr.bf16.vlgmr.msra.gmra.mrb[0].mxu0 %v3030_v32 }
 0x159   : > { %v2280_v50 = vpop.f32.mrb[0].mxu1 }
 0x15a   : > { %v936_v56 = vpop.f32.mrb[1].mxu1  ;;  %v2422_v41 = vadd.f32 %v2280_v50, %v1818_v52 }
 0x15b   : > { %v2281_v61 = vpop.f32.mrb[2].mxu1  ;;  %v2424_v4 = vadd.f32 %v1818_v52, %v936_v56 }
 0x15c   : > { %v939_v46 = vpop.f32.mrb[3].mxu1  ;;  %v2426_v3 = vadd.f32 %v2281_v61, %v1818_v52 }
 0x15d   : > { %v2428_v20 = vadd.f32 %v1818_v52, %v939_v46 }
 0x161   : > { %v2284_v28 = vpop.f32.mrb[4].mxu1 }
 0x162   : > { %v952_v53 = vpop.f32.mrb[5].mxu1  ;;  %v2430_v55 = vadd.f32 %v2284_v28, %v1818_v52 }
 0x163   : > { %v2285_v21 = vpop.f32.mrb[6].mxu1  ;;  %v2433_v17 = vadd.f32 %v1818_v52, %v952_v53  ;;  %v2380_v38 = vpop.f32.mrb[4].mxu0 }
 0x164   : > { %v955_v24 = vpop.f32.mrb[7].mxu1  ;;  %v2436_v14 = vadd.f32 %v2285_v21, %v1818_v52  ;;  %v2431_v49 = vadd.f32 %v2430_v55, %v2380_v38  ;;  %v1562_v57 = vpop.f32.mrb[5].mxu0 }
 0x165   : > { %v2439_v33 = vadd.f32 %v1818_v52, %v955_v24  ;;  %v2434_v63 = vadd.f32 %v2433_v17, %v1562_v57  ;;  %v2381_v0 = vpop.f32.mrb[6].mxu0 }
 0x166   : > { %v2437_v11 = vadd.f32 %v2436_v14, %v2381_v0  ;;  %v1565_v35 = vpop.f32.mrb[7].mxu0 }
 0x167   : > { %v2440_v60 = vadd.f32 %v2439_v33, %v1565_v35 }
 0x179   : > { %v2404_v48 = vpop.f32.mrb[8].mxu1 }
 0x17a   : > { %v2432_v51 = vadd.f32 %v2431_v49, %v2404_v48  ;;  %v1708_v1 = vpop.f32.mrb[9].mxu1 }
 0x17b   : > { %v2435_v30 = vadd.f32 %v2434_v63, %v1708_v1  ;;  %v2405_v45 = vpop.f32.mrb[10].mxu1  ;;  %v2400_v5 = vpop.f32.mrb[0].mxu0 }
 0x17c   : > { %v2438_v58 = vadd.f32 %v2437_v11, %v2405_v45  ;;  %v1711_v47 = vpop.f32.mrb[11].mxu1  ;;  %v1737_v6 = vmax.f32 %v2432_v51, 0.0  ;;  %v2423_v8 = vadd.f32 %v2422_v41, %v2400_v5  ;;  %v1692_v9 = vpop.f32.mrb[1].mxu0 }
 0x17d   : > { %v2441_v22 = vadd.f32 %v2440_v60, %v1711_v47  ;;  %v1735_v15 = vmax.f32 %v2435_v30, 0.0  ;;  %v2425_v37 = vadd.f32 %v2424_v4, %v1692_v9  ;;  %v2401_v54 = vpop.f32.mrb[2].mxu0 }
 0x17e   : > { %v1738_v7 = vmax.f32 %v2438_v58, 0.0  ;;  %v2427_v62 = vadd.f32 %v2426_v3, %v2401_v54  ;;  %v1695_v2 = vpop.f32.mrb[3].mxu0  ;;  %v1733_v40 = vmax.f32 %v2423_v8, 0.0 }
 0x17f   : > { %v1736_v32 = vmax.f32 %v2441_v22, 0.0  ;;  %v2429_v31 = vadd.f32 %v2428_v20, %v1695_v2  ;;  %v1731_v12 = vmax.f32 %v2425_v37, 0.0 }
 0x180   : > { %v2077_v27 = vpack.c.bf16 %v1738_v7, %v1737_v6  ;;  %v1734_v59 = vmax.f32 %v2427_v62, 0.0 }
 0x181   : > { %v2072_v39 = vpack.c.bf16 %v1736_v32, %v1735_v15  ;;  %v1732_v18 = vmax.f32 %v2429_v31, 0.0 }
 0x182   : > { %2081 = vst [vmem:[%s170_s18 + $0x18] sm:$0xff] %v2077_v27   ;;  %v2067_v23 = vpack.c.bf16 %v1734_v59, %v1733_v40 }
 0x183   : > { %2080 = vst [vmem:[%s170_s18 + $0x10] sm:$0xff] %v2072_v39   ;;  %v2062_v13 = vpack.c.bf16 %v1732_v18, %v1731_v12 }
 0x184   : > { %2079 = vst [vmem:[%s170_s18 + $0x8] sm:$0xff] %v2067_v23  }
 0x185   : > { %2063 = vst [vmem:[%s170_s18] sm:$0xff] %v2062_v13  }
 0x186 PF: > { %s13_s12 = sadd.s32 1, %s2590_s12  }
 0x187   : > { %p10_p4 = scmp.ge.s32.totalorder %s13_s12, 4  }
 0x189   :  { %12 = sbr.rel (!%p10_p4) target bundleno = 1 (0x1), region = 70 }

// kernel: my_resnet_forward.31
= control target key start
LH: loop header
LB: loop body
LE: loop exit
PB: predicated region body
PF: predicated region fallthrough
CT: control target
= control target key end

     0   :  { %s1252_s0 = inlined_call_operand.vmem [shape: bf16[32,1152], index: 0, kind: input, shape index: {}]   ;;  %s1253_s1 = inlined_call_operand.vmem [shape: bf16[1152,256], index: 1, kind: input, shape index: {}]   ;;  %s1254_s2 = inlined_call_operand.vmem [shape: f32[1,256], index: 2, kind: input, shape index: {}]   ;;  %s1255_s3 = inlined_call_operand.vmem [shape: bf16[32,256], index: 3, kind: output, shape index: {}]  }
   0x1   :  { %1257 = sst [smem:[#allocation7_spill]] %s1252_s0 }
   0x2   :  { %1258 = sst [smem:[#allocation8_spill]] %s1253_s1 }
   0x3   :  { %s1036_s12 = smov 0   ;;  %s1038_s13 = smov 0  }
   0x4   :  { %s1040_s14 = smov 0   ;;  %s1042_s15 = smov 0  }
   0x5   :  { %s1044_s16 = smov 0   ;;  %s1046_s17 = smov 0  }
   0x6   :  { %s1048_s18 = smov 0   ;;  %s1050_s19 = smov 0  }
   0x7   :  { %s1052_s20 = smov 0   ;;  %s1054_s21 = smov 0  }
   0x8   :  { %s1056_s22 = smov 0  }
   0x9 LB: > { %s747_s23 = sadd.s32 4294967295, %s1013_s22   ;;  %s25_s24 = sadd.s32 1, %s1005_s20  ;;  %s1013_s22 = sphi %s1056_s22, %s13_s22   ;;  %s1009_s21 = sphi %s1054_s21, %s1275_s21   ;;  %s1005_s20 = sphi %s1052_s20, %s1274_s20   ;;  %s1001_s19 = sphi %s1050_s19, %s1273_s19   ;;  %s997_s18 = sphi %s1048_s18, %s1272_s18   ;;  %s993_s17 = sphi %s1046_s17, %s1271_s17   ;;  %s989_s16 = sphi %s1044_s16, %s1270_s16   ;;  %s985_s15 = sphi %s1042_s15, %s1269_s15   ;;  %s981_s14 = sphi %s1040_s14, %s1268_s14   ;;  %s977_s13 = sphi %s1038_s13, %s1267_s13   ;;  %s973_s12 = sphi %s1036_s12, %s1266_s12  }
   0xa   : > { %p26_p0 = scmp.ge.s32.totalorder %s25_s24, 9  ;;  %s28_s25 = sadd.s32 1, %s1009_s21 }
   0xb   : > { %s41_s26 = sadd.s32 1, %s993_s17  ;;  %p48_p1 = scmp.ne.s32.totalorder %s993_s17, %s989_s16 }
   0xc   : > { %s1277_s24 = smov (%p26_p0, %s25_s24), 0  ;;  %s1279_s25 = smov (!%p26_p0, %s28_s25), %s1009_s21 }
   0xd   : > { %s37_s27 = ssub.s32 %s1005_s20, %s1277_s24  ;;  %p49_p2 = scmp.eq.s32.totalorder %s1013_s22, 0 }
   0xe   : > { %p30_p3 = scmp.ge.s32.totalorder %s1279_s25, 2  ;;  %p39_p4 = scmp.eq.s32.totalorder %s37_s27, 0 }
   0xf   : > { %p1103_p5 = por %p49_p2, %p48_p1  ;;  %s69_s29 = sadd.s32 1, %s985_s15 }
  0x10   : > { %s1281_s25 = smov (%p30_p3, %s1279_s25), 0  ;;  %p76_p6 = scmp.ne.s32.totalorder %s985_s15, %s981_s14 }
  0x11   : > { %1260 = sst [smem:[#allocation6_spill]] %s1281_s25  ;;  %s65_s4 = ssub.s32 %s1009_s21, %s1281_s25 }
  0x12   : > { %s1111_s30 = scalar_select %p39_p4, %s993_s17, %s41_s26  }
  0x13   : > { %s66_s5 = sor.u32 %s65_s4, %s37_s27  ;;  %p121_p7 = scmp.eq.s32.totalorder %s65_s4, 0 }
  0x14   : > { %p67_p8 = scmp.eq.s32.totalorder %s66_s5, 0  ;;  %p1117_p9 = por %p76_p6, %p49_p2 }
  0x15   : > { %s123_s7 = sadd.s32 1, %s977_s13  ;;  %p133_p10 = scmp.ne.s32.totalorder %s977_s13, %s973_s12 }
  0x16   : > { %s1125_s8 = scalar_select %p67_p8, %s985_s15, %s69_s29  }
  0x17   : > { %s1128_s9 = scalar_select %p121_p7, %s977_s13, %s123_s7  }
  0x18   : > { %p134_p11 = scmp.eq.s32.totalorder %s747_s23, 17  ;;  %p750_p13 = scmp.ge.s32.totalorder %s1013_s22, 18 }
  0x1a   : > { %p1130_p12 = por %p134_p11, %p133_p10  ;;  %156 = sbr.rel (%p750_p13) target bundleno = 65 (0x41), region = 16 }
  0x21   : > { %159 = sbr.rel (!%p1103_p5) target bundleno = 45 (0x2d), region = 20  ;;  %s161_s11 = sand.u32 (%p1103_p5), 1, %s993_s17  }
  0x22   : > { %s752_s26 = sshll.u32 (%p1103_p5), %s1005_s20, 2  ;;  %s751_s27 = sshll.u32 (%p1103_p5), %s161_s11, 4 }
  0x23   : > { %s1263_s0 = sld [smem:[#allocation7_spill]] (%p1103_p5)  ;;  %s163_s23 = scalar_lea.vmem (%p1103_p5), [#allocation3], %s751_s27 }
  0x29   : > { %s168_s5 = scalar_lea.vmem %s1263_s0, %s752_s26 }
  0x2a   : > { %v184_v0 = vld [vmem:[%s168_s5] sm:$0xf]  ;;  %v186_v1 = vld [vmem:[%s168_s5 + $0x24] sm:$0xf]  ;;  %v188_v2 = vld [vmem:[%s168_s5 + $0x48] sm:$0xf] }
  0x2b   : > { %185 = vst [vmem:[%s163_s23] sm:$0xf] %v184_v0  ;;  %187 = vst [vmem:[%s163_s23 + $0x4] sm:$0xf] %v186_v1  ;;  %v190_v3 = vld [vmem:[%s168_s5 + $0x6c] sm:$0xf] }
  0x2c   : > { %189 = vst [vmem:[%s163_s23 + $0x8] sm:$0xf] %v188_v2  ;;  %191 = vst [vmem:[%s163_s23 + $0xc] sm:$0xf] %v190_v3 }
  0x2d PF: > { %222 = sbr.rel (!%p1117_p9) target bundleno = 65 (0x41), region = 61  ;;  %s224_s28 = sand.u32 (%p1117_p9), 1, %s985_s15  }
  0x2e   : > { %s782_s7 = sshll.u32 (%p1117_p9), %s1005_s20, 5  ;;  %s753_s11 = sshll.u32 (%p1117_p9), %s224_s28, 6 }
  0x2f   : > { %s229_s26 = sadd.s32 (%p1117_p9), %s1009_s21, %s782_s7  ;;  %s1264_s1 = sld [smem:[#allocation8_spill]] (%p1117_p9) }
  0x30   : > { %s756_s29 = sshll.u32 (%p1117_p9), %s229_s26, 2  ;;  %s226_s6 = scalar_lea.vmem (%p1117_p9), [#allocation4], %s753_s11 }
  0x35   : > { %s1150_s0 = scalar_lea.vmem %s1264_s1, %s756_s29 }
  0x36   : > { %v247_v4 = vld [vmem:[%s1150_s0] sm:$0xf]  ;;  %v249_v5 = vld [vmem:[%s1150_s0 + $0x8] sm:$0xf]  ;;  %v251_v6 = vld [vmem:[%s1150_s0 + $0x10] sm:$0xf] }
  0x37   : > { %248 = vst [vmem:[%s226_s6] sm:$0xf] %v247_v4  ;;  %250 = vst [vmem:[%s226_s6 + $0x4] sm:$0xf] %v249_v5  ;;  %v253_v7 = vld [vmem:[%s1150_s0 + $0x18] sm:$0xf] }
  0x38   : > { %252 = vst [vmem:[%s226_s6 + $0x8] sm:$0xf] %v251_v6  ;;  %v255_v8 = vld [vmem:[%s1150_s0 + $0x20] sm:$0xf]  ;;  %v257_v9 = vld [vmem:[%s1150_s0 + $0x28] sm:$0xf] }
  0x39   : > { %254 = vst [vmem:[%s226_s6 + $0xc] sm:$0xf] %v253_v7  ;;  %256 = vst [vmem:[%s226_s6 + $0x10] sm:$0xf] %v255_v8  ;;  %v259_v10 = vld [vmem:[%s1150_s0 + $0x30] sm:$0xf] }
  0x3a   : > { %258 = vst [vmem:[%s226_s6 + $0x14] sm:$0xf] %v257_v9  ;;  %v261_v11 = vld [vmem:[%s1150_s0 + $0x38] sm:$0xf]  ;;  %v263_v12 = vld [vmem:[%s1150_s0 + $0x40] sm:$0xf] }
  0x3b   : > { %260 = vst [vmem:[%s226_s6 + $0x18] sm:$0xf] %v259_v10  ;;  %262 = vst [vmem:[%s226_s6 + $0x1c] sm:$0xf] %v261_v11  ;;  %v265_v13 = vld [vmem:[%s1150_s0 + $0x48] sm:$0xf] }
  0x3c   : > { %264 = vst [vmem:[%s226_s6 + $0x20] sm:$0xf] %v263_v12  ;;  %v267_v14 = vld [vmem:[%s1150_s0 + $0x50] sm:$0xf]  ;;  %v269_v15 = vld [vmem:[%s1150_s0 + $0x58] sm:$0xf] }
  0x3d   : > { %266 = vst [vmem:[%s226_s6 + $0x24] sm:$0xf] %v265_v13  ;;  %268 = vst [vmem:[%s226_s6 + $0x28] sm:$0xf] %v267_v14  ;;  %v271_v16 = vld [vmem:[%s1150_s0 + $0x60] sm:$0xf] }
  0x3e   : > { %270 = vst [vmem:[%s226_s6 + $0x2c] sm:$0xf] %v269_v15  ;;  %v273_v17 = vld [vmem:[%s1150_s0 + $0x68] sm:$0xf]  ;;  %v275_v18 = vld [vmem:[%s1150_s0 + $0x70] sm:$0xf] }
  0x3f   : > { %272 = vst [vmem:[%s226_s6 + $0x30] sm:$0xf] %v271_v16  ;;  %274 = vst [vmem:[%s226_s6 + $0x34] sm:$0xf] %v273_v17  ;;  %v277_v19 = vld [vmem:[%s1150_s0 + $0x78] sm:$0xf] }
  0x40   : > { %276 = vst [vmem:[%s226_s6 + $0x38] sm:$0xf] %v275_v18  ;;  %278 = vst [vmem:[%s226_s6 + $0x3c] sm:$0xf] %v277_v19 }
  0x41 PF: > { %p757_p0 = scmp.ge.s32.totalorder %s1013_s22, 1  ;;  %p338_p1 = scmp.lt.s32.totalorder %s1013_s22, 19 }
  0x43   : > { %p339_p2 = pnand %p757_p0, %p338_p1 }
  0x44   : > { %s345_s5 = sand.u32 (!%p339_p2), 1, %s989_s16   ;;  %s352_s23 = sand.u32 (!%p339_p2), 1, %s981_s14  }
  0x45   : > { %342 = sbr.rel (%p339_p2) target bundleno = 358 (0x166), region = 106  ;;  %s1172_s28 = sshll.u32 (!%p339_p2), %s345_s5, 4 }
  0x46   : > { %s759_s0 = sshll.u32 (!%p339_p2), %s352_s23, 6  ;;  %s378_s7 = sand.u32 (!%p339_p2), 1, %s973_s12  }
  0x47   : > { %p383_p3 = scmp.lt.s32.totalorder (!%p339_p2), %s1001_s19, 1  ;;  %s760_s11 = sshll.u32 (!%p339_p2), %s378_s7, 4 }
  0x48   : > { %s347_s6 = scalar_lea.vmem (!%p339_p2), [#allocation3], %s1172_s28  ;;  %s1184_s1 = scalar_lea.vmem (!%p339_p2), [#allocation4], %s759_s0 }
  0x49   : > { %s1186_s25 = scalar_lea.vmem (!%p339_p2), [#allocation5], %s760_s11  ;;  %p761_p4 = scmp.ne.s32.totalorder (!%p339_p2), %s997_s18, 0 }
  0x4c   : > { %s1177_s26 = scalar_select %p383_p3, %s1001_s19, 1 }
  0x4d   : > { %391 = sbr.rel (%p761_p4) target bundleno = 84 (0x54), region = 118  ;;  %v1015_v20 = vmov (!%p761_p4), 0.0  }
  0x4e   : > { %s385_s27 = scalar_lea.vmem %s1254_s2, %s1177_s26  ;;  %392 = vst [vmem:[#allocation2] sm:$0xff] (!%p761_p4), %v1015_v20  ;;  %393 = vst [vmem:[#allocation2 + $0x8] sm:$0xff] (!%p761_p4), %v1015_v20 }
  0x4f   : > { %394 = vst [vmem:[#allocation2 + $0x10] sm:$0xff] (!%p761_p4), %v1015_v20  ;;  %395 = vst [vmem:[#allocation2 + $0x18] sm:$0xff] (!%p761_p4), %v1015_v20 }
  0x54 PF: > { %v917_v21 = vld [vmem:[%s1184_s1] sm:$0xff]   ;;  %v918_v22 = vld [vmem:[%s1184_s1 + $0x8] sm:$0xff]   ;;  %v919_v23 = vld [vmem:[%s1184_s1 + $0x10] sm:$0xff]   ;;  %p772_p5 = scmp.ne.s32.totalorder %s997_s18, 8 }
  0x55   : > { %808 = vmatprep.subr.bf16.mxu0 %v917_v21  ;;  %v920_v24 = vld [vmem:[%s1184_s1 + $0x18] sm:$0xff]   ;;  %v925_v25 = vld [vmem:[%s347_s6] sm:$0xff]   ;;  %v922_v27 = vld [vmem:[%s1184_s1 + $0x28] sm:$0xff]  }
  0x56   : > { %809 = vmatpush3.bf16.msra.mxu0 %v917_v21  ;;  %824 = vmatprep.mubr.bf16.mxu0 %v925_v25  ;;  %v921_v26 = vld [vmem:[%s1184_s1 + $0x20] sm:$0xff]   ;;  %v923_v28 = vld [vmem:[%s1184_s1 + $0x30] sm:$0xff]   ;;  %v924_v29 = vld [vmem:[%s1184_s1 + $0x38] sm:$0xff]  }
  0x57   : > { %810 = vmatprep.subr.bf16.mxu0 %v918_v22  ;;  %v926_v30 = vld [vmem:[%s347_s6 + $0x8] sm:$0xff]   ;;  %v398_v31 = vld [vmem:[#allocation2 + $0x10] sm:$0xff]  ;;  %v396_v32 = vld [vmem:[#allocation2] sm:$0xff] }
  0x58   : > { %v399_v34 = vld [vmem:[#allocation2 + $0x18] sm:$0xff]  ;;  %v397_v37 = vld [vmem:[#allocation2 + $0x8] sm:$0xff]  ;;  %v773_v45 = vld [vmem:[%s385_s27] ss:$0 sm:$0xff] (!%p772_p5) }
  0x5a   : > { %811 = vmatpush3.bf16.msra.mxu0 %v918_v22 }
  0x5b   : > { %812 = vmatprep.subr.bf16.mxu0 %v919_v23 }
  0x5e   : > { %813 = vmatpush3.bf16.msra.mxu0 %v919_v23 }
  0x5f   : > { %814 = vmatprep.subr.bf16.mxu0 %v920_v24 }
  0x62   : > { %815 = vmatpush3.bf16.msra.mxu0 %v920_v24 }
  0x63   : > { %816 = vmatprep.subr.bf16.mxu0 %v921_v26 }
  0x66   : > { %817 = vmatpush3.bf16.msra.mxu0 %v921_v26 }
  0x67   : > { %818 = vmatprep.subr.bf16.mxu0 %v922_v27 }
  0x6a   : > { %819 = vmatpush3.bf16.msra.mxu0 %v922_v27 }
  0x6b   : > { %820 = vmatprep.subr.bf16.mxu0 %v923_v28 }
  0x6e   : > { %821 = vmatpush3.bf16.msra.mxu0 %v923_v28 }
  0x6f   : > { %822 = vmatprep.subr.bf16.mxu0 %v924_v29 }
  0x72   : > { %823 = vmatpush3.bf16.msra.mxu0 %v924_v29 }
  0x75   : > { %825 = vmatmul.mubr.bf16.vlgmr.msra.gmra.mrb[0].mxu0 %v926_v30 }
 0x148   : > { %v826_v33 = vpop.f32.mrb[0].mxu0  ;;  %540 = sbr.rel (%p772_p5) target bundleno = 349 (0x15d), region = 122 }
 0x149   : > { %v531_v35 = vadd.f32 %v826_v33, %v398_v31  ;;  %v514_v36 = vpop.f32.mrb[1].mxu0 }
 0x14a   : > { %v529_v38 = vadd.f32 %v514_v36, %v396_v32  ;;  %v827_v39 = vpop.f32.mrb[2].mxu0 }
 0x14b   : > { %535 = vst [vmem:[#allocation2 + $0x10] sm:$0xff] %v531_v35  ;;  %v532_v40 = vadd.f32 %v827_v39, %v399_v34  ;;  %v517_v41 = vpop.f32.mrb[3].mxu0 }
 0x14c   : > { %533 = vst [vmem:[#allocation2] sm:$0xff] %v529_v38  ;;  %v530_v42 = vadd.f32 %v517_v41, %v397_v37 }
 0x14d   : > { %536 = vst [vmem:[#allocation2 + $0x18] sm:$0xff] %v532_v40 }
 0x14e   : > { %534 = vst [vmem:[#allocation2 + $0x8] sm:$0xff] %v530_v42 }
 0x152   : > { %v543_v48 = vld [vmem:[#allocation2 + $0x10] sm:$0xff] }
 0x153   : > { %v541_v43 = vld [vmem:[#allocation2] sm:$0xff]  ;;  %v554_v50 = vadd.f32 %v773_v45, %v543_v48 }
 0x154   : > { %v552_v46 = vadd.f32 %v773_v45, %v541_v43  ;;  %v544_v49 = vld [vmem:[#allocation2 + $0x18] sm:$0xff] }
 0x155   : > { %v542_v44 = vld [vmem:[#allocation2 + $0x8] sm:$0xff]  ;;  %v555_v51 = vadd.f32 %v773_v45, %v544_v49  ;;  %v558_v54 = vmax.f32 %v554_v50, 0.0 }
 0x156   : > { %v553_v47 = vadd.f32 %v773_v45, %v542_v44  ;;  %v556_v52 = vmax.f32 %v552_v46, 0.0 }
 0x157   : > { %v559_v55 = vmax.f32 %v555_v51, 0.0 }
 0x158   : > { %v557_v53 = vmax.f32 %v553_v47, 0.0 }
 0x159   : > { %v795_v57 = vpack.c.bf16 %v559_v55, %v558_v54 }
 0x15a   : > { %v790_v56 = vpack.c.bf16 %v557_v53, %v556_v52 }
 0x15b   : > { %797 = vst [vmem:[%s1186_s25 + $0x8] sm:$0xff] %v795_v57  }
 0x15c   : > { %791 = vst [vmem:[%s1186_s25] sm:$0xff] %v790_v56  }
 0x15d PF: > { %586 = sbr.rel (!%p1130_p12) target bundleno = 358 (0x166), region = 126  ;;  %s779_s14 = sshll.u32 (%p1130_p12), %s1001_s19, 2 }
 0x15e   : > { %s591_s5 = scalar_lea.vmem (%p1130_p12), %s1255_s3, %s779_s14 }
 0x162   : > { %v611_v60 = vld [vmem:[%s1186_s25 + $0x8] sm:$0xf] (%p1130_p12)  ;;  %v613_v61 = vld [vmem:[%s1186_s25 + $0xc] sm:$0xf] (%p1130_p12) }
 0x163   : > { %v607_v58 = vld [vmem:[%s1186_s25] sm:$0xf] (%p1130_p12)  ;;  %v609_v59 = vld [vmem:[%s1186_s25 + $0x4] sm:$0xf] (%p1130_p12)  ;;  %612 = vst [vmem:[%s591_s5 + $0x10] sm:$0xf] (%p1130_p12), %v611_v60 }
 0x164   : > { %608 = vst [vmem:[%s591_s5] sm:$0xf] %v607_v58  ;;  %610 = vst [vmem:[%s591_s5 + $0x8] sm:$0xf] %v609_v59 }
 0x165   : > { %614 = vst [vmem:[%s591_s5 + $0x18] sm:$0xf] %v613_v61 }
 0x166 PF: > { %s13_s22 = sadd.s32 1, %s1013_s22   ;;  %s1265_s10 = sld [smem:[#allocation6_spill]] }
 0x167   : > { %p10_p6 = scmp.ge.s32.totalorder %s13_s22, 20   ;;  %s1266_s12 = smov %s977_s13 }
 0x168   : > { %s1267_s13 = smov %s1128_s9  ;;  %s1268_s14 = smov %s985_s15 }
 0x169   : > { %s1269_s15 = smov %s1125_s8  ;;  %s1270_s16 = smov %s993_s17 }
 0x16a   : > { %s1271_s17 = smov %s1111_s30  ;;  %s1272_s18 = smov %s1005_s20 }
 0x16b   : > { %s1273_s19 = smov %s1009_s21  ;;  %s1274_s20 = smov %s1277_s24 }
 0x16c   : > { %s1275_s21 = smov %s1265_s10  ;;  %12 = sbr.rel (!%p10_p6) target bundleno = 9 (0x9), region = 209 }

// kernel: my_resnet_forward.32
= control target key start
LH: loop header
LB: loop body
LE: loop exit
PB: predicated region body
PF: predicated region fallthrough
CT: control target
= control target key end

     0   :  { %s875_s12 = smov 0   ;;  %s877_s13 = smov 0   ;;  %s980_s0 = inlined_call_operand.vmem [shape: bf16[32,128], index: 0, kind: input, shape index: {}]   ;;  %s981_s1 = inlined_call_operand.vmem [shape: bf16[128,256], index: 1, kind: input, shape index: {}]   ;;  %s982_s2 = inlined_call_operand.vmem [shape: f32[1,256], index: 2, kind: input, shape index: {}]   ;;  %s983_s3 = inlined_call_operand.vmem [shape: bf16[32,256], index: 3, kind: output, shape index: {}]  }
   0x1   :  { %s879_s14 = smov 0   ;;  %s881_s15 = smov 0  }
   0x2   :  { %s883_s16 = smov 0  }
   0x3 LB: > { %s28_s17 = sadd.s32 1, %s849_s15  ;;  %s691_s18 = sadd.s32 4294967295, %s853_s16   ;;  %s853_s16 = sphi %s883_s16, %s13_s16   ;;  %s849_s15 = sphi %s881_s15, %s988_s15   ;;  %s845_s14 = sphi %s879_s14, %s987_s14   ;;  %s841_s13 = sphi %s877_s13, %s986_s13   ;;  %s837_s12 = sphi %s875_s12, %s985_s12  }
   0x4   : > { %p30_p0 = scmp.ge.s32.totalorder %s28_s17, 2  ;;  %p76_p1 = scmp.ne.s32.totalorder %s841_s13, %s837_s12 }
   0x5   : > { %p77_p2 = scmp.eq.s32.totalorder %s853_s16, 0  ;;  %p134_p4 = scmp.eq.s32.totalorder %s691_s18, 1 }
   0x6   : > { %s990_s17 = smov (%p30_p0, %s28_s17), 0  ;;  %s69_s20 = sadd.s32 1, %s841_s13 }
   0x7   : > { %p78_p3 = por %p77_p2, %p76_p1  ;;  %s65_s19 = ssub.s32 %s849_s15, %s990_s17 }
   0x8   : > { %p67_p5 = scmp.eq.s32.totalorder %s65_s19, 0  ;;  %p910_p6 = por %p134_p4, %p76_p1 }
   0x9   : > { %p695_p7 = scmp.ge.s32.totalorder %s853_s16, 2 }
   0xa   : > { %s915_s22 = scalar_select %p67_p5, %s841_s13, %s69_s20  }
   0xb   : > { %168 = sbr.rel (%p695_p7) target bundleno = 32 (0x20), region = 20 }
  0x12   : > { %171 = sbr.rel (!%p78_p3) target bundleno = 32 (0x20), region = 24  ;;  %s173_s23 = sand.u32 (%p78_p3), 1, %s841_s13  }
  0x13   : > { %s697_s24 = sshll.u32 (%p78_p3), %s849_s15, 2  ;;  %s696_s25 = sshll.u32 (%p78_p3), %s173_s23, 6 }
  0x14   : > { %s923_s28 = scalar_lea.vmem (%p78_p3), %s981_s1, %s697_s24  ;;  %s175_s29 = scalar_lea.vmem (%p78_p3), [#allocation3], %s696_s25 }
  0x15   : > { %v196_v0 = vld [vmem:[%s923_s28] sm:$0xf] (%p78_p3)  ;;  %v198_v1 = vld [vmem:[%s923_s28 + $0x8] sm:$0xf] (%p78_p3)  ;;  %v200_v2 = vld [vmem:[%s923_s28 + $0x10] sm:$0xf] (%p78_p3) }
  0x16   : > { %197 = vst [vmem:[%s175_s29] sm:$0xf] (%p78_p3), %v196_v0  ;;  %199 = vst [vmem:[%s175_s29 + $0x4] sm:$0xf] (%p78_p3), %v198_v1  ;;  %v202_v3 = vld [vmem:[%s923_s28 + $0x18] sm:$0xf] (%p78_p3) }
  0x17   : > { %v204_v4 = vld [vmem:[%s923_s28 + $0x20] sm:$0xf] (%p78_p3)  ;;  %201 = vst [vmem:[%s175_s29 + $0x8] sm:$0xf] (%p78_p3), %v200_v2  ;;  %203 = vst [vmem:[%s175_s29 + $0xc] sm:$0xf] (%p78_p3), %v202_v3 }
  0x18   : > { %205 = vst [vmem:[%s175_s29 + $0x10] sm:$0xf] (%p78_p3), %v204_v4  ;;  %v206_v5 = vld [vmem:[%s923_s28 + $0x28] sm:$0xf] (%p78_p3)  ;;  %v208_v6 = vld [vmem:[%s923_s28 + $0x30] sm:$0xf] (%p78_p3) }
  0x19   : > { %v210_v7 = vld [vmem:[%s923_s28 + $0x38] sm:$0xf]  ;;  %207 = vst [vmem:[%s175_s29 + $0x14] sm:$0xf] %v206_v5  ;;  %209 = vst [vmem:[%s175_s29 + $0x18] sm:$0xf] %v208_v6 }
  0x1a   : > { %211 = vst [vmem:[%s175_s29 + $0x1c] sm:$0xf] %v210_v7  ;;  %v212_v8 = vld [vmem:[%s923_s28 + $0x40] sm:$0xf]  ;;  %v214_v9 = vld [vmem:[%s923_s28 + $0x48] sm:$0xf] }
  0x1b   : > { %v216_v10 = vld [vmem:[%s923_s28 + $0x50] sm:$0xf]  ;;  %213 = vst [vmem:[%s175_s29 + $0x20] sm:$0xf] %v212_v8  ;;  %215 = vst [vmem:[%s175_s29 + $0x24] sm:$0xf] %v214_v9 }
  0x1c   : > { %217 = vst [vmem:[%s175_s29 + $0x28] sm:$0xf] %v216_v10  ;;  %v218_v11 = vld [vmem:[%s923_s28 + $0x58] sm:$0xf]  ;;  %v220_v12 = vld [vmem:[%s923_s28 + $0x60] sm:$0xf] }
  0x1d   : > { %v222_v13 = vld [vmem:[%s923_s28 + $0x68] sm:$0xf]  ;;  %219 = vst [vmem:[%s175_s29 + $0x2c] sm:$0xf] %v218_v11  ;;  %221 = vst [vmem:[%s175_s29 + $0x30] sm:$0xf] %v220_v12 }
  0x1e   : > { %223 = vst [vmem:[%s175_s29 + $0x34] sm:$0xf] %v222_v13  ;;  %v224_v14 = vld [vmem:[%s923_s28 + $0x70] sm:$0xf]  ;;  %v226_v15 = vld [vmem:[%s923_s28 + $0x78] sm:$0xf] }
  0x1f   : > { %225 = vst [vmem:[%s175_s29 + $0x38] sm:$0xf] %v224_v14  ;;  %227 = vst [vmem:[%s175_s29 + $0x3c] sm:$0xf] %v226_v15 }
  0x20 PF: > { %p698_p8 = scmp.ge.s32.totalorder %s853_s16, 1  ;;  %p287_p9 = scmp.lt.s32.totalorder %s853_s16, 3 }
  0x22   : > { %p288_p10 = pnand %p698_p8, %p287_p9 }
  0x23   : > { %s294_s30 = sand.u32 (!%p288_p10), 1, %s837_s12   ;;  %v813_v16 = vld [vmem:[%s980_s0] sm:$0xff] (!%p288_p10)   ;;  %v814_v25 = vld [vmem:[%s980_s0 + $0x8] sm:$0xff] (!%p288_p10)   ;;  %p337_p11 = scmp.lt.s32.totalorder (!%p288_p10), %s845_s14, 1 }
  0x24   : > { %291 = sbr.rel (%p288_p10) target bundleno = 300 (0x12c), region = 69  ;;  %s699_s6 = sshll.u32 (!%p288_p10), %s294_s30, 6  ;;  %761 = vmatprep.mubr.bf16.mxu0 (!%p288_p10), %v813_v16 }
  0x25   : > { %s296_s7 = scalar_lea.vmem (!%p288_p10), [#allocation3], %s699_s6  ;;  %s700_s20 = sshll.u32 (!%p288_p10), %s294_s30, 4 }
  0x26   : > { %v805_v17 = vld [vmem:[%s296_s7] sm:$0xff] (!%p288_p10)   ;;  %v806_v18 = vld [vmem:[%s296_s7 + $0x8] sm:$0xff] (!%p288_p10)   ;;  %v807_v19 = vld [vmem:[%s296_s7 + $0x10] sm:$0xff] (!%p288_p10)   ;;  %s326_s23 = scalar_lea.vmem (!%p288_p10), [#allocation4], %s700_s20 }
  0x27   : > { %745 = vmatprep.subr.bf16.mxu0 (!%p288_p10), %v805_v17  ;;  %v808_v20 = vld [vmem:[%s296_s7 + $0x18] sm:$0xff] (!%p288_p10)   ;;  %v809_v21 = vld [vmem:[%s296_s7 + $0x20] sm:$0xff] (!%p288_p10)   ;;  %v810_v22 = vld [vmem:[%s296_s7 + $0x28] sm:$0xff] (!%p288_p10)  }
  0x28   : > { %746 = vmatpush3.bf16.msra.mxu0 (!%p288_p10), %v805_v17  ;;  %v811_v23 = vld [vmem:[%s296_s7 + $0x30] sm:$0xff] (!%p288_p10)   ;;  %v812_v24 = vld [vmem:[%s296_s7 + $0x38] sm:$0xff] (!%p288_p10)  }
  0x29   : > { %747 = vmatprep.subr.bf16.mxu0 (!%p288_p10), %v806_v18 }
  0x2b   : > { %s338_s10 = scalar_select %p337_p11, %s845_s14, 1 }
  0x2c   : > { %748 = vmatpush3.bf16.msra.mxu0 %v806_v18  ;;  %s717_s24 = sshll.u32 (%p910_p6), %s845_s14, 2 }
  0x2d   : > { %749 = vmatprep.subr.bf16.mxu0 %v807_v19  ;;  %s339_s19 = scalar_lea.vmem %s982_s2, %s338_s10  ;;  %s540_s26 = scalar_lea.vmem (%p910_p6), %s983_s3, %s717_s24 }
  0x2e   : > { %v711_v27 = vld [vmem:[%s339_s19] ss:$0 sm:$0xff] }
  0x30   : > { %750 = vmatpush3.bf16.msra.mxu0 %v807_v19 }
  0x31   : > { %751 = vmatprep.subr.bf16.mxu0 %v808_v20 }
  0x34   : > { %752 = vmatpush3.bf16.msra.mxu0 %v808_v20 }
  0x35   : > { %753 = vmatprep.subr.bf16.mxu0 %v809_v21 }
  0x38   : > { %754 = vmatpush3.bf16.msra.mxu0 %v809_v21 }
  0x39   : > { %755 = vmatprep.subr.bf16.mxu0 %v810_v22 }
  0x3c   : > { %756 = vmatpush3.bf16.msra.mxu0 %v810_v22 }
  0x3d   : > { %757 = vmatprep.subr.bf16.mxu0 %v811_v23 }
  0x40   : > { %758 = vmatpush3.bf16.msra.mxu0 %v811_v23 }
  0x41   : > { %759 = vmatprep.subr.bf16.mxu0 %v812_v24 }
  0x44   : > { %760 = vmatpush3.bf16.msra.mxu0 %v812_v24 }
  0x47   : > { %762 = vmatmul.mubr.bf16.vlgmr.msra.gmra.mrb[0].mxu0 %v814_v25 }
 0x11a   : > { %v763_v26 = vpop.f32.mrb[0].mxu0 }
 0x11b   : > { %v468_v28 = vpop.f32.mrb[1].mxu0  ;;  %v507_v30 = vadd.f32 %v763_v26, %v711_v27 }
 0x11c   : > { %v764_v29 = vpop.f32.mrb[2].mxu0  ;;  %v505_v33 = vadd.f32 %v711_v27, %v468_v28  ;;  %535 = sbr.rel (!%p910_p6) target bundleno = 300 (0x12c), region = 85 }
 0x11d   : > { %v508_v31 = vadd.f32 %v764_v29, %v711_v27  ;;  %v471_v32 = vpop.f32.mrb[3].mxu0 }
 0x11e   : > { %v506_v34 = vadd.f32 %v711_v27, %v471_v32 }
 0x11f   : > { %v732_v35 = vpack.c.bf16 %v508_v31, %v507_v30 }
 0x120   : > { %v727_v36 = vpack.c.bf16 %v506_v34, %v505_v33 }
 0x121   : > { %734 = vst [vmem:[%s326_s23 + $0x8] sm:$0xff] %v732_v35  }
 0x122   : > { %728 = vst [vmem:[%s326_s23] sm:$0xff] %v727_v36  }
 0x128   : > { %v560_v39 = vld [vmem:[%s326_s23 + $0x8] sm:$0xf]  ;;  %v562_v40 = vld [vmem:[%s326_s23 + $0xc] sm:$0xf] }
 0x129   : > { %v556_v37 = vld [vmem:[%s326_s23] sm:$0xf]  ;;  %v558_v38 = vld [vmem:[%s326_s23 + $0x4] sm:$0xf]  ;;  %561 = vst [vmem:[%s540_s26 + $0x10] sm:$0xf] %v560_v39 }
 0x12a   : > { %557 = vst [vmem:[%s540_s26] sm:$0xf] %v556_v37  ;;  %559 = vst [vmem:[%s540_s26 + $0x8] sm:$0xf] %v558_v38 }
 0x12b   : > { %563 = vst [vmem:[%s540_s26 + $0x18] sm:$0xf] %v562_v40 }
 0x12c PF: > { %s13_s16 = sadd.s32 1, %s853_s16   ;;  %s985_s12 = smov %s841_s13 }
 0x12d   : > { %p10_p12 = scmp.ge.s32.totalorder %s13_s16, 4   ;;  %s986_s13 = smov %s915_s22 }
 0x12e   : > { %s987_s14 = smov %s849_s15  ;;  %s988_s15 = smov %s990_s17 }
 0x12f   :  { %12 = sbr.rel (!%p10_p12) target bundleno = 3 (0x3), region = 163 }

// kernel: my_resnet_forward.33
= control target key start
LH: loop header
LB: loop body
LE: loop exit
PB: predicated region body
PF: predicated region fallthrough
CT: control target
= control target key end

     0   :  { %s1659_s0 = inlined_call_operand.vmem [shape: bf16[32,2304], index: 0, kind: input, shape index: {}]   ;;  %s1660_s1 = inlined_call_operand.vmem [shape: bf16[2304,256], index: 1, kind: input, shape index: {}]   ;;  %s1661_s2 = inlined_call_operand.vmem [shape: f32[1,256], index: 2, kind: input, shape index: {}]   ;;  %s1662_s3 = inlined_call_operand.vmem [shape: bf16[32,256], index: 3, kind: input, shape index: {}]   ;;  %s1663_s4 = inlined_call_operand.vmem [shape: bf16[32,256], index: 4, kind: output, shape index: {}]  }
   0x1   :  { %1666 = sst [smem:[#allocation9_spill]] %s1659_s0 }
   0x2   :  { %s1361_s15 = smov 0   ;;  %s1363_s16 = smov 0  }
   0x3   :  { %s1365_s17 = smov 0   ;;  %s1367_s18 = smov 0  }
   0x4   :  { %s1369_s19 = smov 0   ;;  %s1371_s20 = smov 0  }
   0x5   :  { %s1373_s21 = smov 0   ;;  %s1375_s22 = smov 0  }
   0x6   :  { %s1377_s23 = smov 0   ;;  %s1379_s24 = smov 0  }
   0x7   :  { %s1381_s25 = smov 0  }
   0x8 LB: > { %s1017_s26 = sadd.s32 4294967295, %s1333_s25   ;;  %s26_s27 = sadd.s32 1, %s1325_s23  ;;  %s1333_s25 = sphi %s1381_s25, %s14_s25   ;;  %s1329_s24 = sphi %s1379_s24, %s1685_s24   ;;  %s1325_s23 = sphi %s1377_s23, %s1684_s23   ;;  %s1321_s22 = sphi %s1375_s22, %s1683_s22   ;;  %s1317_s21 = sphi %s1373_s21, %s1682_s21   ;;  %s1313_s20 = sphi %s1371_s20, %s1681_s20   ;;  %s1309_s19 = sphi %s1369_s19, %s1680_s19   ;;  %s1305_s18 = sphi %s1367_s18, %s1679_s18   ;;  %s1301_s17 = sphi %s1365_s17, %s1678_s17   ;;  %s1297_s16 = sphi %s1363_s16, %s1677_s16   ;;  %s1293_s15 = sphi %s1361_s15, %s1676_s15  }
   0x9   : > { %p27_p0 = scmp.ge.s32.totalorder %s26_s27, 9  ;;  %s29_s28 = sadd.s32 1, %s1329_s24 }
   0xa   : > { %s42_s29 = sadd.s32 1, %s1313_s20  ;;  %p49_p1 = scmp.ne.s32.totalorder %s1313_s20, %s1309_s19 }
   0xb   : > { %s1687_s27 = smov (%p27_p0, %s26_s27), 0  ;;  %s1689_s28 = smov (!%p27_p0, %s29_s28), %s1329_s24 }
   0xc   : > { %1667 = sst [smem:[#allocation7_spill]] %s1687_s27  ;;  %s38_s30 = ssub.s32 %s1325_s23, %s1687_s27 }
   0xd   : > { %p50_p2 = scmp.eq.s32.totalorder %s1333_s25, 0  ;;  %p31_p3 = scmp.ge.s32.totalorder %s1689_s28, 2 }
   0xe   : > { %p40_p4 = scmp.eq.s32.totalorder %s38_s30, 0  ;;  %s70_s6 = sadd.s32 1, %s1305_s18 }
   0xf   : > { %p1430_p5 = por %p50_p2, %p49_p1  ;;  %s1691_s28 = smov (%p31_p3, %s1689_s28), 0 }
  0x10   : > { %1669 = sst [smem:[#allocation8_spill]] %s1691_s28  ;;  %s66_s8 = ssub.s32 %s1329_s24, %s1691_s28 }
  0x11   : > { %s1438_s7 = scalar_select %p40_p4, %s1313_s20, %s42_s29  }
  0x12   : > { %p77_p6 = scmp.ne.s32.totalorder %s1305_s18, %s1301_s17  ;;  %s67_s9 = sor.u32 %s66_s8, %s38_s30 }
  0x13   : > { %p122_p7 = scmp.eq.s32.totalorder %s66_s8, 0  ;;  %p68_p8 = scmp.eq.s32.totalorder %s67_s9, 0 }
  0x14   : > { %p1446_p9 = por %p77_p6, %p50_p2  ;;  %s124_s11 = sadd.s32 1, %s1297_s16 }
  0x15   : > { %p131_p10 = scmp.ne.s32.totalorder %s1297_s16, %s1293_s15  ;;  %p163_p12 = scmp.eq.s32.totalorder %s1017_s26, 17 }
  0x16   : > { %s1454_s12 = scalar_select %p68_p8, %s1305_s18, %s70_s6  }
  0x17   : > { %s1457_s13 = scalar_select %p122_p7, %s1297_s16, %s124_s11  }
  0x18   : > { %p1461_p11 = por %p131_p10, %p50_p2  ;;  %p1465_p13 = por %p163_p12, %p131_p10 }
  0x19   : > { %p1020_p0 = scmp.ge.s32.totalorder %s1333_s25, 18 }
  0x1b   : > { %185 = sbr.rel (%p1020_p0) target bundleno = 80 (0x50), region = 16 }
  0x22   : > { %188 = sbr.rel (!%p1430_p5) target bundleno = 46 (0x2e), region = 20  ;;  %s190_s30 = sand.u32 (%p1430_p5), 1, %s1313_s20  }
  0x23   : > { %s1066_s6 = sshll.u32 (%p1430_p5), %s1325_s23, 3  ;;  %s1021_s8 = sshll.u32 (%p1430_p5), %s190_s30, 5 }
  0x24   : > { %s1673_s0 = sld [smem:[#allocation9_spill]] (%p1430_p5)  ;;  %s192_s26 = scalar_lea.vmem (%p1430_p5), [#allocation3], %s1021_s8 }
  0x2a   : > { %s198_s28 = scalar_lea.vmem %s1673_s0, %s1066_s6 }
  0x2b   : > { %v232_v0 = vld [vmem:[%s198_s28] sm:$0xff]  ;;  %v234_v1 = vld [vmem:[%s198_s28 + $0x48] sm:$0xff]  ;;  %v236_v2 = vld [vmem:[%s198_s28 + $0x90] sm:$0xff] }
  0x2c   : > { %233 = vst [vmem:[%s192_s26] sm:$0xff] %v232_v0  ;;  %235 = vst [vmem:[%s192_s26 + $0x8] sm:$0xff] %v234_v1  ;;  %v238_v3 = vld [vmem:[%s198_s28 + $0xd8] sm:$0xff] }
  0x2d   : > { %237 = vst [vmem:[%s192_s26 + $0x10] sm:$0xff] %v236_v2  ;;  %239 = vst [vmem:[%s192_s26 + $0x18] sm:$0xff] %v238_v3 }
  0x2e PF: > { %245 = sbr.rel (!%p1446_p9) target bundleno = 73 (0x49), region = 58  ;;  %s247_s5 = sand.u32 (%p1446_p9), 1, %s1305_s18  }
  0x2f   : > { %s1067_s30 = sshll.u32 (%p1446_p9), %s1325_s23, 6  ;;  %s1024_s9 = sshll.u32 (%p1446_p9), %s247_s5, 7 }
  0x30   : > { %s252_s6 = sadd.s32 (%p1446_p9), %s1329_s24, %s1067_s30  ;;  %s1490_s28 = scalar_lea.vmem (%p1446_p9), [#allocation4], %s1024_s9 }
  0x31   : > { %s1027_s11 = sshll.u32 (%p1446_p9), %s252_s6, 2 }
  0x32   : > { %s1485_s8 = scalar_lea.vmem (%p1446_p9), %s1660_s1, %s1027_s11 }
  0x33   : > { %v270_v4 = vld [vmem:[%s1485_s8] sm:$0xf] (%p1446_p9)  ;;  %v272_v5 = vld [vmem:[%s1485_s8 + $0x8] sm:$0xf] (%p1446_p9)  ;;  %v274_v6 = vld [vmem:[%s1485_s8 + $0x10] sm:$0xf] (%p1446_p9) }
  0x34   : > { %271 = vst [vmem:[%s1490_s28] sm:$0xf] (%p1446_p9), %v270_v4  ;;  %273 = vst [vmem:[%s1490_s28 + $0x4] sm:$0xf] (%p1446_p9), %v272_v5  ;;  %v276_v7 = vld [vmem:[%s1485_s8 + $0x18] sm:$0xf] (%p1446_p9) }
  0x35   : > { %275 = vst [vmem:[%s1490_s28 + $0x8] sm:$0xf] %v274_v6  ;;  %v278_v8 = vld [vmem:[%s1485_s8 + $0x20] sm:$0xf]  ;;  %v280_v9 = vld [vmem:[%s1485_s8 + $0x28] sm:$0xf] }
  0x36   : > { %277 = vst [vmem:[%s1490_s28 + $0xc] sm:$0xf] %v276_v7  ;;  %279 = vst [vmem:[%s1490_s28 + $0x10] sm:$0xf] %v278_v8  ;;  %v282_v10 = vld [vmem:[%s1485_s8 + $0x30] sm:$0xf] }
  0x37   : > { %281 = vst [vmem:[%s1490_s28 + $0x14] sm:$0xf] %v280_v9  ;;  %v284_v11 = vld [vmem:[%s1485_s8 + $0x38] sm:$0xf]  ;;  %v286_v12 = vld [vmem:[%s1485_s8 + $0x40] sm:$0xf] }
  0x38   : > { %283 = vst [vmem:[%s1490_s28 + $0x18] sm:$0xf] %v282_v10  ;;  %285 = vst [vmem:[%s1490_s28 + $0x1c] sm:$0xf] %v284_v11  ;;  %v288_v13 = vld [vmem:[%s1485_s8 + $0x48] sm:$0xf] }
  0x39   : > { %287 = vst [vmem:[%s1490_s28 + $0x20] sm:$0xf] %v286_v12  ;;  %v290_v14 = vld [vmem:[%s1485_s8 + $0x50] sm:$0xf]  ;;  %v292_v15 = vld [vmem:[%s1485_s8 + $0x58] sm:$0xf] }
  0x3a   : > { %289 = vst [vmem:[%s1490_s28 + $0x24] sm:$0xf] %v288_v13  ;;  %291 = vst [vmem:[%s1490_s28 + $0x28] sm:$0xf] %v290_v14  ;;  %v294_v16 = vld [vmem:[%s1485_s8 + $0x60] sm:$0xf] }
  0x3b   : > { %293 = vst [vmem:[%s1490_s28 + $0x2c] sm:$0xf] %v292_v15  ;;  %v296_v17 = vld [vmem:[%s1485_s8 + $0x68] sm:$0xf]  ;;  %v298_v18 = vld [vmem:[%s1485_s8 + $0x70] sm:$0xf] }
  0x3c   : > { %295 = vst [vmem:[%s1490_s28 + $0x30] sm:$0xf] %v294_v16  ;;  %297 = vst [vmem:[%s1490_s28 + $0x34] sm:$0xf] %v296_v17  ;;  %v300_v19 = vld [vmem:[%s1485_s8 + $0x78] sm:$0xf] }
  0x3d   : > { %299 = vst [vmem:[%s1490_s28 + $0x38] sm:$0xf] %v298_v18  ;;  %v302_v20 = vld [vmem:[%s1485_s8 + $0x80] sm:$0xf]  ;;  %v304_v21 = vld [vmem:[%s1485_s8 + $0x88] sm:$0xf] }
  0x3e   : > { %301 = vst [vmem:[%s1490_s28 + $0x3c] sm:$0xf] %v300_v19  ;;  %303 = vst [vmem:[%s1490_s28 + $0x40] sm:$0xf] %v302_v20  ;;  %v306_v22 = vld [vmem:[%s1485_s8 + $0x90] sm:$0xf] }
  0x3f   : > { %305 = vst [vmem:[%s1490_s28 + $0x44] sm:$0xf] %v304_v21  ;;  %v308_v23 = vld [vmem:[%s1485_s8 + $0x98] sm:$0xf]  ;;  %v310_v24 = vld [vmem:[%s1485_s8 + $0xa0] sm:$0xf] }
  0x40   : > { %307 = vst [vmem:[%s1490_s28 + $0x48] sm:$0xf] %v306_v22  ;;  %309 = vst [vmem:[%s1490_s28 + $0x4c] sm:$0xf] %v308_v23  ;;  %v312_v25 = vld [vmem:[%s1485_s8 + $0xa8] sm:$0xf] }
  0x41   : > { %311 = vst [vmem:[%s1490_s28 + $0x50] sm:$0xf] %v310_v24  ;;  %v314_v26 = vld [vmem:[%s1485_s8 + $0xb0] sm:$0xf]  ;;  %v316_v27 = vld [vmem:[%s1485_s8 + $0xb8] sm:$0xf] }
  0x42   : > { %313 = vst [vmem:[%s1490_s28 + $0x54] sm:$0xf] %v312_v25  ;;  %315 = vst [vmem:[%s1490_s28 + $0x58] sm:$0xf] %v314_v26  ;;  %v318_v28 = vld [vmem:[%s1485_s8 + $0xc0] sm:$0xf] }
  0x43   : > { %317 = vst [vmem:[%s1490_s28 + $0x5c] sm:$0xf] %v316_v27  ;;  %v320_v29 = vld [vmem:[%s1485_s8 + $0xc8] sm:$0xf]  ;;  %v322_v30 = vld [vmem:[%s1485_s8 + $0xd0] sm:$0xf] }
  0x44   : > { %319 = vst [vmem:[%s1490_s28 + $0x60] sm:$0xf] %v318_v28  ;;  %321 = vst [vmem:[%s1490_s28 + $0x64] sm:$0xf] %v320_v29  ;;  %v324_v31 = vld [vmem:[%s1485_s8 + $0xd8] sm:$0xf] }
  0x45   : > { %323 = vst [vmem:[%s1490_s28 + $0x68] sm:$0xf] %v322_v30  ;;  %v326_v32 = vld [vmem:[%s1485_s8 + $0xe0] sm:$0xf]  ;;  %v328_v33 = vld [vmem:[%s1485_s8 + $0xe8] sm:$0xf] }
  0x46   : > { %325 = vst [vmem:[%s1490_s28 + $0x6c] sm:$0xf] %v324_v31  ;;  %327 = vst [vmem:[%s1490_s28 + $0x70] sm:$0xf] %v326_v32  ;;  %v330_v34 = vld [vmem:[%s1485_s8 + $0xf0] sm:$0xf] }
  0x47   : > { %329 = vst [vmem:[%s1490_s28 + $0x74] sm:$0xf] %v328_v33  ;;  %v332_v35 = vld [vmem:[%s1485_s8 + $0xf8] sm:$0xf]  ;;  %331 = vst [vmem:[%s1490_s28 + $0x78] sm:$0xf] %v330_v34 }
  0x48   : > { %333 = vst [vmem:[%s1490_s28 + $0x7c] sm:$0xf] %v332_v35 }
  0x49 PF: > { %426 = sbr.rel (!%p1461_p11) target bundleno = 80 (0x50), region = 103  ;;  %s428_s0 = sand.u32 (%p1461_p11), 1, %s1297_s16  }
  0x4a   : > { %s1029_s27 = sshll.u32 (%p1461_p11), %s1329_s24, 2  ;;  %s1028_s10 = sshll.u32 (%p1461_p11), %s428_s0, 4 }
  0x4b   : > { %s435_s30 = scalar_lea.vmem (%p1461_p11), %s1662_s3, %s1029_s27  ;;  %s430_s9 = scalar_lea.vmem (%p1461_p11), [#allocation5], %s1028_s10 }
  0x4c   : > { %v451_v36 = vld [vmem:[%s435_s30] sm:$0xf] (%p1461_p11)  ;;  %v453_v37 = vld [vmem:[%s435_s30 + $0x8] sm:$0xf] (%p1461_p11)  ;;  %v455_v38 = vld [vmem:[%s435_s30 + $0x10] sm:$0xf] (%p1461_p11) }
  0x4d   : > { %452 = vst [vmem:[%s430_s9] sm:$0xf] (%p1461_p11), %v451_v36  ;;  %454 = vst [vmem:[%s430_s9 + $0x4] sm:$0xf] (%p1461_p11), %v453_v37  ;;  %v457_v39 = vld [vmem:[%s435_s30 + $0x18] sm:$0xf] (%p1461_p11) }
  0x4e   : > { %456 = vst [vmem:[%s430_s9 + $0x8] sm:$0xf] (%p1461_p11), %v455_v38  ;;  %458 = vst [vmem:[%s430_s9 + $0xc] sm:$0xf] (%p1461_p11), %v457_v39 }
  0x50 PF: > { %p1030_p1 = scmp.ge.s32.totalorder %s1333_s25, 1  ;;  %p488_p2 = scmp.lt.s32.totalorder %s1333_s25, 19 }
  0x52   : > { %p489_p3 = pnand %p1030_p1, %p488_p2 }
  0x53   : > { %s495_s14 = sand.u32 (!%p489_p3), 1, %s1309_s19   ;;  %s502_s6 = sand.u32 (!%p489_p3), 1, %s1301_s17  }
  0x54   : > { %492 = sbr.rel (%p489_p3) target bundleno = 377 (0x179), region = 144  ;;  %s1031_s11 = sshll.u32 (!%p489_p3), %s495_s14, 5 }
  0x55   : > { %s1032_s8 = sshll.u32 (!%p489_p3), %s502_s6, 7  ;;  %s509_s28 = sand.u32 (!%p489_p3), 1, %s1293_s15  }
  0x56   : > { %p547_p4 = scmp.lt.s32.totalorder (!%p489_p3), %s1321_s22, 1  ;;  %s1566_s0 = sshll.u32 (!%p489_p3), %s509_s28, 4 }
  0x57   : > { %s1575_s30 = scalar_lea.vmem (!%p489_p3), [#allocation3], %s1031_s11  ;;  %s1577_s9 = scalar_lea.vmem (!%p489_p3), [#allocation4], %s1032_s8 }
  0x58   : > { %s511_s17 = scalar_lea.vmem (!%p489_p3), [#allocation5], %s1566_s0  ;;  %s1581_s19 = scalar_lea.vmem (!%p489_p3), [#allocation6], %s1566_s0 }
  0x59   : > { %p1035_p5 = scmp.ne.s32.totalorder (!%p489_p3), %s1317_s21, 0 }
  0x5b   : > { %s1569_s27 = scalar_select %p547_p4, %s1321_s22, 1 }
  0x5c   : > { %556 = sbr.rel (%p1035_p5) target bundleno = 99 (0x63), region = 160  ;;  %v1335_v40 = vmov (!%p1035_p5), 0.0  }
  0x5d   : > { %s549_s5 = scalar_lea.vmem %s1661_s2, %s1569_s27  ;;  %557 = vst [vmem:[#allocation2] sm:$0xff] (!%p1035_p5), %v1335_v40  ;;  %558 = vst [vmem:[#allocation2 + $0x8] sm:$0xff] (!%p1035_p5), %v1335_v40 }
  0x5e   : > { %559 = vst [vmem:[#allocation2 + $0x10] sm:$0xff] (!%p1035_p5), %v1335_v40  ;;  %560 = vst [vmem:[#allocation2 + $0x18] sm:$0xff] (!%p1035_p5), %v1335_v40 }
  0x63 PF: > { %v1225_v41 = vld [vmem:[%s1577_s9 + $0x40] sm:$0xff]   ;;  %v1227_v43 = vld [vmem:[%s1577_s9 + $0x48] sm:$0xff]   ;;  %v1229_v45 = vld [vmem:[%s1577_s9 + $0x50] sm:$0xff]   ;;  %p1056_p6 = scmp.ne.s32.totalorder %s1317_s21, 8 }
  0x64   : > { %v1226_v42 = vld [vmem:[%s1577_s9] sm:$0xff]   ;;  %1092 = vmatprep.subr.bf16.mxu0 %v1225_v41  ;;  %1120 = vmatprep.subr.bf16.mxu1 %v1225_v41  ;;  %v1228_v44 = vld [vmem:[%s1577_s9 + $0x8] sm:$0xff]   ;;  %v1230_v46 = vld [vmem:[%s1577_s9 + $0x10] sm:$0xff]  }
  0x65   : > { %1093 = vmatpush3.bf16.msra.mxu0 %v1226_v42  ;;  %1128 = vmatpush3.bf16.msra.mxu1 %v1226_v42  ;;  %v1231_v47 = vld [vmem:[%s1577_s9 + $0x58] sm:$0xff]   ;;  %v1233_v49 = vld [vmem:[%s1577_s9 + $0x60] sm:$0xff]   ;;  %v1235_v51 = vld [vmem:[%s1577_s9 + $0x68] sm:$0xff]  }
  0x66   : > { %1094 = vmatprep.subr.bf16.mxu0 %v1227_v43  ;;  %1121 = vmatprep.subr.bf16.mxu1 %v1227_v43  ;;  %v1232_v48 = vld [vmem:[%s1577_s9 + $0x18] sm:$0xff]   ;;  %v1234_v50 = vld [vmem:[%s1577_s9 + $0x20] sm:$0xff]   ;;  %v1236_v54 = vld [vmem:[%s1577_s9 + $0x28] sm:$0xff]  }
  0x67   : > { %v1243_v52 = vld [vmem:[%s1575_s30 + $0x4] ss:$8 sps:$4 sm:$0xff]   ;;  %v1246_v53 = vld [vmem:[%s1575_s30 + $0x14] ss:$8 sps:$4 sm:$0xff]   ;;  %v1241_v59 = vld [vmem:[%s1575_s30] ss:$8 sps:$4 sm:$0xff]  }
  0x68   : > { %v1237_v55 = vld [vmem:[%s1577_s9 + $0x70] sm:$0xff]   ;;  %749 = vmatprep.mubr.bf16.mxu0 %v1243_v52  ;;  %757 = vmatprep.mubr.bf16.mxu1 %v1246_v53  ;;  %v1239_v57 = vld [vmem:[%s1577_s9 + $0x78] sm:$0xff]   ;;  %v561_v63 = vld [vmem:[#allocation2] sm:$0xff] }
  0x69   : > { %1095 = vmatpush3.bf16.msra.mxu0 %v1228_v44  ;;  %1129 = vmatpush3.bf16.msra.mxu1 %v1228_v44  ;;  %v1238_v56 = vld [vmem:[%s1577_s9 + $0x30] sm:$0xff]   ;;  %v1240_v58 = vld [vmem:[%s1577_s9 + $0x38] sm:$0xff]   ;;  %v562_v7 = vld [vmem:[#allocation2 + $0x8] sm:$0xff] }
  0x6a   : > { %1096 = vmatprep.subr.bf16.mxu0 %v1229_v45  ;;  %1122 = vmatprep.subr.bf16.mxu1 %v1229_v45  ;;  %v1244_v60 = vld [vmem:[%s1575_s30 + $0x10] ss:$8 sps:$4 sm:$0xff]   ;;  %v1057_v19 = vld [vmem:[%s549_s5] ss:$0 sm:$0xff] (!%p1056_p6) }
  0x6b   : > { %v563_v1 = vld [vmem:[#allocation2 + $0x10] sm:$0xff]  ;;  %v564_v9 = vld [vmem:[#allocation2 + $0x18] sm:$0xff] }
  0x6c   : > { %v1073_v22 = vld [vmem:[%s511_s17] sm:$0xff] (!%p1056_p6)   ;;  %v1090_v29 = vld [vmem:[%s511_s17 + $0x8] sm:$0xff] (!%p1056_p6)  }
  0x6d   : > { %1097 = vmatpush3.bf16.msra.mxu0 %v1230_v46  ;;  %1130 = vmatpush3.bf16.msra.mxu1 %v1230_v46  ;;  %v1074_v25 = vunpack.c.l.bf16 (!%p1056_p6), %v1073_v22  ;;  %v1075_v26 = vunpack.c.h.bf16 (!%p1056_p6), %v1073_v22  ;;  %v1078_v30 = vunpack.c.l.bf16 (!%p1056_p6), %v1090_v29  ;;  %v1079_v31 = vunpack.c.h.bf16 (!%p1056_p6), %v1090_v29 }
  0x6e   : > { %1098 = vmatprep.subr.bf16.mxu0 %v1231_v47  ;;  %1123 = vmatprep.subr.bf16.mxu1 %v1231_v47 }
  0x71   : > { %1099 = vmatpush3.bf16.msra.mxu0 %v1232_v48  ;;  %1131 = vmatpush3.bf16.msra.mxu1 %v1232_v48 }
  0x72   : > { %1100 = vmatprep.subr.bf16.mxu0 %v1233_v49  ;;  %1124 = vmatprep.subr.bf16.mxu1 %v1233_v49 }
  0x75   : > { %1101 = vmatpush3.bf16.msra.mxu0 %v1234_v50  ;;  %1132 = vmatpush3.bf16.msra.mxu1 %v1234_v50 }
  0x76   : > { %1102 = vmatprep.subr.bf16.mxu0 %v1235_v51  ;;  %1125 = vmatprep.subr.bf16.mxu1 %v1235_v51 }
  0x79   : > { %1103 = vmatpush3.bf16.msra.mxu0 %v1236_v54  ;;  %1133 = vmatpush3.bf16.msra.mxu1 %v1236_v54 }
  0x7a   : > { %1104 = vmatprep.subr.bf16.mxu0 %v1237_v55  ;;  %1126 = vmatprep.subr.bf16.mxu1 %v1237_v55 }
  0x7d   : > { %1105 = vmatpush3.bf16.msra.mxu0 %v1238_v56  ;;  %1134 = vmatpush3.bf16.msra.mxu1 %v1238_v56 }
  0x7e   : > { %1106 = vmatprep.subr.bf16.mxu0 %v1239_v57  ;;  %1127 = vmatprep.subr.bf16.mxu1 %v1239_v57 }
  0x81   : > { %1107 = vmatpush3.bf16.msra.mxu0 %v1240_v58  ;;  %1135 = vmatpush3.bf16.msra.mxu1 %v1240_v58 }
  0x84   : > { %750 = vmatmul.mubr.bf16.vlgmr.msra.gmra.mrb[0].mxu0 %v1241_v59  ;;  %758 = vmatmul.mubr.bf16.vlgmr.msra.gmra.mrb[0].mxu1 %v1244_v60 }
 0x157   : > { %v1108_v61 = vpop.f32.mrb[0].mxu0  ;;  %v1114_v62 = vpop.f32.mrb[0].mxu1 }
 0x158   : > { %v1109_v0 = vpop.f32.mrb[1].mxu0  ;;  %v1115_v2 = vpop.f32.mrb[1].mxu1 }
 0x159   : > { %v1110_v3 = vadd.f32 %v1109_v0, %v1108_v61  ;;  %v1116_v4 = vadd.f32 %v1115_v2, %v1114_v62  ;;  %v1111_v5 = vpop.f32.mrb[2].mxu0  ;;  %v1117_v6 = vpop.f32.mrb[2].mxu1  ;;  %777 = sbr.rel (%p1056_p6) target bundleno = 368 (0x170), region = 164 }
 0x15a   : > { %v1112_v8 = vpop.f32.mrb[3].mxu0  ;;  %v1118_v10 = vpop.f32.mrb[3].mxu1 }
 0x15b   : > { %v766_v11 = vadd.f32 %v1110_v3, %v561_v63  ;;  %v768_v12 = vadd.f32 %v1116_v4, %v563_v1  ;;  %v1113_v13 = vadd.f32 %v1112_v8, %v1111_v5  ;;  %v1119_v14 = vadd.f32 %v1118_v10, %v1117_v6 }
 0x15d   : > { %770 = vst [vmem:[#allocation2] sm:$0xff] %v766_v11  ;;  %772 = vst [vmem:[#allocation2 + $0x10] sm:$0xff] %v768_v12  ;;  %v767_v15 = vadd.f32 %v1113_v13, %v562_v7  ;;  %v769_v16 = vadd.f32 %v1119_v14, %v564_v9 }
 0x15f   : > { %771 = vst [vmem:[#allocation2 + $0x8] sm:$0xff] %v767_v15  ;;  %773 = vst [vmem:[#allocation2 + $0x18] sm:$0xff] %v769_v16 }
 0x164   : > { %v778_v17 = vld [vmem:[#allocation2] sm:$0xff]  ;;  %v780_v23 = vld [vmem:[#allocation2 + $0x10] sm:$0xff] }
 0x165   : > { %v789_v20 = vadd.f32 %v1057_v19, %v778_v17  ;;  %v791_v27 = vadd.f32 %v1057_v19, %v780_v23 }
 0x166   : > { %v779_v18 = vld [vmem:[#allocation2 + $0x8] sm:$0xff]  ;;  %v781_v24 = vld [vmem:[#allocation2 + $0x18] sm:$0xff] }
 0x167   : > { %v790_v21 = vadd.f32 %v1057_v19, %v779_v18  ;;  %v792_v28 = vadd.f32 %v1057_v19, %v781_v24  ;;  %v801_v32 = vadd.f32 %v1074_v25, %v789_v20  ;;  %v803_v34 = vadd.f32 %v1078_v30, %v791_v27 }
 0x169   : > { %v802_v33 = vadd.f32 %v1075_v26, %v790_v21  ;;  %v804_v35 = vadd.f32 %v1079_v31, %v792_v28  ;;  %v805_v36 = vmax.f32 %v801_v32, 0.0  ;;  %v807_v38 = vmax.f32 %v803_v34, 0.0 }
 0x16b   : > { %v806_v37 = vmax.f32 %v802_v33, 0.0  ;;  %v808_v39 = vmax.f32 %v804_v35, 0.0 }
 0x16d   : > { %v1083_v40 = vpack.c.bf16 %v806_v37, %v805_v36  ;;  %v1088_v41 = vpack.c.bf16 %v808_v39, %v807_v38 }
 0x16f   : > { %1084 = vst [vmem:[%s1581_s19] sm:$0xff] %v1083_v40   ;;  %1091 = vst [vmem:[%s1581_s19 + $0x8] sm:$0xff] %v1088_v41  }
 0x170 PF: > { %835 = sbr.rel (!%p1465_p13) target bundleno = 377 (0x179), region = 168  ;;  %s1063_s21 = sshll.u32 (%p1465_p13), %s1321_s22, 2 }
 0x171   : > { %s840_s8 = scalar_lea.vmem (%p1465_p13), %s1663_s4, %s1063_s21 }
 0x176   : > { %v856_v42 = vld [vmem:[%s1581_s19] sm:$0xf] (%p1465_p13)  ;;  %v858_v43 = vld [vmem:[%s1581_s19 + $0x4] sm:$0xf] (%p1465_p13)  ;;  %v860_v44 = vld [vmem:[%s1581_s19 + $0x8] sm:$0xf] (%p1465_p13) }
 0x177   : > { %v862_v45 = vld [vmem:[%s1581_s19 + $0xc] sm:$0xf]  ;;  %857 = vst [vmem:[%s840_s8] sm:$0xf] %v856_v42  ;;  %859 = vst [vmem:[%s840_s8 + $0x8] sm:$0xf] %v858_v43 }
 0x178   : > { %861 = vst [vmem:[%s840_s8 + $0x10] sm:$0xf] %v860_v44  ;;  %863 = vst [vmem:[%s840_s8 + $0x18] sm:$0xf] %v862_v45 }
 0x179 PF: > { %s14_s25 = sadd.s32 1, %s1333_s25   ;;  %s1674_s29 = sld [smem:[#allocation7_spill]] }
 0x17a   : > { %p11_p7 = scmp.ge.s32.totalorder %s14_s25, 20   ;;  %s1675_s28 = sld [smem:[#allocation8_spill]] }
 0x17b   : > { %s1676_s15 = smov %s1297_s16  ;;  %s1677_s16 = smov %s1457_s13 }
 0x17c   : > { %s1678_s17 = smov %s1305_s18  ;;  %s1679_s18 = smov %s1454_s12 }
 0x17d   : > { %s1680_s19 = smov %s1313_s20  ;;  %s1681_s20 = smov %s1438_s7 }
 0x17e   : > { %s1682_s21 = smov %s1325_s23  ;;  %s1683_s22 = smov %s1329_s24 }
 0x17f   : > { %s1684_s23 = smov %s1674_s29  ;;  %13 = sbr.rel (!%p11_p7) target bundleno = 8 (0x8), region = 259 }
 0x180   : > { %s1685_s24 = smov %s1675_s28 }

// kernel: my_resnet_forward.34
= control target key start
LH: loop header
LB: loop body
LE: loop exit
PB: predicated region body
PF: predicated region fallthrough
CT: control target
= control target key end

     0   :  { %s1479_s0 = inlined_call_operand.vmem [shape: bf16[32,2304], index: 0, kind: input, shape index: {}]   ;;  %s1480_s1 = inlined_call_operand.vmem [shape: bf16[2304,256], index: 1, kind: input, shape index: {}]   ;;  %s1481_s2 = inlined_call_operand.vmem [shape: f32[1,256], index: 2, kind: input, shape index: {}]   ;;  %s1482_s3 = inlined_call_operand.vmem [shape: bf16[32,256], index: 3, kind: output, shape index: {}]  }
   0x1   :  { %1484 = sst [smem:[#allocation7_spill]] %s1479_s0 }
   0x2   :  { %1485 = sst [smem:[#allocation8_spill]] %s1480_s1 }
   0x3   :  { %s1206_s12 = smov 0   ;;  %s1208_s13 = smov 0  }
   0x4   :  { %s1210_s14 = smov 0   ;;  %s1212_s15 = smov 0  }
   0x5   :  { %s1214_s16 = smov 0   ;;  %s1216_s17 = smov 0  }
   0x6   :  { %s1218_s18 = smov 0   ;;  %s1220_s19 = smov 0  }
   0x7   :  { %s1222_s20 = smov 0   ;;  %s1224_s21 = smov 0  }
   0x8   :  { %s1226_s22 = smov 0  }
   0x9 LB: > { %s879_s23 = sadd.s32 4294967295, %s1183_s22   ;;  %s25_s24 = sadd.s32 1, %s1175_s20  ;;  %s1183_s22 = sphi %s1226_s22, %s13_s22   ;;  %s1179_s21 = sphi %s1224_s21, %s1502_s21   ;;  %s1175_s20 = sphi %s1222_s20, %s1501_s20   ;;  %s1171_s19 = sphi %s1220_s19, %s1500_s19   ;;  %s1167_s18 = sphi %s1218_s18, %s1499_s18   ;;  %s1163_s17 = sphi %s1216_s17, %s1498_s17   ;;  %s1159_s16 = sphi %s1214_s16, %s1497_s16   ;;  %s1155_s15 = sphi %s1212_s15, %s1496_s15   ;;  %s1151_s14 = sphi %s1210_s14, %s1495_s14   ;;  %s1147_s13 = sphi %s1208_s13, %s1494_s13   ;;  %s1143_s12 = sphi %s1206_s12, %s1493_s12  }
   0xa   : > { %p26_p0 = scmp.ge.s32.totalorder %s25_s24, 9  ;;  %s28_s25 = sadd.s32 1, %s1179_s21 }
   0xb   : > { %s41_s26 = sadd.s32 1, %s1163_s17  ;;  %p48_p1 = scmp.ne.s32.totalorder %s1163_s17, %s1159_s16 }
   0xc   : > { %s1504_s24 = smov (%p26_p0, %s25_s24), 0  ;;  %s1506_s25 = smov (!%p26_p0, %s28_s25), %s1179_s21 }
   0xd   : > { %s37_s27 = ssub.s32 %s1175_s20, %s1504_s24  ;;  %p49_p2 = scmp.eq.s32.totalorder %s1183_s22, 0 }
   0xe   : > { %p30_p3 = scmp.ge.s32.totalorder %s1506_s25, 2  ;;  %p39_p4 = scmp.eq.s32.totalorder %s37_s27, 0 }
   0xf   : > { %p1273_p5 = por %p49_p2, %p48_p1  ;;  %s69_s29 = sadd.s32 1, %s1155_s15 }
  0x10   : > { %s1508_s25 = smov (%p30_p3, %s1506_s25), 0  ;;  %p76_p6 = scmp.ne.s32.totalorder %s1155_s15, %s1151_s14 }
  0x11   : > { %1487 = sst [smem:[#allocation6_spill]] %s1508_s25  ;;  %s65_s4 = ssub.s32 %s1179_s21, %s1508_s25 }
  0x12   : > { %s1281_s30 = scalar_select %p39_p4, %s1163_s17, %s41_s26  }
  0x13   : > { %s66_s5 = sor.u32 %s65_s4, %s37_s27  ;;  %p121_p7 = scmp.eq.s32.totalorder %s65_s4, 0 }
  0x14   : > { %p67_p8 = scmp.eq.s32.totalorder %s66_s5, 0  ;;  %p1287_p9 = por %p76_p6, %p49_p2 }
  0x15   : > { %s123_s7 = sadd.s32 1, %s1147_s13  ;;  %p133_p10 = scmp.ne.s32.totalorder %s1147_s13, %s1143_s12 }
  0x16   : > { %s1295_s8 = scalar_select %p67_p8, %s1155_s15, %s69_s29  }
  0x17   : > { %s1298_s9 = scalar_select %p121_p7, %s1147_s13, %s123_s7  }
  0x18   : > { %p134_p11 = scmp.eq.s32.totalorder %s879_s23, 17  ;;  %p882_p13 = scmp.ge.s32.totalorder %s1183_s22, 18 }
  0x1a   : > { %p1300_p12 = por %p134_p11, %p133_p10  ;;  %156 = sbr.rel (%p882_p13) target bundleno = 76 (0x4c), region = 16 }
  0x21   : > { %159 = sbr.rel (!%p1273_p5) target bundleno = 45 (0x2d), region = 20  ;;  %s161_s11 = sand.u32 (%p1273_p5), 1, %s1163_s17  }
  0x22   : > { %s925_s26 = sshll.u32 (%p1273_p5), %s1175_s20, 3  ;;  %s883_s27 = sshll.u32 (%p1273_p5), %s161_s11, 5 }
  0x23   : > { %s1490_s0 = sld [smem:[#allocation7_spill]] (%p1273_p5)  ;;  %s163_s23 = scalar_lea.vmem (%p1273_p5), [#allocation3], %s883_s27 }
  0x29   : > { %s169_s5 = scalar_lea.vmem %s1490_s0, %s925_s26 }
  0x2a   : > { %v203_v0 = vld [vmem:[%s169_s5] sm:$0xff]  ;;  %v205_v1 = vld [vmem:[%s169_s5 + $0x48] sm:$0xff]  ;;  %v207_v2 = vld [vmem:[%s169_s5 + $0x90] sm:$0xff] }
  0x2b   : > { %204 = vst [vmem:[%s163_s23] sm:$0xff] %v203_v0  ;;  %206 = vst [vmem:[%s163_s23 + $0x8] sm:$0xff] %v205_v1  ;;  %v209_v3 = vld [vmem:[%s169_s5 + $0xd8] sm:$0xff] }
  0x2c   : > { %208 = vst [vmem:[%s163_s23 + $0x10] sm:$0xff] %v207_v2  ;;  %210 = vst [vmem:[%s163_s23 + $0x18] sm:$0xff] %v209_v3 }
  0x2d PF: > { %216 = sbr.rel (!%p1287_p9) target bundleno = 76 (0x4c), region = 58  ;;  %s218_s28 = sand.u32 (%p1287_p9), 1, %s1155_s15  }
  0x2e   : > { %s926_s7 = sshll.u32 (%p1287_p9), %s1175_s20, 6  ;;  %s886_s11 = sshll.u32 (%p1287_p9), %s218_s28, 7 }
  0x2f   : > { %s223_s26 = sadd.s32 (%p1287_p9), %s1179_s21, %s926_s7  ;;  %s1491_s1 = sld [smem:[#allocation8_spill]] (%p1287_p9) }
  0x30   : > { %s889_s29 = sshll.u32 (%p1287_p9), %s223_s26, 2  ;;  %s1325_s6 = scalar_lea.vmem (%p1287_p9), [#allocation4], %s886_s11 }
  0x35   : > { %s1320_s27 = scalar_lea.vmem %s1491_s1, %s889_s29 }
  0x36   : > { %v241_v4 = vld [vmem:[%s1320_s27] sm:$0xf]  ;;  %v243_v5 = vld [vmem:[%s1320_s27 + $0x8] sm:$0xf]  ;;  %v245_v6 = vld [vmem:[%s1320_s27 + $0x10] sm:$0xf] }
  0x37   : > { %242 = vst [vmem:[%s1325_s6] sm:$0xf] %v241_v4  ;;  %244 = vst [vmem:[%s1325_s6 + $0x4] sm:$0xf] %v243_v5  ;;  %v247_v7 = vld [vmem:[%s1320_s27 + $0x18] sm:$0xf] }
  0x38   : > { %246 = vst [vmem:[%s1325_s6 + $0x8] sm:$0xf] %v245_v6  ;;  %v249_v8 = vld [vmem:[%s1320_s27 + $0x20] sm:$0xf]  ;;  %v251_v9 = vld [vmem:[%s1320_s27 + $0x28] sm:$0xf] }
  0x39   : > { %248 = vst [vmem:[%s1325_s6 + $0xc] sm:$0xf] %v247_v7  ;;  %250 = vst [vmem:[%s1325_s6 + $0x10] sm:$0xf] %v249_v8  ;;  %v253_v10 = vld [vmem:[%s1320_s27 + $0x30] sm:$0xf] }
  0x3a   : > { %252 = vst [vmem:[%s1325_s6 + $0x14] sm:$0xf] %v251_v9  ;;  %v255_v11 = vld [vmem:[%s1320_s27 + $0x38] sm:$0xf]  ;;  %v257_v12 = vld [vmem:[%s1320_s27 + $0x40] sm:$0xf] }
  0x3b   : > { %254 = vst [vmem:[%s1325_s6 + $0x18] sm:$0xf] %v253_v10  ;;  %256 = vst [vmem:[%s1325_s6 + $0x1c] sm:$0xf] %v255_v11  ;;  %v259_v13 = vld [vmem:[%s1320_s27 + $0x48] sm:$0xf] }
  0x3c   : > { %258 = vst [vmem:[%s1325_s6 + $0x20] sm:$0xf] %v257_v12  ;;  %v261_v14 = vld [vmem:[%s1320_s27 + $0x50] sm:$0xf]  ;;  %v263_v15 = vld [vmem:[%s1320_s27 + $0x58] sm:$0xf] }
  0x3d   : > { %260 = vst [vmem:[%s1325_s6 + $0x24] sm:$0xf] %v259_v13  ;;  %262 = vst [vmem:[%s1325_s6 + $0x28] sm:$0xf] %v261_v14  ;;  %v265_v16 = vld [vmem:[%s1320_s27 + $0x60] sm:$0xf] }
  0x3e   : > { %264 = vst [vmem:[%s1325_s6 + $0x2c] sm:$0xf] %v263_v15  ;;  %v267_v17 = vld [vmem:[%s1320_s27 + $0x68] sm:$0xf]  ;;  %v269_v18 = vld [vmem:[%s1320_s27 + $0x70] sm:$0xf] }
  0x3f   : > { %266 = vst [vmem:[%s1325_s6 + $0x30] sm:$0xf] %v265_v16  ;;  %268 = vst [vmem:[%s1325_s6 + $0x34] sm:$0xf] %v267_v17  ;;  %v271_v19 = vld [vmem:[%s1320_s27 + $0x78] sm:$0xf] }
  0x40   : > { %270 = vst [vmem:[%s1325_s6 + $0x38] sm:$0xf] %v269_v18  ;;  %v273_v20 = vld [vmem:[%s1320_s27 + $0x80] sm:$0xf]  ;;  %v275_v21 = vld [vmem:[%s1320_s27 + $0x88] sm:$0xf] }
  0x41   : > { %272 = vst [vmem:[%s1325_s6 + $0x3c] sm:$0xf] %v271_v19  ;;  %274 = vst [vmem:[%s1325_s6 + $0x40] sm:$0xf] %v273_v20  ;;  %v277_v22 = vld [vmem:[%s1320_s27 + $0x90] sm:$0xf] }
  0x42   : > { %276 = vst [vmem:[%s1325_s6 + $0x44] sm:$0xf] %v275_v21  ;;  %v279_v23 = vld [vmem:[%s1320_s27 + $0x98] sm:$0xf]  ;;  %v281_v24 = vld [vmem:[%s1320_s27 + $0xa0] sm:$0xf] }
  0x43   : > { %278 = vst [vmem:[%s1325_s6 + $0x48] sm:$0xf] %v277_v22  ;;  %280 = vst [vmem:[%s1325_s6 + $0x4c] sm:$0xf] %v279_v23  ;;  %v283_v25 = vld [vmem:[%s1320_s27 + $0xa8] sm:$0xf] }
  0x44   : > { %282 = vst [vmem:[%s1325_s6 + $0x50] sm:$0xf] %v281_v24  ;;  %v285_v26 = vld [vmem:[%s1320_s27 + $0xb0] sm:$0xf]  ;;  %v287_v27 = vld [vmem:[%s1320_s27 + $0xb8] sm:$0xf] }
  0x45   : > { %284 = vst [vmem:[%s1325_s6 + $0x54] sm:$0xf] %v283_v25  ;;  %286 = vst [vmem:[%s1325_s6 + $0x58] sm:$0xf] %v285_v26  ;;  %v289_v28 = vld [vmem:[%s1320_s27 + $0xc0] sm:$0xf] }
  0x46   : > { %288 = vst [vmem:[%s1325_s6 + $0x5c] sm:$0xf] %v287_v27  ;;  %v291_v29 = vld [vmem:[%s1320_s27 + $0xc8] sm:$0xf]  ;;  %v293_v30 = vld [vmem:[%s1320_s27 + $0xd0] sm:$0xf] }
  0x47   : > { %290 = vst [vmem:[%s1325_s6 + $0x60] sm:$0xf] %v289_v28  ;;  %292 = vst [vmem:[%s1325_s6 + $0x64] sm:$0xf] %v291_v29  ;;  %v295_v31 = vld [vmem:[%s1320_s27 + $0xd8] sm:$0xf] }
  0x48   : > { %294 = vst [vmem:[%s1325_s6 + $0x68] sm:$0xf] %v293_v30  ;;  %v297_v32 = vld [vmem:[%s1320_s27 + $0xe0] sm:$0xf]  ;;  %v299_v33 = vld [vmem:[%s1320_s27 + $0xe8] sm:$0xf] }
  0x49   : > { %296 = vst [vmem:[%s1325_s6 + $0x6c] sm:$0xf] %v295_v31  ;;  %298 = vst [vmem:[%s1325_s6 + $0x70] sm:$0xf] %v297_v32  ;;  %v301_v34 = vld [vmem:[%s1320_s27 + $0xf0] sm:$0xf] }
  0x4a   : > { %300 = vst [vmem:[%s1325_s6 + $0x74] sm:$0xf] %v299_v33  ;;  %v303_v35 = vld [vmem:[%s1320_s27 + $0xf8] sm:$0xf]  ;;  %302 = vst [vmem:[%s1325_s6 + $0x78] sm:$0xf] %v301_v34 }
  0x4b   : > { %304 = vst [vmem:[%s1325_s6 + $0x7c] sm:$0xf] %v303_v35 }
  0x4c PF: > { %p890_p0 = scmp.ge.s32.totalorder %s1183_s22, 1  ;;  %p396_p1 = scmp.lt.s32.totalorder %s1183_s22, 19 }
  0x4e   : > { %p397_p2 = pnand %p890_p0, %p396_p1 }
  0x4f   : > { %s403_s0 = sand.u32 (!%p397_p2), 1, %s1159_s16   ;;  %s410_s5 = sand.u32 (!%p397_p2), 1, %s1151_s14  }
  0x50   : > { %400 = sbr.rel (%p397_p2) target bundleno = 371 (0x173), region = 103  ;;  %s891_s23 = sshll.u32 (!%p397_p2), %s403_s0, 5 }
  0x51   : > { %s892_s28 = sshll.u32 (!%p397_p2), %s410_s5, 7  ;;  %s436_s7 = sand.u32 (!%p397_p2), 1, %s1143_s12  }
  0x52   : > { %p442_p3 = scmp.lt.s32.totalorder (!%p397_p2), %s1171_s19, 1  ;;  %s893_s11 = sshll.u32 (!%p397_p2), %s436_s7, 4 }
  0x53   : > { %s1401_s6 = scalar_lea.vmem (!%p397_p2), [#allocation3], %s891_s23  ;;  %s1403_s1 = scalar_lea.vmem (!%p397_p2), [#allocation4], %s892_s28 }
  0x54   : > { %s1405_s25 = scalar_lea.vmem (!%p397_p2), [#allocation5], %s893_s11  ;;  %p894_p4 = scmp.ne.s32.totalorder (!%p397_p2), %s1167_s18, 0 }
  0x57   : > { %s1395_s26 = scalar_select %p442_p3, %s1171_s19, 1 }
  0x58   : > { %450 = sbr.rel (%p894_p4) target bundleno = 95 (0x5f), region = 115  ;;  %v1185_v36 = vmov (!%p894_p4), 0.0  }
  0x59   : > { %s444_s27 = scalar_lea.vmem %s1481_s2, %s1395_s26  ;;  %451 = vst [vmem:[#allocation2] sm:$0xff] (!%p894_p4), %v1185_v36  ;;  %452 = vst [vmem:[#allocation2 + $0x8] sm:$0xff] (!%p894_p4), %v1185_v36 }
  0x5a   : > { %453 = vst [vmem:[#allocation2 + $0x10] sm:$0xff] (!%p894_p4), %v1185_v36  ;;  %454 = vst [vmem:[#allocation2 + $0x18] sm:$0xff] (!%p894_p4), %v1185_v36 }
  0x5f PF: > { %v1075_v37 = vld [vmem:[%s1403_s1 + $0x40] sm:$0xff]   ;;  %v1077_v39 = vld [vmem:[%s1403_s1 + $0x48] sm:$0xff]   ;;  %v1079_v41 = vld [vmem:[%s1403_s1 + $0x50] sm:$0xff]   ;;  %p915_p5 = scmp.ne.s32.totalorder %s1167_s18, 8 }
  0x60   : > { %v1076_v38 = vld [vmem:[%s1403_s1] sm:$0xff]   ;;  %942 = vmatprep.subr.bf16.mxu0 %v1075_v37  ;;  %970 = vmatprep.subr.bf16.mxu1 %v1075_v37  ;;  %v1078_v40 = vld [vmem:[%s1403_s1 + $0x8] sm:$0xff]   ;;  %v1080_v42 = vld [vmem:[%s1403_s1 + $0x10] sm:$0xff]  }
  0x61   : > { %943 = vmatpush3.bf16.msra.mxu0 %v1076_v38  ;;  %978 = vmatpush3.bf16.msra.mxu1 %v1076_v38  ;;  %v1081_v43 = vld [vmem:[%s1403_s1 + $0x58] sm:$0xff]   ;;  %v1083_v45 = vld [vmem:[%s1403_s1 + $0x60] sm:$0xff]   ;;  %v1085_v47 = vld [vmem:[%s1403_s1 + $0x68] sm:$0xff]  }
  0x62   : > { %944 = vmatprep.subr.bf16.mxu0 %v1077_v39  ;;  %971 = vmatprep.subr.bf16.mxu1 %v1077_v39  ;;  %v1082_v44 = vld [vmem:[%s1403_s1 + $0x18] sm:$0xff]   ;;  %v1084_v46 = vld [vmem:[%s1403_s1 + $0x20] sm:$0xff]   ;;  %v1086_v50 = vld [vmem:[%s1403_s1 + $0x28] sm:$0xff]  }
  0x63   : > { %v1093_v48 = vld [vmem:[%s1401_s6 + $0x4] ss:$8 sps:$4 sm:$0xff]   ;;  %v1096_v49 = vld [vmem:[%s1401_s6 + $0x14] ss:$8 sps:$4 sm:$0xff]   ;;  %v1091_v55 = vld [vmem:[%s1401_s6] ss:$8 sps:$4 sm:$0xff]  }
  0x64   : > { %v1087_v51 = vld [vmem:[%s1403_s1 + $0x70] sm:$0xff]   ;;  %643 = vmatprep.mubr.bf16.mxu0 %v1093_v48  ;;  %651 = vmatprep.mubr.bf16.mxu1 %v1096_v49  ;;  %v1089_v53 = vld [vmem:[%s1403_s1 + $0x78] sm:$0xff]   ;;  %v455_v59 = vld [vmem:[#allocation2] sm:$0xff] }
  0x65   : > { %945 = vmatpush3.bf16.msra.mxu0 %v1078_v40  ;;  %979 = vmatpush3.bf16.msra.mxu1 %v1078_v40  ;;  %v1088_v52 = vld [vmem:[%s1403_s1 + $0x30] sm:$0xff]   ;;  %v1090_v54 = vld [vmem:[%s1403_s1 + $0x38] sm:$0xff]   ;;  %v456_v3 = vld [vmem:[#allocation2 + $0x8] sm:$0xff] }
  0x66   : > { %946 = vmatprep.subr.bf16.mxu0 %v1079_v41  ;;  %972 = vmatprep.subr.bf16.mxu1 %v1079_v41  ;;  %v1094_v56 = vld [vmem:[%s1401_s6 + $0x10] ss:$8 sps:$4 sm:$0xff]   ;;  %v916_v15 = vld [vmem:[%s444_s27] ss:$0 sm:$0xff] (!%p915_p5) }
  0x67   : > { %v457_v61 = vld [vmem:[#allocation2 + $0x10] sm:$0xff]  ;;  %v458_v5 = vld [vmem:[#allocation2 + $0x18] sm:$0xff] }
  0x69   : > { %947 = vmatpush3.bf16.msra.mxu0 %v1080_v42  ;;  %980 = vmatpush3.bf16.msra.mxu1 %v1080_v42 }
  0x6a   : > { %948 = vmatprep.subr.bf16.mxu0 %v1081_v43  ;;  %973 = vmatprep.subr.bf16.mxu1 %v1081_v43 }
  0x6d   : > { %949 = vmatpush3.bf16.msra.mxu0 %v1082_v44  ;;  %981 = vmatpush3.bf16.msra.mxu1 %v1082_v44 }
  0x6e   : > { %950 = vmatprep.subr.bf16.mxu0 %v1083_v45  ;;  %974 = vmatprep.subr.bf16.mxu1 %v1083_v45 }
  0x71   : > { %951 = vmatpush3.bf16.msra.mxu0 %v1084_v46  ;;  %982 = vmatpush3.bf16.msra.mxu1 %v1084_v46 }
  0x72   : > { %952 = vmatprep.subr.bf16.mxu0 %v1085_v47  ;;  %975 = vmatprep.subr.bf16.mxu1 %v1085_v47 }
  0x75   : > { %953 = vmatpush3.bf16.msra.mxu0 %v1086_v50  ;;  %983 = vmatpush3.bf16.msra.mxu1 %v1086_v50 }
  0x76   : > { %954 = vmatprep.subr.bf16.mxu0 %v1087_v51  ;;  %976 = vmatprep.subr.bf16.mxu1 %v1087_v51 }
  0x79   : > { %955 = vmatpush3.bf16.msra.mxu0 %v1088_v52  ;;  %984 = vmatpush3.bf16.msra.mxu1 %v1088_v52 }
  0x7a   : > { %956 = vmatprep.subr.bf16.mxu0 %v1089_v53  ;;  %977 = vmatprep.subr.bf16.mxu1 %v1089_v53 }
  0x7d   : > { %957 = vmatpush3.bf16.msra.mxu0 %v1090_v54  ;;  %985 = vmatpush3.bf16.msra.mxu1 %v1090_v54 }
  0x80   : > { %644 = vmatmul.mubr.bf16.vlgmr.msra.gmra.mrb[0].mxu0 %v1091_v55  ;;  %652 = vmatmul.mubr.bf16.vlgmr.msra.gmra.mrb[0].mxu1 %v1094_v56 }
 0x153   : > { %v958_v57 = vpop.f32.mrb[0].mxu0  ;;  %v964_v58 = vpop.f32.mrb[0].mxu1 }
 0x154   : > { %v959_v60 = vpop.f32.mrb[1].mxu0  ;;  %v965_v62 = vpop.f32.mrb[1].mxu1 }
 0x155   : > { %v960_v63 = vadd.f32 %v959_v60, %v958_v57  ;;  %v966_v0 = vadd.f32 %v965_v62, %v964_v58  ;;  %v961_v1 = vpop.f32.mrb[2].mxu0  ;;  %v967_v2 = vpop.f32.mrb[2].mxu1  ;;  %671 = sbr.rel (%p915_p5) target bundleno = 362 (0x16a), region = 119 }
 0x156   : > { %v962_v4 = vpop.f32.mrb[3].mxu0  ;;  %v968_v6 = vpop.f32.mrb[3].mxu1 }
 0x157   : > { %v660_v7 = vadd.f32 %v960_v63, %v455_v59  ;;  %v662_v8 = vadd.f32 %v966_v0, %v457_v61  ;;  %v963_v9 = vadd.f32 %v962_v4, %v961_v1  ;;  %v969_v10 = vadd.f32 %v968_v6, %v967_v2 }
 0x159   : > { %664 = vst [vmem:[#allocation2] sm:$0xff] %v660_v7  ;;  %666 = vst [vmem:[#allocation2 + $0x10] sm:$0xff] %v662_v8  ;;  %v661_v11 = vadd.f32 %v963_v9, %v456_v3  ;;  %v663_v12 = vadd.f32 %v969_v10, %v458_v5 }
 0x15b   : > { %665 = vst [vmem:[#allocation2 + $0x8] sm:$0xff] %v661_v11  ;;  %667 = vst [vmem:[#allocation2 + $0x18] sm:$0xff] %v663_v12 }
 0x160   : > { %v672_v13 = vld [vmem:[#allocation2] sm:$0xff]  ;;  %v674_v18 = vld [vmem:[#allocation2 + $0x10] sm:$0xff] }
 0x161   : > { %v683_v16 = vadd.f32 %v916_v15, %v672_v13  ;;  %v685_v20 = vadd.f32 %v916_v15, %v674_v18 }
 0x162   : > { %v673_v14 = vld [vmem:[#allocation2 + $0x8] sm:$0xff]  ;;  %v675_v19 = vld [vmem:[#allocation2 + $0x18] sm:$0xff] }
 0x163   : > { %v684_v17 = vadd.f32 %v916_v15, %v673_v14  ;;  %v686_v21 = vadd.f32 %v916_v15, %v675_v19  ;;  %v687_v22 = vmax.f32 %v683_v16, 0.0  ;;  %v689_v24 = vmax.f32 %v685_v20, 0.0 }
 0x165   : > { %v688_v23 = vmax.f32 %v684_v17, 0.0  ;;  %v690_v25 = vmax.f32 %v686_v21, 0.0 }
 0x167   : > { %v934_v26 = vpack.c.bf16 %v688_v23, %v687_v22  ;;  %v939_v27 = vpack.c.bf16 %v690_v25, %v689_v24 }
 0x169   : > { %935 = vst [vmem:[%s1405_s25] sm:$0xff] %v934_v26   ;;  %941 = vst [vmem:[%s1405_s25 + $0x8] sm:$0xff] %v939_v27  }
 0x16a PF: > { %717 = sbr.rel (!%p1300_p12) target bundleno = 371 (0x173), region = 123  ;;  %s922_s14 = sshll.u32 (%p1300_p12), %s1171_s19, 2 }
 0x16b   : > { %s722_s0 = scalar_lea.vmem (%p1300_p12), %s1482_s3, %s922_s14 }
 0x170   : > { %v738_v28 = vld [vmem:[%s1405_s25] sm:$0xf] (%p1300_p12)  ;;  %v740_v29 = vld [vmem:[%s1405_s25 + $0x4] sm:$0xf] (%p1300_p12)  ;;  %v742_v30 = vld [vmem:[%s1405_s25 + $0x8] sm:$0xf] (%p1300_p12) }
 0x171   : > { %v744_v31 = vld [vmem:[%s1405_s25 + $0xc] sm:$0xf]  ;;  %739 = vst [vmem:[%s722_s0] sm:$0xf] %v738_v28  ;;  %741 = vst [vmem:[%s722_s0 + $0x8] sm:$0xf] %v740_v29 }
 0x172   : > { %743 = vst [vmem:[%s722_s0 + $0x10] sm:$0xf] %v742_v30  ;;  %745 = vst [vmem:[%s722_s0 + $0x18] sm:$0xf] %v744_v31 }
 0x173 PF: > { %s13_s22 = sadd.s32 1, %s1183_s22   ;;  %s1492_s10 = sld [smem:[#allocation6_spill]] }
 0x174   : > { %p10_p6 = scmp.ge.s32.totalorder %s13_s22, 20   ;;  %s1493_s12 = smov %s1147_s13 }
 0x175   : > { %s1494_s13 = smov %s1298_s9  ;;  %s1495_s14 = smov %s1155_s15 }
 0x176   : > { %s1496_s15 = smov %s1295_s8  ;;  %s1497_s16 = smov %s1163_s17 }
 0x177   : > { %s1498_s17 = smov %s1281_s30  ;;  %s1499_s18 = smov %s1175_s20 }
 0x178   : > { %s1500_s19 = smov %s1179_s21  ;;  %s1501_s20 = smov %s1504_s24 }
 0x179   : > { %s1502_s21 = smov %s1492_s10  ;;  %12 = sbr.rel (!%p10_p6) target bundleno = 9 (0x9), region = 206 }

// kernel: my_resnet_forward.36
= control target key start
LH: loop header
LB: loop body
LE: loop exit
PB: predicated region body
PF: predicated region fallthrough
CT: control target
= control target key end

     0   :  { %s949_s12 = smov 0   ;;  %s951_s13 = smov 0   ;;  %s1148_s0 = inlined_call_operand.vmem [shape: bf16[8,2304], index: 0, kind: input, shape index: {}]   ;;  %s1149_s1 = inlined_call_operand.vmem [shape: bf16[2304,512], index: 1, kind: input, shape index: {}]   ;;  %s1150_s2 = inlined_call_operand.vmem [shape: f32[1,512], index: 2, kind: input, shape index: {}]   ;;  %s1151_s3 = inlined_call_operand.vmem [shape: bf16[8,512], index: 3, kind: output, shape index: {}]  }
   0x1   :  { %s953_s14 = smov 0   ;;  %s955_s15 = smov 0  }
   0x2   :  { %s957_s16 = smov 0   ;;  %s959_s17 = smov 0  }
   0x3   :  { %s961_s18 = smov 0  }
   0x4 LB: > { %s25_s19 = sadd.s32 1, %s918_s16  ;;  %s28_s20 = sadd.s32 1, %s922_s17  ;;  %s926_s18 = sphi %s961_s18, %s13_s18   ;;  %s922_s17 = sphi %s959_s17, %s1157_s17   ;;  %s918_s16 = sphi %s957_s16, %s1156_s16   ;;  %s914_s15 = sphi %s955_s15, %s1155_s15   ;;  %s910_s14 = sphi %s953_s14, %s1154_s14   ;;  %s906_s13 = sphi %s951_s13, %s1153_s13   ;;  %s902_s12 = sphi %s949_s12, %s1152_s12  }
   0x5   : > { %p26_p0 = scmp.ge.s32.totalorder %s25_s19, 9  ;;  %p76_p1 = scmp.ne.s32.totalorder %s906_s13, %s902_s12 }
   0x6   : > { %p77_p2 = scmp.eq.s32.totalorder %s926_s18, 0  ;;  %s69_s24 = sadd.s32 1, %s906_s13 }
   0x7   : > { %s1159_s19 = smov (%p26_p0, %s25_s19), 0  ;;  %s1161_s20 = smov (!%p26_p0, %s28_s20), %s922_s17 }
   0x8   : > { %p78_p3 = por %p77_p2, %p76_p1  ;;  %p30_p4 = scmp.ge.s32.totalorder %s1161_s20, 4 }
   0x9   : > { %s64_s21 = ssub.s32 %s918_s16, %s1159_s19  ;;  %p741_p6 = scmp.ge.s32.totalorder %s926_s18, 36 }
   0xa   : > { %s1163_s20 = smov (%p30_p4, %s1161_s20), 0 }
   0xb   : > { %s65_s22 = ssub.s32 %s922_s17, %s1163_s20  ;;  %156 = sbr.rel (%p741_p6) target bundleno = 45 (0x2d), region = 16 }
   0xc   : > { %s66_s23 = sor.u32 %s65_s22, %s64_s21 }
   0xd   : > { %p67_p5 = scmp.eq.s32.totalorder %s66_s23, 0 }
   0xf   : > { %s1000_s25 = scalar_select %p67_p5, %s906_s13, %s69_s24  }
  0x12   : > { %172 = sbr.rel (!%p78_p3) target bundleno = 45 (0x2d), region = 24  ;;  %s174_s26 = sand.u32 (%p78_p3), 1, %s906_s13  }
  0x13   : > { %s774_s27 = sshll.u32 (%p78_p3), %s918_s16, 7  ;;  %s742_s28 = sshll.u32 (%p78_p3), %s174_s26, 7 }
  0x14   : > { %s179_s29 = sadd.s32 (%p78_p3), %s922_s17, %s774_s27  ;;  %s1014_s7 = scalar_lea.vmem (%p78_p3), [#allocation3], %s742_s28 }
  0x15   : > { %s745_s30 = sshll.u32 (%p78_p3), %s179_s29, 2 }
  0x16   : > { %s1009_s6 = scalar_lea.vmem (%p78_p3), %s1149_s1, %s745_s30 }
  0x17   : > { %v197_v0 = vld [vmem:[%s1009_s6] sm:$0xf] (%p78_p3)  ;;  %v199_v1 = vld [vmem:[%s1009_s6 + $0x10] sm:$0xf] (%p78_p3) }
  0x18   : > { %v201_v2 = vld [vmem:[%s1009_s6 + $0x20] sm:$0xf] (%p78_p3)  ;;  %198 = vst [vmem:[%s1014_s7] sm:$0xf] (%p78_p3), %v197_v0  ;;  %200 = vst [vmem:[%s1014_s7 + $0x4] sm:$0xf] (%p78_p3), %v199_v1 }
  0x19   : > { %202 = vst [vmem:[%s1014_s7 + $0x8] sm:$0xf] %v201_v2  ;;  %v203_v3 = vld [vmem:[%s1009_s6 + $0x30] sm:$0xf]  ;;  %v205_v4 = vld [vmem:[%s1009_s6 + $0x40] sm:$0xf] }
  0x1a   : > { %v207_v5 = vld [vmem:[%s1009_s6 + $0x50] sm:$0xf]  ;;  %204 = vst [vmem:[%s1014_s7 + $0xc] sm:$0xf] %v203_v3  ;;  %206 = vst [vmem:[%s1014_s7 + $0x10] sm:$0xf] %v205_v4 }
  0x1b   : > { %208 = vst [vmem:[%s1014_s7 + $0x14] sm:$0xf] %v207_v5  ;;  %v209_v6 = vld [vmem:[%s1009_s6 + $0x60] sm:$0xf]  ;;  %v211_v7 = vld [vmem:[%s1009_s6 + $0x70] sm:$0xf] }
  0x1c   : > { %v213_v8 = vld [vmem:[%s1009_s6 + $0x80] sm:$0xf]  ;;  %210 = vst [vmem:[%s1014_s7 + $0x18] sm:$0xf] %v209_v6  ;;  %212 = vst [vmem:[%s1014_s7 + $0x1c] sm:$0xf] %v211_v7 }
  0x1d   : > { %214 = vst [vmem:[%s1014_s7 + $0x20] sm:$0xf] %v213_v8  ;;  %v215_v9 = vld [vmem:[%s1009_s6 + $0x90] sm:$0xf]  ;;  %v217_v10 = vld [vmem:[%s1009_s6 + $0xa0] sm:$0xf] }
  0x1e   : > { %v219_v11 = vld [vmem:[%s1009_s6 + $0xb0] sm:$0xf]  ;;  %216 = vst [vmem:[%s1014_s7 + $0x24] sm:$0xf] %v215_v9  ;;  %218 = vst [vmem:[%s1014_s7 + $0x28] sm:$0xf] %v217_v10 }
  0x1f   : > { %220 = vst [vmem:[%s1014_s7 + $0x2c] sm:$0xf] %v219_v11  ;;  %v221_v12 = vld [vmem:[%s1009_s6 + $0xc0] sm:$0xf]  ;;  %v223_v13 = vld [vmem:[%s1009_s6 + $0xd0] sm:$0xf] }
  0x20   : > { %v225_v14 = vld [vmem:[%s1009_s6 + $0xe0] sm:$0xf]  ;;  %222 = vst [vmem:[%s1014_s7 + $0x30] sm:$0xf] %v221_v12  ;;  %224 = vst [vmem:[%s1014_s7 + $0x34] sm:$0xf] %v223_v13 }
  0x21   : > { %226 = vst [vmem:[%s1014_s7 + $0x38] sm:$0xf] %v225_v14  ;;  %v227_v15 = vld [vmem:[%s1009_s6 + $0xf0] sm:$0xf]  ;;  %v229_v16 = vld [vmem:[%s1009_s6 + $0x100] sm:$0xf] }
  0x22   : > { %v231_v17 = vld [vmem:[%s1009_s6 + $0x110] sm:$0xf]  ;;  %228 = vst [vmem:[%s1014_s7 + $0x3c] sm:$0xf] %v227_v15  ;;  %230 = vst [vmem:[%s1014_s7 + $0x40] sm:$0xf] %v229_v16 }
  0x23   : > { %232 = vst [vmem:[%s1014_s7 + $0x44] sm:$0xf] %v231_v17  ;;  %v233_v18 = vld [vmem:[%s1009_s6 + $0x120] sm:$0xf]  ;;  %v235_v19 = vld [vmem:[%s1009_s6 + $0x130] sm:$0xf] }
  0x24   : > { %v237_v20 = vld [vmem:[%s1009_s6 + $0x140] sm:$0xf]  ;;  %234 = vst [vmem:[%s1014_s7 + $0x48] sm:$0xf] %v233_v18  ;;  %236 = vst [vmem:[%s1014_s7 + $0x4c] sm:$0xf] %v235_v19 }
  0x25   : > { %238 = vst [vmem:[%s1014_s7 + $0x50] sm:$0xf] %v237_v20  ;;  %v239_v21 = vld [vmem:[%s1009_s6 + $0x150] sm:$0xf]  ;;  %v241_v22 = vld [vmem:[%s1009_s6 + $0x160] sm:$0xf] }
  0x26   : > { %v243_v23 = vld [vmem:[%s1009_s6 + $0x170] sm:$0xf]  ;;  %240 = vst [vmem:[%s1014_s7 + $0x54] sm:$0xf] %v239_v21  ;;  %242 = vst [vmem:[%s1014_s7 + $0x58] sm:$0xf] %v241_v22 }
  0x27   : > { %244 = vst [vmem:[%s1014_s7 + $0x5c] sm:$0xf] %v243_v23  ;;  %v245_v24 = vld [vmem:[%s1009_s6 + $0x180] sm:$0xf]  ;;  %v247_v25 = vld [vmem:[%s1009_s6 + $0x190] sm:$0xf] }
  0x28   : > { %v249_v26 = vld [vmem:[%s1009_s6 + $0x1a0] sm:$0xf]  ;;  %246 = vst [vmem:[%s1014_s7 + $0x60] sm:$0xf] %v245_v24  ;;  %248 = vst [vmem:[%s1014_s7 + $0x64] sm:$0xf] %v247_v25 }
  0x29   : > { %250 = vst [vmem:[%s1014_s7 + $0x68] sm:$0xf] %v249_v26  ;;  %v251_v27 = vld [vmem:[%s1009_s6 + $0x1b0] sm:$0xf]  ;;  %v253_v28 = vld [vmem:[%s1009_s6 + $0x1c0] sm:$0xf] }
  0x2a   : > { %v255_v29 = vld [vmem:[%s1009_s6 + $0x1d0] sm:$0xf]  ;;  %252 = vst [vmem:[%s1014_s7 + $0x6c] sm:$0xf] %v251_v27  ;;  %254 = vst [vmem:[%s1014_s7 + $0x70] sm:$0xf] %v253_v28 }
  0x2b   : > { %256 = vst [vmem:[%s1014_s7 + $0x74] sm:$0xf] %v255_v29  ;;  %v257_v30 = vld [vmem:[%s1009_s6 + $0x1e0] sm:$0xf]  ;;  %v259_v31 = vld [vmem:[%s1009_s6 + $0x1f0] sm:$0xf] }
  0x2c   : > { %258 = vst [vmem:[%s1014_s7 + $0x78] sm:$0xf] %v257_v30  ;;  %260 = vst [vmem:[%s1014_s7 + $0x7c] sm:$0xf] %v259_v31 }
  0x2d PF: > { %p746_p7 = scmp.ge.s32.totalorder %s926_s18, 1  ;;  %p352_p8 = scmp.lt.s32.totalorder %s926_s18, 37 }
  0x2f   : > { %p353_p9 = pnand %p746_p7, %p352_p8 }
  0x30   : > { %s359_s8 = sand.u32 (!%p353_p9), 1, %s902_s12   ;;  %s748_s9 = sshll.u32 (!%p353_p9), %s910_s14, 1 }
  0x31   : > { %356 = sbr.rel (%p353_p9) target bundleno = 331 (0x14b), region = 69  ;;  %s747_s10 = sshll.u32 (!%p353_p9), %s359_s8, 7 }
  0x32   : > { %p400_p10 = scmp.lt.s32.totalorder (!%p353_p9), %s748_s9, 17  ;;  %p408_p11 = scmp.lt.s32.totalorder (!%p353_p9), %s914_s15, 3 }
  0x33   : > { %s1100_s4 = scalar_lea.vmem (!%p353_p9), [#allocation3], %s747_s10  ;;  %p751_p12 = scmp.ne.s32.totalorder (!%p353_p9), %s910_s14, 0 }
  0x38   : > { %s1165_s9 = smov (!%p400_p10, %s748_s9), 17  ;;  %s1167_s15 = smov (!%p408_p11, %s914_s15), 3 }
  0x39   : > { %s749_s11 = sshll.u32 %s1165_s9, 2  ;;  %s410_s27 = scalar_lea.vmem %s1150_s2, %s1167_s15  ;;  %v928_v32 = vmov (!%p751_p12), 0.0  }
  0x3a   : > { %s1088_s23 = scalar_lea.vmem %s1148_s0, %s749_s11  ;;  %s750_s12 = sshll.u32 %s1167_s15, 2  ;;  %424 = vst [vmem:[#allocation2] sm:$0xff] (!%p751_p12), %v928_v32 }
  0x3b   : > { %s1098_s30 = scalar_lea.vmem %s1151_s3, %s750_s12  ;;  %423 = sbr.rel (%p751_p12) target bundleno = 66 (0x42), region = 77 }
  0x42 PF: > { %v854_v33 = vld [vmem:[%s1100_s4 + $0x40] sm:$0xff]   ;;  %v856_v35 = vld [vmem:[%s1100_s4 + $0x48] sm:$0xff]   ;;  %v858_v37 = vld [vmem:[%s1100_s4 + $0x50] sm:$0xff]   ;;  %p770_p13 = scmp.ne.s32.totalorder %s910_s14, 8 }
  0x43   : > { %v855_v34 = vld [vmem:[%s1100_s4] sm:$0xff]   ;;  %775 = vmatprep.subr.bf16.mxu0 %v854_v33  ;;  %v857_v36 = vld [vmem:[%s1100_s4 + $0x8] sm:$0xff]   ;;  %v859_v38 = vld [vmem:[%s1100_s4 + $0x10] sm:$0xff]  }
  0x44   : > { %776 = vmatpush3.bf16.msra.mxu0 %v855_v34  ;;  %v860_v39 = vld [vmem:[%s1100_s4 + $0x58] sm:$0xff]   ;;  %v862_v41 = vld [vmem:[%s1100_s4 + $0x60] sm:$0xff]   ;;  %v864_v43 = vld [vmem:[%s1100_s4 + $0x68] sm:$0xff]  }
  0x45   : > { %777 = vmatprep.subr.bf16.mxu0 %v856_v35  ;;  %v861_v40 = vld [vmem:[%s1100_s4 + $0x18] sm:$0xff]   ;;  %v863_v42 = vld [vmem:[%s1100_s4 + $0x20] sm:$0xff]   ;;  %v865_v46 = vld [vmem:[%s1100_s4 + $0x28] sm:$0xff]  }
  0x46   : > { %v426_v44 = vld [vmem:[%s1088_s23] sm:$0xff]  ;;  %v866_v47 = vld [vmem:[%s1100_s4 + $0x70] sm:$0xff]  }
  0x47   : > { %v753_v45 = vcombine.high %v426_v44, %v426_v44  ;;  %v867_v48 = vld [vmem:[%s1100_s4 + $0x30] sm:$0xff]   ;;  %v868_v49 = vld [vmem:[%s1100_s4 + $0x78] sm:$0xff]   ;;  %v752_v51 = vcombine.low %v426_v44, %v426_v44 }
  0x48   : > { %778 = vmatpush3.bf16.msra.mxu0 %v857_v36  ;;  %v869_v50 = vld [vmem:[%s1100_s4 + $0x38] sm:$0xff]  }
  0x49   : > { %779 = vmatprep.subr.bf16.mxu0 %v858_v37  ;;  %594 = vmatprep.mubr.bf16.mxu0 %v753_v45  ;;  %v425_v53 = vld [vmem:[#allocation2] sm:$0xff] }
  0x4a   : > { %v771_v60 = vld [vmem:[%s410_s27] ss:$0 sm:$0xff] (!%p770_p13) }
  0x4c   : > { %780 = vmatpush3.bf16.msra.mxu0 %v859_v38 }
  0x4d   : > { %781 = vmatprep.subr.bf16.mxu0 %v860_v39 }
  0x50   : > { %782 = vmatpush3.bf16.msra.mxu0 %v861_v40 }
  0x51   : > { %783 = vmatprep.subr.bf16.mxu0 %v862_v41 }
  0x54   : > { %784 = vmatpush3.bf16.msra.mxu0 %v863_v42 }
  0x55   : > { %785 = vmatprep.subr.bf16.mxu0 %v864_v43 }
  0x58   : > { %786 = vmatpush3.bf16.msra.mxu0 %v865_v46 }
  0x59   : > { %787 = vmatprep.subr.bf16.mxu0 %v866_v47 }
  0x5c   : > { %788 = vmatpush3.bf16.msra.mxu0 %v867_v48 }
  0x5d   : > { %789 = vmatprep.subr.bf16.mxu0 %v868_v49 }
  0x60   : > { %790 = vmatpush3.bf16.msra.mxu0 %v869_v50 }
  0x63   : > { %595 = vmatmul.mubr.bf16.vlgmr.msra.gmra.mrb[0].mxu0 %v752_v51 }
 0x136   : > { %v791_v52 = vpop.f32.mrb[0].mxu0  ;;  %607 = sbr.rel (%p770_p13) target bundleno = 331 (0x14b), region = 81 }
 0x137   : > { %v792_v54 = vpop.f32.mrb[1].mxu0 }
 0x138   : > { %v793_v55 = vadd.f32 %v792_v54, %v791_v52  ;;  %v794_v56 = vpop.f32.mrb[2].mxu0 }
 0x139   : > { %v795_v57 = vpop.f32.mrb[3].mxu0 }
 0x13a   : > { %v602_v58 = vadd.f32 %v793_v55, %v425_v53 }
 0x13c   : > { %603 = vst [vmem:[#allocation2] sm:$0xff] %v602_v58 }
 0x143   : > { %v608_v59 = vld [vmem:[#allocation2] sm:$0xff] }
 0x144   : > { %v616_v61 = vadd.f32 %v771_v60, %v608_v59 }
 0x146   : > { %v617_v62 = vmax.f32 %v616_v61, 0.0 }
 0x148   : > { %v618_v63 = vpack.c.bf16 %v617_v62, %v617_v62 }
 0x14a   : > { %619 = vst [vmem:[%s1098_s30] sm:$0xf] %v618_v63 }
 0x14b PF: > { %s13_s18 = sadd.s32 1, %s926_s18   ;;  %s1152_s12 = smov %s906_s13 }
 0x14c   : > { %p10_p0 = scmp.ge.s32.totalorder %s13_s18, 38   ;;  %s1153_s13 = smov %s1000_s25 }
 0x14d   : > { %s1154_s14 = smov %s918_s16  ;;  %s1155_s15 = smov %s922_s17 }
 0x14e   : > { %s1156_s16 = smov %s1159_s19  ;;  %s1157_s17 = smov %s1163_s20 }
 0x14f   :  { %12 = sbr.rel (!%p10_p0) target bundleno = 4 (0x4), region = 122 }

// kernel: my_resnet_forward.37
= control target key start
LH: loop header
LB: loop body
LE: loop exit
PB: predicated region body
PF: predicated region fallthrough
CT: control target
= control target key end

     0   :  { %s908_s12 = smov 0   ;;  %s910_s13 = smov 0   ;;  %s1066_s0 = inlined_call_operand.vmem [shape: bf16[8,256], index: 0, kind: input, shape index: {}]   ;;  %s1067_s1 = inlined_call_operand.vmem [shape: bf16[256,512], index: 1, kind: input, shape index: {}]   ;;  %s1068_s2 = inlined_call_operand.vmem [shape: f32[1,512], index: 2, kind: input, shape index: {}]   ;;  %s1069_s3 = inlined_call_operand.vmem [shape: bf16[8,512], index: 3, kind: output, shape index: {}]  }
   0x1   :  { %s912_s14 = smov 0   ;;  %s914_s15 = smov 0  }
   0x2   :  { %s916_s16 = smov 0  }
   0x3 LB: > { %s28_s17 = sadd.s32 1, %s882_s15  ;;  %p76_p1 = scmp.ne.s32.totalorder %s874_s13, %s870_s12  ;;  %s886_s16 = sphi %s916_s16, %s13_s16   ;;  %s882_s15 = sphi %s914_s15, %s1073_s15   ;;  %s878_s14 = sphi %s912_s14, %s1072_s14   ;;  %s874_s13 = sphi %s910_s13, %s1071_s13   ;;  %s870_s12 = sphi %s908_s12, %s1070_s12  }
   0x4   : > { %p30_p0 = scmp.ge.s32.totalorder %s28_s17, 4  ;;  %p77_p2 = scmp.eq.s32.totalorder %s886_s16, 0 }
   0x5   : > { %s69_s19 = sadd.s32 1, %s874_s13  ;;  %p741_p5 = scmp.ge.s32.totalorder %s886_s16, 4 }
   0x6   : > { %s1075_s17 = smov (%p30_p0, %s28_s17), 0  ;;  %p78_p3 = por %p77_p2, %p76_p1 }
   0x7   : > { %s65_s18 = ssub.s32 %s882_s15, %s1075_s17  ;;  %169 = sbr.rel (%p741_p5) target bundleno = 39 (0x27), region = 20 }
   0x8   : > { %p67_p4 = scmp.eq.s32.totalorder %s65_s18, 0 }
   0xa   : > { %s943_s20 = scalar_select %p67_p4, %s874_s13, %s69_s19  }
   0xe   : > { %172 = sbr.rel (!%p78_p3) target bundleno = 39 (0x27), region = 24  ;;  %s174_s21 = sand.u32 (%p78_p3), 1, %s874_s13  }
   0xf   : > { %s743_s22 = sshll.u32 (%p78_p3), %s882_s15, 2  ;;  %s742_s23 = sshll.u32 (%p78_p3), %s174_s21, 7 }
  0x10   : > { %s951_s26 = scalar_lea.vmem (%p78_p3), %s1067_s1, %s743_s22  ;;  %s955_s27 = scalar_lea.vmem (%p78_p3), [#allocation3], %s742_s23 }
  0x11   : > { %v197_v0 = vld [vmem:[%s951_s26] sm:$0xf] (%p78_p3)  ;;  %v199_v1 = vld [vmem:[%s951_s26 + $0x10] sm:$0xf] (%p78_p3) }
  0x12   : > { %198 = vst [vmem:[%s955_s27] sm:$0xf] (%p78_p3), %v197_v0  ;;  %200 = vst [vmem:[%s955_s27 + $0x4] sm:$0xf] (%p78_p3), %v199_v1  ;;  %v201_v2 = vld [vmem:[%s951_s26 + $0x20] sm:$0xf] (%p78_p3) }
  0x13   : > { %v203_v3 = vld [vmem:[%s951_s26 + $0x30] sm:$0xf] (%p78_p3)  ;;  %v205_v4 = vld [vmem:[%s951_s26 + $0x40] sm:$0xf] (%p78_p3)  ;;  %202 = vst [vmem:[%s955_s27 + $0x8] sm:$0xf] (%p78_p3), %v201_v2 }
  0x14   : > { %204 = vst [vmem:[%s955_s27 + $0xc] sm:$0xf] (%p78_p3), %v203_v3  ;;  %206 = vst [vmem:[%s955_s27 + $0x10] sm:$0xf] (%p78_p3), %v205_v4  ;;  %v207_v5 = vld [vmem:[%s951_s26 + $0x50] sm:$0xf] (%p78_p3) }
  0x15   : > { %v209_v6 = vld [vmem:[%s951_s26 + $0x60] sm:$0xf]  ;;  %v211_v7 = vld [vmem:[%s951_s26 + $0x70] sm:$0xf]  ;;  %208 = vst [vmem:[%s955_s27 + $0x14] sm:$0xf] %v207_v5 }
  0x16   : > { %210 = vst [vmem:[%s955_s27 + $0x18] sm:$0xf] %v209_v6  ;;  %212 = vst [vmem:[%s955_s27 + $0x1c] sm:$0xf] %v211_v7  ;;  %v213_v8 = vld [vmem:[%s951_s26 + $0x80] sm:$0xf] }
  0x17   : > { %v215_v9 = vld [vmem:[%s951_s26 + $0x90] sm:$0xf]  ;;  %v217_v10 = vld [vmem:[%s951_s26 + $0xa0] sm:$0xf]  ;;  %214 = vst [vmem:[%s955_s27 + $0x20] sm:$0xf] %v213_v8 }
  0x18   : > { %216 = vst [vmem:[%s955_s27 + $0x24] sm:$0xf] %v215_v9  ;;  %218 = vst [vmem:[%s955_s27 + $0x28] sm:$0xf] %v217_v10  ;;  %v219_v11 = vld [vmem:[%s951_s26 + $0xb0] sm:$0xf] }
  0x19   : > { %v221_v12 = vld [vmem:[%s951_s26 + $0xc0] sm:$0xf]  ;;  %v223_v13 = vld [vmem:[%s951_s26 + $0xd0] sm:$0xf]  ;;  %220 = vst [vmem:[%s955_s27 + $0x2c] sm:$0xf] %v219_v11 }
  0x1a   : > { %222 = vst [vmem:[%s955_s27 + $0x30] sm:$0xf] %v221_v12  ;;  %224 = vst [vmem:[%s955_s27 + $0x34] sm:$0xf] %v223_v13  ;;  %v225_v14 = vld [vmem:[%s951_s26 + $0xe0] sm:$0xf] }
  0x1b   : > { %v227_v15 = vld [vmem:[%s951_s26 + $0xf0] sm:$0xf]  ;;  %v229_v16 = vld [vmem:[%s951_s26 + $0x100] sm:$0xf]  ;;  %226 = vst [vmem:[%s955_s27 + $0x38] sm:$0xf] %v225_v14 }
  0x1c   : > { %228 = vst [vmem:[%s955_s27 + $0x3c] sm:$0xf] %v227_v15  ;;  %230 = vst [vmem:[%s955_s27 + $0x40] sm:$0xf] %v229_v16  ;;  %v231_v17 = vld [vmem:[%s951_s26 + $0x110] sm:$0xf] }
  0x1d   : > { %v233_v18 = vld [vmem:[%s951_s26 + $0x120] sm:$0xf]  ;;  %v235_v19 = vld [vmem:[%s951_s26 + $0x130] sm:$0xf]  ;;  %232 = vst [vmem:[%s955_s27 + $0x44] sm:$0xf] %v231_v17 }
  0x1e   : > { %234 = vst [vmem:[%s955_s27 + $0x48] sm:$0xf] %v233_v18  ;;  %236 = vst [vmem:[%s955_s27 + $0x4c] sm:$0xf] %v235_v19  ;;  %v237_v20 = vld [vmem:[%s951_s26 + $0x140] sm:$0xf] }
  0x1f   : > { %v239_v21 = vld [vmem:[%s951_s26 + $0x150] sm:$0xf]  ;;  %v241_v22 = vld [vmem:[%s951_s26 + $0x160] sm:$0xf]  ;;  %238 = vst [vmem:[%s955_s27 + $0x50] sm:$0xf] %v237_v20 }
  0x20   : > { %240 = vst [vmem:[%s955_s27 + $0x54] sm:$0xf] %v239_v21  ;;  %242 = vst [vmem:[%s955_s27 + $0x58] sm:$0xf] %v241_v22  ;;  %v243_v23 = vld [vmem:[%s951_s26 + $0x170] sm:$0xf] }
  0x21   : > { %v245_v24 = vld [vmem:[%s951_s26 + $0x180] sm:$0xf]  ;;  %v247_v25 = vld [vmem:[%s951_s26 + $0x190] sm:$0xf]  ;;  %244 = vst [vmem:[%s955_s27 + $0x5c] sm:$0xf] %v243_v23 }
  0x22   : > { %246 = vst [vmem:[%s955_s27 + $0x60] sm:$0xf] %v245_v24  ;;  %248 = vst [vmem:[%s955_s27 + $0x64] sm:$0xf] %v247_v25  ;;  %v249_v26 = vld [vmem:[%s951_s26 + $0x1a0] sm:$0xf] }
  0x23   : > { %v251_v27 = vld [vmem:[%s951_s26 + $0x1b0] sm:$0xf]  ;;  %v253_v28 = vld [vmem:[%s951_s26 + $0x1c0] sm:$0xf]  ;;  %250 = vst [vmem:[%s955_s27 + $0x68] sm:$0xf] %v249_v26 }
  0x24   : > { %252 = vst [vmem:[%s955_s27 + $0x6c] sm:$0xf] %v251_v27  ;;  %254 = vst [vmem:[%s955_s27 + $0x70] sm:$0xf] %v253_v28  ;;  %v255_v29 = vld [vmem:[%s951_s26 + $0x1d0] sm:$0xf] }
  0x25   : > { %v257_v30 = vld [vmem:[%s951_s26 + $0x1e0] sm:$0xf]  ;;  %v259_v31 = vld [vmem:[%s951_s26 + $0x1f0] sm:$0xf]  ;;  %256 = vst [vmem:[%s955_s27 + $0x74] sm:$0xf] %v255_v29 }
  0x26   : > { %258 = vst [vmem:[%s955_s27 + $0x78] sm:$0xf] %v257_v30  ;;  %260 = vst [vmem:[%s955_s27 + $0x7c] sm:$0xf] %v259_v31 }
  0x27 PF: > { %p744_p6 = scmp.ge.s32.totalorder %s886_s16, 1  ;;  %p352_p7 = scmp.lt.s32.totalorder %s886_s16, 5 }
  0x29   : > { %p353_p8 = pnand %p744_p6, %p352_p7 }
  0x2a   : > { %s359_s28 = sand.u32 (!%p353_p8), 1, %s870_s12   ;;  %v426_v32 = vld [vmem:[%s1066_s0] sm:$0xff] (!%p353_p8)  ;;  %p408_p9 = scmp.lt.s32.totalorder (!%p353_p8), %s878_s14, 3 }
  0x2b   : > { %356 = sbr.rel (%p353_p8) target bundleno = 298 (0x12a), region = 69  ;;  %s745_s4 = sshll.u32 (!%p353_p8), %s359_s28, 7  ;;  %v748_v33 = vcombine.high (!%p353_p8), %v426_v32, %v426_v32  ;;  %v747_v50 = vcombine.low (!%p353_p8), %v426_v32, %v426_v32 }
  0x2c   : > { %s1025_s5 = scalar_lea.vmem (!%p353_p8), [#allocation3], %s745_s4 }
  0x2d   : > { %v830_v34 = vld [vmem:[%s1025_s5 + $0x40] sm:$0xff] (!%p353_p8)   ;;  %594 = vmatprep.mubr.bf16.mxu0 (!%p353_p8), %v748_v33  ;;  %v832_v36 = vld [vmem:[%s1025_s5 + $0x48] sm:$0xff] (!%p353_p8)   ;;  %v834_v38 = vld [vmem:[%s1025_s5 + $0x50] sm:$0xff] (!%p353_p8)  }
  0x2e   : > { %v831_v35 = vld [vmem:[%s1025_s5] sm:$0xff] (!%p353_p8)   ;;  %768 = vmatprep.subr.bf16.mxu0 (!%p353_p8), %v830_v34  ;;  %v833_v37 = vld [vmem:[%s1025_s5 + $0x8] sm:$0xff] (!%p353_p8)   ;;  %v835_v39 = vld [vmem:[%s1025_s5 + $0x10] sm:$0xff] (!%p353_p8)  }
  0x2f   : > { %769 = vmatpush3.bf16.msra.mxu0 (!%p353_p8), %v831_v35  ;;  %v836_v40 = vld [vmem:[%s1025_s5 + $0x58] sm:$0xff] (!%p353_p8)   ;;  %v838_v42 = vld [vmem:[%s1025_s5 + $0x60] sm:$0xff] (!%p353_p8)   ;;  %v840_v44 = vld [vmem:[%s1025_s5 + $0x68] sm:$0xff] (!%p353_p8)  }
  0x30   : > { %770 = vmatprep.subr.bf16.mxu0 (!%p353_p8), %v832_v36  ;;  %v837_v41 = vld [vmem:[%s1025_s5 + $0x18] sm:$0xff] (!%p353_p8)   ;;  %v839_v43 = vld [vmem:[%s1025_s5 + $0x20] sm:$0xff] (!%p353_p8)   ;;  %v841_v45 = vld [vmem:[%s1025_s5 + $0x28] sm:$0xff] (!%p353_p8)  }
  0x31   : > { %v842_v46 = vld [vmem:[%s1025_s5 + $0x70] sm:$0xff] (!%p353_p8)   ;;  %v844_v48 = vld [vmem:[%s1025_s5 + $0x78] sm:$0xff] (!%p353_p8)  }
  0x32   : > { %v843_v47 = vld [vmem:[%s1025_s5 + $0x30] sm:$0xff]   ;;  %v845_v49 = vld [vmem:[%s1025_s5 + $0x38] sm:$0xff]   ;;  %s1077_s14 = smov (!%p408_p9, %s878_s14), 3 }
  0x33   : > { %771 = vmatpush3.bf16.msra.mxu0 %v833_v37  ;;  %s410_s8 = scalar_lea.vmem %s1068_s2, %s1077_s14  ;;  %s746_s9 = sshll.u32 %s1077_s14, 2 }
  0x34   : > { %772 = vmatprep.subr.bf16.mxu0 %v834_v38  ;;  %v765_v53 = vld [vmem:[%s410_s8] ss:$0 sm:$0xff]  ;;  %s418_s12 = scalar_lea.vmem %s1069_s3, %s746_s9 }
  0x37   : > { %773 = vmatpush3.bf16.msra.mxu0 %v835_v39 }
  0x38   : > { %774 = vmatprep.subr.bf16.mxu0 %v836_v40 }
  0x3b   : > { %775 = vmatpush3.bf16.msra.mxu0 %v837_v41 }
  0x3c   : > { %776 = vmatprep.subr.bf16.mxu0 %v838_v42 }
  0x3f   : > { %777 = vmatpush3.bf16.msra.mxu0 %v839_v43 }
  0x40   : > { %778 = vmatprep.subr.bf16.mxu0 %v840_v44 }
  0x43   : > { %779 = vmatpush3.bf16.msra.mxu0 %v841_v45 }
  0x44   : > { %780 = vmatprep.subr.bf16.mxu0 %v842_v46 }
  0x47   : > { %781 = vmatpush3.bf16.msra.mxu0 %v843_v47 }
  0x48   : > { %782 = vmatprep.subr.bf16.mxu0 %v844_v48 }
  0x4b   : > { %783 = vmatpush3.bf16.msra.mxu0 %v845_v49 }
  0x4e   : > { %595 = vmatmul.mubr.bf16.vlgmr.msra.gmra.mrb[0].mxu0 %v747_v50 }
 0x121   : > { %v784_v51 = vpop.f32.mrb[0].mxu0 }
 0x122   : > { %v785_v52 = vpop.f32.mrb[1].mxu0 }
 0x123   : > { %v786_v54 = vadd.f32 %v785_v52, %v784_v51  ;;  %v787_v55 = vpop.f32.mrb[2].mxu0 }
 0x124   : > { %v788_v56 = vpop.f32.mrb[3].mxu0 }
 0x125   : > { %v615_v57 = vadd.f32 %v786_v54, %v765_v53 }
 0x127   : > { %v616_v58 = vpack.c.bf16 %v615_v57, %v615_v57 }
 0x129   : > { %617 = vst [vmem:[%s418_s12] sm:$0xf] %v616_v58 }
 0x12a PF: > { %s13_s16 = sadd.s32 1, %s886_s16   ;;  %s1070_s12 = smov %s874_s13 }
 0x12b   : > { %p10_p10 = scmp.ge.s32.totalorder %s13_s16, 6   ;;  %s1071_s13 = smov %s943_s20 }
 0x12c   : > { %s1072_s14 = smov %s882_s15  ;;  %s1073_s15 = smov %s1075_s17 }
 0x12d   :  { %12 = sbr.rel (!%p10_p10) target bundleno = 3 (0x3), region = 122 }

// kernel: my_resnet_forward.38
= control target key start
LH: loop header
LB: loop body
LE: loop exit
PB: predicated region body
PF: predicated region fallthrough
CT: control target
= control target key end

     0   :  { %s1034_s15 = smov 0   ;;  %s1036_s16 = smov 0   ;;  %s1239_s0 = inlined_call_operand.vmem [shape: bf16[8,4608], index: 0, kind: input, shape index: {}]   ;;  %s1240_s1 = inlined_call_operand.vmem [shape: bf16[4608,512], index: 1, kind: input, shape index: {}]   ;;  %s1241_s2 = inlined_call_operand.vmem [shape: f32[1,512], index: 2, kind: input, shape index: {}]   ;;  %s1242_s3 = inlined_call_operand.vmem [shape: bf16[8,512], index: 3, kind: input, shape index: {}]   ;;  %s1243_s4 = inlined_call_operand.vmem [shape: bf16[8,512], index: 4, kind: output, shape index: {}]  }
   0x1   :  { %s1038_s17 = smov 0   ;;  %s1040_s18 = smov 0  }
   0x2   :  { %s1042_s19 = smov 0   ;;  %s1044_s20 = smov 0  }
   0x3   :  { %s1046_s21 = smov 0  }
   0x4 LB: > { %s26_s22 = sadd.s32 1, %s998_s19  ;;  %s29_s23 = sadd.s32 1, %s1002_s20  ;;  %s1006_s21 = sphi %s1046_s21, %s14_s21   ;;  %s1002_s20 = sphi %s1044_s20, %s1249_s20   ;;  %s998_s19 = sphi %s1042_s19, %s1248_s19   ;;  %s994_s18 = sphi %s1040_s18, %s1247_s18   ;;  %s990_s17 = sphi %s1038_s17, %s1246_s17   ;;  %s986_s16 = sphi %s1036_s16, %s1245_s16   ;;  %s982_s15 = sphi %s1034_s15, %s1244_s15  }
   0x5   : > { %p27_p0 = scmp.ge.s32.totalorder %s26_s22, 18  ;;  %p77_p1 = scmp.ne.s32.totalorder %s986_s16, %s982_s15 }
   0x6   : > { %p78_p2 = scmp.eq.s32.totalorder %s1006_s21, 0  ;;  %s70_s27 = sadd.s32 1, %s986_s16 }
   0x7   : > { %s1251_s22 = smov (%p27_p0, %s26_s22), 0  ;;  %s1253_s23 = smov (!%p27_p0, %s29_s23), %s1002_s20 }
   0x8   : > { %p79_p3 = por %p78_p2, %p77_p1  ;;  %p31_p4 = scmp.ge.s32.totalorder %s1253_s23, 4 }
   0x9   : > { %s65_s24 = ssub.s32 %s998_s19, %s1251_s22  ;;  %p820_p6 = scmp.ge.s32.totalorder %s1006_s21, 72 }
   0xa   : > { %s1255_s23 = smov (%p31_p4, %s1253_s23), 0 }
   0xb   : > { %s66_s25 = ssub.s32 %s1002_s20, %s1255_s23  ;;  %185 = sbr.rel (%p820_p6) target bundleno = 45 (0x2d), region = 16 }
   0xc   : > { %s67_s26 = sor.u32 %s66_s25, %s65_s24 }
   0xd   : > { %p68_p5 = scmp.eq.s32.totalorder %s67_s26, 0 }
   0xf   : > { %s1085_s28 = scalar_select %p68_p5, %s986_s16, %s70_s27  }
  0x12   : > { %201 = sbr.rel (!%p79_p3) target bundleno = 45 (0x2d), region = 24  ;;  %s203_s29 = sand.u32 (%p79_p3), 1, %s986_s16  }
  0x13   : > { %s854_s30 = sshll.u32 (%p79_p3), %s998_s19, 7  ;;  %s821_s5 = sshll.u32 (%p79_p3), %s203_s29, 7 }
  0x14   : > { %s208_s6 = sadd.s32 (%p79_p3), %s1002_s20, %s854_s30  ;;  %s1099_s11 = scalar_lea.vmem (%p79_p3), [#allocation3], %s821_s5 }
  0x15   : > { %s824_s7 = sshll.u32 (%p79_p3), %s208_s6, 2 }
  0x16   : > { %s1094_s10 = scalar_lea.vmem (%p79_p3), %s1240_s1, %s824_s7 }
  0x17   : > { %v226_v0 = vld [vmem:[%s1094_s10] sm:$0xf] (%p79_p3)  ;;  %v228_v1 = vld [vmem:[%s1094_s10 + $0x10] sm:$0xf] (%p79_p3) }
  0x18   : > { %v230_v2 = vld [vmem:[%s1094_s10 + $0x20] sm:$0xf] (%p79_p3)  ;;  %227 = vst [vmem:[%s1099_s11] sm:$0xf] (%p79_p3), %v226_v0  ;;  %229 = vst [vmem:[%s1099_s11 + $0x4] sm:$0xf] (%p79_p3), %v228_v1 }
  0x19   : > { %231 = vst [vmem:[%s1099_s11 + $0x8] sm:$0xf] %v230_v2  ;;  %v232_v3 = vld [vmem:[%s1094_s10 + $0x30] sm:$0xf]  ;;  %v234_v4 = vld [vmem:[%s1094_s10 + $0x40] sm:$0xf] }
  0x1a   : > { %v236_v5 = vld [vmem:[%s1094_s10 + $0x50] sm:$0xf]  ;;  %233 = vst [vmem:[%s1099_s11 + $0xc] sm:$0xf] %v232_v3  ;;  %235 = vst [vmem:[%s1099_s11 + $0x10] sm:$0xf] %v234_v4 }
  0x1b   : > { %237 = vst [vmem:[%s1099_s11 + $0x14] sm:$0xf] %v236_v5  ;;  %v238_v6 = vld [vmem:[%s1094_s10 + $0x60] sm:$0xf]  ;;  %v240_v7 = vld [vmem:[%s1094_s10 + $0x70] sm:$0xf] }
  0x1c   : > { %v242_v8 = vld [vmem:[%s1094_s10 + $0x80] sm:$0xf]  ;;  %239 = vst [vmem:[%s1099_s11 + $0x18] sm:$0xf] %v238_v6  ;;  %241 = vst [vmem:[%s1099_s11 + $0x1c] sm:$0xf] %v240_v7 }
  0x1d   : > { %243 = vst [vmem:[%s1099_s11 + $0x20] sm:$0xf] %v242_v8  ;;  %v244_v9 = vld [vmem:[%s1094_s10 + $0x90] sm:$0xf]  ;;  %v246_v10 = vld [vmem:[%s1094_s10 + $0xa0] sm:$0xf] }
  0x1e   : > { %v248_v11 = vld [vmem:[%s1094_s10 + $0xb0] sm:$0xf]  ;;  %245 = vst [vmem:[%s1099_s11 + $0x24] sm:$0xf] %v244_v9  ;;  %247 = vst [vmem:[%s1099_s11 + $0x28] sm:$0xf] %v246_v10 }
  0x1f   : > { %249 = vst [vmem:[%s1099_s11 + $0x2c] sm:$0xf] %v248_v11  ;;  %v250_v12 = vld [vmem:[%s1094_s10 + $0xc0] sm:$0xf]  ;;  %v252_v13 = vld [vmem:[%s1094_s10 + $0xd0] sm:$0xf] }
  0x20   : > { %v254_v14 = vld [vmem:[%s1094_s10 + $0xe0] sm:$0xf]  ;;  %251 = vst [vmem:[%s1099_s11 + $0x30] sm:$0xf] %v250_v12  ;;  %253 = vst [vmem:[%s1099_s11 + $0x34] sm:$0xf] %v252_v13 }
  0x21   : > { %255 = vst [vmem:[%s1099_s11 + $0x38] sm:$0xf] %v254_v14  ;;  %v256_v15 = vld [vmem:[%s1094_s10 + $0xf0] sm:$0xf]  ;;  %v258_v16 = vld [vmem:[%s1094_s10 + $0x100] sm:$0xf] }
  0x22   : > { %v260_v17 = vld [vmem:[%s1094_s10 + $0x110] sm:$0xf]  ;;  %257 = vst [vmem:[%s1099_s11 + $0x3c] sm:$0xf] %v256_v15  ;;  %259 = vst [vmem:[%s1099_s11 + $0x40] sm:$0xf] %v258_v16 }
  0x23   : > { %261 = vst [vmem:[%s1099_s11 + $0x44] sm:$0xf] %v260_v17  ;;  %v262_v18 = vld [vmem:[%s1094_s10 + $0x120] sm:$0xf]  ;;  %v264_v19 = vld [vmem:[%s1094_s10 + $0x130] sm:$0xf] }
  0x24   : > { %v266_v20 = vld [vmem:[%s1094_s10 + $0x140] sm:$0xf]  ;;  %263 = vst [vmem:[%s1099_s11 + $0x48] sm:$0xf] %v262_v18  ;;  %265 = vst [vmem:[%s1099_s11 + $0x4c] sm:$0xf] %v264_v19 }
  0x25   : > { %267 = vst [vmem:[%s1099_s11 + $0x50] sm:$0xf] %v266_v20  ;;  %v268_v21 = vld [vmem:[%s1094_s10 + $0x150] sm:$0xf]  ;;  %v270_v22 = vld [vmem:[%s1094_s10 + $0x160] sm:$0xf] }
  0x26   : > { %v272_v23 = vld [vmem:[%s1094_s10 + $0x170] sm:$0xf]  ;;  %269 = vst [vmem:[%s1099_s11 + $0x54] sm:$0xf] %v268_v21  ;;  %271 = vst [vmem:[%s1099_s11 + $0x58] sm:$0xf] %v270_v22 }
  0x27   : > { %273 = vst [vmem:[%s1099_s11 + $0x5c] sm:$0xf] %v272_v23  ;;  %v274_v24 = vld [vmem:[%s1094_s10 + $0x180] sm:$0xf]  ;;  %v276_v25 = vld [vmem:[%s1094_s10 + $0x190] sm:$0xf] }
  0x28   : > { %v278_v26 = vld [vmem:[%s1094_s10 + $0x1a0] sm:$0xf]  ;;  %275 = vst [vmem:[%s1099_s11 + $0x60] sm:$0xf] %v274_v24  ;;  %277 = vst [vmem:[%s1099_s11 + $0x64] sm:$0xf] %v276_v25 }
  0x29   : > { %279 = vst [vmem:[%s1099_s11 + $0x68] sm:$0xf] %v278_v26  ;;  %v280_v27 = vld [vmem:[%s1094_s10 + $0x1b0] sm:$0xf]  ;;  %v282_v28 = vld [vmem:[%s1094_s10 + $0x1c0] sm:$0xf] }
  0x2a   : > { %v284_v29 = vld [vmem:[%s1094_s10 + $0x1d0] sm:$0xf]  ;;  %281 = vst [vmem:[%s1099_s11 + $0x6c] sm:$0xf] %v280_v27  ;;  %283 = vst [vmem:[%s1099_s11 + $0x70] sm:$0xf] %v282_v28 }
  0x2b   : > { %285 = vst [vmem:[%s1099_s11 + $0x74] sm:$0xf] %v284_v29  ;;  %v286_v30 = vld [vmem:[%s1094_s10 + $0x1e0] sm:$0xf]  ;;  %v288_v31 = vld [vmem:[%s1094_s10 + $0x1f0] sm:$0xf] }
  0x2c   : > { %287 = vst [vmem:[%s1099_s11 + $0x78] sm:$0xf] %v286_v30  ;;  %289 = vst [vmem:[%s1099_s11 + $0x7c] sm:$0xf] %v288_v31 }
  0x2d PF: > { %p825_p7 = scmp.ge.s32.totalorder %s1006_s21, 1  ;;  %p392_p8 = scmp.lt.s32.totalorder %s1006_s21, 73 }
  0x2f   : > { %p393_p9 = pnand %p825_p7, %p392_p8 }
  0x30   : > { %s399_s12 = sand.u32 (!%p393_p9), 1, %s982_s15   ;;  %s827_s13 = sshll.u32 (!%p393_p9), %s990_s17, 1 }
  0x31   : > { %396 = sbr.rel (%p393_p9) target bundleno = 334 (0x14e), region = 73  ;;  %s826_s14 = sshll.u32 (!%p393_p9), %s399_s12, 7 }
  0x32   : > { %p450_p10 = scmp.lt.s32.totalorder (!%p393_p9), %s827_s13, 35  ;;  %p458_p11 = scmp.lt.s32.totalorder (!%p393_p9), %s994_s18, 3 }
  0x33   : > { %s1190_s12 = scalar_lea.vmem (!%p393_p9), [#allocation3], %s826_s14  ;;  %p831_p12 = scmp.ne.s32.totalorder (!%p393_p9), %s990_s17, 0 }
  0x38   : > { %s1257_s13 = smov (!%p450_p10, %s827_s13), 35  ;;  %s1259_s18 = smov (!%p458_p11, %s994_s18), 3 }
  0x39   : > { %s828_s24 = sshll.u32 %s1257_s13, 2  ;;  %s460_s5 = scalar_lea.vmem %s1241_s2, %s1259_s18  ;;  %v1008_v32 = vmov (!%p831_p12), 0.0  }
  0x3a   : > { %s1173_s27 = scalar_lea.vmem %s1239_s0, %s828_s24  ;;  %s829_s15 = sshll.u32 %s1259_s18, 2  ;;  %482 = vst [vmem:[#allocation2] sm:$0xff] (!%p831_p12), %v1008_v32 }
  0x3b   : > { %s1183_s8 = scalar_lea.vmem %s1242_s3, %s829_s15  ;;  %s1188_s11 = scalar_lea.vmem %s1243_s4, %s829_s15 }
  0x3c   : > { %481 = sbr.rel (%p831_p12) target bundleno = 67 (0x43), region = 81 }
  0x43 PF: > { %v934_v33 = vld [vmem:[%s1190_s12 + $0x40] sm:$0xff]   ;;  %v936_v35 = vld [vmem:[%s1190_s12 + $0x48] sm:$0xff]   ;;  %v938_v37 = vld [vmem:[%s1190_s12 + $0x50] sm:$0xff]   ;;  %p850_p13 = scmp.ne.s32.totalorder %s990_s17, 17 }
  0x44   : > { %v935_v34 = vld [vmem:[%s1190_s12] sm:$0xff]   ;;  %855 = vmatprep.subr.bf16.mxu0 %v934_v33  ;;  %v937_v36 = vld [vmem:[%s1190_s12 + $0x8] sm:$0xff]   ;;  %v939_v38 = vld [vmem:[%s1190_s12 + $0x10] sm:$0xff]  }
  0x45   : > { %856 = vmatpush3.bf16.msra.mxu0 %v935_v34  ;;  %v940_v39 = vld [vmem:[%s1190_s12 + $0x58] sm:$0xff]   ;;  %v942_v41 = vld [vmem:[%s1190_s12 + $0x60] sm:$0xff]   ;;  %v944_v43 = vld [vmem:[%s1190_s12 + $0x68] sm:$0xff]  }
  0x46   : > { %857 = vmatprep.subr.bf16.mxu0 %v936_v35  ;;  %v941_v40 = vld [vmem:[%s1190_s12 + $0x18] sm:$0xff]   ;;  %v943_v42 = vld [vmem:[%s1190_s12 + $0x20] sm:$0xff]   ;;  %v945_v46 = vld [vmem:[%s1190_s12 + $0x28] sm:$0xff]  }
  0x47   : > { %v484_v44 = vld [vmem:[%s1173_s27] sm:$0xff]  ;;  %v946_v47 = vld [vmem:[%s1190_s12 + $0x70] sm:$0xff]  }
  0x48   : > { %v833_v45 = vcombine.high %v484_v44, %v484_v44  ;;  %v947_v48 = vld [vmem:[%s1190_s12 + $0x30] sm:$0xff]   ;;  %v948_v49 = vld [vmem:[%s1190_s12 + $0x78] sm:$0xff]   ;;  %v832_v51 = vcombine.low %v484_v44, %v484_v44 }
  0x49   : > { %858 = vmatpush3.bf16.msra.mxu0 %v937_v36  ;;  %v949_v50 = vld [vmem:[%s1190_s12 + $0x38] sm:$0xff]  }
  0x4a   : > { %859 = vmatprep.subr.bf16.mxu0 %v938_v37  ;;  %652 = vmatprep.mubr.bf16.mxu0 %v833_v45  ;;  %v483_v53 = vld [vmem:[#allocation2] sm:$0xff] }
  0x4b   : > { %v851_v60 = vld [vmem:[%s460_s5] ss:$0 sm:$0xff] (!%p850_p13) }
  0x4c   : > { %v675_v61 = vld [vmem:[%s1183_s8] sm:$0xf] (!%p850_p13) }
  0x4d   : > { %860 = vmatpush3.bf16.msra.mxu0 %v939_v38  ;;  %v676_v63 = vunpack.c.l.bf16 (!%p850_p13), %v675_v61 }
  0x4e   : > { %861 = vmatprep.subr.bf16.mxu0 %v940_v39 }
  0x51   : > { %862 = vmatpush3.bf16.msra.mxu0 %v941_v40 }
  0x52   : > { %863 = vmatprep.subr.bf16.mxu0 %v942_v41 }
  0x55   : > { %864 = vmatpush3.bf16.msra.mxu0 %v943_v42 }
  0x56   : > { %865 = vmatprep.subr.bf16.mxu0 %v944_v43 }
  0x59   : > { %866 = vmatpush3.bf16.msra.mxu0 %v945_v46 }
  0x5a   : > { %867 = vmatprep.subr.bf16.mxu0 %v946_v47 }
  0x5d   : > { %868 = vmatpush3.bf16.msra.mxu0 %v947_v48 }
  0x5e   : > { %869 = vmatprep.subr.bf16.mxu0 %v948_v49 }
  0x61   : > { %870 = vmatpush3.bf16.msra.mxu0 %v949_v50 }
  0x64   : > { %653 = vmatmul.mubr.bf16.vlgmr.msra.gmra.mrb[0].mxu0 %v832_v51 }
 0x137   : > { %v871_v52 = vpop.f32.mrb[0].mxu0  ;;  %665 = sbr.rel (%p850_p13) target bundleno = 334 (0x14e), region = 85 }
 0x138   : > { %v872_v54 = vpop.f32.mrb[1].mxu0 }
 0x139   : > { %v873_v55 = vadd.f32 %v872_v54, %v871_v52  ;;  %v874_v56 = vpop.f32.mrb[2].mxu0 }
 0x13a   : > { %v875_v57 = vpop.f32.mrb[3].mxu0 }
 0x13b   : > { %v660_v58 = vadd.f32 %v873_v55, %v483_v53 }
 0x13d   : > { %661 = vst [vmem:[#allocation2] sm:$0xff] %v660_v58 }
 0x144   : > { %v666_v59 = vld [vmem:[#allocation2] sm:$0xff] }
 0x145   : > { %v674_v62 = vadd.f32 %v851_v60, %v666_v59 }
 0x147   : > { %v677_v0 = vadd.f32 %v676_v63, %v674_v62 }
 0x149   : > { %v678_v1 = vmax.f32 %v677_v0, 0.0 }
 0x14b   : > { %v679_v2 = vpack.c.bf16 %v678_v1, %v678_v1 }
 0x14d   : > { %680 = vst [vmem:[%s1188_s11] sm:$0xf] %v679_v2 }
 0x14e PF: > { %s14_s21 = sadd.s32 1, %s1006_s21   ;;  %s1244_s15 = smov %s986_s16 }
 0x14f   : > { %p11_p0 = scmp.ge.s32.totalorder %s14_s21, 74   ;;  %s1245_s16 = smov %s1085_s28 }
 0x150   : > { %s1246_s17 = smov %s998_s19  ;;  %s1247_s18 = smov %s1002_s20 }
 0x151   : > { %s1248_s19 = smov %s1251_s22  ;;  %s1249_s20 = smov %s1255_s23 }
 0x152   :  { %13 = sbr.rel (!%p11_p0) target bundleno = 4 (0x4), region = 129 }

// kernel: my_resnet_forward.39
= control target key start
LH: loop header
LB: loop body
LE: loop exit
PB: predicated region body
PF: predicated region fallthrough
CT: control target
= control target key end

     0   :  { %s949_s12 = smov 0   ;;  %s951_s13 = smov 0   ;;  %s1148_s0 = inlined_call_operand.vmem [shape: bf16[8,4608], index: 0, kind: input, shape index: {}]   ;;  %s1149_s1 = inlined_call_operand.vmem [shape: bf16[4608,512], index: 1, kind: input, shape index: {}]   ;;  %s1150_s2 = inlined_call_operand.vmem [shape: f32[1,512], index: 2, kind: input, shape index: {}]   ;;  %s1151_s3 = inlined_call_operand.vmem [shape: bf16[8,512], index: 3, kind: output, shape index: {}]  }
   0x1   :  { %s953_s14 = smov 0   ;;  %s955_s15 = smov 0  }
   0x2   :  { %s957_s16 = smov 0   ;;  %s959_s17 = smov 0  }
   0x3   :  { %s961_s18 = smov 0  }
   0x4 LB: > { %s25_s19 = sadd.s32 1, %s918_s16  ;;  %s28_s20 = sadd.s32 1, %s922_s17  ;;  %s926_s18 = sphi %s961_s18, %s13_s18   ;;  %s922_s17 = sphi %s959_s17, %s1157_s17   ;;  %s918_s16 = sphi %s957_s16, %s1156_s16   ;;  %s914_s15 = sphi %s955_s15, %s1155_s15   ;;  %s910_s14 = sphi %s953_s14, %s1154_s14   ;;  %s906_s13 = sphi %s951_s13, %s1153_s13   ;;  %s902_s12 = sphi %s949_s12, %s1152_s12  }
   0x5   : > { %p26_p0 = scmp.ge.s32.totalorder %s25_s19, 18  ;;  %p76_p1 = scmp.ne.s32.totalorder %s906_s13, %s902_s12 }
   0x6   : > { %p77_p2 = scmp.eq.s32.totalorder %s926_s18, 0  ;;  %s69_s24 = sadd.s32 1, %s906_s13 }
   0x7   : > { %s1159_s19 = smov (%p26_p0, %s25_s19), 0  ;;  %s1161_s20 = smov (!%p26_p0, %s28_s20), %s922_s17 }
   0x8   : > { %p78_p3 = por %p77_p2, %p76_p1  ;;  %p30_p4 = scmp.ge.s32.totalorder %s1161_s20, 4 }
   0x9   : > { %s64_s21 = ssub.s32 %s918_s16, %s1159_s19  ;;  %p741_p6 = scmp.ge.s32.totalorder %s926_s18, 72 }
   0xa   : > { %s1163_s20 = smov (%p30_p4, %s1161_s20), 0 }
   0xb   : > { %s65_s22 = ssub.s32 %s922_s17, %s1163_s20  ;;  %156 = sbr.rel (%p741_p6) target bundleno = 45 (0x2d), region = 16 }
   0xc   : > { %s66_s23 = sor.u32 %s65_s22, %s64_s21 }
   0xd   : > { %p67_p5 = scmp.eq.s32.totalorder %s66_s23, 0 }
   0xf   : > { %s1000_s25 = scalar_select %p67_p5, %s906_s13, %s69_s24  }
  0x12   : > { %172 = sbr.rel (!%p78_p3) target bundleno = 45 (0x2d), region = 24  ;;  %s174_s26 = sand.u32 (%p78_p3), 1, %s906_s13  }
  0x13   : > { %s774_s27 = sshll.u32 (%p78_p3), %s918_s16, 7  ;;  %s742_s28 = sshll.u32 (%p78_p3), %s174_s26, 7 }
  0x14   : > { %s179_s29 = sadd.s32 (%p78_p3), %s922_s17, %s774_s27  ;;  %s1014_s7 = scalar_lea.vmem (%p78_p3), [#allocation3], %s742_s28 }
  0x15   : > { %s745_s30 = sshll.u32 (%p78_p3), %s179_s29, 2 }
  0x16   : > { %s1009_s6 = scalar_lea.vmem (%p78_p3), %s1149_s1, %s745_s30 }
  0x17   : > { %v197_v0 = vld [vmem:[%s1009_s6] sm:$0xf] (%p78_p3)  ;;  %v199_v1 = vld [vmem:[%s1009_s6 + $0x10] sm:$0xf] (%p78_p3) }
  0x18   : > { %v201_v2 = vld [vmem:[%s1009_s6 + $0x20] sm:$0xf] (%p78_p3)  ;;  %198 = vst [vmem:[%s1014_s7] sm:$0xf] (%p78_p3), %v197_v0  ;;  %200 = vst [vmem:[%s1014_s7 + $0x4] sm:$0xf] (%p78_p3), %v199_v1 }
  0x19   : > { %202 = vst [vmem:[%s1014_s7 + $0x8] sm:$0xf] %v201_v2  ;;  %v203_v3 = vld [vmem:[%s1009_s6 + $0x30] sm:$0xf]  ;;  %v205_v4 = vld [vmem:[%s1009_s6 + $0x40] sm:$0xf] }
  0x1a   : > { %v207_v5 = vld [vmem:[%s1009_s6 + $0x50] sm:$0xf]  ;;  %204 = vst [vmem:[%s1014_s7 + $0xc] sm:$0xf] %v203_v3  ;;  %206 = vst [vmem:[%s1014_s7 + $0x10] sm:$0xf] %v205_v4 }
  0x1b   : > { %208 = vst [vmem:[%s1014_s7 + $0x14] sm:$0xf] %v207_v5  ;;  %v209_v6 = vld [vmem:[%s1009_s6 + $0x60] sm:$0xf]  ;;  %v211_v7 = vld [vmem:[%s1009_s6 + $0x70] sm:$0xf] }
  0x1c   : > { %v213_v8 = vld [vmem:[%s1009_s6 + $0x80] sm:$0xf]  ;;  %210 = vst [vmem:[%s1014_s7 + $0x18] sm:$0xf] %v209_v6  ;;  %212 = vst [vmem:[%s1014_s7 + $0x1c] sm:$0xf] %v211_v7 }
  0x1d   : > { %214 = vst [vmem:[%s1014_s7 + $0x20] sm:$0xf] %v213_v8  ;;  %v215_v9 = vld [vmem:[%s1009_s6 + $0x90] sm:$0xf]  ;;  %v217_v10 = vld [vmem:[%s1009_s6 + $0xa0] sm:$0xf] }
  0x1e   : > { %v219_v11 = vld [vmem:[%s1009_s6 + $0xb0] sm:$0xf]  ;;  %216 = vst [vmem:[%s1014_s7 + $0x24] sm:$0xf] %v215_v9  ;;  %218 = vst [vmem:[%s1014_s7 + $0x28] sm:$0xf] %v217_v10 }
  0x1f   : > { %220 = vst [vmem:[%s1014_s7 + $0x2c] sm:$0xf] %v219_v11  ;;  %v221_v12 = vld [vmem:[%s1009_s6 + $0xc0] sm:$0xf]  ;;  %v223_v13 = vld [vmem:[%s1009_s6 + $0xd0] sm:$0xf] }
  0x20   : > { %v225_v14 = vld [vmem:[%s1009_s6 + $0xe0] sm:$0xf]  ;;  %222 = vst [vmem:[%s1014_s7 + $0x30] sm:$0xf] %v221_v12  ;;  %224 = vst [vmem:[%s1014_s7 + $0x34] sm:$0xf] %v223_v13 }
  0x21   : > { %226 = vst [vmem:[%s1014_s7 + $0x38] sm:$0xf] %v225_v14  ;;  %v227_v15 = vld [vmem:[%s1009_s6 + $0xf0] sm:$0xf]  ;;  %v229_v16 = vld [vmem:[%s1009_s6 + $0x100] sm:$0xf] }
  0x22   : > { %v231_v17 = vld [vmem:[%s1009_s6 + $0x110] sm:$0xf]  ;;  %228 = vst [vmem:[%s1014_s7 + $0x3c] sm:$0xf] %v227_v15  ;;  %230 = vst [vmem:[%s1014_s7 + $0x40] sm:$0xf] %v229_v16 }
  0x23   : > { %232 = vst [vmem:[%s1014_s7 + $0x44] sm:$0xf] %v231_v17  ;;  %v233_v18 = vld [vmem:[%s1009_s6 + $0x120] sm:$0xf]  ;;  %v235_v19 = vld [vmem:[%s1009_s6 + $0x130] sm:$0xf] }
  0x24   : > { %v237_v20 = vld [vmem:[%s1009_s6 + $0x140] sm:$0xf]  ;;  %234 = vst [vmem:[%s1014_s7 + $0x48] sm:$0xf] %v233_v18  ;;  %236 = vst [vmem:[%s1014_s7 + $0x4c] sm:$0xf] %v235_v19 }
  0x25   : > { %238 = vst [vmem:[%s1014_s7 + $0x50] sm:$0xf] %v237_v20  ;;  %v239_v21 = vld [vmem:[%s1009_s6 + $0x150] sm:$0xf]  ;;  %v241_v22 = vld [vmem:[%s1009_s6 + $0x160] sm:$0xf] }
  0x26   : > { %v243_v23 = vld [vmem:[%s1009_s6 + $0x170] sm:$0xf]  ;;  %240 = vst [vmem:[%s1014_s7 + $0x54] sm:$0xf] %v239_v21  ;;  %242 = vst [vmem:[%s1014_s7 + $0x58] sm:$0xf] %v241_v22 }
  0x27   : > { %244 = vst [vmem:[%s1014_s7 + $0x5c] sm:$0xf] %v243_v23  ;;  %v245_v24 = vld [vmem:[%s1009_s6 + $0x180] sm:$0xf]  ;;  %v247_v25 = vld [vmem:[%s1009_s6 + $0x190] sm:$0xf] }
  0x28   : > { %v249_v26 = vld [vmem:[%s1009_s6 + $0x1a0] sm:$0xf]  ;;  %246 = vst [vmem:[%s1014_s7 + $0x60] sm:$0xf] %v245_v24  ;;  %248 = vst [vmem:[%s1014_s7 + $0x64] sm:$0xf] %v247_v25 }
  0x29   : > { %250 = vst [vmem:[%s1014_s7 + $0x68] sm:$0xf] %v249_v26  ;;  %v251_v27 = vld [vmem:[%s1009_s6 + $0x1b0] sm:$0xf]  ;;  %v253_v28 = vld [vmem:[%s1009_s6 + $0x1c0] sm:$0xf] }
  0x2a   : > { %v255_v29 = vld [vmem:[%s1009_s6 + $0x1d0] sm:$0xf]  ;;  %252 = vst [vmem:[%s1014_s7 + $0x6c] sm:$0xf] %v251_v27  ;;  %254 = vst [vmem:[%s1014_s7 + $0x70] sm:$0xf] %v253_v28 }
  0x2b   : > { %256 = vst [vmem:[%s1014_s7 + $0x74] sm:$0xf] %v255_v29  ;;  %v257_v30 = vld [vmem:[%s1009_s6 + $0x1e0] sm:$0xf]  ;;  %v259_v31 = vld [vmem:[%s1009_s6 + $0x1f0] sm:$0xf] }
  0x2c   : > { %258 = vst [vmem:[%s1014_s7 + $0x78] sm:$0xf] %v257_v30  ;;  %260 = vst [vmem:[%s1014_s7 + $0x7c] sm:$0xf] %v259_v31 }
  0x2d PF: > { %p746_p7 = scmp.ge.s32.totalorder %s926_s18, 1  ;;  %p352_p8 = scmp.lt.s32.totalorder %s926_s18, 73 }
  0x2f   : > { %p353_p9 = pnand %p746_p7, %p352_p8 }
  0x30   : > { %s359_s8 = sand.u32 (!%p353_p9), 1, %s902_s12   ;;  %s748_s9 = sshll.u32 (!%p353_p9), %s910_s14, 1 }
  0x31   : > { %356 = sbr.rel (%p353_p9) target bundleno = 331 (0x14b), region = 69  ;;  %s747_s10 = sshll.u32 (!%p353_p9), %s359_s8, 7 }
  0x32   : > { %p400_p10 = scmp.lt.s32.totalorder (!%p353_p9), %s748_s9, 35  ;;  %p408_p11 = scmp.lt.s32.totalorder (!%p353_p9), %s914_s15, 3 }
  0x33   : > { %s1100_s4 = scalar_lea.vmem (!%p353_p9), [#allocation3], %s747_s10  ;;  %p751_p12 = scmp.ne.s32.totalorder (!%p353_p9), %s910_s14, 0 }
  0x38   : > { %s1165_s9 = smov (!%p400_p10, %s748_s9), 35  ;;  %s1167_s15 = smov (!%p408_p11, %s914_s15), 3 }
  0x39   : > { %s749_s11 = sshll.u32 %s1165_s9, 2  ;;  %s410_s27 = scalar_lea.vmem %s1150_s2, %s1167_s15  ;;  %v928_v32 = vmov (!%p751_p12), 0.0  }
  0x3a   : > { %s1088_s23 = scalar_lea.vmem %s1148_s0, %s749_s11  ;;  %s750_s12 = sshll.u32 %s1167_s15, 2  ;;  %424 = vst [vmem:[#allocation2] sm:$0xff] (!%p751_p12), %v928_v32 }
  0x3b   : > { %s1098_s30 = scalar_lea.vmem %s1151_s3, %s750_s12  ;;  %423 = sbr.rel (%p751_p12) target bundleno = 66 (0x42), region = 77 }
  0x42 PF: > { %v854_v33 = vld [vmem:[%s1100_s4 + $0x40] sm:$0xff]   ;;  %v856_v35 = vld [vmem:[%s1100_s4 + $0x48] sm:$0xff]   ;;  %v858_v37 = vld [vmem:[%s1100_s4 + $0x50] sm:$0xff]   ;;  %p770_p13 = scmp.ne.s32.totalorder %s910_s14, 17 }
  0x43   : > { %v855_v34 = vld [vmem:[%s1100_s4] sm:$0xff]   ;;  %775 = vmatprep.subr.bf16.mxu0 %v854_v33  ;;  %v857_v36 = vld [vmem:[%s1100_s4 + $0x8] sm:$0xff]   ;;  %v859_v38 = vld [vmem:[%s1100_s4 + $0x10] sm:$0xff]  }
  0x44   : > { %776 = vmatpush3.bf16.msra.mxu0 %v855_v34  ;;  %v860_v39 = vld [vmem:[%s1100_s4 + $0x58] sm:$0xff]   ;;  %v862_v41 = vld [vmem:[%s1100_s4 + $0x60] sm:$0xff]   ;;  %v864_v43 = vld [vmem:[%s1100_s4 + $0x68] sm:$0xff]  }
  0x45   : > { %777 = vmatprep.subr.bf16.mxu0 %v856_v35  ;;  %v861_v40 = vld [vmem:[%s1100_s4 + $0x18] sm:$0xff]   ;;  %v863_v42 = vld [vmem:[%s1100_s4 + $0x20] sm:$0xff]   ;;  %v865_v46 = vld [vmem:[%s1100_s4 + $0x28] sm:$0xff]  }
  0x46   : > { %v426_v44 = vld [vmem:[%s1088_s23] sm:$0xff]  ;;  %v866_v47 = vld [vmem:[%s1100_s4 + $0x70] sm:$0xff]  }
  0x47   : > { %v753_v45 = vcombine.high %v426_v44, %v426_v44  ;;  %v867_v48 = vld [vmem:[%s1100_s4 + $0x30] sm:$0xff]   ;;  %v868_v49 = vld [vmem:[%s1100_s4 + $0x78] sm:$0xff]   ;;  %v752_v51 = vcombine.low %v426_v44, %v426_v44 }
  0x48   : > { %778 = vmatpush3.bf16.msra.mxu0 %v857_v36  ;;  %v869_v50 = vld [vmem:[%s1100_s4 + $0x38] sm:$0xff]  }
  0x49   : > { %779 = vmatprep.subr.bf16.mxu0 %v858_v37  ;;  %594 = vmatprep.mubr.bf16.mxu0 %v753_v45  ;;  %v425_v53 = vld [vmem:[#allocation2] sm:$0xff] }
  0x4a   : > { %v771_v60 = vld [vmem:[%s410_s27] ss:$0 sm:$0xff] (!%p770_p13) }
  0x4c   : > { %780 = vmatpush3.bf16.msra.mxu0 %v859_v38 }
  0x4d   : > { %781 = vmatprep.subr.bf16.mxu0 %v860_v39 }
  0x50   : > { %782 = vmatpush3.bf16.msra.mxu0 %v861_v40 }
  0x51   : > { %783 = vmatprep.subr.bf16.mxu0 %v862_v41 }
  0x54   : > { %784 = vmatpush3.bf16.msra.mxu0 %v863_v42 }
  0x55   : > { %785 = vmatprep.subr.bf16.mxu0 %v864_v43 }
  0x58   : > { %786 = vmatpush3.bf16.msra.mxu0 %v865_v46 }
  0x59   : > { %787 = vmatprep.subr.bf16.mxu0 %v866_v47 }
  0x5c   : > { %788 = vmatpush3.bf16.msra.mxu0 %v867_v48 }
  0x5d   : > { %789 = vmatprep.subr.bf16.mxu0 %v868_v49 }
  0x60   : > { %790 = vmatpush3.bf16.msra.mxu0 %v869_v50 }
  0x63   : > { %595 = vmatmul.mubr.bf16.vlgmr.msra.gmra.mrb[0].mxu0 %v752_v51 }
 0x136   : > { %v791_v52 = vpop.f32.mrb[0].mxu0  ;;  %607 = sbr.rel (%p770_p13) target bundleno = 331 (0x14b), region = 81 }
 0x137   : > { %v792_v54 = vpop.f32.mrb[1].mxu0 }
 0x138   : > { %v793_v55 = vadd.f32 %v792_v54, %v791_v52  ;;  %v794_v56 = vpop.f32.mrb[2].mxu0 }
 0x139   : > { %v795_v57 = vpop.f32.mrb[3].mxu0 }
 0x13a   : > { %v602_v58 = vadd.f32 %v793_v55, %v425_v53 }
 0x13c   : > { %603 = vst [vmem:[#allocation2] sm:$0xff] %v602_v58 }
 0x143   : > { %v608_v59 = vld [vmem:[#allocation2] sm:$0xff] }
 0x144   : > { %v616_v61 = vadd.f32 %v771_v60, %v608_v59 }
 0x146   : > { %v617_v62 = vmax.f32 %v616_v61, 0.0 }
 0x148   : > { %v618_v63 = vpack.c.bf16 %v617_v62, %v617_v62 }
 0x14a   : > { %619 = vst [vmem:[%s1098_s30] sm:$0xf] %v618_v63 }
 0x14b PF: > { %s13_s18 = sadd.s32 1, %s926_s18   ;;  %s1152_s12 = smov %s906_s13 }
 0x14c   : > { %p10_p0 = scmp.ge.s32.totalorder %s13_s18, 74   ;;  %s1153_s13 = smov %s1000_s25 }
 0x14d   : > { %s1154_s14 = smov %s918_s16  ;;  %s1155_s15 = smov %s922_s17 }
 0x14e   : > { %s1156_s16 = smov %s1159_s19  ;;  %s1157_s17 = smov %s1163_s20 }
 0x14f   :  { %12 = sbr.rel (!%p10_p0) target bundleno = 4 (0x4), region = 122 }

// kernel: my_resnet_forward.41
= control target key start
LH: loop header
LB: loop body
LE: loop exit
PB: predicated region body
PF: predicated region fallthrough
CT: control target
= control target key end

     0   :  { %vm34_vm0 = vcmask 1043456   ;;  %s778_s0 = inlined_call_operand.vmem [shape: bf16[2,4,512], index: 0, kind: input, shape index: {}]   ;;  %s779_s1 = inlined_call_operand.vmem [shape: bf16[512,128], index: 1, kind: input, shape index: {}]   ;;  %s780_s2 = inlined_call_operand.vmem [shape: f32[1,128], index: 2, kind: input, shape index: {}]   ;;  %s781_s3 = inlined_call_operand.hbm [shape: f32[2,128], index: 3, kind: output, shape index: {}]  }
   0x1   :  { %v572_v0 = vld [vmem:[%s779_s1 + $0x40] sm:$0xff]   ;;  %v576_v4 = vld [vmem:[%s779_s1 + $0x48] sm:$0xff]   ;;  %v580_v8 = vld [vmem:[%s779_s1 + $0x50] sm:$0xff]  }
   0x2   :  { %v573_v1 = vld [vmem:[%s779_s1 + $0xc0] sm:$0xff]   ;;  %527 = vmatprep.subr.bf16.mxu0 %v572_v0  ;;  %v577_v5 = vld [vmem:[%s779_s1 + $0xc8] sm:$0xff]   ;;  %v581_v9 = vld [vmem:[%s779_s1 + $0xd0] sm:$0xff]  }
   0x3   :  { %v574_v2 = vld [vmem:[%s779_s1] sm:$0xff]   ;;  %549 = vmatprep.subr.bf16.mxu1 %v573_v1  ;;  %v578_v6 = vld [vmem:[%s779_s1 + $0x8] sm:$0xff]   ;;  %v582_v10 = vld [vmem:[%s779_s1 + $0x10] sm:$0xff]  }
   0x4   :  { %v575_v3 = vld [vmem:[%s779_s1 + $0x80] sm:$0xff]   ;;  %528 = vmatpush3.bf16.msra.mxu0 %v574_v2  ;;  %v579_v7 = vld [vmem:[%s779_s1 + $0x88] sm:$0xff]   ;;  %v583_v11 = vld [vmem:[%s779_s1 + $0x90] sm:$0xff]  }
   0x5   :  { %550 = vmatpush3.bf16.msra.mxu1 %v575_v3  ;;  %529 = vmatprep.subr.bf16.mxu0 %v576_v4  ;;  %v584_v12 = vld [vmem:[%s779_s1 + $0x58] sm:$0xff]   ;;  %v588_v16 = vld [vmem:[%s779_s1 + $0x60] sm:$0xff]   ;;  %v592_v20 = vld [vmem:[%s779_s1 + $0x68] sm:$0xff]  }
   0x6   :  { %551 = vmatprep.subr.bf16.mxu1 %v577_v5  ;;  %v585_v13 = vld [vmem:[%s779_s1 + $0xd8] sm:$0xff]   ;;  %v589_v17 = vld [vmem:[%s779_s1 + $0xe0] sm:$0xff]   ;;  %v593_v21 = vld [vmem:[%s779_s1 + $0xe8] sm:$0xff]  }
   0x7   :  { %v586_v14 = vld [vmem:[%s779_s1 + $0x18] sm:$0xff]   ;;  %v590_v18 = vld [vmem:[%s779_s1 + $0x20] sm:$0xff]   ;;  %v594_v22 = vld [vmem:[%s779_s1 + $0x28] sm:$0xff]  }
   0x8   :  { %530 = vmatpush3.bf16.msra.mxu0 %v578_v6  ;;  %v587_v15 = vld [vmem:[%s779_s1 + $0x98] sm:$0xff]   ;;  %v591_v19 = vld [vmem:[%s779_s1 + $0xa0] sm:$0xff]   ;;  %v595_v23 = vld [vmem:[%s779_s1 + $0xa8] sm:$0xff]  }
   0x9   :  { %552 = vmatpush3.bf16.msra.mxu1 %v579_v7  ;;  %531 = vmatprep.subr.bf16.mxu0 %v580_v8  ;;  %v596_v24 = vld [vmem:[%s779_s1 + $0x70] sm:$0xff]   ;;  %v600_v28 = vld [vmem:[%s779_s1 + $0x78] sm:$0xff]   ;;  %v16_v32 = vld [vmem:[%s778_s0] sm:$0xff] }
   0xa   :  { %553 = vmatprep.subr.bf16.mxu1 %v581_v9  ;;  %v597_v25 = vld [vmem:[%s779_s1 + $0xf0] sm:$0xff]   ;;  %v601_v29 = vld [vmem:[%s779_s1 + $0xf8] sm:$0xff]   ;;  %v17_v33 = vld [vmem:[%s778_s0 + $0x8] sm:$0xff] }
   0xb   :  { %v598_v26 = vld [vmem:[%s779_s1 + $0x30] sm:$0xff]   ;;  %v602_v30 = vld [vmem:[%s779_s1 + $0x38] sm:$0xff]  }
   0xc   :  { %532 = vmatpush3.bf16.msra.mxu0 %v582_v10  ;;  %v599_v27 = vld [vmem:[%s779_s1 + $0xb0] sm:$0xff]   ;;  %v603_v31 = vld [vmem:[%s779_s1 + $0xb8] sm:$0xff]  }
   0xd   :  { %554 = vmatpush3.bf16.msra.mxu1 %v583_v11  ;;  %533 = vmatprep.subr.bf16.mxu0 %v584_v12 }
   0xe   :  { %555 = vmatprep.subr.bf16.mxu1 %v585_v13 }
  0x10   :  { %534 = vmatpush3.bf16.msra.mxu0 %v586_v14 }
  0x11   :  { %556 = vmatpush3.bf16.msra.mxu1 %v587_v15  ;;  %535 = vmatprep.subr.bf16.mxu0 %v588_v16 }
  0x12   :  { %557 = vmatprep.subr.bf16.mxu1 %v589_v17 }
  0x14   :  { %536 = vmatpush3.bf16.msra.mxu0 %v590_v18 }
  0x15   :  { %558 = vmatpush3.bf16.msra.mxu1 %v591_v19  ;;  %537 = vmatprep.subr.bf16.mxu0 %v592_v20 }
  0x16   :  { %559 = vmatprep.subr.bf16.mxu1 %v593_v21 }
  0x18   :  { %538 = vmatpush3.bf16.msra.mxu0 %v594_v22 }
  0x19   :  { %560 = vmatpush3.bf16.msra.mxu1 %v595_v23  ;;  %539 = vmatprep.subr.bf16.mxu0 %v596_v24 }
  0x1a   :  { %561 = vmatprep.subr.bf16.mxu1 %v597_v25 }
  0x1c   :  { %540 = vmatpush3.bf16.msra.mxu0 %v598_v26 }
  0x1d   :  { %562 = vmatpush3.bf16.msra.mxu1 %v599_v27  ;;  %541 = vmatprep.subr.bf16.mxu0 %v600_v28 }
  0x1e   :  { %563 = vmatprep.subr.bf16.mxu1 %v601_v29 }
  0x20   :  { %542 = vmatpush3.bf16.msra.mxu0 %v602_v30 }
  0x21   :  { %8 = vsyncpa [#allocation3], 0  ;;  %564 = vmatpush3.bf16.msra.mxu1 %v603_v31  ;;  %v18_v34 = vunpack.c.l.bf16 %v16_v32  ;;  %v20_v35 = vunpack.c.l.bf16 %v17_v33  ;;  %v19_v36 = vunpack.c.h.bf16 %v16_v32  ;;  %v21_v37 = vunpack.c.h.bf16 %v17_v33  ;;  %s628_s26 = smov [#allocation2]  }
  0x22   :  { %vm194_vm1 = vcmask 1041409   ;;  %s486_s27 = sshll.u32 %s628_s26, 4  ;;  %s487_s27 = int_to_ptr.vmem [resolvable:$true] %s486_s27 }
  0x23   :  { %v26_v38 = vcombine.high %v18_v34, %v18_v34  ;;  %v28_v39 = vcombine.high %v20_v35, %v20_v35  ;;  %v27_v40 = vcombine.high %v19_v36, %v19_v36  ;;  %v29_v41 = vcombine.high %v21_v37, %v21_v37  ;;  %s604_s28 = scalar_lea.vmem %s487_s27, 32  ;;  %p609_p1 = scmp.lt.s32.totalorder %s487_s27, %s487_s27 }
  0x24   :  { %v35_v42 = vsel %vm34_vm0, %v18_v34, 0.0  ;;  %v63_v43 = vsel %vm34_vm0, %v20_v35, 0.0  ;;  %v49_v44 = vsel %vm34_vm0, %v19_v36, 0.0  ;;  %v77_v45 = vsel %vm34_vm0, %v21_v37, 0.0  ;;  %p605_p0 = scmp.ne.s32.totalorder %s487_s27, %s604_s28  ;;  %p610_p2 = scmp.lt.s32.totalorder %s604_s28, %s604_s28 }
  0x25   :  { %v42_v46 = vsel %vm34_vm0, %v26_v38, 0.0  ;;  %v70_v47 = vsel %vm34_vm0, %v28_v39, 0.0  ;;  %v56_v48 = vsel %vm34_vm0, %v27_v40, 0.0  ;;  %v84_v49 = vsel %vm34_vm0, %v29_v41, 0.0 }
  0x26   :  { %v43_v50 = vrot.slane %v42_v46, 4  ;;  %v71_v51 = vrot.slane %v70_v47, 4  ;;  %v57_v52 = vrot.slane %v56_v48, 4  ;;  %v85_v53 = vrot.slane %v84_v49, 4  ;;  %p611_p3 = por %p610_p2, %p609_p1 }
  0x27   :  { %v36_v54 = vrot.slane %v35_v42, 4  ;;  %v64_v55 = vrot.slane %v63_v43, 4  ;;  %v50_v56 = vrot.slane %v49_v44, 4  ;;  %v78_v57 = vrot.slane %v77_v45, 4 }
  0x28   :  { %v44_v58 = vadd.f32 %v43_v50, %v42_v46  ;;  %v72_v59 = vadd.f32 %v71_v51, %v70_v47  ;;  %v58_v60 = vadd.f32 %v57_v52, %v56_v48  ;;  %v86_v61 = vadd.f32 %v85_v53, %v84_v49  ;;  %p612_p4 = pnand %p611_p3, %p605_p0 }
  0x29   :  { %v37_v62 = vadd.f32 %v36_v54, %v35_v42  ;;  %v65_v63 = vadd.f32 %v64_v55, %v63_v43  ;;  %v51_v0 = vadd.f32 %v50_v56, %v49_v44  ;;  %v79_v1 = vadd.f32 %v78_v57, %v77_v45 }
  0x2a   :  { %v45_v2 = vrot.slane %v44_v58, 2  ;;  %v73_v3 = vrot.slane %v72_v59, 2  ;;  %v59_v4 = vrot.slane %v58_v60, 2  ;;  %v87_v5 = vrot.slane %v86_v61, 2 }
  0x2b   :  { %v38_v6 = vrot.slane %v37_v62, 2  ;;  %v66_v7 = vrot.slane %v65_v63, 2  ;;  %v52_v8 = vrot.slane %v51_v0, 2  ;;  %v80_v9 = vrot.slane %v79_v1, 2 }
  0x2c   :  { %v46_v10 = vadd.f32 %v45_v2, %v44_v58  ;;  %v74_v11 = vadd.f32 %v73_v3, %v72_v59  ;;  %v60_v12 = vadd.f32 %v59_v4, %v58_v60  ;;  %v88_v13 = vadd.f32 %v87_v5, %v86_v61  ;;  %v494_v4 = vld [vmem:[%s780_s2] ss:$0 sm:$0xff] }
  0x2d   :  { %v39_v14 = vadd.f32 %v38_v6, %v37_v62  ;;  %v67_v15 = vadd.f32 %v66_v7, %v65_v63  ;;  %v53_v16 = vadd.f32 %v52_v8, %v51_v0  ;;  %v81_v17 = vadd.f32 %v80_v9, %v79_v1 }
  0x2e   :  { %v47_v18 = vrot.slane %v46_v10, 1  ;;  %v75_v19 = vrot.slane %v74_v11, 1  ;;  %v61_v20 = vrot.slane %v60_v12, 1  ;;  %v89_v21 = vrot.slane %v88_v13, 1 }
  0x2f   :  { %v40_v22 = vrot.slane %v39_v14, 1  ;;  %v68_v23 = vrot.slane %v67_v15, 1  ;;  %v54_v24 = vrot.slane %v53_v16, 1  ;;  %v82_v25 = vrot.slane %v81_v17, 1 }
  0x30   :  { %v48_v26 = vadd.f32 %v47_v18, %v46_v10  ;;  %v76_v27 = vadd.f32 %v75_v19, %v74_v11  ;;  %v62_v28 = vadd.f32 %v61_v20, %v60_v12  ;;  %v90_v29 = vadd.f32 %v89_v21, %v88_v13 }
  0x31   :  { %v41_v30 = vadd.f32 %v40_v22, %v39_v14  ;;  %v69_v31 = vadd.f32 %v68_v23, %v67_v15  ;;  %v55_v32 = vadd.f32 %v54_v24, %v53_v16  ;;  %v83_v33 = vadd.f32 %v82_v25, %v81_v17 }
  0x32   :  { %v92_v34 = vmul.f32 0.25, %v48_v26  ;;  %v96_v35 = vmul.f32 0.25, %v76_v27  ;;  %v94_v36 = vmul.f32 0.25, %v62_v28  ;;  %v98_v37 = vmul.f32 0.25, %v90_v29 }
  0x33   :  { %v91_v38 = vmul.f32 0.25, %v41_v30  ;;  %v95_v39 = vmul.f32 0.25, %v69_v31  ;;  %v93_v40 = vmul.f32 0.25, %v55_v32  ;;  %v97_v41 = vmul.f32 0.25, %v83_v33 }
  0x34   :  { %v100_v42 = vpack.c.bf16 %v92_v34, %v92_v34  ;;  %v104_v43 = vpack.c.bf16 %v96_v35, %v96_v35  ;;  %v102_v44 = vpack.c.bf16 %v94_v36, %v94_v36  ;;  %v106_v45 = vpack.c.bf16 %v98_v37, %v98_v37 }
  0x35   :  { %v99_v46 = vpack.c.bf16 %v91_v38, %v91_v38  ;;  %v103_v47 = vpack.c.bf16 %v95_v39, %v95_v39  ;;  %v101_v48 = vpack.c.bf16 %v93_v40, %v93_v40  ;;  %v105_v49 = vpack.c.bf16 %v97_v41, %v97_v41 }
  0x36   :  { %v187_v50 = vunpack.c.l.b16 %v100_v42  ;;  %v191_v51 = vunpack.c.l.b16 %v104_v43  ;;  %v189_v52 = vunpack.c.l.b16 %v102_v44  ;;  %v193_v53 = vunpack.c.l.b16 %v106_v45 }
  0x37   :  { %v186_v54 = vunpack.c.l.b16 %v99_v46  ;;  %v190_v55 = vunpack.c.l.b16 %v103_v47  ;;  %v188_v56 = vunpack.c.l.b16 %v101_v48  ;;  %v192_v57 = vunpack.c.l.b16 %v105_v49 }
  0x38   :  { %v196_v58 = vsel %vm194_vm1, %v191_v51, %v187_v50  ;;  %v198_v59 = vsel %vm194_vm1, %v193_v53, %v189_v52 }
  0x39   :  { %v200_v60 = vpack.c.b16 %v196_v58, %v196_v58  ;;  %v202_v61 = vpack.c.b16 %v198_v59, %v198_v59  ;;  %v195_v62 = vsel %vm194_vm1, %v190_v55, %v186_v54  ;;  %v197_v63 = vsel %vm194_vm1, %v192_v57, %v188_v56 }
  0x3a   :  { %v199_v0 = vpack.c.b16 %v195_v62, %v195_v62  ;;  %v201_v1 = vpack.c.b16 %v197_v63, %v197_v63 }
  0x3b   :  { %431 = vmatprep.mubr.bf16.mxu0 %v200_v60  ;;  %471 = vmatprep.mubr.bf16.mxu1 %v202_v61 }
  0x3c   :  { %432 = vmatmul.mubr.bf16.vlgmr.msra.gmra.mrb[0].mxu0 %v199_v0  ;;  %472 = vmatmul.mubr.bf16.vlgmr.msra.gmra.mrb[0].mxu1 %v201_v1 }
 0x10f   :  { %v543_v2 = vpop.f32.mrb[0].mxu0  ;;  %v565_v3 = vpop.f32.mrb[0].mxu1 }
 0x110   :  { %v544_v5 = vpop.f32.mrb[1].mxu0  ;;  %v566_v6 = vpop.f32.mrb[1].mxu1 }
 0x111   :  { %v545_v7 = vadd.f32 %v544_v5, %v543_v2  ;;  %v567_v8 = vadd.f32 %v566_v6, %v565_v3  ;;  %v546_v9 = vpop.f32.mrb[2].mxu0  ;;  %v568_v10 = vpop.f32.mrb[2].mxu1 }
 0x112   :  { %v547_v11 = vpop.f32.mrb[3].mxu0  ;;  %v569_v12 = vpop.f32.mrb[3].mxu1 }
 0x113   :  { %v434_v13 = vadd.f32 %v545_v7, %v494_v4 }
 0x115   :  { %v474_v14 = vadd.f32 %v567_v8, %v434_v13 }
 0x117   :  { %479 = vst [vmem:[#allocation2] sm:$0x3] %v474_v14 }
 0x118   :  { %615 = shalt.err (!%p612_p4)
}
 0x119   :  { %s616_s30 = scalar_lea.hbm %s781_s3, 32 }
 0x11a   :  { %p617_p5 = scmp.ne.s32.totalorder %s781_s3, %s616_s30  ;;  %p620_p6 = scmp.lt.u32.totalorder %s616_s30, %s781_s3 }
 0x11c   :  { %p622_p7 = pnand %p620_p6, %p617_p5 }
 0x11e   :  { %625 = shalt.err (!%p622_p7)
}
 0x11f   :  { %489 = dma.vmem_to_hbm [thread:$0]  %s487_s27, 32, %s781_s3, [#allocation3]  }
 0x120   :  { %626 = dma.done.wait [#allocation3], 32  }
 0x121   :  { %627 = vsyncadd [#allocation3], 4294967264 }
 0x122   :  { %493 = vsyncpa [#allocation3], 1 }

</bundles_post_ra>
